<compile_context>
chip_gen: v6e
topology: v6e:2x2x1
jax: 0.10.0
libtpu: 0.0.40
codegen_flags: <defaults>
</compile_context>

<pallas_src>
import jax
import jax.numpy as jnp
from jax.experimental import pallas as pl
from jax.experimental.pallas import tpu as pltpu

H, W = 16, 16          # generated image spatial size -> fc4 outputs H*W = 256
Z_DIM = 100            # noise dimension
N_CLASSES = 10
EPS = 1e-5             # nn.BatchNorm1d default eps


def _vmem_limit_bytes():
    # Generation-aware scoped-VMEM request.  The kernel needs only ~2.2 MiB of
    # bf16 weights plus ~12 KiB/row of f32 activations, so a modest slice of
    # whatever this chip actually has (64 MiB/TC on v7x, 128 MiB on v5e/v6e)
    # is plenty and leaves headroom for the compiler's own buffering.
    try:
        cap = pltpu.get_tpu_info().vmem_capacity_bytes
    except Exception:
        cap = 64 * 1024 * 1024                      # conservative (v7x-sized)
    return min(max(cap // 2, 32 * 1024 * 1024), 48 * 1024 * 1024)


def generator_kernel(
    z_ref,                      # [B, 100]    bf16  noise
    yg_ref,                     # [B, 256]    bf16  W1_2[label] rows (label branch pre-act)
    w11_ref,                    # [100, 256]  bf16  fc1_1 weight
    g11_ref, be11_ref,          # fc1_1_bn gamma/beta   [1, 256]  f32
    g12_ref, be12_ref,          # fc1_2_bn gamma/beta   [1, 256]  f32
    w2a_ref, w2b_ref,           # fc2 weight split      [256, 512] bf16 x2
    g2_ref, be2_ref,            # fc2_bn gamma/beta     [1, 512]  f32
    w3_ref,                     # [512, 1024] bf16
    g3_ref, be3_ref,            # fc3_bn gamma/beta     [1, 1024] f32
    w4_ref, b4_ref,             # fc4 weight/bias       [1024, 256] bf16, [1, 256] f32
    out_ref,                    # [B, 256] f32
):
    def bn_relu(h, gamma_ref, beta_ref):
        # BatchNorm1d, training mode (biased batch stats), single pass:
        # var = E[h^2] - E[h]^2, then one fused scale/shift per element.
        mean = jnp.mean(h, axis=0, keepdims=True)
        msq = jnp.mean(h * h, axis=0, keepdims=True)
        var = jnp.maximum(msq - mean * mean, 0.0)
        scale = gamma_ref[...] * jax.lax.rsqrt(var + EPS)
        shift = beta_ref[...] - mean * scale
        return jnp.maximum(h * scale + shift, 0.0)      # ReLU fused in

    def mm(a, b_ref):
        # bf16 MXU operands, f32 accumulation.
        return jnp.dot(a.astype(jnp.bfloat16), b_ref[...],
                       preferred_element_type=jnp.float32)

    # noise branch: fc1_1 + bn + relu  (pre-BN bias omitted: BN cancels it).
    h1 = bn_relu(mm(z_ref[...], w11_ref), g11_ref, be11_ref)

    # label branch: the one-hot @ W1_2 matmul was replaced by a row gather in
    # the wrapper, so yg_ref already holds the fc1_2 pre-activation (no bias).
    h2 = bn_relu(yg_ref[...].astype(jnp.float32), g12_ref, be12_ref)

    # fc2 over concat([h1, h2], 1)  ==  h1 @ W2[:256] + h2 @ W2[256:]
    h = bn_relu(mm(h1, w2a_ref) + mm(h2, w2b_ref), g2_ref, be2_ref)

    # fc3 + bn + relu
    h = bn_relu(mm(h, w3_ref), g3_ref, be3_ref)

    # fc4 + tanh (bias kept: no BN after it).  Output is lane-dense (256).
    out_ref[...] = jnp.tanh(mm(h, w4_ref) + b4_ref[...])


def init_params(key):
    """PyTorch-Linear-like uniform fan-in init.  Matmul weights are stored in
    bf16 (the kernel's MXU operand dtype); biases / BN affine params are f32.
    BN affine params get non-default values so the affine path is exercised
    (PyTorch init would be gamma=1, beta=0)."""

    def linear(k, fan_in, fan_out):
        kw, kb = jax.random.split(k)
        bound = 1.0 / (fan_in ** 0.5)
        w = jax.random.uniform(kw, (fan_in, fan_out), jnp.float32, -bound, bound)
        b = jax.random.uniform(kb, (1, fan_out), jnp.float32, -bound, bound)
        return w.astype(jnp.bfloat16), b

    def bn_affine(k, n):
        kg, kb = jax.random.split(k)
        gamma = 1.0 + 0.1 * jax.random.normal(kg, (1, n), jnp.float32)
        beta = 0.1 * jax.random.normal(kb, (1, n), jnp.float32)
        return gamma, beta

    ks = jax.random.split(key, 9)
    w11, b11 = linear(ks[0], Z_DIM, 256)
    w12, b12 = linear(ks[1], N_CLASSES, 256)
    w2, b2 = linear(ks[2], 512, 512)
    w3, b3 = linear(ks[3], 512, 1024)
    w4, b4 = linear(ks[4], 1024, H * W)
    g11, be11 = bn_affine(ks[5], 256)
    g12, be12 = bn_affine(ks[6], 256)
    g2, be2 = bn_affine(ks[7], 512)
    g3, be3 = bn_affine(ks[8], 1024)
    # b11/b12/b2/b3 are kept only for the f32 reference: the kernel drops them
    # because BatchNorm's mean subtraction cancels any pre-BN bias exactly.
    return dict(
        w11=w11, b11=b11, g11=g11, be11=be11,
        w12=w12, b12=b12, g12=g12, be12=be12,
        w2a=w2[:256], w2b=w2[256:], b2=b2, g2=g2, be2=be2,
        w3=w3, b3=b3, g3=g3, be3=be3,
        w4=w4, b4=b4,
    )


@jax.jit
def generator_forward(noise, label, params):
    """Generator forward.  `noise` is [B, 100] f32, `label` is a one-hot
    [B, 10] vector (as in the cGAN training loop)."""
    B = noise.shape[0]
    z = noise.astype(jnp.bfloat16)

    # One-hot label matmul -> row gather (exact for one-hot labels): the
    # [B,10] x [10,256] dot would pad K=10 to a full MXU pass for nothing.
    label_idx = jnp.argmax(label, axis=-1)
    y_gather = jnp.take(params["w12"], label_idx, axis=0)        # [B, 256] bf16

    operands = (
        z, y_gather,
        params["w11"], params["g11"], params["be11"],
        params["g12"], params["be12"],
        params["w2a"], params["w2b"], params["g2"], params["be2"],
        params["w3"], params["g3"], params["be3"],
        params["w4"], params["b4"],
    )
    vmem = pl.BlockSpec(memory_space=pltpu.MemorySpace.VMEM)
    return pl.pallas_call(
        generator_kernel,
        out_shape=jax.ShapeDtypeStruct((B, H * W), jnp.float32),
        in_specs=[vmem] * len(operands),
        out_specs=vmem,
        compiler_params=pltpu.CompilerParams(vmem_limit_bytes=_vmem_limit_bytes()),
    )(*operands)


def generator_reference(noise, label, params):
    """Pure-JAX f32 reference of the PyTorch forward (training-mode BN): same
    (bf16-stored) weights upcast to f32, f32 activations end-to-end, the full
    pre-BN biases, the concat form of fc2 and two-pass BN variance."""
    f32 = lambda a: a.astype(jnp.float32)

    def bn(h, gamma, beta):
        mean = jnp.mean(h, axis=0, keepdims=True)
        var = jnp.mean((h - mean) ** 2, axis=0, keepdims=True)
        return (h - mean) * jax.lax.rsqrt(var + EPS) * gamma + beta

    x = jax.nn.relu(bn(f32(noise) @ f32(params["w11"]) + params["b11"],
                       params["g11"], params["be11"]))
    y = jax.nn.relu(bn(f32(label) @ f32(params["w12"]) + params["b12"],
                       params["g12"], params["be12"]))
    h = jnp.concatenate([x, y], axis=1)
    w2 = jnp.concatenate([f32(params["w2a"]), f32(params["w2b"])], axis=0)
    h = jax.nn.relu(bn(h @ w2 + params["b2"], params["g2"], params["be2"]))
    h = jax.nn.relu(bn(h @ f32(params["w3"]) + params["b3"],
                       params["g3"], params["be3"]))
    return jnp.tanh(h @ f32(params["w4"]) + params["b4"])


if __name__ == "__main__":
    key = jax.random.PRNGKey(0)
    k_params, k_noise, k_lbl = jax.random.split(key, 3)

    # Batch >= 128 rows keeps sublane/MXU occupancy sensible (perf review);
    # still small -- f32 activations total ~1.5 MiB at B = 128.
    B = 128
    params = init_params(k_params)
    noise = jax.random.normal(k_noise, (B, Z_DIM), jnp.float32)
    label_idx = jax.random.randint(k_lbl, (B,), 0, N_CLASSES)
    label = jax.nn.one_hot(label_idx, N_CLASSES, dtype=jnp.float32)   # [B, 10]

    out = jax.block_until_ready(generator_forward(noise, label, params))
    ref = generator_reference(noise, label, params)

    assert out.shape == (B, H * W)
    # The kernel uses bf16 MXU operands with f32 accumulation and f32 BN/tanh,
    # while the reference keeps f32 activations end-to-end, so agreement sits
    # at the bf16 rounding floor (max |err| is typically a few 1e-3 on tanh
    # outputs in [-1, 1]).  With f32 operands the same kernel matches to 1e-5.
    assert jnp.allclose(out, ref, atol=1e-2, rtol=0.0), \
        float(jnp.max(jnp.abs(out - ref)))
    print("KERNEL_OK")
</pallas_src>

<mosaic_0001>
module attributes {stable_mosaic.version = 11 : i64} {
  func.func @generator_kernel(%arg0: memref<128x100xbf16, #tpu.memory_space<vmem>>, %arg1: memref<128x256xbf16, #tpu.memory_space<vmem>>, %arg2: memref<100x256xbf16, #tpu.memory_space<vmem>>, %arg3: memref<1x256xf32, #tpu.memory_space<vmem>>, %arg4: memref<1x256xf32, #tpu.memory_space<vmem>>, %arg5: memref<1x256xf32, #tpu.memory_space<vmem>>, %arg6: memref<1x256xf32, #tpu.memory_space<vmem>>, %arg7: memref<256x512xbf16, #tpu.memory_space<vmem>>, %arg8: memref<256x512xbf16, #tpu.memory_space<vmem>>, %arg9: memref<1x512xf32, #tpu.memory_space<vmem>>, %arg10: memref<1x512xf32, #tpu.memory_space<vmem>>, %arg11: memref<512x1024xbf16, #tpu.memory_space<vmem>>, %arg12: memref<1x1024xf32, #tpu.memory_space<vmem>>, %arg13: memref<1x1024xf32, #tpu.memory_space<vmem>>, %arg14: memref<1024x256xbf16, #tpu.memory_space<vmem>>, %arg15: memref<1x256xf32, #tpu.memory_space<vmem>>, %arg16: memref<128x256xf32, #tpu.memory_space<vmem>>) attributes {dimension_semantics = [], scalar_prefetch = 0 : i64, scratch_operands = 0 : i64, tpu.core_type = #tpu.core_type<tc>} {
    %c0 = arith.constant 0 : index
    %c0_0 = arith.constant 0 : index
    %0 = vector.load %arg0[%c0, %c0_0] : memref<128x100xbf16, #tpu.memory_space<vmem>>, vector<128x100xbf16>
    %c0_1 = arith.constant 0 : index
    %c0_2 = arith.constant 0 : index
    %1 = vector.load %arg2[%c0_1, %c0_2] : memref<100x256xbf16, #tpu.memory_space<vmem>>, vector<100x256xbf16>
    %cst = arith.constant dense<0.000000e+00> : vector<128x256xf32>
    %2 = tpu.matmul %0, %1, %cst {dimension_numbers = #tpu.dot_dimension_numbers<[1], [0], [0], [1], [0, 0, 1, 1], [], []>} : vector<128x100xbf16>, vector<100x256xbf16>, vector<128x256xf32> -> vector<128x256xf32>
    %cst_3 = arith.constant dense<0.000000e+00> : vector<256xf32>
    %3 = vector.multi_reduction <add>, %2, %cst_3 [0] : vector<128x256xf32> to vector<256xf32>
    %4 = vector.shape_cast %3 : vector<256xf32> to vector<1x256xf32>
    %cst_4 = arith.constant 1.280000e+02 : f32
    %5 = vector.broadcast %cst_4 : f32 to vector<1x256xf32>
    %6 = arith.divf %4, %5 : vector<1x256xf32>
    %7 = arith.mulf %2, %2 : vector<128x256xf32>
    %cst_5 = arith.constant dense<0.000000e+00> : vector<256xf32>
    %8 = vector.multi_reduction <add>, %7, %cst_5 [0] : vector<128x256xf32> to vector<256xf32>
    %9 = vector.shape_cast %8 : vector<256xf32> to vector<1x256xf32>
    %cst_6 = arith.constant 1.280000e+02 : f32
    %10 = vector.broadcast %cst_6 : f32 to vector<1x256xf32>
    %11 = arith.divf %9, %10 : vector<1x256xf32>
    %12 = arith.mulf %6, %6 : vector<1x256xf32>
    %13 = arith.subf %11, %12 : vector<1x256xf32>
    %cst_7 = arith.constant 0.000000e+00 : f32
    %14 = vector.broadcast %cst_7 : f32 to vector<1x256xf32>
    %15 = arith.maximumf %13, %14 : vector<1x256xf32>
    %c0_8 = arith.constant 0 : index
    %c0_9 = arith.constant 0 : index
    %16 = vector.load %arg3[%c0_8, %c0_9] : memref<1x256xf32, #tpu.memory_space<vmem>>, vector<1x256xf32>
    %cst_10 = arith.constant 9.99999974E-6 : f32
    %17 = vector.broadcast %cst_10 : f32 to vector<1x256xf32>
    %18 = arith.addf %15, %17 : vector<1x256xf32>
    %19 = math.rsqrt %18 : vector<1x256xf32>
    %20 = arith.mulf %16, %19 : vector<1x256xf32>
    %c0_11 = arith.constant 0 : index
    %c0_12 = arith.constant 0 : index
    %21 = vector.load %arg4[%c0_11, %c0_12] : memref<1x256xf32, #tpu.memory_space<vmem>>, vector<1x256xf32>
    %22 = arith.mulf %6, %20 : vector<1x256xf32>
    %23 = arith.subf %21, %22 : vector<1x256xf32>
    %24 = vector.broadcast %20 : vector<1x256xf32> to vector<128x256xf32>
    %25 = arith.mulf %2, %24 : vector<128x256xf32>
    %26 = vector.broadcast %23 : vector<1x256xf32> to vector<128x256xf32>
    %27 = arith.addf %25, %26 : vector<128x256xf32>
    %cst_13 = arith.constant 0.000000e+00 : f32
    %28 = vector.broadcast %cst_13 : f32 to vector<128x256xf32>
    %29 = arith.maximumf %27, %28 : vector<128x256xf32>
    %c0_14 = arith.constant 0 : index
    %c0_15 = arith.constant 0 : index
    %30 = vector.load %arg1[%c0_14, %c0_15] : memref<128x256xbf16, #tpu.memory_space<vmem>>, vector<128x256xbf16>
    %31 = arith.extf %30 : vector<128x256xbf16> to vector<128x256xf32>
    %cst_16 = arith.constant dense<0.000000e+00> : vector<256xf32>
    %32 = vector.multi_reduction <add>, %31, %cst_16 [0] : vector<128x256xf32> to vector<256xf32>
    %33 = vector.shape_cast %32 : vector<256xf32> to vector<1x256xf32>
    %cst_17 = arith.constant 1.280000e+02 : f32
    %34 = vector.broadcast %cst_17 : f32 to vector<1x256xf32>
    %35 = arith.divf %33, %34 : vector<1x256xf32>
    %36 = arith.mulf %31, %31 : vector<128x256xf32>
    %cst_18 = arith.constant dense<0.000000e+00> : vector<256xf32>
    %37 = vector.multi_reduction <add>, %36, %cst_18 [0] : vector<128x256xf32> to vector<256xf32>
    %38 = vector.shape_cast %37 : vector<256xf32> to vector<1x256xf32>
    %cst_19 = arith.constant 1.280000e+02 : f32
    %39 = vector.broadcast %cst_19 : f32 to vector<1x256xf32>
    %40 = arith.divf %38, %39 : vector<1x256xf32>
    %41 = arith.mulf %35, %35 : vector<1x256xf32>
    %42 = arith.subf %40, %41 : vector<1x256xf32>
    %cst_20 = arith.constant 0.000000e+00 : f32
    %43 = vector.broadcast %cst_20 : f32 to vector<1x256xf32>
    %44 = arith.maximumf %42, %43 : vector<1x256xf32>
    %c0_21 = arith.constant 0 : index
    %c0_22 = arith.constant 0 : index
    %45 = vector.load %arg5[%c0_21, %c0_22] : memref<1x256xf32, #tpu.memory_space<vmem>>, vector<1x256xf32>
    %cst_23 = arith.constant 9.99999974E-6 : f32
    %46 = vector.broadcast %cst_23 : f32 to vector<1x256xf32>
    %47 = arith.addf %44, %46 : vector<1x256xf32>
    %48 = math.rsqrt %47 : vector<1x256xf32>
    %49 = arith.mulf %45, %48 : vector<1x256xf32>
    %c0_24 = arith.constant 0 : index
    %c0_25 = arith.constant 0 : index
    %50 = vector.load %arg6[%c0_24, %c0_25] : memref<1x256xf32, #tpu.memory_space<vmem>>, vector<1x256xf32>
    %51 = arith.mulf %35, %49 : vector<1x256xf32>
    %52 = arith.subf %50, %51 : vector<1x256xf32>
    %53 = vector.broadcast %49 : vector<1x256xf32> to vector<128x256xf32>
    %54 = arith.mulf %31, %53 : vector<128x256xf32>
    %55 = vector.broadcast %52 : vector<1x256xf32> to vector<128x256xf32>
    %56 = arith.addf %54, %55 : vector<128x256xf32>
    %cst_26 = arith.constant 0.000000e+00 : f32
    %57 = vector.broadcast %cst_26 : f32 to vector<128x256xf32>
    %58 = arith.maximumf %56, %57 : vector<128x256xf32>
    %59 = arith.truncf %29 : vector<128x256xf32> to vector<128x256xbf16>
    %c0_27 = arith.constant 0 : index
    %c0_28 = arith.constant 0 : index
    %60 = vector.load %arg7[%c0_27, %c0_28] : memref<256x512xbf16, #tpu.memory_space<vmem>>, vector<256x512xbf16>
    %cst_29 = arith.constant dense<0.000000e+00> : vector<128x512xf32>
    %61 = tpu.matmul %59, %60, %cst_29 {dimension_numbers = #tpu.dot_dimension_numbers<[1], [0], [0], [1], [0, 0, 1, 1], [], []>} : vector<128x256xbf16>, vector<256x512xbf16>, vector<128x512xf32> -> vector<128x512xf32>
    %62 = arith.truncf %58 : vector<128x256xf32> to vector<128x256xbf16>
    %c0_30 = arith.constant 0 : index
    %c0_31 = arith.constant 0 : index
    %63 = vector.load %arg8[%c0_30, %c0_31] : memref<256x512xbf16, #tpu.memory_space<vmem>>, vector<256x512xbf16>
    %cst_32 = arith.constant dense<0.000000e+00> : vector<128x512xf32>
    %64 = tpu.matmul %62, %63, %cst_32 {dimension_numbers = #tpu.dot_dimension_numbers<[1], [0], [0], [1], [0, 0, 1, 1], [], []>} : vector<128x256xbf16>, vector<256x512xbf16>, vector<128x512xf32> -> vector<128x512xf32>
    %65 = arith.addf %61, %64 : vector<128x512xf32>
    %cst_33 = arith.constant dense<0.000000e+00> : vector<512xf32>
    %66 = vector.multi_reduction <add>, %65, %cst_33 [0] : vector<128x512xf32> to vector<512xf32>
    %67 = vector.shape_cast %66 : vector<512xf32> to vector<1x512xf32>
    %cst_34 = arith.constant 1.280000e+02 : f32
    %68 = vector.broadcast %cst_34 : f32 to vector<1x512xf32>
    %69 = arith.divf %67, %68 : vector<1x512xf32>
    %70 = arith.mulf %65, %65 : vector<128x512xf32>
    %cst_35 = arith.constant dense<0.000000e+00> : vector<512xf32>
    %71 = vector.multi_reduction <add>, %70, %cst_35 [0] : vector<128x512xf32> to vector<512xf32>
    %72 = vector.shape_cast %71 : vector<512xf32> to vector<1x512xf32>
    %cst_36 = arith.constant 1.280000e+02 : f32
    %73 = vector.broadcast %cst_36 : f32 to vector<1x512xf32>
    %74 = arith.divf %72, %73 : vector<1x512xf32>
    %75 = arith.mulf %69, %69 : vector<1x512xf32>
    %76 = arith.subf %74, %75 : vector<1x512xf32>
    %cst_37 = arith.constant 0.000000e+00 : f32
    %77 = vector.broadcast %cst_37 : f32 to vector<1x512xf32>
    %78 = arith.maximumf %76, %77 : vector<1x512xf32>
    %c0_38 = arith.constant 0 : index
    %c0_39 = arith.constant 0 : index
    %79 = vector.load %arg9[%c0_38, %c0_39] : memref<1x512xf32, #tpu.memory_space<vmem>>, vector<1x512xf32>
    %cst_40 = arith.constant 9.99999974E-6 : f32
    %80 = vector.broadcast %cst_40 : f32 to vector<1x512xf32>
    %81 = arith.addf %78, %80 : vector<1x512xf32>
    %82 = math.rsqrt %81 : vector<1x512xf32>
    %83 = arith.mulf %79, %82 : vector<1x512xf32>
    %c0_41 = arith.constant 0 : index
    %c0_42 = arith.constant 0 : index
    %84 = vector.load %arg10[%c0_41, %c0_42] : memref<1x512xf32, #tpu.memory_space<vmem>>, vector<1x512xf32>
    %85 = arith.mulf %69, %83 : vector<1x512xf32>
    %86 = arith.subf %84, %85 : vector<1x512xf32>
    %87 = vector.broadcast %83 : vector<1x512xf32> to vector<128x512xf32>
    %88 = arith.mulf %65, %87 : vector<128x512xf32>
    %89 = vector.broadcast %86 : vector<1x512xf32> to vector<128x512xf32>
    %90 = arith.addf %88, %89 : vector<128x512xf32>
    %cst_43 = arith.constant 0.000000e+00 : f32
    %91 = vector.broadcast %cst_43 : f32 to vector<128x512xf32>
    %92 = arith.maximumf %90, %91 : vector<128x512xf32>
    %93 = arith.truncf %92 : vector<128x512xf32> to vector<128x512xbf16>
    %c0_44 = arith.constant 0 : index
    %c0_45 = arith.constant 0 : index
    %94 = vector.load %arg11[%c0_44, %c0_45] : memref<512x1024xbf16, #tpu.memory_space<vmem>>, vector<512x1024xbf16>
    %cst_46 = arith.constant dense<0.000000e+00> : vector<128x1024xf32>
    %95 = tpu.matmul %93, %94, %cst_46 {dimension_numbers = #tpu.dot_dimension_numbers<[1], [0], [0], [1], [0, 0, 1, 1], [], []>} : vector<128x512xbf16>, vector<512x1024xbf16>, vector<128x1024xf32> -> vector<128x1024xf32>
    %cst_47 = arith.constant dense<0.000000e+00> : vector<1024xf32>
    %96 = vector.multi_reduction <add>, %95, %cst_47 [0] : vector<128x1024xf32> to vector<1024xf32>
    %97 = vector.shape_cast %96 : vector<1024xf32> to vector<1x1024xf32>
    %cst_48 = arith.constant 1.280000e+02 : f32
    %98 = vector.broadcast %cst_48 : f32 to vector<1x1024xf32>
    %99 = arith.divf %97, %98 : vector<1x1024xf32>
    %100 = arith.mulf %95, %95 : vector<128x1024xf32>
    %cst_49 = arith.constant dense<0.000000e+00> : vector<1024xf32>
    %101 = vector.multi_reduction <add>, %100, %cst_49 [0] : vector<128x1024xf32> to vector<1024xf32>
    %102 = vector.shape_cast %101 : vector<1024xf32> to vector<1x1024xf32>
    %cst_50 = arith.constant 1.280000e+02 : f32
    %103 = vector.broadcast %cst_50 : f32 to vector<1x1024xf32>
    %104 = arith.divf %102, %103 : vector<1x1024xf32>
    %105 = arith.mulf %99, %99 : vector<1x1024xf32>
    %106 = arith.subf %104, %105 : vector<1x1024xf32>
    %cst_51 = arith.constant 0.000000e+00 : f32
    %107 = vector.broadcast %cst_51 : f32 to vector<1x1024xf32>
    %108 = arith.maximumf %106, %107 : vector<1x1024xf32>
    %c0_52 = arith.constant 0 : index
    %c0_53 = arith.constant 0 : index
    %109 = vector.load %arg12[%c0_52, %c0_53] : memref<1x1024xf32, #tpu.memory_space<vmem>>, vector<1x1024xf32>
    %cst_54 = arith.constant 9.99999974E-6 : f32
    %110 = vector.broadcast %cst_54 : f32 to vector<1x1024xf32>
    %111 = arith.addf %108, %110 : vector<1x1024xf32>
    %112 = math.rsqrt %111 : vector<1x1024xf32>
    %113 = arith.mulf %109, %112 : vector<1x1024xf32>
    %c0_55 = arith.constant 0 : index
    %c0_56 = arith.constant 0 : index
    %114 = vector.load %arg13[%c0_55, %c0_56] : memref<1x1024xf32, #tpu.memory_space<vmem>>, vector<1x1024xf32>
    %115 = arith.mulf %99, %113 : vector<1x1024xf32>
    %116 = arith.subf %114, %115 : vector<1x1024xf32>
    %117 = vector.broadcast %113 : vector<1x1024xf32> to vector<128x1024xf32>
    %118 = arith.mulf %95, %117 : vector<128x1024xf32>
    %119 = vector.broadcast %116 : vector<1x1024xf32> to vector<128x1024xf32>
    %120 = arith.addf %118, %119 : vector<128x1024xf32>
    %cst_57 = arith.constant 0.000000e+00 : f32
    %121 = vector.broadcast %cst_57 : f32 to vector<128x1024xf32>
    %122 = arith.maximumf %120, %121 : vector<128x1024xf32>
    %123 = arith.truncf %122 : vector<128x1024xf32> to vector<128x1024xbf16>
    %c0_58 = arith.constant 0 : index
    %c0_59 = arith.constant 0 : index
    %124 = vector.load %arg14[%c0_58, %c0_59] : memref<1024x256xbf16, #tpu.memory_space<vmem>>, vector<1024x256xbf16>
    %cst_60 = arith.constant dense<0.000000e+00> : vector<128x256xf32>
    %125 = tpu.matmul %123, %124, %cst_60 {dimension_numbers = #tpu.dot_dimension_numbers<[1], [0], [0], [1], [0, 0, 1, 1], [], []>} : vector<128x1024xbf16>, vector<1024x256xbf16>, vector<128x256xf32> -> vector<128x256xf32>
    %c0_61 = arith.constant 0 : index
    %c0_62 = arith.constant 0 : index
    %126 = vector.load %arg15[%c0_61, %c0_62] : memref<1x256xf32, #tpu.memory_space<vmem>>, vector<1x256xf32>
    %127 = vector.broadcast %126 : vector<1x256xf32> to vector<128x256xf32>
    %128 = arith.addf %125, %127 : vector<128x256xf32>
    %129 = math.tanh %128 : vector<128x256xf32>
    %c0_63 = arith.constant 0 : index
    %c0_64 = arith.constant 0 : index
    %130 = vector.load %arg16[%c0_63, %c0_64] : memref<128x256xf32, #tpu.memory_space<vmem>>, vector<128x256xf32>
    tpu.vector_store %arg16[%c0_63, %c0_64], %129 {strides = array<i32>} : memref<128x256xf32, #tpu.memory_space<vmem>>, vector<128x256xf32>,
    return
  }
}

</mosaic_0001>

<bundles_post_ra>
// kernel: generator_forward.1
= control target key start
LH: loop header
LB: loop body
LE: loop exit
PB: predicated region body
PF: predicated region fallthrough
CT: control target
= control target key end

     0   :  { %s13559_s0 = inlined_call_operand.vmem [shape: bf16[128,100], index: 0, kind: input, shape index: {}]   ;;  %s13560_s1 = inlined_call_operand.vmem [shape: bf16[128,256], index: 1, kind: input, shape index: {}]   ;;  %s13561_s2 = inlined_call_operand.vmem [shape: bf16[100,256], index: 2, kind: input, shape index: {}]   ;;  %s13562_s3 = inlined_call_operand.vmem [shape: f32[1,256], index: 3, kind: input, shape index: {}]   ;;  %s13563_s4 = inlined_call_operand.vmem [shape: f32[1,256], index: 4, kind: input, shape index: {}]   ;;  %s13564_s5 = inlined_call_operand.vmem [shape: f32[1,256], index: 5, kind: input, shape index: {}]   ;;  %s13565_s6 = inlined_call_operand.vmem [shape: f32[1,256], index: 6, kind: input, shape index: {}]   ;;  %s13566_s7 = inlined_call_operand.vmem [shape: bf16[256,512], index: 7, kind: input, shape index: {}]   ;;  %s13567_s8 = inlined_call_operand.hbm [shape: bf16[256,512], index: 8, kind: input, shape index: {}]   ;;  %s13568_s9 = inlined_call_operand.vmem [shape: f32[1,512], index: 9, kind: input, shape index: {}]   ;;  %s13569_s10 = inlined_call_operand.vmem [shape: f32[1,512], index: 10, kind: input, shape index: {}]   ;;  %s13570_s11 = inlined_call_operand.hbm [shape: bf16[512,1024], index: 11, kind: input, shape index: {}]   ;;  %s13571_s12 = inlined_call_operand.vmem [shape: f32[1,1024], index: 12, kind: input, shape index: {}]   ;;  %s13572_s13 = inlined_call_operand.vmem [shape: f32[1,1024], index: 13, kind: input, shape index: {}]   ;;  %s13573_s14 = inlined_call_operand.vmem [shape: bf16[1024,256], index: 14, kind: input, shape index: {}]   ;;  %s13574_s15 = inlined_call_operand.vmem [shape: f32[1,256], index: 15, kind: input, shape index: {}]   ;;  %s13575_s16 = inlined_call_operand.hbm [shape: f32[128,256], index: 16, kind: output, shape index: {}]  }
   0x1   :  { %13845 = sst [smem:[#allocation138_spill]] %s13559_s0 }
   0x2   :  { %21 = vsyncpa [#allocation3], 0 }
   0x3   :  { %22 = vsyncpa [#allocation6], 0 }
   0x4   :  { %23 = vsyncpa [#allocation4], 0  ;;  %s8958_s21 = smov [#allocation2]  }
   0x5   :  { %s45_s22 = sshll.u32 %s8958_s21, 4  ;;  %s46_s22 = int_to_ptr.vmem [resolvable:$true] %s45_s22 }
   0x6   :  { %s8868_s23 = scalar_lea.vmem %s46_s22, 8192  ;;  %p8873_p1 = scmp.lt.s32.totalorder %s46_s22, %s46_s22 }
   0x7   :  { %p8869_p0 = scmp.ne.s32.totalorder %s46_s22, %s8868_s23  ;;  %p8874_p2 = scmp.lt.s32.totalorder %s8868_s23, %s8868_s23 }
   0x9   :  { %p8875_p3 = por %p8874_p2, %p8873_p1 }
   0xb   :  { %p8876_p4 = pnand %p8875_p3, %p8869_p0 }
   0xd   :  { %8879 = shalt.err (!%p8876_p4)
}
   0xe   :  { %s8959_s24 = smov 256   ;;  %s8960_s25 = smov 16  }
   0xf   :  { %51 = dma.hbm_to_vmem [thread:$0]  %s13567_s8, 8192, %s46_s22, [#allocation3], %s8959_s24, %s8959_s24, %s8960_s25  }
  0x10   :  { %s8961_s28 = smov [#allocation5]  }
  0x11   :  { %s61_s29 = sshll.u32 %s8961_s28, 4  ;;  %s62_s29 = int_to_ptr.vmem [resolvable:$true] %s61_s29 }
  0x12   :  { %s8888_s30 = scalar_lea.vmem %s62_s29, 32768  ;;  %p8893_p6 = scmp.lt.s32.totalorder %s62_s29, %s62_s29 }
  0x13   :  { %p8889_p5 = scmp.ne.s32.totalorder %s62_s29, %s8888_s30  ;;  %p8894_p7 = scmp.lt.s32.totalorder %s8888_s30, %s8888_s30 }
  0x15   :  { %p8895_p8 = por %p8894_p7, %p8893_p6 }
  0x17   :  { %p8896_p9 = pnand %p8895_p8, %p8889_p5 }
  0x19   :  { %8899 = shalt.err (!%p8896_p9)
}
  0x1a   :  { %s8962_s0 = smov 512   ;;  %s8963_s17 = smov 32  }
  0x1b   :  { %67 = dma.hbm_to_vmem [thread:$0]  %s13570_s11, 32768, %s62_s29, [#allocation6], %s8962_s0, %s8962_s0, %s8963_s17  }
  0x1c   :  { %8920 = dma.done.wait [#allocation3], 8192  }
  0x1d   :  { %8921 = vsyncadd [#allocation3], 4294959104 }
  0x1e   :  { %8922 = dma.done.wait [#allocation6], 32768  }
  0x1f   :  { %8923 = vsyncadd [#allocation6], 4294934528  ;;  %v8964_v0 = vmov 0   ;;  %v111_v1 = vld [vmem:[%s13561_s2 + $0x60] sm:$0x33]  ;;  %vm242_vm0 = vcmask 1041408  }
  0x20   :  { %281 = vmatprep.mubr.bf16.mxu0 %v8964_v0  ;;  %v7788_v2 = vcombine.high %v111_v1, %v111_v1  ;;  %v7787_v3 = vcombine.low %v111_v1, %v111_v1  ;;  %v8353_v4 = vld [vmem:[%s13561_s2 + $0x54] ss:$8 sps:$4 sm:$0xff]   ;;  %v8355_v6 = vld [vmem:[%s13561_s2 + $0x50] ss:$8 sps:$4 sm:$0xff]   ;;  %v8356_v7 = vld [vmem:[%s13561_s2 + $0x44] ss:$8 sps:$4 sm:$0xff]  }
  0x21   :  { %v8358_v8 = vld [vmem:[%s13561_s2 + $0x40] ss:$8 sps:$4 sm:$0xff]   ;;  %v8359_v9 = vld [vmem:[%s13561_s2 + $0x34] ss:$8 sps:$4 sm:$0xff]   ;;  %v8361_v10 = vld [vmem:[%s13561_s2 + $0x30] ss:$8 sps:$4 sm:$0xff]  }
  0x22   :  { %7789 = vmatprep.subr.msk.bf16.mxu0 %vm242_vm0, %v7788_v2  ;;  %v244_v5 = vsel %vm242_vm0, %v7787_v3, 0  ;;  %v8362_v11 = vld [vmem:[%s13561_s2 + $0x24] ss:$8 sps:$4 sm:$0xff]   ;;  %v8364_v12 = vld [vmem:[%s13561_s2 + $0x20] ss:$8 sps:$4 sm:$0xff]   ;;  %s13846_s18 = sld [smem:[#allocation138_spill]] }
  0x23   :  { %252 = vmatpush1.bf16.msra.mxu0 %v244_v5  ;;  %v8365_v13 = vld [vmem:[%s13561_s2 + $0x14] ss:$8 sps:$4 sm:$0xff]   ;;  %v8367_v15 = vld [vmem:[%s13561_s2 + $0x10] ss:$8 sps:$4 sm:$0xff]   ;;  %v8368_v17 = vld [vmem:[%s13561_s2 + $0x4] ss:$8 sps:$4 sm:$0xff]  }
  0x24   :  { %253 = vmatprep.subr.bf16.mxu0 %v8353_v4  ;;  %v8379_v14 = vld [vmem:[#allocation2 + $0xe4] ss:$16 sps:$4 sm:$0xff]   ;;  %v8384_v16 = vld [vmem:[#allocation2 + $0xe0] ss:$16 sps:$4 sm:$0xff]   ;;  %v8383_v19 = vld [vmem:[#allocation2 + $0xec] ss:$16 sps:$4 sm:$0xff]  }
  0x25   :  { %1471 = vmatprep.subr.bf16.mxu1 %v8379_v14  ;;  %v8370_v18 = vld [vmem:[%s13561_s2] ss:$8 sps:$4 sm:$0xff]   ;;  %vm217_vm1 = vcmask 818176   ;;  %v9142_v32 = vld [vmem:[%s13560_s1 + $0x10] sm:$0xff]  ;;  %v9157_v37 = vld [vmem:[%s13560_s1 + $0x18] sm:$0xff] }
  0x26   :  { %1472 = vmatpush1.bf16.msra.mxu1 %v8384_v16  ;;  %v8381_v21 = vld [vmem:[#allocation2 + $0xe8] ss:$16 sps:$4 sm:$0xff]   ;;  %v9128_v26 = vld [vmem:[%s13560_s1] sm:$0xff]  ;;  %v673_v33 = vunpack.c.l.bf16 %v9142_v32  ;;  %v674_v34 = vunpack.c.h.bf16 %v9142_v32  ;;  %v675_v38 = vunpack.c.l.bf16 %v9157_v37  ;;  %v676_v39 = vunpack.c.h.bf16 %v9157_v37  ;;  %v9201_v53 = vld [vmem:[%s13560_s1 + $0x30] sm:$0xff] }
  0x27   :  { %254 = vmatpush1.bf16.msra.mxu0 %v8355_v6  ;;  %v9133_v27 = vld [vmem:[%s13560_s1 + $0x8] sm:$0xff]  ;;  %v669_v28 = vunpack.c.l.bf16 %v9128_v26  ;;  %v670_v29 = vunpack.c.h.bf16 %v9128_v26  ;;  %v9169_v42 = vld [vmem:[%s13560_s1 + $0x20] sm:$0xff]  ;;  %8926 = vmul.bf16.f32.vacc0 %v9128_v26, %v9128_v26  ;;  %v681_v54 = vunpack.c.l.bf16 %v9201_v53  ;;  %v9214_v58 = vld [vmem:[%s13560_s1 + $0x38] sm:$0xff] }
  0x28   :  { %255 = vmatprep.subr.bf16.mxu0 %v8356_v7  ;;  %v8371_v20 = vld [vmem:[%s13846_s18] sm:$0xff]   ;;  %v8372_v22 = vld [vmem:[%s13846_s18 + $0x8] sm:$0xff]   ;;  %v8373_v23 = vld [vmem:[%s13846_s18 + $0x10] sm:$0xff]   ;;  %v671_v30 = vunpack.c.l.bf16 %v9133_v27  ;;  %v672_v31 = vunpack.c.h.bf16 %v9133_v27  ;;  %8927 = vmac.bf16.f32.vacc0 %v9133_v27, %v9133_v27  ;;  %v677_v43 = vunpack.c.l.bf16 %v9169_v42 }
  0x29   :  { %v8374_v24 = vld [vmem:[%s13846_s18 + $0x18] sm:$0xff]   ;;  %v8375_v25 = vld [vmem:[%s13846_s18 + $0x20] sm:$0xff]   ;;  %v678_v44 = vunpack.c.h.bf16 %v9169_v42  ;;  %v8376_v47 = vld [vmem:[%s13846_s18 + $0x28] sm:$0xff]   ;;  %8928 = vmac.bf16.f32.vacc0 %v9142_v32, %v9142_v32  ;;  %v682_v55 = vunpack.c.h.bf16 %v9201_v53  ;;  %v683_v59 = vunpack.c.l.bf16 %v9214_v58 }
  0x2a   :  { %v701_v35 = vadd.f32 %v671_v30, %v669_v28  ;;  %v722_v36 = vadd.f32 %v672_v31, %v670_v29  ;;  %v9188_v48 = vld [vmem:[%s13560_s1 + $0x28] sm:$0xff]  ;;  %8929 = vmac.bf16.f32.vacc0 %v9157_v37, %v9157_v37  ;;  %v684_v60 = vunpack.c.h.bf16 %v9214_v58  ;;  %v9228_v63 = vld [vmem:[%s13560_s1 + $0x40] sm:$0xff]  ;;  %v8377_v5 = vld [vmem:[%s13846_s18 + $0x30] sm:$0xff]  }
  0x2b   :  { %256 = vmatpush1.bf16.msra.mxu0 %v8358_v8  ;;  %v679_v49 = vunpack.c.l.bf16 %v9188_v48  ;;  %v680_v50 = vunpack.c.h.bf16 %v9188_v48  ;;  %8930 = vmac.bf16.f32.vacc0 %v9169_v42, %v9169_v42  ;;  %v685_v1 = vunpack.c.l.bf16 %v9228_v63  ;;  %v9245_v6 = vld [vmem:[%s13560_s1 + $0x48] sm:$0xff]  ;;  %v9271_v16 = vld [vmem:[%s13560_s1 + $0x58] sm:$0xff] }
  0x2c   :  { %257 = vmatprep.subr.bf16.mxu0 %v8359_v9  ;;  %v702_v40 = vadd.f32 %v701_v35, %v673_v33  ;;  %v723_v41 = vadd.f32 %v722_v36, %v674_v34  ;;  %8931 = vmac.bf16.f32.vacc0 %v9188_v48, %v9188_v48  ;;  %v686_v2 = vunpack.c.h.bf16 %v9228_v63  ;;  %v8378_v35 = vld [vmem:[%s13846_s18 + $0x38] sm:$0xff]   ;;  %v9302_v36 = vld [vmem:[%s13560_s1 + $0x68] sm:$0xff] }
  0x2d   :  { %8932 = vmac.bf16.f32.vacc0 %v9201_v53, %v9201_v53  ;;  %v687_v7 = vunpack.c.l.bf16 %v9245_v6  ;;  %v688_v8 = vunpack.c.h.bf16 %v9245_v6  ;;  %v8480_v37 = vld [vmem:[%s13566_s7 + $0xec] ss:$16 sps:$4 sm:$0xff]  }
  0x2e   :  { %v703_v45 = vadd.f32 %v702_v40, %v675_v38  ;;  %v724_v46 = vadd.f32 %v723_v41, %v676_v39  ;;  %8933 = vmac.bf16.f32.vacc0 %v9214_v58, %v9214_v58  ;;  %v13583_v40 = vunpack.c.h.bf16 %v9302_v36 }
  0x2f   :  { %258 = vmatpush1.bf16.msra.mxu0 %v8361_v10  ;;  %8934 = vmac.bf16.f32.vacc0 %v9228_v63, %v9228_v63 }
  0x30   :  { %259 = vmatprep.subr.bf16.mxu0 %v8362_v11  ;;  %v704_v51 = vadd.f32 %v703_v45, %v677_v43  ;;  %v725_v52 = vadd.f32 %v724_v46, %v678_v44  ;;  %v9258_v11 = vld [vmem:[%s13560_s1 + $0x50] sm:$0xff]  ;;  %8935 = vmac.bf16.f32.vacc0 %v9245_v6, %v9245_v6 }
  0x31   :  { %8936 = vmac.bf16.f32.vacc0 %v9258_v11, %v9258_v11  ;;  %v9315_v46 = vld [vmem:[%s13560_s1 + $0x70] sm:$0xff] }
  0x32   :  { %v705_v56 = vadd.f32 %v704_v51, %v679_v49  ;;  %v726_v57 = vadd.f32 %v725_v52, %v680_v50  ;;  %8937 = vmac.bf16.f32.vacc0 %v9271_v16, %v9271_v16  ;;  %v13580_v51 = vunpack.c.h.bf16 %v9315_v46 }
  0x33   :  { %260 = vmatpush1.bf16.msra.mxu0 %v8364_v12  ;;  %v13586_v12 = vunpack.c.l.bf16 %v9258_v11 }
  0x34   :  { %261 = vmatprep.subr.bf16.mxu0 %v8365_v13  ;;  %v706_v61 = vadd.f32 %v705_v56, %v681_v54  ;;  %v727_v62 = vadd.f32 %v726_v57, %v682_v55  ;;  %v690_v13 = vunpack.c.h.bf16 %v9258_v11  ;;  %v9328_v57 = vld [vmem:[%s13560_s1 + $0x78] sm:$0xff] }
  0x36   :  { %v707_v3 = vadd.f32 %v706_v61, %v683_v59  ;;  %v728_v4 = vadd.f32 %v727_v62, %v684_v60  ;;  %v13577_v61 = vunpack.c.l.bf16 %v9328_v57  ;;  %v13579_v62 = vunpack.c.h.bf16 %v9328_v57 }
  0x37   :  { %262 = vmatpush1.bf16.msra.mxu0 %v8367_v15 }
  0x38   :  { %263 = vmatprep.subr.bf16.mxu0 %v8368_v17  ;;  %v708_v9 = vadd.f32 %v707_v3, %v685_v1  ;;  %v729_v10 = vadd.f32 %v728_v4, %v686_v2  ;;  %v13585_v17 = vunpack.c.l.bf16 %v9271_v16 }
  0x3a   :  { %v709_v14 = vadd.f32 %v708_v9, %v687_v7  ;;  %v730_v15 = vadd.f32 %v729_v10, %v688_v8 }
  0x3b   :  { %264 = vmatpush1.bf16.msra.mxu0 %v8370_v18  ;;  %v13587_v18 = vunpack.c.h.bf16 %v9271_v16 }
  0x3c   :  { %1584 = vmatprep.subr.bf16.mxu0 %v8383_v19  ;;  %v710_v19 = vadd.f32 %v709_v14, %v13586_v12 }
  0x3e   :  { %7790 = vmatmul.mubr.msk.bf16.vlgmr.msra.gmra.mxu0 %vm217_vm1, %v8371_v20  ;;  %v731_v20 = vadd.f32 %v730_v15, %v690_v13 }
  0x3f   :  { %291 = vmatprep.mubr.bf16.mxu0 %v8964_v0  ;;  %1585 = vmatpush1.bf16.msra.mxu0 %v8381_v21  ;;  %v9285_v21 = vld [vmem:[%s13560_s1 + $0x60] sm:$0xff] }
  0x40   :  { %8938 = vmac.bf16.f32.vacc0 %v9285_v21, %v9285_v21 }
  0x41   :  { %8939 = vmac.bf16.f32.vacc0 %v9302_v36, %v9302_v36 }
  0x42   :  { %8940 = vmac.bf16.f32.vacc0 %v9315_v46, %v9315_v46 }
  0x43   :  { %8941 = vmac.bf16.f32.vacc0 %v9328_v57, %v9328_v57 }
  0x45   :  { %v8942_v15 = vmovacc.add.low.vacc0 }
  0x46   :  { %7791 = vmatmul.mubr.msk.bf16.gmra.mxu0 %vm217_vm1, %v8372_v22  ;;  %v13582_v22 = vunpack.c.l.bf16 %v9285_v21 }
  0x47   :  { %301 = vmatprep.mubr.bf16.mxu0 %v8964_v0 }
  0x4e   :  { %7792 = vmatmul.mubr.msk.bf16.gmra.mxu0 %vm217_vm1, %v8373_v23  ;;  %v13584_v23 = vunpack.c.h.bf16 %v9285_v21 }
  0x4f   :  { %311 = vmatprep.mubr.bf16.mxu0 %v8964_v0 }
  0x56   :  { %7793 = vmatmul.mubr.msk.bf16.gmra.mxu0 %vm217_vm1, %v8374_v24  ;;  %v711_v24 = vadd.f32 %v710_v19, %v13585_v17  ;;  %v8943_v19 = vmovacc.add.high.vacc0 }
  0x57   :  { %321 = vmatprep.mubr.bf16.mxu0 %v8964_v0 }
  0x58   :  { %v712_v41 = vadd.f32 %v711_v24, %v13582_v22  ;;  %v8945_v24 = vcombine.high %v8942_v15, %v8943_v19 }
  0x5e   :  { %7794 = vmatmul.mubr.msk.bf16.gmra.mxu0 %vm217_vm1, %v8375_v25  ;;  %v732_v25 = vadd.f32 %v731_v20, %v13587_v18  ;;  %v8944_v20 = vcombine.low %v8942_v15, %v8943_v19 }
  0x5f   :  { %331 = vmatprep.mubr.bf16.mxu0 %v8964_v0 }
  0x60   :  { %v733_v45 = vadd.f32 %v732_v25, %v13584_v23  ;;  %v8965_v25 = vmov 1935823168   ;;  %v8390_v23 = vld [vmem:[#allocation2 + $0xc0] ss:$16 sps:$4 sm:$0xff]  }
  0x62   :  { %v734_v56 = vadd.f32 %v733_v45, %v13583_v40  ;;  %v8948_v45 = vlaneseq  ;;  %v8387_v40 = vld [vmem:[#allocation2 + $0xc8] ss:$16 sps:$4 sm:$0xff]  }
  0x64   :  { %v735_v4 = vadd.f32 %v734_v56, %v13580_v51  ;;  %v8389_v51 = vld [vmem:[#allocation2 + $0xcc] ss:$16 sps:$4 sm:$0xff]  }
  0x65   :  { %1586 = vmatprep.subr.bf16.mxu0 %v8389_v51  ;;  %v8399_v51 = vld [vmem:[#allocation2 + $0x88] ss:$16 sps:$4 sm:$0xff]  }
  0x66   :  { %7795 = vmatmul.mubr.msk.bf16.gmra.mxu0 %vm217_vm1, %v8376_v47  ;;  %v13578_v47 = vunpack.c.l.bf16 %v9315_v46  ;;  %v736_v9 = vadd.f32 %v735_v4, %v13579_v62  ;;  %v8385_v62 = vld [vmem:[#allocation2 + $0xc4] ss:$16 sps:$4 sm:$0xff]  }
  0x67   :  { %341 = vmatprep.mubr.bf16.mxu0 %v8964_v0  ;;  %1473 = vmatprep.subr.bf16.mxu1 %v8385_v62 }
  0x68   :  { %v737_v14 = vrot.slane %v736_v9, 4  ;;  %1474 = vmatpush1.bf16.msra.mxu1 %v8390_v23  ;;  %1587 = vmatpush1.bf16.msra.mxu0 %v8387_v40  ;;  %v8397_v23 = vld [vmem:[#allocation2 + $0x84] ss:$16 sps:$4 sm:$0xff]   ;;  %v8401_v40 = vld [vmem:[#allocation2 + $0x8c] ss:$16 sps:$4 sm:$0xff]  }
  0x6e   :  { %7796 = vmatmul.mubr.msk.bf16.gmra.mxu0 %vm217_vm1, %v8377_v5 }
  0x6f   :  { %351 = vmatprep.mubr.bf16.mxu0 %v8964_v0  ;;  %v13581_v0 = vunpack.c.l.bf16 %v9302_v36 }
  0x71   :  { %v713_v52 = vadd.f32 %v712_v41, %v13581_v0 }
  0x73   :  { %v714_v3 = vadd.f32 %v713_v52, %v13578_v47  ;;  %v9349_v52 = vshrl.u32 %v8948_v45, 7  ;;  %v738_v47 = vadd.f32 %v737_v14, %v736_v9  ;;  %v8396_v14 = vld [vmem:[#allocation2 + $0xa0] ss:$16 sps:$4 sm:$0xff]  }
  0x75   :  { %v715_v5 = vadd.f32 %v714_v3, %v13577_v61  ;;  %13847 = vst [vmem:[#allocation11_spill] sm:$0xff] %v9349_v52  ;;  %v739_v15 = vrot.slane %v738_v47, 2 }
  0x76   :  { %7797 = vmatmul.mubr.msk.bf16.gmra.mxu0 %vm217_vm1, %v8378_v35  ;;  %v8946_v35 = vunpack.c.l.s4 %v8965_v25 }
  0x77   :  { %v716_v10 = vrot.slane %v715_v5, 4 }
  0x78   :  { %v8947_v41 = vunpack.c.0.s8 %v8946_v35 }
  0x79   :  { %v717_v61 = vadd.f32 %v716_v10, %v715_v5  ;;  %v8393_v10 = vld [vmem:[#allocation2 + $0xa8] ss:$16 sps:$4 sm:$0xff]  }
  0x7a   :  { %v8950_v56 = vsub.s32 %v8947_v41, %v9349_v52  ;;  %v740_v41 = vadd.f32 %v739_v15, %v738_v47 }
  0x7b   :  { %v718_v17 = vrot.slane %v717_v61, 2 }
  0x7c   :  { %v8951_v3 = vrot.slane %v8944_v20, %v8950_v56  ;;  %v8957_v4 = vrot.slane %v8945_v24, %v8950_v56  ;;  %v8391_v20 = vld [vmem:[#allocation2 + $0xa4] ss:$16 sps:$4 sm:$0xff]   ;;  %v8395_v24 = vld [vmem:[#allocation2 + $0xac] ss:$16 sps:$4 sm:$0xff]   ;;  %v741_v56 = vrot.slane %v740_v41, 1 }
  0x7d   :  { %v719_v35 = vadd.f32 %v718_v17, %v717_v61  ;;  %1475 = vmatprep.subr.bf16.mxu1 %v8391_v20  ;;  %1588 = vmatprep.subr.bf16.mxu0 %v8395_v24  ;;  %v8402_v61 = vld [vmem:[#allocation2 + $0x80] ss:$16 sps:$4 sm:$0xff]  }
  0x7e   :  { %v792_v0 = vrot.slane %v8951_v3, 4  ;;  %v813_v22 = vrot.slane %v8957_v4, 4  ;;  %1476 = vmatpush1.bf16.msra.mxu1 %v8396_v14  ;;  %1589 = vmatpush1.bf16.msra.mxu0 %v8393_v10 }
  0x7f   :  { %v720_v45 = vrot.slane %v719_v35, 1  ;;  %1477 = vmatprep.subr.bf16.mxu1 %v8397_v23  ;;  %1590 = vmatprep.subr.bf16.mxu0 %v8401_v40 }
  0x80   :  { %v793_v19 = vadd.f32 %v8951_v3, %v792_v0  ;;  %v814_v25 = vadd.f32 %v8957_v4, %v813_v22  ;;  %v742_v22 = vadd.f32 %v741_v56, %v740_v41  ;;  %v8407_v41 = vld [vmem:[#allocation2 + $0x6c] ss:$16 sps:$4 sm:$0xff]  }
  0x81   :  { %v721_v0 = vadd.f32 %v720_v45, %v719_v35  ;;  %v8403_v35 = vld [vmem:[#allocation2 + $0x64] ss:$16 sps:$4 sm:$0xff]  }
  0x82   :  { %v794_v5 = vrot.slane %v793_v19, 2  ;;  %v815_v9 = vrot.slane %v814_v25, 2  ;;  %v9354_v3 = vmul.f32 0.0078125, %v742_v22  ;;  %1478 = vmatpush1.bf16.msra.mxu1 %v8402_v61  ;;  %1591 = vmatpush1.bf16.msra.mxu0 %v8399_v51  ;;  %v8414_v22 = vld [vmem:[#allocation2 + $0x40] ss:$16 sps:$4 sm:$0xff]  }
  0x83   :  { %v9352_v62 = vmul.f32 0.0078125, %v721_v0  ;;  %1479 = vmatprep.subr.bf16.mxu1 %v8403_v35  ;;  %1592 = vmatprep.subr.bf16.mxu0 %v8407_v41  ;;  %v8411_v0 = vld [vmem:[#allocation2 + $0x48] ss:$16 sps:$4 sm:$0xff]   ;;  %v8420_v61 = vld [vmem:[#allocation2 + $0x20] ss:$16 sps:$4 sm:$0xff]  }
  0x84   :  { %v795_v12 = vadd.f32 %v794_v5, %v793_v19  ;;  %v816_v18 = vadd.f32 %v815_v9, %v814_v25  ;;  %v822_v25 = vmul.f32 %v9354_v3, %v9354_v3  ;;  %v8405_v5 = vld [vmem:[#allocation2 + $0x68] ss:$16 sps:$4 sm:$0xff]   ;;  %v8408_v9 = vld [vmem:[#allocation2 + $0x60] ss:$16 sps:$4 sm:$0xff]   ;;  %v8427_v35 = vld [vmem:[#allocation2 + $0x1e4] ss:$16 sps:$4 sm:$0xff]  }
  0x85   :  { %v821_v19 = vmul.f32 %v9352_v62, %v9352_v62  ;;  %v8417_v51 = vld [vmem:[#allocation2 + $0x28] ss:$16 sps:$4 sm:$0xff]   ;;  %v8431_v41 = vld [vmem:[#allocation2 + $0x1ec] ss:$16 sps:$4 sm:$0xff]  }
  0x86   :  { %v796_v17 = vrot.slane %v795_v12, 1  ;;  %v817_v47 = vrot.slane %v816_v18, 1  ;;  %1480 = vmatpush1.bf16.msra.mxu1 %v8408_v9  ;;  %1593 = vmatpush1.bf16.msra.mxu0 %v8405_v5  ;;  %v8966_v5 = vmov 1966171168  }
  0x87   :  { %v498_v9 = vunpack.c.l.s4 %v8966_v5 }
  0x88   :  { %v797_v4 = vadd.f32 %v796_v17, %v795_v12  ;;  %v818_v15 = vadd.f32 %v817_v47, %v816_v18  ;;  %v8409_v12 = vld [vmem:[#allocation2 + $0x44] ss:$16 sps:$4 sm:$0xff]   ;;  %v8413_v18 = vld [vmem:[#allocation2 + $0x4c] ss:$16 sps:$4 sm:$0xff]  }
  0x89   :  { %1481 = vmatprep.subr.bf16.mxu1 %v8409_v12  ;;  %1594 = vmatprep.subr.bf16.mxu0 %v8413_v18  ;;  %v8415_v17 = vld [vmem:[#allocation2 + $0x24] ss:$16 sps:$4 sm:$0xff]   ;;  %v8419_v47 = vld [vmem:[#allocation2 + $0x2c] ss:$16 sps:$4 sm:$0xff]  }
  0x8a   :  { %v819_v20 = vmul.f32 0.0078125, %v797_v4  ;;  %v820_v24 = vmul.f32 0.0078125, %v818_v15  ;;  %1482 = vmatpush1.bf16.msra.mxu1 %v8414_v22  ;;  %1595 = vmatpush1.bf16.msra.mxu0 %v8411_v0  ;;  %v8421_v4 = vld [vmem:[#allocation2 + $0x4] ss:$16 sps:$4 sm:$0xff]   ;;  %v8425_v15 = vld [vmem:[#allocation2 + $0xc] ss:$16 sps:$4 sm:$0xff]  }
  0x8b   :  { %1483 = vmatprep.subr.bf16.mxu1 %v8415_v17  ;;  %1596 = vmatprep.subr.bf16.mxu0 %v8419_v47  ;;  %v8437_v12 = vld [vmem:[#allocation2 + $0x1cc] ss:$16 sps:$4 sm:$0xff]   ;;  %v8441_v47 = vld [vmem:[#allocation2 + $0x1a8] ss:$16 sps:$4 sm:$0xff]  }
  0x8c   :  { %v823_v10 = vsub.f32 %v819_v20, %v821_v19  ;;  %v824_v14 = vsub.f32 %v820_v24, %v822_v25  ;;  %v8423_v19 = vld [vmem:[#allocation2 + $0x8] ss:$16 sps:$4 sm:$0xff]   ;;  %v8426_v25 = vld [vmem:[#allocation2] ss:$16 sps:$4 sm:$0xff]   ;;  %v8443_v17 = vld [vmem:[#allocation2 + $0x1ac] ss:$16 sps:$4 sm:$0xff]  }
  0x8d   :  { %v8429_v20 = vld [vmem:[#allocation2 + $0x1e8] ss:$16 sps:$4 sm:$0xff]   ;;  %v8432_v24 = vld [vmem:[#allocation2 + $0x1e0] ss:$16 sps:$4 sm:$0xff]  }
  0x8e   :  { %v825_v45 = vmax.f32 %v823_v10, 0.0  ;;  %v826_v56 = vmax.f32 %v824_v14, 0.0  ;;  %1484 = vmatpush1.bf16.msra.mxu1 %v8420_v61  ;;  %1597 = vmatpush1.bf16.msra.mxu0 %v8417_v51  ;;  %v499_v10 = vunpack.c.0.s8 %v498_v9  ;;  %v8433_v14 = vld [vmem:[#allocation2 + $0x1c4] ss:$16 sps:$4 sm:$0xff]   ;;  %v8444_v51 = vld [vmem:[#allocation2 + $0x1a0] ss:$16 sps:$4 sm:$0xff]  }
  0x8f   :  { %1485 = vmatprep.subr.bf16.mxu1 %v8421_v4  ;;  %1598 = vmatprep.subr.bf16.mxu0 %v8425_v15  ;;  %v827_v4 = vld [vmem:[%s13564_s5] sm:$0x3]  ;;  %v9368_v15 = vsub.s32 0, %v9349_v52 }
  0x90   :  { %v828_v23 = vadd.f32 1e-05, %v825_v45  ;;  %v829_v40 = vadd.f32 1e-05, %v826_v56  ;;  %v8435_v45 = vld [vmem:[#allocation2 + $0x1c8] ss:$16 sps:$4 sm:$0xff]   ;;  %v9361_v0 = vsub.s32 %v499_v10, %v9349_v52 }
  0x91   :  { %v8438_v56 = vld [vmem:[#allocation2 + $0x1c0] ss:$16 sps:$4 sm:$0xff]   ;;  %13849 = vst [vmem:[#allocation13_spill] sm:$0xff] %v9368_v15 }
  0x92   :  { %8763 = vrsqrt.f32 %v828_v23  ;;  %1486 = vmatpush1.bf16.msra.mxu1 %v8426_v25  ;;  %1599 = vmatpush1.bf16.msra.mxu0 %v8423_v19  ;;  %13848 = vst [vmem:[#allocation12_spill] sm:$0xff] %v9361_v0  ;;  %v9371_v19 = vsub.s32 1, %v9349_v52 }
  0x93   :  { %8765 = vrsqrt.f32 %v829_v40  ;;  %1487 = vmatprep.subr.bf16.mxu1 %v8427_v35  ;;  %1600 = vmatprep.subr.bf16.mxu0 %v8431_v41  ;;  %v8439_v40 = vld [vmem:[#allocation2 + $0x1a4] ss:$16 sps:$4 sm:$0xff]   ;;  %v8449_v41 = vld [vmem:[#allocation2 + $0x18c] ss:$16 sps:$4 sm:$0xff]  }
  0x94   :  { %13850 = vst [vmem:[#allocation14_spill] sm:$0xff] %v9371_v19  ;;  %v8445_v35 = vld [vmem:[#allocation2 + $0x184] ss:$16 sps:$4 sm:$0xff]  }
  0x96   :  { %1488 = vmatpush2.bf16.msra.mxu1 %v8432_v24  ;;  %1601 = vmatpush2.bf16.msra.mxu0 %v8429_v20  ;;  %v8447_v20 = vld [vmem:[#allocation2 + $0x188] ss:$16 sps:$4 sm:$0xff]   ;;  %v8450_v24 = vld [vmem:[#allocation2 + $0x180] ss:$16 sps:$4 sm:$0xff]  }
  0x97   :  { %1489 = vmatprep.subr.bf16.mxu1 %v8433_v14  ;;  %1602 = vmatprep.subr.bf16.mxu0 %v8437_v12  ;;  %v8451_v14 = vld [vmem:[#allocation2 + $0x164] ss:$16 sps:$4 sm:$0xff]   ;;  %v8455_v12 = vld [vmem:[#allocation2 + $0x16c] ss:$16 sps:$4 sm:$0xff]  }
  0x9a   :  { %1490 = vmatpush2.bf16.msra.mxu1 %v8438_v56  ;;  %1603 = vmatpush2.bf16.msra.mxu0 %v8435_v45  ;;  %v8456_v45 = vld [vmem:[#allocation2 + $0x160] ss:$16 sps:$4 sm:$0xff]  }
  0x9b   :  { %1491 = vmatprep.subr.bf16.mxu1 %v8439_v40  ;;  %1604 = vmatprep.subr.bf16.mxu0 %v8443_v17  ;;  %v8457_v40 = vld [vmem:[#allocation2 + $0x144] ss:$16 sps:$4 sm:$0xff]   ;;  %v8461_v17 = vld [vmem:[#allocation2 + $0x14c] ss:$16 sps:$4 sm:$0xff]  }
  0x9e   :  { %1492 = vmatpush2.bf16.msra.mxu1 %v8444_v51  ;;  %1605 = vmatpush2.bf16.msra.mxu0 %v8441_v47  ;;  %v8459_v47 = vld [vmem:[#allocation2 + $0x148] ss:$16 sps:$4 sm:$0xff]   ;;  %v8462_v51 = vld [vmem:[#allocation2 + $0x140] ss:$16 sps:$4 sm:$0xff]  }
  0x9f   :  { %v8764_v18 = vpop.eup %8763  ;;  %1493 = vmatprep.subr.bf16.mxu1 %v8445_v35  ;;  %1606 = vmatprep.subr.bf16.mxu0 %v8449_v41  ;;  %v8465_v35 = vld [vmem:[#allocation2 + $0x128] ss:$16 sps:$4 sm:$0xff]   ;;  %v8468_v41 = vld [vmem:[#allocation2 + $0x120] ss:$16 sps:$4 sm:$0xff]  }
  0xa0   :  { %v8766_v22 = vpop.eup %8765 }
  0xa1   :  { %v834_v23 = vcombine.low %v8764_v18, %v8766_v22  ;;  %v8453_v18 = vld [vmem:[#allocation2 + $0x168] ss:$16 sps:$4 sm:$0xff]  }
  0xa2   :  { %1494 = vmatpush2.bf16.msra.mxu1 %v8450_v24  ;;  %1607 = vmatpush2.bf16.msra.mxu0 %v8447_v20 }
  0xa3   :  { %v841_v61 = vrot.slane %v834_v23, %v9361_v0  ;;  %1495 = vmatprep.subr.bf16.mxu1 %v8451_v14  ;;  %1608 = vmatprep.subr.bf16.mxu0 %v8455_v12 }
  0xa5   :  { %v848_v25 = vrot.slane %v841_v61, %v9361_v0 }
  0xa6   :  { %1496 = vmatpush2.bf16.msra.mxu1 %v8456_v45  ;;  %1609 = vmatpush2.bf16.msra.mxu0 %v8453_v18  ;;  %v8469_v45 = vld [vmem:[#allocation2 + $0x104] ss:$16 sps:$4 sm:$0xff]  }
  0xa7   :  { %v850_v5 = vmul.f32 %v848_v25, %v827_v4  ;;  %1497 = vmatprep.subr.bf16.mxu1 %v8457_v40  ;;  %1610 = vmatprep.subr.bf16.mxu0 %v8461_v17  ;;  %v8463_v4 = vld [vmem:[#allocation2 + $0x124] ss:$16 sps:$4 sm:$0xff]   ;;  %v8467_v25 = vld [vmem:[#allocation2 + $0x12c] ss:$16 sps:$4 sm:$0xff]  }
  0xa9   :  { %v9375_v9 = vrot.slane %v850_v5, %v9368_v15  ;;  %v9378_v10 = vrot.slane %v850_v5, %v9371_v19 }
  0xaa   :  { %1498 = vmatpush2.bf16.msra.mxu1 %v8462_v51  ;;  %1611 = vmatpush2.bf16.msra.mxu0 %v8459_v47 }
  0xab   :  { %v863_v56 = vmul.f32 %v9375_v9, %v9352_v62  ;;  %v864_v22 = vmul.f32 %v9378_v10, %v9354_v3  ;;  %v851_v62 = vld [vmem:[%s13565_s6] sm:$0x3]  ;;  %v885_v24 = vmul.f32 %v9378_v10, %v670_v29  ;;  %v887_v5 = vmul.f32 %v9378_v10, %v672_v31  ;;  %1499 = vmatprep.subr.bf16.mxu1 %v8463_v4  ;;  %v8473_v31 = vld [vmem:[#allocation2 + $0x10c] ss:$16 sps:$4 sm:$0xff]  }
  0xac   :  { %1612 = vmatprep.subr.bf16.mxu0 %v8467_v25  ;;  %v884_v14 = vmul.f32 %v9375_v9, %v669_v28  ;;  %v886_v12 = vmul.f32 %v9375_v9, %v671_v30  ;;  %v888_v4 = vmul.f32 %v9375_v9, %v673_v33  ;;  %v890_v25 = vmul.f32 %v9375_v9, %v675_v38  ;;  %v8477_v33 = vld [vmem:[%s13566_s7 + $0xe4] ss:$16 sps:$4 sm:$0xff]  }
  0xad   :  { %v867_v23 = vcombine.low %v863_v56, %v864_v22  ;;  %v8471_v56 = vld [vmem:[#allocation2 + $0x108] ss:$16 sps:$4 sm:$0xff]   ;;  %v8474_v22 = vld [vmem:[#allocation2 + $0x100] ss:$16 sps:$4 sm:$0xff]  }
  0xae   :  { %1500 = vmatpush2.bf16.msra.mxu1 %v8468_v41  ;;  %1613 = vmatpush2.bf16.msra.mxu0 %v8465_v35 }
  0xaf   :  { %v874_v61 = vrot.slane %v867_v23, %v9361_v0  ;;  %1501 = vmatprep.subr.bf16.mxu1 %v8469_v45  ;;  %1614 = vmatprep.subr.bf16.mxu0 %v8473_v31  ;;  %v893_v31 = vmul.f32 %v9378_v10, %v678_v44  ;;  %v894_v44 = vmul.f32 %v9375_v9, %v679_v49 }
  0xb1   :  { %v881_v3 = vrot.slane %v874_v61, %v9361_v0 }
  0xb2   :  { %1502 = vmatpush2.bf16.msra.mxu1 %v8474_v22  ;;  %1615 = vmatpush2.bf16.msra.mxu0 %v8471_v56  ;;  %v895_v56 = vmul.f32 %v9378_v10, %v680_v50  ;;  %v8483_v22 = vld [vmem:[%s13566_s7 + $0xc4] ss:$16 sps:$4 sm:$0xff]   ;;  %v8481_v50 = vld [vmem:[%s13566_s7 + $0xc0] ss:$16 sps:$4 sm:$0xff]  }
  0xb3   :  { %v883_v20 = vsub.f32 %v851_v62, %v881_v3  ;;  %v889_v62 = vmul.f32 %v9378_v10, %v674_v34  ;;  %v891_v3 = vmul.f32 %v9378_v10, %v676_v39  ;;  %2017 = vmatprep.subr.bf16.mxu1 %v8477_v33  ;;  %2130 = vmatprep.subr.bf16.mxu0 %v8480_v37  ;;  %v8501_v37 = vld [vmem:[%s13566_s7 + $0x64] ss:$16 sps:$4 sm:$0xff]  }
  0xb5   :  { %v9402_v18 = vrot.slane %v883_v20, %v9368_v15  ;;  %v9405_v29 = vrot.slane %v883_v20, %v9371_v19 }
  0xb7   :  { %v928_v26 = vadd.f32 %v9405_v29, %v885_v24  ;;  %v930_v28 = vadd.f32 %v9405_v29, %v887_v5  ;;  %v927_v27 = vadd.f32 %v9402_v18, %v884_v14  ;;  %v929_v30 = vadd.f32 %v9402_v18, %v886_v12  ;;  %v8475_v5 = vld [vmem:[%s13566_s7 + $0xe0] ss:$16 sps:$4 sm:$0xff]   ;;  %v8478_v14 = vld [vmem:[%s13566_s7 + $0xe8] ss:$16 sps:$4 sm:$0xff]  }
  0xb8   :  { %v932_v35 = vadd.f32 %v9405_v29, %v889_v62  ;;  %v934_v41 = vadd.f32 %v9405_v29, %v891_v3  ;;  %v931_v34 = vadd.f32 %v9402_v18, %v888_v4  ;;  %v933_v39 = vadd.f32 %v9402_v18, %v890_v25  ;;  %v8490_v62 = vld [vmem:[%s13566_s7 + $0xa8] ss:$16 sps:$4 sm:$0xff]  }
  0xb9   :  { %v960_v23 = vmax.f32 %v928_v26, 0.0  ;;  %v962_v40 = vmax.f32 %v930_v28, 0.0  ;;  %v959_v17 = vmax.f32 %v927_v27, 0.0  ;;  %v961_v47 = vmax.f32 %v929_v30, 0.0  ;;  %v8486_v26 = vld [vmem:[%s13566_s7 + $0xcc] ss:$16 sps:$4 sm:$0xff]  }
  0xba   :  { %v964_v20 = vmax.f32 %v932_v35, 0.0  ;;  %v966_v32 = vmax.f32 %v934_v41, 0.0  ;;  %v963_v38 = vmax.f32 %v931_v34, 0.0  ;;  %v965_v24 = vmax.f32 %v933_v39, 0.0  ;;  %v8484_v27 = vld [vmem:[%s13566_s7 + $0xc8] ss:$16 sps:$4 sm:$0xff]  }
  0xbb   :  { %v1072_v51 = vpack.c.bf16 %v962_v40, %v960_v23  ;;  %v1071_v61 = vpack.c.bf16 %v961_v47, %v959_v17  ;;  %v892_v28 = vmul.f32 %v9375_v9, %v677_v43  ;;  %v936_v30 = vadd.f32 %v9405_v29, %v893_v31  ;;  %v8489_v40 = vld [vmem:[%s13566_s7 + $0xa4] ss:$16 sps:$4 sm:$0xff]   ;;  %v8492_v17 = vld [vmem:[%s13566_s7 + $0xac] ss:$16 sps:$4 sm:$0xff]  }
  0xbc   :  { %v1074_v12 = vpack.c.bf16 %v966_v32, %v964_v20  ;;  %v1073_v45 = vpack.c.bf16 %v965_v24, %v963_v38  ;;  %v938_v23 = vadd.f32 %v9405_v29, %v895_v56  ;;  %v937_v43 = vadd.f32 %v9402_v18, %v894_v44  ;;  %v8495_v41 = vld [vmem:[%s13566_s7 + $0x84] ss:$16 sps:$4 sm:$0xff]   ;;  %v8498_v34 = vld [vmem:[%s13566_s7 + $0x8c] ss:$16 sps:$4 sm:$0xff]   ;;  %v8496_v20 = vld [vmem:[%s13566_s7 + $0x88] ss:$16 sps:$4 sm:$0xff]  }
  0xbd   :  { %1503 = vmatprep.mubr.bf16.mxu1 %v1072_v51  ;;  %1616 = vmatprep.mubr.bf16.mxu0 %v1072_v51  ;;  %v935_v42 = vadd.f32 %v9402_v18, %v892_v28  ;;  %v968_v48 = vmax.f32 %v936_v30, 0.0  ;;  %v897_v25 = vmul.f32 %v9378_v10, %v682_v55  ;;  %v899_v35 = vmul.f32 %v9378_v10, %v684_v60  ;;  %v8493_v60 = vld [vmem:[%s13566_s7 + $0x80] ss:$16 sps:$4 sm:$0xff]   ;;  %v8504_v38 = vld [vmem:[%s13566_s7 + $0x6c] ss:$16 sps:$4 sm:$0xff]  }
  0xbe   :  { %1504 = vmatmul.mubr.bf16.vlgmr.msra.gmra.mxu1 %v1071_v61  ;;  %1617 = vmatmul.mubr.bf16.vlgmr.msra.gmra.mxu0 %v1071_v61  ;;  %v970_v49 = vmax.f32 %v938_v23, 0.0  ;;  %v969_v51 = vmax.f32 %v937_v43, 0.0  ;;  %v8487_v61 = vld [vmem:[%s13566_s7 + $0xa0] ss:$16 sps:$4 sm:$0xff]   ;;  %v896_v39 = vmul.f32 %v9375_v9, %v681_v54  ;;  %v898_v55 = vmul.f32 %v9375_v9, %v683_v59  ;;  %v8510_v28 = vld [vmem:[%s13566_s7 + $0x4c] ss:$16 sps:$4 sm:$0xff]  }
  0xbf   :  { %2018 = vmatpush1.bf16.msra.mxu1 %v8475_v5  ;;  %2131 = vmatpush1.bf16.msra.mxu0 %v8478_v14  ;;  %v967_v47 = vmax.f32 %v935_v42, 0.0  ;;  %v940_v32 = vadd.f32 %v9405_v29, %v897_v25  ;;  %v942_v33 = vadd.f32 %v9405_v29, %v899_v35  ;;  %v8499_v14 = vld [vmem:[%s13566_s7 + $0x60] ss:$16 sps:$4 sm:$0xff]   ;;  %v901_v56 = vmul.f32 %v9378_v10, %v686_v2  ;;  %v8513_v23 = vld [vmem:[%s13566_s7 + $0x24] ss:$16 sps:$4 sm:$0xff]  }
  0xc0   :  { %1513 = vmatprep.mubr.bf16.mxu1 %v1074_v12  ;;  %1626 = vmatprep.mubr.bf16.mxu0 %v1074_v12  ;;  %v1076_v3 = vpack.c.bf16 %v970_v49, %v968_v48  ;;  %v939_v53 = vadd.f32 %v9402_v18, %v896_v39  ;;  %v941_v54 = vadd.f32 %v9402_v18, %v898_v55  ;;  %v8502_v12 = vld [vmem:[%s13566_s7 + $0x68] ss:$16 sps:$4 sm:$0xff]   ;;  %v8516_v42 = vld [vmem:[%s13566_s7 + $0x2c] ss:$16 sps:$4 sm:$0xff]   ;;  %v8511_v49 = vld [vmem:[%s13566_s7 + $0x20] ss:$16 sps:$4 sm:$0xff]   ;;  %v13852_v25 = vunpack.c.l.bf16 %v9258_v11 }
  0xc1   :  { %2019 = vmatprep.subr.bf16.mxu1 %v8483_v22  ;;  %2132 = vmatprep.subr.bf16.mxu0 %v8486_v26  ;;  %v1075_v4 = vpack.c.bf16 %v969_v51, %v967_v47  ;;  %v972_v58 = vmax.f32 %v940_v32, 0.0  ;;  %v974_v59 = vmax.f32 %v942_v33, 0.0  ;;  %v903_v22 = vmul.f32 %v9378_v10, %v688_v8  ;;  %v8507_v26 = vld [vmem:[%s13566_s7 + $0x44] ss:$16 sps:$4 sm:$0xff]   ;;  %v8505_v8 = vld [vmem:[%s13566_s7 + $0x40] ss:$16 sps:$4 sm:$0xff]  }
  0xc2   :  { %v971_v24 = vmax.f32 %v939_v53, 0.0  ;;  %v973_v5 = vmax.f32 %v941_v54, 0.0  ;;  %v900_v44 = vmul.f32 %v9375_v9, %v685_v1  ;;  %v902_v2 = vmul.f32 %v9375_v9, %v687_v7  ;;  %v8520_v39 = vld [vmem:[%s13566_s7 + $0x8] ss:$16 sps:$4 sm:$0xff]   ;;  %v8525_v33 = vld [vmem:[%s13566_s7 + $0x1e4] ss:$16 sps:$4 sm:$0xff]  }
  0xc3   :  { %2020 = vmatpush1.bf16.msra.mxu1 %v8481_v50  ;;  %2133 = vmatpush1.bf16.msra.mxu0 %v8484_v27  ;;  %v8508_v50 = vld [vmem:[%s13566_s7 + $0x48] ss:$16 sps:$4 sm:$0xff]   ;;  %v944_v27 = vadd.f32 %v9405_v29, %v901_v56  ;;  %v946_v30 = vadd.f32 %v9405_v29, %v903_v22  ;;  %v905_v51 = vmul.f32 %v9378_v10, %v690_v13  ;;  %v13853_v13 = vunpack.c.l.bf16 %v9271_v16  ;;  %v8528_v53 = vld [vmem:[%s13566_s7 + $0x1ec] ss:$16 sps:$4 sm:$0xff]  }
  0xc4   :  { %2021 = vmatprep.subr.bf16.mxu1 %v8489_v40  ;;  %2134 = vmatprep.subr.bf16.mxu0 %v8492_v17  ;;  %v1077_v31 = vpack.c.bf16 %v973_v5, %v971_v24  ;;  %v943_v63 = vadd.f32 %v9402_v18, %v900_v44  ;;  %v945_v1 = vadd.f32 %v9402_v18, %v902_v2  ;;  %v8514_v40 = vld [vmem:[%s13566_s7 + $0x28] ss:$16 sps:$4 sm:$0xff]   ;;  %v13854_v5 = vunpack.c.h.bf16 %v9285_v21  ;;  %v8534_v56 = vld [vmem:[%s13566_s7 + $0x1cc] ss:$16 sps:$4 sm:$0xff]   ;;  %v8529_v2 = vld [vmem:[%s13566_s7 + $0x1c0] ss:$16 sps:$4 sm:$0xff]  }
  0xc5   :  { %v976_v6 = vmax.f32 %v944_v27, 0.0  ;;  %v978_v7 = vmax.f32 %v946_v30, 0.0  ;;  %v904_v35 = vmul.f32 %v9375_v9, %v13852_v25  ;;  %v948_v55 = vadd.f32 %v9405_v29, %v905_v51 }
  0xc6   :  { %1514 = vmatmul.mubr.bf16.gmra.mxu1 %v1073_v45  ;;  %1627 = vmatmul.mubr.bf16.gmra.mxu0 %v1073_v45  ;;  %v1078_v45 = vpack.c.bf16 %v974_v59, %v972_v58  ;;  %v975_v43 = vmax.f32 %v943_v63, 0.0  ;;  %v977_v48 = vmax.f32 %v945_v1, 0.0  ;;  %v8523_v59 = vld [vmem:[%s13566_s7 + $0x1e0] ss:$16 sps:$4 sm:$0xff]   ;;  %v13856_v22 = vunpack.c.l.bf16 %v9285_v21  ;;  %v8537_v1 = vld [vmem:[%s13566_s7 + $0x1a4] ss:$16 sps:$4 sm:$0xff]  }
  0xc7   :  { %1523 = vmatprep.mubr.bf16.mxu1 %v1076_v3  ;;  %1636 = vmatprep.mubr.bf16.mxu0 %v1076_v3  ;;  %v1080_v17 = vpack.c.bf16 %v978_v7, %v976_v6  ;;  %v8519_v3 = vld [vmem:[%s13566_s7 + $0x4] ss:$16 sps:$4 sm:$0xff]   ;;  %v947_v11 = vadd.f32 %v9402_v18, %v904_v35  ;;  %v8540_v6 = vld [vmem:[%s13566_s7 + $0x1ac] ss:$16 sps:$4 sm:$0xff]   ;;  %v13861_v25 = vunpack.c.l.bf16 %v9328_v57 }
  0xc8   :  { %2022 = vmatpush1.bf16.msra.mxu1 %v8487_v61  ;;  %2135 = vmatpush1.bf16.msra.mxu0 %v8490_v62  ;;  %v1079_v47 = vpack.c.bf16 %v977_v48, %v975_v43  ;;  %v13851_v61 = vunpack.c.h.bf16 %v9271_v16  ;;  %v8538_v43 = vld [vmem:[%s13566_s7 + $0x1a8] ss:$16 sps:$4 sm:$0xff]  }
  0xc9   :  { %2023 = vmatprep.subr.bf16.mxu1 %v8495_v41  ;;  %2136 = vmatprep.subr.bf16.mxu0 %v8498_v34  ;;  %v906_v41 = vmul.f32 %v9375_v9, %v13853_v13  ;;  %v8517_v34 = vld [vmem:[%s13566_s7] ss:$16 sps:$4 sm:$0xff]   ;;  %v979_v54 = vmax.f32 %v947_v11, 0.0  ;;  %v914_v35 = vmul.f32 %v9375_v9, %v13861_v25  ;;  %v8544_v13 = vld [vmem:[%s13566_s7 + $0x188] ss:$16 sps:$4 sm:$0xff]  }
  0xca   :  { %v907_v62 = vmul.f32 %v9378_v10, %v13851_v61  ;;  %v8543_v61 = vld [vmem:[%s13566_s7 + $0x184] ss:$16 sps:$4 sm:$0xff]  }
  0xcb   :  { %v949_v16 = vadd.f32 %v9402_v18, %v906_v41 }
  0xcc   :  { %2024 = vmatpush1.bf16.msra.mxu1 %v8493_v60  ;;  %2137 = vmatpush1.bf16.msra.mxu0 %v8496_v20  ;;  %v950_v60 = vadd.f32 %v9405_v29, %v907_v62  ;;  %v980_v20 = vmax.f32 %v948_v55, 0.0  ;;  %v8546_v62 = vld [vmem:[%s13566_s7 + $0x18c] ss:$16 sps:$4 sm:$0xff]   ;;  %v8549_v55 = vld [vmem:[%s13566_s7 + $0x164] ss:$16 sps:$4 sm:$0xff]  }
  0xcd   :  { %2025 = vmatprep.subr.bf16.mxu1 %v8501_v37  ;;  %2138 = vmatprep.subr.bf16.mxu0 %v8504_v38  ;;  %v981_v58 = vmax.f32 %v949_v16, 0.0  ;;  %v8526_v37 = vld [vmem:[%s13566_s7 + $0x1e8] ss:$16 sps:$4 sm:$0xff]  }
  0xce   :  { %1524 = vmatmul.mubr.bf16.gmra.mxu1 %v1075_v4  ;;  %1637 = vmatmul.mubr.bf16.gmra.mxu0 %v1075_v4  ;;  %v8522_v4 = vld [vmem:[%s13566_s7 + $0xc] ss:$16 sps:$4 sm:$0xff]   ;;  %v982_v32 = vmax.f32 %v950_v60, 0.0  ;;  %v8550_v16 = vld [vmem:[%s13566_s7 + $0x168] ss:$16 sps:$4 sm:$0xff]  }
  0xcf   :  { %1533 = vmatprep.mubr.bf16.mxu1 %v1078_v45  ;;  %1646 = vmatprep.mubr.bf16.mxu0 %v1078_v45  ;;  %v1081_v24 = vpack.c.bf16 %v981_v58, %v979_v54  ;;  %v8553_v54 = vld [vmem:[%s13566_s7 + $0x140] ss:$16 sps:$4 sm:$0xff]   ;;  %v8556_v58 = vld [vmem:[%s13566_s7 + $0x148] ss:$16 sps:$4 sm:$0xff]  }
  0xd0   :  { %2026 = vmatpush1.bf16.msra.mxu1 %v8499_v14  ;;  %2139 = vmatpush1.bf16.msra.mxu0 %v8502_v12  ;;  %v1082_v38 = vpack.c.bf16 %v982_v32, %v980_v20  ;;  %v909_v14 = vmul.f32 %v9378_v10, %v13854_v5  ;;  %v13855_v12 = vunpack.c.h.bf16 %v9302_v36  ;;  %v8567_v5 = vld [vmem:[%s13566_s7 + $0x104] ss:$16 sps:$4 sm:$0xff]  }
  0xd1   :  { %2027 = vmatprep.subr.bf16.mxu1 %v8507_v26  ;;  %2140 = vmatprep.subr.bf16.mxu0 %v8510_v28  ;;  %v908_v26 = vmul.f32 %v9375_v9, %v13856_v22  ;;  %v13857_v28 = vunpack.c.l.bf16 %v9302_v36 }
  0xd2   :  { %v911_v45 = vmul.f32 %v9378_v10, %v13855_v12  ;;  %v8565_v12 = vld [vmem:[%s13566_s7 + $0x100] ss:$16 sps:$4 sm:$0xff]  }
  0xd3   :  { %v910_v44 = vmul.f32 %v9375_v9, %v13857_v28  ;;  %v951_v21 = vadd.f32 %v9402_v18, %v908_v26 }
  0xd4   :  { %2028 = vmatpush1.bf16.msra.mxu1 %v8505_v8  ;;  %2141 = vmatpush1.bf16.msra.mxu0 %v8508_v50  ;;  %v8532_v8 = vld [vmem:[%s13566_s7 + $0x1c8] ss:$16 sps:$4 sm:$0xff]   ;;  %v952_v50 = vadd.f32 %v9405_v29, %v909_v14  ;;  %v954_v27 = vadd.f32 %v9405_v29, %v911_v45  ;;  %v8570_v14 = vld [vmem:[%s13566_s7 + $0x10c] ss:$16 sps:$4 sm:$0xff]  }
  0xd5   :  { %2029 = vmatprep.subr.bf16.mxu1 %v8513_v23  ;;  %2142 = vmatprep.subr.bf16.mxu0 %v8516_v42  ;;  %v953_v36 = vadd.f32 %v9402_v18, %v910_v44  ;;  %v983_v7 = vmax.f32 %v951_v21, 0.0  ;;  %v8535_v42 = vld [vmem:[%s13566_s7 + $0x1a0] ss:$16 sps:$4 sm:$0xff]   ;;  %v8568_v45 = vld [vmem:[%s13566_s7 + $0x108] ss:$16 sps:$4 sm:$0xff]  }
  0xd6   :  { %1534 = vmatmul.mubr.bf16.gmra.mxu1 %v1077_v31  ;;  %1647 = vmatmul.mubr.bf16.gmra.mxu0 %v1077_v31  ;;  %v8531_v31 = vld [vmem:[%s13566_s7 + $0x1c4] ss:$16 sps:$4 sm:$0xff]   ;;  %v984_v30 = vmax.f32 %v952_v50, 0.0  ;;  %v986_v63 = vmax.f32 %v954_v27, 0.0 }
  0xd7   :  { %1543 = vmatprep.mubr.bf16.mxu1 %v1080_v17  ;;  %1656 = vmatprep.mubr.bf16.mxu0 %v1080_v17  ;;  %v985_v23 = vmax.f32 %v953_v36, 0.0 }
  0xd8   :  { %2030 = vmatpush1.bf16.msra.mxu1 %v8511_v49  ;;  %2143 = vmatpush1.bf16.msra.mxu0 %v8514_v40  ;;  %v1084_v48 = vpack.c.bf16 %v986_v63, %v984_v30  ;;  %v13858_v40 = vunpack.c.h.bf16 %v9315_v46 }
  0xd9   :  { %2031 = vmatprep.subr.bf16.mxu1 %v8519_v3  ;;  %2144 = vmatprep.subr.bf16.mxu0 %v8522_v4  ;;  %v1083_v49 = vpack.c.bf16 %v985_v23, %v983_v7  ;;  %v13860_v3 = vunpack.c.l.bf16 %v9315_v46 }
  0xda   :  { %v913_v17 = vmul.f32 %v9378_v10, %v13858_v40 }
  0xdb   :  { %v912_v4 = vmul.f32 %v9375_v9, %v13860_v3 }
  0xdc   :  { %2032 = vmatpush1.bf16.msra.mxu1 %v8517_v34  ;;  %2145 = vmatpush1.bf16.msra.mxu0 %v8520_v39  ;;  %v956_v41 = vadd.f32 %v9405_v29, %v913_v17 }
  0xdd   :  { %2033 = vmatprep.subr.bf16.mxu1 %v8525_v33  ;;  %2146 = vmatprep.subr.bf16.mxu0 %v8528_v53  ;;  %v955_v46 = vadd.f32 %v9402_v18, %v912_v4  ;;  %v8555_v33 = vld [vmem:[%s13566_s7 + $0x144] ss:$16 sps:$4 sm:$0xff]   ;;  %v8558_v53 = vld [vmem:[%s13566_s7 + $0x14c] ss:$16 sps:$4 sm:$0xff]  }
  0xde   :  { %1544 = vmatmul.mubr.bf16.gmra.mxu1 %v1079_v47  ;;  %1657 = vmatmul.mubr.bf16.gmra.mxu0 %v1079_v47  ;;  %v13859_v47 = vunpack.c.h.bf16 %v9328_v57  ;;  %v957_v57 = vadd.f32 %v9402_v18, %v914_v35  ;;  %v988_v9 = vmax.f32 %v956_v41, 0.0  ;;  %v8547_v18 = vld [vmem:[%s13566_s7 + $0x160] ss:$16 sps:$4 sm:$0xff]  }
  0xdf   :  { %1553 = vmatprep.mubr.bf16.mxu1 %v1082_v38  ;;  %1666 = vmatprep.mubr.bf16.mxu0 %v1082_v38  ;;  %v987_v60 = vmax.f32 %v955_v46, 0.0  ;;  %v8559_v38 = vld [vmem:[%s13566_s7 + $0x120] ss:$16 sps:$4 sm:$0xff]  }
  0xe0   :  { %2034 = vmatpush2.bf16.msra.mxu1 %v8523_v59  ;;  %2147 = vmatpush2.bf16.msra.mxu0 %v8526_v37  ;;  %v915_v51 = vmul.f32 %v9378_v10, %v13859_v47  ;;  %v8541_v10 = vld [vmem:[%s13566_s7 + $0x180] ss:$16 sps:$4 sm:$0xff]   ;;  %v989_v11 = vmax.f32 %v957_v57, 0.0  ;;  %v8561_v59 = vld [vmem:[%s13566_s7 + $0x124] ss:$16 sps:$4 sm:$0xff]  }
  0xe1   :  { %2035 = vmatprep.subr.bf16.mxu1 %v8531_v31  ;;  %2148 = vmatprep.subr.bf16.mxu0 %v8534_v56  ;;  %v8564_v37 = vld [vmem:[%s13566_s7 + $0x12c] ss:$16 sps:$4 sm:$0xff]  }
  0xe2   :  { %v958_v34 = vadd.f32 %v9405_v29, %v915_v51  ;;  %v8552_v29 = vld [vmem:[%s13566_s7 + $0x16c] ss:$16 sps:$4 sm:$0xff]   ;;  %v1085_v32 = vpack.c.bf16 %v989_v11, %v987_v60 }
  0xe4   :  { %2036 = vmatpush2.bf16.msra.mxu1 %v8529_v2  ;;  %2149 = vmatpush2.bf16.msra.mxu0 %v8532_v8  ;;  %v990_v39 = vmax.f32 %v958_v34, 0.0 }
  0xe5   :  { %2037 = vmatprep.subr.bf16.mxu1 %v8537_v1  ;;  %2150 = vmatprep.subr.bf16.mxu0 %v8540_v6 }
  0xe6   :  { %1554 = vmatmul.mubr.bf16.gmra.mxu1 %v1081_v24  ;;  %1667 = vmatmul.mubr.bf16.gmra.mxu0 %v1081_v24  ;;  %v1086_v20 = vpack.c.bf16 %v990_v39, %v988_v9  ;;  %v8562_v24 = vld [vmem:[%s13566_s7 + $0x128] ss:$16 sps:$4 sm:$0xff]  }
  0xe7   :  { %1563 = vmatprep.mubr.bf16.mxu1 %v1084_v48  ;;  %1676 = vmatprep.mubr.bf16.mxu0 %v1084_v48 }
  0xe8   :  { %2038 = vmatpush2.bf16.msra.mxu1 %v8535_v42  ;;  %2151 = vmatpush2.bf16.msra.mxu0 %v8538_v43 }
  0xe9   :  { %2039 = vmatprep.subr.bf16.mxu1 %v8543_v61  ;;  %2152 = vmatprep.subr.bf16.mxu0 %v8546_v62 }
  0xec   :  { %2040 = vmatpush2.bf16.msra.mxu1 %v8541_v10  ;;  %2153 = vmatpush2.bf16.msra.mxu0 %v8544_v13 }
  0xed   :  { %2041 = vmatprep.subr.bf16.mxu1 %v8549_v55  ;;  %2154 = vmatprep.subr.bf16.mxu0 %v8552_v29 }
  0xee   :  { %1564 = vmatmul.mubr.bf16.gmra.mxu1 %v1083_v49  ;;  %1677 = vmatmul.mubr.bf16.gmra.mxu0 %v1083_v49 }
  0xef   :  { %1573 = vmatprep.mubr.bf16.mxu1 %v1086_v20  ;;  %1686 = vmatprep.mubr.bf16.mxu0 %v1086_v20 }
  0xf0   :  { %2042 = vmatpush2.bf16.msra.mxu1 %v8547_v18  ;;  %2155 = vmatpush2.bf16.msra.mxu0 %v8550_v16 }
  0xf1   :  { %2043 = vmatprep.subr.bf16.mxu1 %v8555_v33  ;;  %2156 = vmatprep.subr.bf16.mxu0 %v8558_v53 }
  0xf4   :  { %2044 = vmatpush2.bf16.msra.mxu1 %v8553_v54  ;;  %2157 = vmatpush2.bf16.msra.mxu0 %v8556_v58 }
  0xf5   :  { %2045 = vmatprep.subr.bf16.mxu1 %v8561_v59  ;;  %2158 = vmatprep.subr.bf16.mxu0 %v8564_v37 }
  0xf6   :  { %1574 = vmatmul.mubr.bf16.gmra.mxu1 %v1085_v32  ;;  %1687 = vmatmul.mubr.bf16.gmra.mxu0 %v1085_v32 }
  0xf8   :  { %2046 = vmatpush2.bf16.msra.mxu1 %v8559_v38  ;;  %2159 = vmatpush2.bf16.msra.mxu0 %v8562_v24 }
  0xf9   :  { %2047 = vmatprep.subr.bf16.mxu1 %v8567_v5  ;;  %2160 = vmatprep.subr.bf16.mxu0 %v8570_v14 }
  0xfc   :  { %2048 = vmatpush2.bf16.msra.mxu1 %v8565_v12  ;;  %2161 = vmatpush2.bf16.msra.mxu0 %v8568_v45 }
  0xfe   :  { %v9715_v31 = vpop.f32.mrf.mxu0 }
  0xff   :  { %v407_v43 = vmul.f32 %v9715_v31, %v9715_v31 }
 0x100   :  { %v9717_v56 = vpop.f32.mrf.mxu0 }
 0x101   :  { %v408_v40 = vmul.f32 %v9717_v56, %v9717_v56 }
 0x102   :  { %v9719_v22 = vpop.f32.mrf.mxu0 }
 0x103   :  { %v409_v7 = vmul.f32 %v9719_v22, %v9719_v22  ;;  %v362_v48 = vadd.f32 %v9719_v22, %v9715_v31 }
 0x104   :  { %v9721_v26 = vpop.f32.mrf.mxu0 }
 0x105   :  { %v410_v23 = vmul.f32 %v9721_v26, %v9721_v26  ;;  %v439_v51 = vadd.f32 %v409_v7, %v407_v43  ;;  %v383_v62 = vadd.f32 %v9721_v26, %v9717_v56 }
 0x106   :  { %v9723_v28 = vpop.f32.mrf.mxu0 }
 0x107   :  { %v411_v49 = vmul.f32 %v9723_v28, %v9723_v28  ;;  %v363_v61 = vadd.f32 %v362_v48, %v9723_v28  ;;  %v460_v4 = vadd.f32 %v410_v23, %v408_v40 }
 0x108   :  { %v9725_v44 = vpop.f32.mrf.mxu0 }
 0x109   :  { %v412_v17 = vmul.f32 %v9725_v44, %v9725_v44  ;;  %v440_v10 = vadd.f32 %v439_v51, %v411_v49  ;;  %v384_v13 = vadd.f32 %v383_v62, %v9725_v44 }
 0x10a   :  { %v9727_v2 = vpop.f32.mrf.mxu0 }
 0x10b   :  { %v413_v3 = vmul.f32 %v9727_v2, %v9727_v2  ;;  %v364_v41 = vadd.f32 %v363_v61, %v9727_v2  ;;  %v461_v46 = vadd.f32 %v460_v4, %v412_v17 }
 0x10c   :  { %v9729_v8 = vpop.f32.mrf.mxu0 }
 0x10d   :  { %v414_v25 = vmul.f32 %v9729_v8, %v9729_v8  ;;  %v441_v39 = vadd.f32 %v440_v10, %v413_v3  ;;  %v385_v29 = vadd.f32 %v384_v13, %v9729_v8 }
 0x10e   :  { %v9731_v50 = vpop.f32.mrf.mxu0 }
 0x10f   :  { %v415_v34 = vmul.f32 %v9731_v50, %v9731_v50  ;;  %v365_v55 = vadd.f32 %v364_v41, %v9731_v50  ;;  %v462_v11 = vadd.f32 %v461_v46, %v414_v25 }
 0x110   :  { %v9733_v27 = vpop.f32.mrf.mxu0 }
 0x111   :  { %v416_v57 = vmul.f32 %v9733_v27, %v9733_v27  ;;  %v442_v20 = vadd.f32 %v441_v39, %v415_v34  ;;  %v386_v32 = vadd.f32 %v385_v29, %v9733_v27 }
 0x112   :  { %v9735_v21 = vpop.f32.mrf.mxu0 }
 0x113   :  { %v417_v60 = vmul.f32 %v9735_v21, %v9735_v21  ;;  %v366_v33 = vadd.f32 %v365_v55, %v9735_v21  ;;  %v463_v54 = vadd.f32 %v462_v11, %v416_v57 }
 0x114   :  { %v9737_v36 = vpop.f32.mrf.mxu0 }
 0x115   :  { %v418_v18 = vmul.f32 %v9737_v36, %v9737_v36  ;;  %v443_v37 = vadd.f32 %v442_v20, %v417_v60  ;;  %v387_v24 = vadd.f32 %v386_v32, %v9737_v36 }
 0x116   :  { %v9739_v30 = vpop.f32.mrf.mxu0 }
 0x117   :  { %v419_v53 = vmul.f32 %v9739_v30, %v9739_v30  ;;  %v367_v38 = vadd.f32 %v366_v33, %v9739_v30  ;;  %v464_v14 = vadd.f32 %v463_v54, %v418_v18 }
 0x118   :  { %v9741_v63 = vpop.f32.mrf.mxu0 }
 0x119   :  { %v420_v58 = vmul.f32 %v9741_v63, %v9741_v63  ;;  %v444_v7 = vadd.f32 %v443_v37, %v419_v53  ;;  %v388_v23 = vadd.f32 %v387_v24, %v9741_v63 }
 0x11a   :  { %v9743_v1 = vpop.f32.mrf.mxu0 }
 0x11b   :  { %v421_v5 = vmul.f32 %v9743_v1, %v9743_v1  ;;  %v368_v43 = vadd.f32 %v367_v38, %v9743_v1  ;;  %v465_v49 = vadd.f32 %v464_v14, %v420_v58 }
 0x11c   :  { %v9745_v6 = vpop.f32.mrf.mxu0 }
 0x11d   :  { %v422_v12 = vmul.f32 %v9745_v6, %v9745_v6  ;;  %v445_v51 = vadd.f32 %v444_v7, %v421_v5  ;;  %v389_v62 = vadd.f32 %v388_v23, %v9745_v6 }
 0x11e   :  { %v9751_v42 = vpop.f32.mrf.mxu0 }
 0x11f   :  { %v423_v48 = vmul.f32 %v9751_v42, %v9751_v42  ;;  %v369_v61 = vadd.f32 %v368_v43, %v9751_v42  ;;  %v466_v4 = vadd.f32 %v465_v49, %v422_v12 }
 0x120   :  { %v9763_v47 = vpop.f32.mrf.mxu0 }
 0x121   :  { %v424_v40 = vmul.f32 %v9763_v47, %v9763_v47  ;;  %v446_v13 = vadd.f32 %v445_v51, %v423_v48  ;;  %v390_v41 = vadd.f32 %v389_v62, %v9763_v47 }
 0x122   :  { %v9772_v35 = vpop.f32.mrf.mxu0 }
 0x123   :  { %v425_v3 = vmul.f32 %v9772_v35, %v9772_v35  ;;  %v370_v34 = vadd.f32 %v369_v61, %v9772_v35  ;;  %v467_v57 = vadd.f32 %v466_v4, %v424_v40 }
 0x124   :  { %v9780_v9 = vpop.f32.mrf.mxu0 }
 0x125   :  { %v426_v25 = vmul.f32 %v9780_v9, %v9780_v9  ;;  %v447_v29 = vadd.f32 %v446_v13, %v425_v3  ;;  %v391_v11 = vadd.f32 %v390_v41, %v9780_v9 }
 0x126   :  { %v9788_v16 = vpop.f32.mrf.mxu0 }
 0x127   :  { %v427_v46 = vmul.f32 %v9788_v16, %v9788_v16  ;;  %v371_v60 = vadd.f32 %v370_v34, %v9788_v16  ;;  %v468_v20 = vadd.f32 %v467_v57, %v426_v25 }
 0x128   :  { %v9796_v59 = vpop.f32.mrf.mxu0 }
 0x129   :  { %v428_v39 = vmul.f32 %v9796_v59, %v9796_v59  ;;  %v448_v53 = vadd.f32 %v447_v29, %v427_v46  ;;  %v392_v54 = vadd.f32 %v391_v11, %v9796_v59 }
 0x12a   :  { %v9804_v45 = vpop.f32.mrf.mxu0 }
 0x12b   :  { %v429_v18 = vmul.f32 %v9804_v45, %v9804_v45  ;;  %v372_v58 = vadd.f32 %v371_v60, %v9804_v45  ;;  %v469_v38 = vadd.f32 %v468_v20, %v428_v39 }
 0x12c   :  { %v9812_v17 = vpop.f32.mrf.mxu0 }
 0x12d   :  { %v430_v32 = vmul.f32 %v9812_v17, %v9812_v17  ;;  %v449_v14 = vadd.f32 %v448_v53, %v429_v18  ;;  %v393_v7 = vadd.f32 %v392_v54, %v9812_v17 }
 0x12e   :  { %v9820_v10 = vpop.f32.mrf.mxu0 }
 0x12f   :  { %v431_v37 = vmul.f32 %v9820_v10, %v9820_v10  ;;  %v373_v12 = vadd.f32 %v372_v58, %v9820_v10  ;;  %v470_v43 = vadd.f32 %v469_v38, %v430_v32 }
 0x130   :  { %v9828_v55 = vpop.f32.mrf.mxu0 }
 0x131   :  { %v432_v24 = vmul.f32 %v9828_v55, %v9828_v55  ;;  %v450_v40 = vadd.f32 %v449_v14, %v431_v37  ;;  %v394_v51 = vadd.f32 %v393_v7, %v9828_v55 }
 0x132   :  { %v9836_v33 = vpop.f32.mrf.mxu0 }
 0x133   :  { %v433_v23 = vmul.f32 %v9836_v33, %v9836_v33  ;;  %v374_v61 = vadd.f32 %v373_v12, %v9836_v33  ;;  %v471_v3 = vadd.f32 %v470_v43, %v432_v24 }
 0x134   :  { %v9844_v5 = vpop.f32.mrf.mxu0 }
 0x135   :  { %v434_v48 = vmul.f32 %v9844_v5, %v9844_v5  ;;  %v451_v25 = vadd.f32 %v450_v40, %v433_v23  ;;  %v395_v41 = vadd.f32 %v394_v51, %v9844_v5 }
 0x136   :  { %v9852_v49 = vpop.f32.mrf.mxu0 }
 0x137   :  { %v435_v62 = vmul.f32 %v9852_v49, %v9852_v49  ;;  %v375_v13 = vadd.f32 %v374_v61, %v9852_v49  ;;  %v472_v46 = vadd.f32 %v471_v3, %v434_v48 }
 0x138   :  { %v9858_v4 = vpop.f32.mrf.mxu0 }
 0x139   :  { %v436_v34 = vmul.f32 %v9858_v4, %v9858_v4  ;;  %v452_v39 = vadd.f32 %v451_v25, %v435_v62  ;;  %v396_v29 = vadd.f32 %v395_v41, %v9858_v4 }
 0x13a   :  { %v9864_v57 = vpop.f32.mrf.mxu0 }
 0x13b   :  { %v376_v60 = vadd.f32 %v375_v13, %v9864_v57  ;;  %v437_v11 = vmul.f32 %v9864_v57, %v9864_v57  ;;  %v473_v18 = vadd.f32 %v472_v46, %v436_v34 }
 0x13c   :  { %v9870_v20 = vpop.f32.mrf.mxu0 }
 0x13d   :  { %v377_v32 = vrot.slane %v376_v60, 4  ;;  %v453_v53 = vadd.f32 %v452_v39, %v437_v11  ;;  %v397_v54 = vadd.f32 %v396_v29, %v9870_v20  ;;  %v438_v58 = vmul.f32 %v9870_v20, %v9870_v20 }
 0x13f   :  { %v378_v37 = vadd.f32 %v377_v32, %v376_v60  ;;  %v454_v38 = vrot.slane %v453_v53, 4  ;;  %v398_v24 = vrot.slane %v397_v54, 4  ;;  %v474_v14 = vadd.f32 %v473_v18, %v438_v58 }
 0x141   :  { %v379_v12 = vrot.slane %v378_v37, 2  ;;  %v455_v7 = vadd.f32 %v454_v38, %v453_v53  ;;  %v399_v23 = vadd.f32 %v398_v24, %v397_v54  ;;  %v475_v43 = vrot.slane %v474_v14, 4 }
 0x143   :  { %v380_v48 = vadd.f32 %v379_v12, %v378_v37  ;;  %v456_v40 = vrot.slane %v455_v7, 2  ;;  %v400_v51 = vrot.slane %v399_v23, 2  ;;  %v476_v61 = vadd.f32 %v475_v43, %v474_v14 }
 0x145   :  { %v381_v62 = vrot.slane %v380_v48, 1  ;;  %v457_v3 = vadd.f32 %v456_v40, %v455_v7  ;;  %v401_v25 = vadd.f32 %v400_v51, %v399_v23  ;;  %v477_v13 = vrot.slane %v476_v61, 2 }
 0x147   :  { %v382_v41 = vadd.f32 %v381_v62, %v380_v48  ;;  %v458_v34 = vrot.slane %v457_v3, 1  ;;  %v402_v46 = vrot.slane %v401_v25, 1  ;;  %v478_v39 = vadd.f32 %v477_v13, %v476_v61  ;;  %v489_v62 = vld [vmem:[%s13562_s3] sm:$0x3] }
 0x149   :  { %v405_v29 = vmul.f32 0.0078125, %v382_v41  ;;  %v459_v60 = vadd.f32 %v458_v34, %v457_v3  ;;  %v403_v11 = vadd.f32 %v402_v46, %v401_v25  ;;  %v479_v18 = vrot.slane %v478_v39, 1 }
 0x14b   :  { %v481_v32 = vmul.f32 0.0078125, %v459_v60  ;;  %v483_v53 = vmul.f32 %v405_v29, %v405_v29  ;;  %v406_v54 = vmul.f32 0.0078125, %v403_v11  ;;  %v480_v58 = vadd.f32 %v479_v18, %v478_v39  ;;  %v513_v11 = vld [vmem:[%s13563_s4] sm:$0x3] }
 0x14d   :  { %v485_v37 = vsub.f32 %v481_v32, %v483_v53  ;;  %v482_v38 = vmul.f32 0.0078125, %v480_v58  ;;  %v484_v24 = vmul.f32 %v406_v54, %v406_v54 }
 0x14f   :  { %v487_v14 = vmax.f32 %v485_v37, 0.0  ;;  %v486_v12 = vsub.f32 %v482_v38, %v484_v24 }
 0x151   :  { %v490_v7 = vadd.f32 1e-05, %v487_v14  ;;  %v488_v23 = vmax.f32 %v486_v12, 0.0 }
 0x153   :  { %v491_v43 = vadd.f32 1e-05, %v488_v23  ;;  %8767 = vrsqrt.f32 %v490_v7 }
 0x155   :  { %8769 = vrsqrt.f32 %v491_v43 }
 0x160   :  { %v8768_v48 = vpop.eup %8767 }
 0x162   :  { %v8770_v40 = vpop.eup %8769 }
 0x163   :  { %v496_v51 = vcombine.low %v8768_v48, %v8770_v40 }
 0x165   :  { %v503_v61 = vrot.slane %v496_v51, %v9361_v0 }
 0x167   :  { %v510_v3 = vrot.slane %v503_v61, %v9361_v0 }
 0x169   :  { %v512_v25 = vmul.f32 %v510_v3, %v489_v62 }
 0x16b   :  { %v9881_v13 = vrot.slane %v512_v25, %v9368_v15  ;;  %v9884_v41 = vrot.slane %v512_v25, %v9371_v19 }
 0x16d   :  { %v525_v34 = vmul.f32 %v9881_v13, %v405_v29  ;;  %v526_v46 = vmul.f32 %v9884_v41, %v406_v54  ;;  %v547_v53 = vmul.f32 %v9884_v41, %v9717_v56  ;;  %v549_v58 = vmul.f32 %v9884_v41, %v9721_v26 }
 0x16e   :  { %v574_v29 = vmul.f32 %v9881_v13, %v9852_v49  ;;  %v576_v54 = vmul.f32 %v9881_v13, %v9864_v57  ;;  %v546_v24 = vmul.f32 %v9881_v13, %v9715_v31  ;;  %v548_v56 = vmul.f32 %v9881_v13, %v9719_v22 }
 0x16f   :  { %v529_v39 = vcombine.low %v525_v34, %v526_v46  ;;  %v551_v26 = vmul.f32 %v9884_v41, %v9725_v44  ;;  %v553_v49 = vmul.f32 %v9884_v41, %v9729_v8  ;;  %v550_v8 = vmul.f32 %v9881_v13, %v9723_v28 }
 0x170   :  { %v552_v61 = vmul.f32 %v9881_v13, %v9727_v2  ;;  %v555_v25 = vmul.f32 %v9884_v41, %v9733_v27  ;;  %v557_v34 = vmul.f32 %v9884_v41, %v9737_v36  ;;  %v554_v36 = vmul.f32 %v9881_v13, %v9731_v50 }
 0x171   :  { %v536_v60 = vrot.slane %v529_v39, %v9361_v0 }
 0x173   :  { %v543_v18 = vrot.slane %v536_v60, %v9361_v0 }
 0x175   :  { %v545_v32 = vsub.f32 %v513_v11, %v543_v18 }
 0x177   :  { %v9902_v37 = vrot.slane %v545_v32, %v9368_v15  ;;  %v9905_v38 = vrot.slane %v545_v32, %v9371_v19 }
 0x179   :  { %v590_v57 = vadd.f32 %v9905_v38, %v547_v53  ;;  %v592_v14 = vadd.f32 %v9905_v38, %v549_v58  ;;  %v589_v12 = vadd.f32 %v9902_v37, %v546_v24  ;;  %v591_v7 = vadd.f32 %v9902_v37, %v548_v56 }
 0x17a   :  { %v594_v23 = vadd.f32 %v9905_v38, %v551_v26  ;;  %v596_v31 = vadd.f32 %v9905_v38, %v553_v49  ;;  %v593_v46 = vadd.f32 %v9902_v37, %v550_v8  ;;  %v595_v39 = vadd.f32 %v9902_v37, %v552_v61 }
 0x17b   :  { %v622_v43 = vmax.f32 %v590_v57, 0.0  ;;  %v624_v22 = vmax.f32 %v592_v14, 0.0  ;;  %v621_v48 = vmax.f32 %v589_v12, 0.0  ;;  %v623_v40 = vmax.f32 %v591_v7, 0.0 }
 0x17c   :  { %v626_v44 = vmax.f32 %v594_v23, 0.0  ;;  %v628_v51 = vmax.f32 %v596_v31, 0.0  ;;  %v598_v28 = vadd.f32 %v9905_v38, %v555_v25  ;;  %v600_v11 = vadd.f32 %v9905_v38, %v557_v34 }
 0x17d   :  { %v992_v62 = vpack.c.bf16 %v624_v22, %v622_v43  ;;  %v991_v3 = vpack.c.bf16 %v623_v40, %v621_v48  ;;  %v625_v2 = vmax.f32 %v593_v46, 0.0  ;;  %v627_v27 = vmax.f32 %v595_v39, 0.0 }
 0x17e   :  { %v994_v60 = vpack.c.bf16 %v628_v51, %v626_v44  ;;  %v630_v18 = vmax.f32 %v598_v28, 0.0  ;;  %v632_v32 = vmax.f32 %v600_v11, 0.0  ;;  %v556_v53 = vmul.f32 %v9881_v13, %v9735_v21 }
 0x17f   :  { %2049 = vmatprep.mubr.bf16.mxu1 %v992_v62  ;;  %2162 = vmatprep.mubr.bf16.mxu0 %v992_v62  ;;  %v559_v58 = vmul.f32 %v9884_v41, %v9741_v63  ;;  %v561_v24 = vmul.f32 %v9884_v41, %v9745_v6  ;;  %v993_v56 = vpack.c.bf16 %v627_v27, %v625_v2 }
 0x180   :  { %2050 = vmatmul.mubr.bf16.vlgmr.msra.gmra.mxu1 %v991_v3  ;;  %2163 = vmatmul.mubr.bf16.vlgmr.msra.gmra.mxu0 %v991_v3  ;;  %v597_v26 = vadd.f32 %v9902_v37, %v554_v36  ;;  %v599_v49 = vadd.f32 %v9902_v37, %v556_v53  ;;  %v996_v57 = vpack.c.bf16 %v632_v32, %v630_v18 }
 0x181   :  { %2059 = vmatprep.mubr.bf16.mxu1 %v994_v60  ;;  %2172 = vmatprep.mubr.bf16.mxu0 %v994_v60  ;;  %v602_v14 = vadd.f32 %v9905_v38, %v559_v58  ;;  %v604_v12 = vadd.f32 %v9905_v38, %v561_v24  ;;  %v617_v63 = vadd.f32 %v9902_v37, %v574_v29 }
 0x182   :  { %v629_v50 = vmax.f32 %v597_v26, 0.0  ;;  %v631_v21 = vmax.f32 %v599_v49, 0.0  ;;  %v619_v6 = vadd.f32 %v9902_v37, %v576_v54  ;;  %v558_v31 = vmul.f32 %v9881_v13, %v9739_v30 }
 0x183   :  { %v634_v7 = vmax.f32 %v602_v14, 0.0  ;;  %v636_v23 = vmax.f32 %v604_v12, 0.0  ;;  %v560_v43 = vmul.f32 %v9881_v13, %v9743_v1  ;;  %v649_v22 = vmax.f32 %v617_v63, 0.0 }
 0x184   :  { %v651_v48 = vmax.f32 %v619_v6, 0.0  ;;  %v563_v40 = vmul.f32 %v9884_v41, %v9763_v47  ;;  %v565_v44 = vmul.f32 %v9884_v41, %v9780_v9  ;;  %v995_v51 = vpack.c.bf16 %v631_v21, %v629_v50 }
 0x185   :  { %v601_v29 = vadd.f32 %v9902_v37, %v558_v31  ;;  %v603_v54 = vadd.f32 %v9902_v37, %v560_v43  ;;  %v998_v61 = vpack.c.bf16 %v636_v23, %v634_v7  ;;  %v562_v25 = vmul.f32 %v9881_v13, %v9751_v42 }
 0x186   :  { %v9957_v8 = vpack.c.bf16 %v651_v48, %v649_v22  ;;  %v606_v30 = vadd.f32 %v9905_v38, %v563_v40  ;;  %v608_v1 = vadd.f32 %v9905_v38, %v565_v44  ;;  %v564_v34 = vmul.f32 %v9881_v13, %v9772_v35 }
 0x187   :  { %v633_v47 = vmax.f32 %v601_v29, 0.0  ;;  %v635_v62 = vmax.f32 %v603_v54, 0.0  ;;  %v567_v46 = vmul.f32 %v9884_v41, %v9796_v59  ;;  %v569_v39 = vmul.f32 %v9884_v41, %v9812_v17 }
 0x188   :  { %2060 = vmatmul.mubr.bf16.gmra.mxu1 %v993_v56  ;;  %2173 = vmatmul.mubr.bf16.gmra.mxu0 %v993_v56  ;;  %v638_v3 = vmax.f32 %v606_v30, 0.0  ;;  %v640_v9 = vmax.f32 %v608_v1, 0.0  ;;  %v605_v28 = vadd.f32 %v9902_v37, %v562_v25  ;;  %v607_v11 = vadd.f32 %v9902_v37, %v564_v34 }
 0x189   :  { %2069 = vmatprep.mubr.bf16.mxu1 %v996_v57  ;;  %2182 = vmatprep.mubr.bf16.mxu0 %v996_v57  ;;  %v997_v60 = vpack.c.bf16 %v635_v62, %v633_v47  ;;  %v610_v27 = vadd.f32 %v9905_v38, %v567_v46  ;;  %v612_v18 = vadd.f32 %v9905_v38, %v569_v39 }
 0x18a   :  { %v1000_v2 = vpack.c.bf16 %v640_v9, %v638_v3  ;;  %v637_v42 = vmax.f32 %v605_v28, 0.0  ;;  %v639_v35 = vmax.f32 %v607_v11, 0.0  ;;  %v566_v17 = vmul.f32 %v9881_v13, %v9788_v16 }
 0x18b   :  { %v642_v59 = vmax.f32 %v610_v27, 0.0  ;;  %v644_v32 = vmax.f32 %v612_v18, 0.0  ;;  %v568_v36 = vmul.f32 %v9881_v13, %v9804_v45  ;;  %v571_v53 = vmul.f32 %v9884_v41, %v9828_v55 }
 0x18c   :  { %v573_v58 = vmul.f32 %v9884_v41, %v9844_v5  ;;  %v999_v24 = vpack.c.bf16 %v639_v35, %v637_v42  ;;  %v609_v56 = vadd.f32 %v9902_v37, %v566_v17  ;;  %v570_v5 = vmul.f32 %v9881_v13, %v9820_v10 }
 0x18d   :  { %v611_v26 = vadd.f32 %v9902_v37, %v568_v36  ;;  %v1002_v49 = vpack.c.bf16 %v644_v32, %v642_v59  ;;  %v614_v57 = vadd.f32 %v9905_v38, %v571_v53  ;;  %v572_v50 = vmul.f32 %v9881_v13, %v9836_v33 }
 0x18e   :  { %v616_v14 = vadd.f32 %v9905_v38, %v573_v58  ;;  %v641_v16 = vmax.f32 %v609_v56, 0.0  ;;  %v577_v21 = vmul.f32 %v9884_v41, %v9870_v20  ;;  %v575_v63 = vmul.f32 %v9884_v41, %v9858_v4  ;;  %v9999_v41 = vpop.f32.mrf.mxu1 }
 0x18f   :  { %v643_v45 = vmax.f32 %v611_v26, 0.0  ;;  %v646_v55 = vmax.f32 %v614_v57, 0.0  ;;  %v613_v7 = vadd.f32 %v9902_v37, %v570_v5  ;;  %v615_v23 = vadd.f32 %v9902_v37, %v572_v50  ;;  %v10001_v37 = vpop.f32.mrf.mxu0  ;;  %v2891_v5 = vld [vmem:[#allocation5 + $0x1c0] sm:$0xff] }
 0x190   :  { %2070 = vmatmul.mubr.bf16.gmra.mxu1 %v995_v51  ;;  %2183 = vmatmul.mubr.bf16.gmra.mxu0 %v995_v51  ;;  %v648_v12 = vmax.f32 %v616_v14, 0.0  ;;  %v618_v43 = vadd.f32 %v9905_v38, %v575_v63  ;;  %v620_v22 = vadd.f32 %v9905_v38, %v577_v21  ;;  %v10003_v38 = vpop.f32.mrf.mxu1  ;;  %v2895_v50 = vld [vmem:[#allocation5 + $0x1e0] sm:$0xff] }
 0x191   :  { %2079 = vmatprep.mubr.bf16.mxu1 %v998_v61  ;;  %2192 = vmatprep.mubr.bf16.mxu0 %v998_v61  ;;  %v1001_v6 = vpack.c.bf16 %v643_v45, %v641_v16  ;;  %v645_v10 = vmax.f32 %v613_v7, 0.0  ;;  %v647_v33 = vmax.f32 %v615_v23, 0.0  ;;  %v10005_v40 = vpop.f32.mrf.mxu0  ;;  %v3019_v21 = vld [vmem:[#allocation5 + $0x5c0] sm:$0xff]  ;;  %v7983_v63 = vcombine.high %v2891_v5, %v2895_v50 }
 0x192   :  { %v1004_v31 = vpack.c.bf16 %v648_v12, %v646_v55  ;;  %v650_v20 = vmax.f32 %v618_v43, 0.0  ;;  %v652_v13 = vmax.f32 %v620_v22, 0.0  ;;  %v10007_v44 = vpop.f32.mrf.mxu1  ;;  %v7982_v7 = vcombine.low %v2891_v5, %v2895_v50 }
 0x193   :  { %v1003_v48 = vpack.c.bf16 %v647_v33, %v645_v10  ;;  %v10009_v51 = vpop.f32.mrf.mxu0  ;;  %4371 = vmatprep.subr.bf16.mxu1 %v7983_v63  ;;  %v2883_v10 = vld [vmem:[#allocation5 + $0x180] sm:$0xff] }
 0x194   :  { %v1006_v4 = vpack.c.bf16 %v652_v13, %v650_v20  ;;  %v10011_v29 = vpop.f32.mrf.mxu1  ;;  %4372 = vmatpush1.bf16.msra.mxu1 %v7982_v7  ;;  %v2887_v33 = vld [vmem:[#allocation5 + $0x1a0] sm:$0xff] }
 0x195   :  { %v10013_v54 = vpop.f32.mrf.mxu0  ;;  %v3011_v20 = vld [vmem:[#allocation5 + $0x580] sm:$0xff]  ;;  %v7975_v13 = vcombine.high %v2883_v10, %v2887_v33 }
 0x196   :  { %v10015_v61 = vpop.f32.mrf.mxu1  ;;  %v2879_v63 = vld [vmem:[#allocation5 + $0x160] sm:$0xff] }
 0x197   :  { %v10017_v30 = vpop.f32.mrf.mxu0  ;;  %4373 = vmatprep.subr.bf16.mxu1 %v7975_v13  ;;  %v2871_v13 = vld [vmem:[#allocation5 + $0x120] sm:$0xff] }
 0x198   :  { %2080 = vmatmul.mubr.bf16.gmra.mxu1 %v997_v60  ;;  %2193 = vmatmul.mubr.bf16.gmra.mxu0 %v997_v60 }
 0x199   :  { %2089 = vmatprep.mubr.bf16.mxu1 %v1000_v2  ;;  %2202 = vmatprep.mubr.bf16.mxu0 %v1000_v2  ;;  %v10021_v1 = vpop.f32.mrf.mxu0 }
 0x19b   :  { %v10025_v62 = vpop.f32.mrf.mxu0 }
 0x19d   :  { %v10029_v9 = vpop.f32.mrf.mxu0 }
 0x19f   :  { %v10033_v34 = vpop.f32.mrf.mxu0 }
 0x1a0   :  { %2090 = vmatmul.mubr.bf16.gmra.mxu1 %v999_v24  ;;  %2203 = vmatmul.mubr.bf16.gmra.mxu0 %v999_v24 }
 0x1a1   :  { %2099 = vmatprep.mubr.bf16.mxu1 %v1002_v49  ;;  %2212 = vmatprep.mubr.bf16.mxu0 %v1002_v49  ;;  %v10037_v39 = vpop.f32.mrf.mxu0 }
 0x1a3   :  { %v10041_v28 = vpop.f32.mrf.mxu0 }
 0x1a5   :  { %v10045_v2 = vpop.f32.mrf.mxu0 }
 0x1a7   :  { %v10049_v18 = vpop.f32.mrf.mxu0 }
 0x1a8   :  { %2100 = vmatmul.mubr.bf16.gmra.mxu1 %v1001_v6  ;;  %2213 = vmatmul.mubr.bf16.gmra.mxu0 %v1001_v6  ;;  %v3023_v6 = vld [vmem:[#allocation5 + $0x5e0] sm:$0xff] }
 0x1a9   :  { %2109 = vmatprep.mubr.bf16.mxu1 %v1004_v31  ;;  %2222 = vmatprep.mubr.bf16.mxu0 %v1004_v31  ;;  %v10053_v35 = vpop.f32.mrf.mxu0  ;;  %v8110_v23 = vcombine.low %v3019_v21, %v3023_v6  ;;  %v8111_v31 = vcombine.high %v3019_v21, %v3023_v6  ;;  %v2875_v21 = vld [vmem:[#allocation5 + $0x140] sm:$0xff] }
 0x1aa   :  { %v3003_v6 = vld [vmem:[#allocation5 + $0x540] sm:$0xff]  ;;  %v7967_v7 = vcombine.high %v2875_v21, %v2879_v63  ;;  %v7966_v52 = vcombine.low %v2875_v21, %v2879_v63 }
 0x1ab   :  { %v10057_v32 = vpop.f32.mrf.mxu0  ;;  %4484 = vmatprep.subr.bf16.mxu0 %v8111_v31  ;;  %v3007_v31 = vld [vmem:[#allocation5 + $0x560] sm:$0xff] }
 0x1ac   :  { %4485 = vmatpush1.bf16.msra.mxu0 %v8110_v23  ;;  %v8094_v23 = vcombine.low %v3003_v6, %v3007_v31  ;;  %v8095_v0 = vcombine.high %v3003_v6, %v3007_v31  ;;  %v2859_v6 = vld [vmem:[#allocation5 + $0xc0] sm:$0xff] }
 0x1ad   :  { %v10061_v36 = vpop.f32.mrf.mxu0  ;;  %v2991_v31 = vld [vmem:[#allocation5 + $0x4e0] sm:$0xff] }
 0x1af   :  { %v10065_v58 = vpop.f32.mrf.mxu0 }
 0x1b0   :  { %2110 = vmatmul.mubr.bf16.gmra.mxu1 %v1003_v48  ;;  %2223 = vmatmul.mubr.bf16.gmra.mxu0 %v1003_v48  ;;  %v3015_v48 = vld [vmem:[#allocation5 + $0x5a0] sm:$0xff] }
 0x1b1   :  { %2119 = vmatprep.mubr.bf16.mxu1 %v1006_v4  ;;  %2232 = vmatprep.mubr.bf16.mxu0 %v1006_v4  ;;  %v10069_v56 = vpop.f32.mrf.mxu0  ;;  %v7974_v4 = vcombine.low %v2883_v10, %v2887_v33  ;;  %v8102_v19 = vcombine.low %v3011_v20, %v3015_v48  ;;  %v8103_v15 = vcombine.high %v3011_v20, %v3015_v48  ;;  %v2867_v20 = vld [vmem:[#allocation5 + $0x100] sm:$0xff] }
 0x1b2   :  { %v7959_v48 = vcombine.high %v2867_v20, %v2871_v13 }
 0x1b3   :  { %v10073_v49 = vpop.f32.mrf.mxu0  ;;  %4486 = vmatprep.subr.bf16.mxu0 %v8103_v15  ;;  %4374 = vmatpush1.bf16.msra.mxu1 %v7974_v4  ;;  %v2995_v15 = vld [vmem:[#allocation5 + $0x500] sm:$0xff] }
 0x1b4   :  { %4487 = vmatpush1.bf16.msra.mxu0 %v8102_v19  ;;  %4375 = vmatprep.subr.bf16.mxu1 %v7967_v7  ;;  %v2999_v4 = vld [vmem:[#allocation5 + $0x520] sm:$0xff] }
 0x1b5   :  { %v10077_v14 = vpop.f32.mrf.mxu0  ;;  %4488 = vmatprep.subr.bf16.mxu0 %v8095_v0  ;;  %v8086_v19 = vcombine.low %v2995_v15, %v2999_v4  ;;  %v2863_v7 = vld [vmem:[#allocation5 + $0xe0] sm:$0xff] }
 0x1b6   :  { %v2987_v0 = vld [vmem:[#allocation5 + $0x4c0] sm:$0xff] }
 0x1b7   :  { %v10081_v45 = vpop.f32.mrf.mxu0  ;;  %4376 = vmatpush1.bf16.msra.mxu1 %v7966_v52  ;;  %v7951_v52 = vcombine.high %v2859_v6, %v2863_v7 }
 0x1b8   :  { %2120 = vmatmul.mubr.bf16.gmra.mxu1 %v9957_v8  ;;  %2233 = vmatmul.mubr.bf16.gmra.mxu0 %v9957_v8  ;;  %v10019_v8 = vpop.f32.mrf.mxu1 }
 0x1b9   :  { %v10085_v12 = vpop.f32.mrf.mxu0  ;;  %4489 = vmatpush1.bf16.msra.mxu0 %v8094_v23  ;;  %4377 = vmatprep.subr.bf16.mxu1 %v7959_v48  ;;  %v8078_v23 = vcombine.low %v2987_v0, %v2991_v31  ;;  %v2855_v48 = vld [vmem:[#allocation5 + $0xa0] sm:$0xff] }
 0x1ba   :  { %v10023_v47 = vpop.f32.mrf.mxu1  ;;  %13862 = vst [vmem:[#allocation15_spill] sm:$0xff] %v10085_v12 }
 0x1bb   :  { %v10089_v22 = vpop.f32.mrf.mxu0 }
 0x1bc   :  { %v10027_v3 = vpop.f32.mrf.mxu1  ;;  %13864 = vst [vmem:[#allocation17_spill] sm:$0xff] %v10089_v22 }
 0x1bd   :  { %v10093_v50 = vpop.f32.mrf.mxu0 }
 0x1be   :  { %v10031_v25 = vpop.f32.mrf.mxu1  ;;  %13866 = vst [vmem:[#allocation19_spill] sm:$0xff] %v10093_v50  ;;  %v7958_v50 = vcombine.low %v2867_v20, %v2871_v13 }
 0x1bf   :  { %v10097_v33 = vpop.f32.mrf.mxu0 }
 0x1c0   :  { %v10035_v46 = vpop.f32.mrf.mxu1  ;;  %13868 = vst [vmem:[#allocation21_spill] sm:$0xff] %v10097_v33  ;;  %4378 = vmatpush1.bf16.msra.mxu1 %v7958_v50  ;;  %v7950_v33 = vcombine.low %v2859_v6, %v2863_v7  ;;  %v2979_v50 = vld [vmem:[#allocation5 + $0x480] sm:$0xff] }
 0x1c1   :  { %v10101_v63 = vpop.f32.mrf.mxu0  ;;  %4379 = vmatprep.subr.bf16.mxu1 %v7951_v52  ;;  %v2847_v52 = vld [vmem:[#allocation5 + $0x60] sm:$0xff] }
 0x1c2   :  { %v10039_v60 = vpop.f32.mrf.mxu1  ;;  %13870 = vst [vmem:[#allocation23_spill] sm:$0xff] %v10101_v63 }
 0x1c3   :  { %v10105_v13 = vpop.f32.mrf.mxu0 }
 0x1c4   :  { %v10043_v11 = vpop.f32.mrf.mxu1  ;;  %13872 = vst [vmem:[#allocation25_spill] sm:$0xff] %v10105_v13  ;;  %4380 = vmatpush1.bf16.msra.mxu1 %v7950_v33 }
 0x1c5   :  { %v10109_v7 = vpop.f32.mrf.mxu0 }
 0x1c6   :  { %v10047_v27 = vpop.f32.mrf.mxu1  ;;  %13874 = vst [vmem:[#allocation27_spill] sm:$0xff] %v10109_v7 }
 0x1c8   :  { %v10051_v42 = vpop.f32.mrf.mxu1 }
 0x1ca   :  { %v10055_v59 = vpop.f32.mrf.mxu1 }
 0x1cc   :  { %v10059_v17 = vpop.f32.mrf.mxu1 }
 0x1ce   :  { %v10063_v53 = vpop.f32.mrf.mxu1 }
 0x1d0   :  { %v10067_v24 = vpop.f32.mrf.mxu1 }
 0x1d2   :  { %v10071_v26 = vpop.f32.mrf.mxu1 }
 0x1d4   :  { %v10075_v57 = vpop.f32.mrf.mxu1 }
 0x1d6   :  { %v10079_v16 = vpop.f32.mrf.mxu1 }
 0x1d8   :  { %v10083_v55 = vpop.f32.mrf.mxu1 }
 0x1da   :  { %v10087_v43 = vpop.f32.mrf.mxu1 }
 0x1db   :  { %13863 = vst [vmem:[#allocation16_spill] sm:$0xff] %v10087_v43  ;;  %v10155_v43 = vld [vmem:[#allocation5 + $0x6e0] sm:$0xff] }
 0x1dc   :  { %v10091_v5 = vpop.f32.mrf.mxu1 }
 0x1dd   :  { %13865 = vst [vmem:[#allocation18_spill] sm:$0xff] %v10091_v5  ;;  %v8087_v5 = vcombine.high %v2995_v15, %v2999_v4  ;;  %v2851_v15 = vld [vmem:[#allocation5 + $0x80] sm:$0xff] }
 0x1de   :  { %v10095_v10 = vpop.f32.mrf.mxu1  ;;  %v2983_v4 = vld [vmem:[#allocation5 + $0x4a0] sm:$0xff]  ;;  %v7942_v63 = vcombine.low %v2851_v15, %v2855_v48 }
 0x1df   :  { %13867 = vst [vmem:[#allocation20_spill] sm:$0xff] %v10095_v10  ;;  %4490 = vmatprep.subr.bf16.mxu0 %v8087_v5  ;;  %v8079_v10 = vcombine.high %v2987_v0, %v2991_v31  ;;  %v7943_v5 = vcombine.high %v2851_v15, %v2855_v48  ;;  %v2843_v0 = vld [vmem:[#allocation5 + $0x40] sm:$0xff]  ;;  %v10113_v48 = vpop.f32.mrf.mxu0 }
 0x1e0   :  { %v10099_v21 = vpop.f32.mrf.mxu1  ;;  %4491 = vmatpush1.bf16.msra.mxu0 %v8086_v19  ;;  %v8070_v19 = vcombine.low %v2979_v50, %v2983_v4  ;;  %v7935_v33 = vcombine.high %v2843_v0, %v2847_v52  ;;  %v2975_v31 = vld [vmem:[#allocation5 + $0x460] sm:$0xff]  ;;  %13876 = vst [vmem:[#allocation29_spill] sm:$0xff] %v10113_v48 }
 0x1e1   :  { %13869 = vst [vmem:[#allocation22_spill] sm:$0xff] %v10099_v21  ;;  %4492 = vmatprep.subr.bf16.mxu0 %v8079_v10  ;;  %v8071_v21 = vcombine.high %v2979_v50, %v2983_v4  ;;  %4381 = vmatprep.subr.bf16.mxu1 %v7943_v5  ;;  %v2971_v10 = vld [vmem:[#allocation5 + $0x440] sm:$0xff] }
 0x1e2   :  { %v10103_v20 = vpop.f32.mrf.mxu1  ;;  %4382 = vmatpush1.bf16.msra.mxu1 %v7942_v63  ;;  %v8062_v13 = vcombine.low %v2971_v10, %v2975_v31  ;;  %v2835_v5 = vld [vmem:[#allocation5] sm:$0xff] }
 0x1e3   :  { %13871 = vst [vmem:[#allocation24_spill] sm:$0xff] %v10103_v20  ;;  %v8063_v20 = vcombine.high %v2971_v10, %v2975_v31  ;;  %4383 = vmatprep.subr.bf16.mxu1 %v7935_v33  ;;  %v2839_v50 = vld [vmem:[#allocation5 + $0x20] sm:$0xff] }
 0x1e4   :  { %4493 = vmatpush1.bf16.msra.mxu0 %v8078_v23  ;;  %v10107_v6 = vpop.f32.mrf.mxu1  ;;  %v7934_v23 = vcombine.low %v2843_v0, %v2847_v52  ;;  %v7927_v63 = vcombine.high %v2835_v5, %v2839_v50  ;;  %v2967_v4 = vld [vmem:[#allocation5 + $0x420] sm:$0xff]  ;;  %v7926_v7 = vcombine.low %v2835_v5, %v2839_v50  ;;  %v10117_v52 = vpop.f32.mrf.mxu0 }
 0x1e5   :  { %13873 = vst [vmem:[#allocation26_spill] sm:$0xff] %v10107_v6  ;;  %4494 = vmatprep.subr.bf16.mxu0 %v8071_v21  ;;  %v2963_v21 = vld [vmem:[#allocation5 + $0x400] sm:$0xff]  ;;  %13878 = vst [vmem:[#allocation31_spill] sm:$0xff] %v10117_v52 }
 0x1e6   :  { %v10111_v15 = vpop.f32.mrf.mxu1  ;;  %4384 = vmatpush1.bf16.msra.mxu1 %v7934_v23  ;;  %v8055_v6 = vcombine.high %v2963_v21, %v2967_v4  ;;  %v2955_v10 = vld [vmem:[#allocation5 + $0x3c0] sm:$0xff]  ;;  %v10121_v50 = vpop.f32.mrf.mxu0 }
 0x1e7   :  { %13875 = vst [vmem:[#allocation28_spill] sm:$0xff] %v10111_v15  ;;  %4385 = vmatprep.subr.bf16.mxu1 %v7927_v63  ;;  %v2959_v33 = vld [vmem:[#allocation5 + $0x3e0] sm:$0xff]  ;;  %13880 = vst [vmem:[#allocation33_spill] sm:$0xff] %v10121_v50 }
 0x1e8   :  { %4495 = vmatpush1.bf16.msra.mxu0 %v8070_v19  ;;  %v8054_v19 = vcombine.low %v2963_v21, %v2967_v4  ;;  %v10115_v0 = vpop.f32.mrf.mxu1  ;;  %v8047_v31 = vcombine.high %v2955_v10, %v2959_v33  ;;  %v3087_v23 = vld [vmem:[#allocation5 + $0x7e0] sm:$0xff]  ;;  %v8046_v48 = vcombine.low %v2955_v10, %v2959_v33  ;;  %v10125_v33 = vpop.f32.mrf.mxu0 }
 0x1e9   :  { %4496 = vmatprep.subr.bf16.mxu0 %v8063_v20  ;;  %13877 = vst [vmem:[#allocation30_spill] sm:$0xff] %v10115_v0  ;;  %v3083_v20 = vld [vmem:[#allocation5 + $0x7c0] sm:$0xff]  ;;  %13882 = vst [vmem:[#allocation35_spill] sm:$0xff] %v10125_v33 }
 0x1ea   :  { %4386 = vmatpush1.bf16.msra.mxu1 %v7926_v7  ;;  %v8175_v15 = vcombine.high %v3083_v20, %v3087_v23  ;;  %v10119_v5 = vpop.f32.mrf.mxu1  ;;  %v2947_v21 = vld [vmem:[#allocation5 + $0x380] sm:$0xff] }
 0x1eb   :  { %4387 = vmatprep.subr.bf16.mxu1 %v8047_v31  ;;  %13879 = vst [vmem:[#allocation32_spill] sm:$0xff] %v10119_v5  ;;  %v2951_v63 = vld [vmem:[#allocation5 + $0x3a0] sm:$0xff] }
 0x1ec   :  { %4497 = vmatpush1.bf16.msra.mxu0 %v8062_v13  ;;  %v8174_v13 = vcombine.low %v3083_v20, %v3087_v23  ;;  %v8039_v7 = vcombine.high %v2947_v21, %v2951_v63  ;;  %v3079_v4 = vld [vmem:[#allocation5 + $0x7a0] sm:$0xff]  ;;  %v8038_v52 = vcombine.low %v2947_v21, %v2951_v63  ;;  %v10123_v10 = vpop.f32.mrf.mxu1 }
 0x1ed   :  { %4498 = vmatprep.subr.bf16.mxu0 %v8055_v6  ;;  %v3075_v6 = vld [vmem:[#allocation5 + $0x780] sm:$0xff]  ;;  %13881 = vst [vmem:[#allocation34_spill] sm:$0xff] %v10123_v10 }
 0x1ee   :  { %4388 = vmatpush2.bf16.msra.mxu1 %v8046_v48  ;;  %v8167_v0 = vcombine.high %v3075_v6, %v3079_v4  ;;  %v2939_v20 = vld [vmem:[#allocation5 + $0x340] sm:$0xff] }
 0x1ef   :  { %4389 = vmatprep.subr.bf16.mxu1 %v8039_v7  ;;  %v2943_v31 = vld [vmem:[#allocation5 + $0x360] sm:$0xff] }
 0x1f0   :  { %4499 = vmatpush1.bf16.msra.mxu0 %v8054_v19  ;;  %v8166_v19 = vcombine.low %v3075_v6, %v3079_v4  ;;  %v8031_v48 = vcombine.high %v2939_v20, %v2943_v31  ;;  %v3071_v23 = vld [vmem:[#allocation5 + $0x760] sm:$0xff]  ;;  %v8030_v5 = vcombine.low %v2939_v20, %v2943_v31 }
 0x1f1   :  { %4500 = vmatprep.subr.bf16.mxu0 %v8175_v15  ;;  %v3067_v15 = vld [vmem:[#allocation5 + $0x740] sm:$0xff] }
 0x1f2   :  { %4390 = vmatpush2.bf16.msra.mxu1 %v8038_v52  ;;  %v8158_v22 = vcombine.low %v3067_v15, %v3071_v23  ;;  %v8159_v21 = vcombine.high %v3067_v15, %v3071_v23  ;;  %v2931_v7 = vld [vmem:[#allocation5 + $0x300] sm:$0xff] }
 0x1f3   :  { %4391 = vmatprep.subr.bf16.mxu1 %v8031_v48  ;;  %v2935_v4 = vld [vmem:[#allocation5 + $0x320] sm:$0xff] }
 0x1f4   :  { %4501 = vmatpush2.bf16.msra.mxu0 %v8174_v13  ;;  %v8022_v15 = vcombine.low %v2931_v7, %v2935_v4  ;;  %v8023_v48 = vcombine.high %v2931_v7, %v2935_v4 }
 0x1f5   :  { %4502 = vmatprep.subr.bf16.mxu0 %v8167_v0 }
 0x1f6   :  { %4392 = vmatpush2.bf16.msra.mxu1 %v8030_v5 }
 0x1f7   :  { %4393 = vmatprep.subr.bf16.mxu1 %v8023_v48 }
 0x1f8   :  { %4503 = vmatpush2.bf16.msra.mxu0 %v8166_v19  ;;  %v3059_v19 = vld [vmem:[#allocation5 + $0x700] sm:$0xff] }
 0x1f9   :  { %4504 = vmatprep.subr.bf16.mxu0 %v8159_v21 }
 0x1fa   :  { %4394 = vmatpush2.bf16.msra.mxu1 %v8022_v15 }
 0x1fc   :  { %4505 = vmatpush2.bf16.msra.mxu0 %v8158_v22  ;;  %v2923_v22 = vld [vmem:[#allocation5 + $0x2c0] sm:$0xff] }
 0x240   :  { %v2051_v50 = vpop.f32.mrf.mxu1  ;;  %v2164_v13 = vpop.f32.mrf.mxu0 }
 0x241   :  { %v10128_v63 = vadd.f32 %v2051_v50, %v9999_v41  ;;  %v10131_v6 = vadd.f32 %v2164_v13, %v10001_v37  ;;  %v3063_v37 = vld [vmem:[#allocation5 + $0x720] sm:$0xff] }
 0x242   :  { %v2053_v0 = vpop.f32.mrf.mxu1  ;;  %v2166_v52 = vpop.f32.mrf.mxu0  ;;  %v8150_v23 = vcombine.low %v3059_v19, %v3063_v37  ;;  %v8151_v5 = vcombine.high %v3059_v19, %v3063_v37 }
 0x243   :  { %13883 = vst [vmem:[#allocation36_spill] sm:$0xff] %v10128_v63  ;;  %13884 = vst [vmem:[#allocation37_spill] sm:$0xff] %v10131_v6  ;;  %v2331_v33 = vmul.f32 %v10128_v63, %v10128_v63  ;;  %v10136_v20 = vadd.f32 %v2053_v0, %v10003_v38  ;;  %v10139_v41 = vadd.f32 %v2166_v52, %v10005_v40  ;;  %v2927_v0 = vld [vmem:[#allocation5 + $0x2e0] sm:$0xff] }
 0x244   :  { %v2055_v50 = vpop.f32.mrf.mxu1  ;;  %v2168_v31 = vpop.f32.mrf.mxu0  ;;  %v2333_v13 = vmul.f32 %v10131_v6, %v10131_v6  ;;  %v10151_v52 = vld [vmem:[#allocation5 + $0x6c0] sm:$0xff]  ;;  %4506 = vmatprep.subr.bf16.mxu0 %v8151_v5  ;;  %v8014_v37 = vcombine.low %v2923_v22, %v2927_v0  ;;  %v8015_v10 = vcombine.high %v2923_v22, %v2927_v0 }
 0x245   :  { %v2332_v21 = vmul.f32 %v10136_v20, %v10136_v20  ;;  %v10146_v38 = vadd.f32 %v2055_v50, %v10007_v44  ;;  %v10149_v40 = vadd.f32 %v2168_v31, %v10009_v51  ;;  %v2334_v7 = vmul.f32 %v10139_v41, %v10139_v41  ;;  %4507 = vmatpush2.bf16.msra.mxu0 %v8150_v23 }
 0x246   :  { %v2057_v4 = vpop.f32.mrf.mxu1  ;;  %v2170_v19 = vpop.f32.mrf.mxu0  ;;  %4395 = vmatprep.subr.bf16.mxu1 %v8015_v10 }
 0x247   :  { %13885 = vst [vmem:[#allocation38_spill] sm:$0xff] %v10146_v38  ;;  %13886 = vst [vmem:[#allocation39_spill] sm:$0xff] %v10149_v40  ;;  %v2243_v44 = vadd.f32 %v10146_v38, %v10128_v63  ;;  %v2335_v51 = vmul.f32 %v10146_v38, %v10146_v38  ;;  %v2285_v50 = vadd.f32 %v10149_v40, %v10131_v6  ;;  %4396 = vmatpush2.bf16.msra.mxu1 %v8014_v37 }
 0x248   :  { %v2337_v31 = vmul.f32 %v10149_v40, %v10149_v40  ;;  %v10166_v48 = vadd.f32 %v2057_v4, %v10011_v29  ;;  %v10169_v5 = vadd.f32 %v2170_v19, %v10013_v54  ;;  %v2061_v22 = vpop.f32.mrf.mxu1  ;;  %v2174_v0 = vpop.f32.mrf.mxu0 }
 0x249   :  { %v2395_v63 = vadd.f32 %v2335_v51, %v2331_v33  ;;  %v10174_v6 = vadd.f32 %v2061_v22, %v10015_v61  ;;  %v10177_v15 = vadd.f32 %v2174_v0, %v10017_v30 }
 0x24a   :  { %13887 = vst [vmem:[#allocation40_spill] sm:$0xff] %v10169_v5  ;;  %v2437_v12 = vadd.f32 %v2337_v31, %v2333_v13  ;;  %v2264_v29 = vadd.f32 %v10166_v48, %v10136_v20  ;;  %v2336_v54 = vmul.f32 %v10166_v48, %v10166_v48  ;;  %v2306_v10 = vadd.f32 %v10169_v5, %v10139_v41  ;;  %v2063_v33 = vpop.f32.mrf.mxu1  ;;  %v2176_v13 = vpop.f32.mrf.mxu0 }
 0x24b   :  { %13888 = vst [vmem:[#allocation41_spill] sm:$0xff] %v10174_v6  ;;  %v2338_v23 = vmul.f32 %v10169_v5, %v10169_v5  ;;  %v2244_v61 = vadd.f32 %v2243_v44, %v10174_v6  ;;  %v2339_v30 = vmul.f32 %v10174_v6, %v10174_v6  ;;  %v2286_v4 = vadd.f32 %v2285_v50, %v10177_v15 }
 0x24c   :  { %v2341_v19 = vmul.f32 %v10177_v15, %v10177_v15  ;;  %v2416_v51 = vadd.f32 %v2336_v54, %v2332_v21  ;;  %v10194_v22 = vadd.f32 %v2063_v33, %v10019_v8  ;;  %v10197_v0 = vadd.f32 %v2176_v13, %v10021_v1  ;;  %v2065_v38 = vpop.f32.mrf.mxu1  ;;  %v2178_v40 = vpop.f32.mrf.mxu0 }
 0x24d   :  { %v2458_v31 = vadd.f32 %v2338_v23, %v2334_v7  ;;  %v2396_v44 = vadd.f32 %v2395_v63, %v2339_v30  ;;  %v10200_v6 = vadd.f32 %v2065_v38, %v10023_v47  ;;  %v10203_v50 = vadd.f32 %v2178_v40, %v10025_v62 }
 0x24e   :  { %v2438_v5 = vadd.f32 %v2437_v12, %v2341_v19  ;;  %v2265_v37 = vadd.f32 %v2264_v29, %v10194_v22  ;;  %v2340_v21 = vmul.f32 %v10194_v22, %v10194_v22  ;;  %v2307_v8 = vadd.f32 %v2306_v10, %v10197_v0  ;;  %v2067_v7 = vpop.f32.mrf.mxu1  ;;  %v2180_v54 = vpop.f32.mrf.mxu0 }
 0x24f   :  { %v2342_v1 = vmul.f32 %v10197_v0, %v10197_v0  ;;  %v2245_v12 = vadd.f32 %v2244_v61, %v10200_v6  ;;  %v2343_v47 = vmul.f32 %v10200_v6, %v10200_v6  ;;  %v2287_v62 = vadd.f32 %v2286_v4, %v10203_v50 }
 0x250   :  { %v2345_v63 = vmul.f32 %v10203_v50, %v10203_v50  ;;  %v2417_v38 = vadd.f32 %v2416_v51, %v2340_v21  ;;  %v10218_v29 = vadd.f32 %v2067_v7, %v10027_v3  ;;  %v10221_v10 = vadd.f32 %v2180_v54, %v10029_v9  ;;  %v2071_v23 = vpop.f32.mrf.mxu1  ;;  %v2184_v33 = vpop.f32.mrf.mxu0 }
 0x251   :  { %v2459_v40 = vadd.f32 %v2458_v31, %v2342_v1  ;;  %v2397_v13 = vadd.f32 %v2396_v44, %v2343_v47  ;;  %v10224_v30 = vadd.f32 %v2071_v23, %v10031_v25  ;;  %v10227_v4 = vadd.f32 %v2184_v33, %v10033_v34 }
 0x252   :  { %v2439_v61 = vadd.f32 %v2438_v5, %v2345_v63  ;;  %v2266_v19 = vadd.f32 %v2265_v37, %v10218_v29  ;;  %v2344_v51 = vmul.f32 %v10218_v29, %v10218_v29  ;;  %v2308_v3 = vadd.f32 %v2307_v8, %v10221_v10  ;;  %v2073_v31 = vpop.f32.mrf.mxu1  ;;  %v2186_v21 = vpop.f32.mrf.mxu0 }
 0x253   :  { %v2346_v9 = vmul.f32 %v10221_v10, %v10221_v10  ;;  %v2246_v5 = vadd.f32 %v2245_v12, %v10224_v30  ;;  %v2347_v25 = vmul.f32 %v10224_v30, %v10224_v30  ;;  %v2288_v34 = vadd.f32 %v2287_v62, %v10227_v4 }
 0x254   :  { %v2349_v44 = vmul.f32 %v10227_v4, %v10227_v4  ;;  %v2418_v37 = vadd.f32 %v2417_v38, %v2344_v51  ;;  %v10242_v7 = vadd.f32 %v2073_v31, %v10035_v46  ;;  %v10245_v8 = vadd.f32 %v2186_v21, %v10037_v39  ;;  %v2075_v54 = vpop.f32.mrf.mxu1  ;;  %v2188_v47 = vpop.f32.mrf.mxu0 }
 0x255   :  { %v2460_v1 = vadd.f32 %v2459_v40, %v2346_v9  ;;  %v2398_v63 = vadd.f32 %v2397_v13, %v2347_v25  ;;  %v10248_v23 = vadd.f32 %v2075_v54, %v10039_v60  ;;  %v10251_v62 = vadd.f32 %v2188_v47, %v10041_v28 }
 0x256   :  { %v2440_v12 = vadd.f32 %v2439_v61, %v2349_v44  ;;  %v2267_v33 = vadd.f32 %v2266_v19, %v10242_v7  ;;  %v2348_v38 = vmul.f32 %v10242_v7, %v10242_v7  ;;  %v2309_v46 = vadd.f32 %v2308_v3, %v10245_v8  ;;  %v2077_v40 = vpop.f32.mrf.mxu1  ;;  %v2190_v51 = vpop.f32.mrf.mxu0 }
 0x257   :  { %v2350_v39 = vmul.f32 %v10245_v8, %v10245_v8  ;;  %v2247_v13 = vadd.f32 %v2246_v5, %v10248_v23  ;;  %v2351_v60 = vmul.f32 %v10248_v23, %v10248_v23  ;;  %v2289_v28 = vadd.f32 %v2288_v34, %v10251_v62 }
 0x258   :  { %v2353_v61 = vmul.f32 %v10251_v62, %v10251_v62  ;;  %v2419_v19 = vadd.f32 %v2418_v37, %v2348_v38  ;;  %v10266_v31 = vadd.f32 %v2077_v40, %v10043_v11  ;;  %v10269_v3 = vadd.f32 %v2190_v51, %v10045_v2  ;;  %v2081_v21 = vpop.f32.mrf.mxu1  ;;  %v2194_v25 = vpop.f32.mrf.mxu0 }
 0x259   :  { %v2461_v9 = vadd.f32 %v2460_v1, %v2350_v39  ;;  %v2399_v44 = vadd.f32 %v2398_v63, %v2351_v60  ;;  %v10272_v54 = vadd.f32 %v2081_v21, %v10047_v27  ;;  %v10275_v34 = vadd.f32 %v2194_v25, %v10049_v18 }
 0x25a   :  { %v2441_v5 = vadd.f32 %v2440_v12, %v2353_v61  ;;  %v2268_v47 = vadd.f32 %v2267_v33, %v10266_v31  ;;  %v2352_v37 = vmul.f32 %v10266_v31, %v10266_v31  ;;  %v2310_v11 = vadd.f32 %v2309_v46, %v10269_v3  ;;  %v2083_v1 = vpop.f32.mrf.mxu1  ;;  %v2196_v38 = vpop.f32.mrf.mxu0 }
 0x25b   :  { %13889 = vst [vmem:[#allocation42_spill] sm:$0xff] %v10272_v54  ;;  %13890 = vst [vmem:[#allocation43_spill] sm:$0xff] %v10275_v34  ;;  %v2354_v2 = vmul.f32 %v10269_v3, %v10269_v3  ;;  %v2248_v63 = vadd.f32 %v2247_v13, %v10272_v54  ;;  %v2355_v27 = vmul.f32 %v10272_v54, %v10272_v54 }
 0x25c   :  { %v2290_v18 = vadd.f32 %v2289_v28, %v10275_v34  ;;  %v2357_v12 = vmul.f32 %v10275_v34, %v10275_v34  ;;  %v2420_v33 = vadd.f32 %v2419_v19, %v2352_v37  ;;  %v10290_v40 = vadd.f32 %v2083_v1, %v10051_v42  ;;  %v2085_v51 = vpop.f32.mrf.mxu1  ;;  %v2198_v60 = vpop.f32.mrf.mxu0  ;;  %v10640_v34 = vld [vmem:[#allocation5 + $0x4a8] sm:$0xff] }
 0x25d   :  { %v2462_v39 = vadd.f32 %v2461_v9, %v2354_v2  ;;  %v10293_v46 = vadd.f32 %v2196_v38, %v10053_v35  ;;  %v2400_v61 = vadd.f32 %v2399_v44, %v2355_v27  ;;  %v10296_v21 = vadd.f32 %v2085_v51, %v10055_v59 }
 0x25e   :  { %v2442_v13 = vadd.f32 %v2441_v5, %v2357_v12  ;;  %v10299_v28 = vadd.f32 %v2198_v60, %v10057_v32  ;;  %v2269_v25 = vadd.f32 %v2268_v47, %v10290_v40  ;;  %v2356_v19 = vmul.f32 %v10290_v40, %v10290_v40  ;;  %v2087_v9 = vpop.f32.mrf.mxu1  ;;  %v2200_v37 = vpop.f32.mrf.mxu0 }
 0x25f   :  { %13891 = vst [vmem:[#allocation44_spill] sm:$0xff] %v10296_v21  ;;  %v2311_v42 = vadd.f32 %v2310_v11, %v10293_v46  ;;  %v2358_v35 = vmul.f32 %v10293_v46, %v10293_v46  ;;  %v2249_v44 = vadd.f32 %v2248_v63, %v10296_v21  ;;  %v2359_v59 = vmul.f32 %v10296_v21, %v10296_v21  ;;  %v10666_v21 = vld [vmem:[#allocation5 + $0x8] sm:$0xff] }
 0x260   :  { %13892 = vst [vmem:[#allocation45_spill] sm:$0xff] %v10299_v28  ;;  %v2291_v32 = vadd.f32 %v2290_v18, %v10299_v28  ;;  %v2361_v5 = vmul.f32 %v10299_v28, %v10299_v28  ;;  %v2421_v47 = vadd.f32 %v2420_v33, %v2356_v19  ;;  %v10314_v1 = vadd.f32 %v2087_v9, %v10059_v17  ;;  %v2091_v38 = vpop.f32.mrf.mxu1  ;;  %v2204_v27 = vpop.f32.mrf.mxu0 }
 0x261   :  { %v2463_v2 = vadd.f32 %v2462_v39, %v2358_v35  ;;  %v10317_v11 = vadd.f32 %v2200_v37, %v10061_v36  ;;  %v2401_v12 = vadd.f32 %v2400_v61, %v2359_v59  ;;  %v10320_v51 = vadd.f32 %v2091_v38, %v10063_v53  ;;  %13967 = vst [vmem:[#allocation73_spill] sm:$0xff] %v10666_v21 }
 0x262   :  { %v2443_v63 = vadd.f32 %v2442_v13, %v2361_v5  ;;  %v10323_v18 = vadd.f32 %v2204_v27, %v10065_v58  ;;  %v2270_v60 = vadd.f32 %v2269_v25, %v10314_v1  ;;  %v2360_v33 = vmul.f32 %v10314_v1, %v10314_v1  ;;  %v2093_v39 = vpop.f32.mrf.mxu1  ;;  %v2206_v19 = vpop.f32.mrf.mxu0 }
 0x263   :  { %13893 = vst [vmem:[#allocation46_spill] sm:$0xff] %v10317_v11  ;;  %13894 = vst [vmem:[#allocation47_spill] sm:$0xff] %v10320_v51  ;;  %v2312_v17 = vadd.f32 %v2311_v42, %v10317_v11  ;;  %v2362_v36 = vmul.f32 %v10317_v11, %v10317_v11  ;;  %v2250_v61 = vadd.f32 %v2249_v44, %v10320_v51 }
 0x264   :  { %13895 = vst [vmem:[#allocation48_spill] sm:$0xff] %v10323_v18  ;;  %v2363_v53 = vmul.f32 %v10320_v51, %v10320_v51  ;;  %v2292_v58 = vadd.f32 %v2291_v32, %v10323_v18  ;;  %v2365_v13 = vmul.f32 %v10323_v18, %v10323_v18  ;;  %v2422_v25 = vadd.f32 %v2421_v47, %v2360_v33  ;;  %v2095_v37 = vpop.f32.mrf.mxu1  ;;  %v2208_v59 = vpop.f32.mrf.mxu0 }
 0x265   :  { %v2464_v35 = vadd.f32 %v2463_v2, %v2362_v36  ;;  %v10338_v9 = vadd.f32 %v2093_v39, %v10067_v24  ;;  %v10341_v42 = vadd.f32 %v2206_v19, %v10069_v56  ;;  %v10344_v38 = vadd.f32 %v2095_v37, %v10071_v26 }
 0x266   :  { %v2402_v5 = vadd.f32 %v2401_v12, %v2363_v53  ;;  %v2444_v44 = vadd.f32 %v2443_v63, %v2365_v13  ;;  %v10347_v32 = vadd.f32 %v2208_v59, %v10073_v49  ;;  %v2097_v2 = vpop.f32.mrf.mxu1  ;;  %v2210_v33 = vpop.f32.mrf.mxu0 }
 0x267   :  { %13896 = vst [vmem:[#allocation49_spill] sm:$0xff] %v10338_v9  ;;  %13897 = vst [vmem:[#allocation50_spill] sm:$0xff] %v10341_v42  ;;  %v2271_v27 = vadd.f32 %v2270_v60, %v10338_v9  ;;  %v2364_v47 = vmul.f32 %v10338_v9, %v10338_v9  ;;  %v2313_v24 = vadd.f32 %v2312_v17, %v10341_v42 }
 0x268   :  { %13898 = vst [vmem:[#allocation51_spill] sm:$0xff] %v10344_v38  ;;  %13899 = vst [vmem:[#allocation52_spill] sm:$0xff] %v10347_v32  ;;  %v2366_v56 = vmul.f32 %v10341_v42, %v10341_v42  ;;  %v2251_v12 = vadd.f32 %v2250_v61, %v10344_v38  ;;  %v2367_v26 = vmul.f32 %v10344_v38, %v10344_v38  ;;  %v2101_v19 = vpop.f32.mrf.mxu1  ;;  %v2214_v53 = vpop.f32.mrf.mxu0 }
 0x269   :  { %v2293_v49 = vadd.f32 %v2292_v58, %v10347_v32  ;;  %v2369_v63 = vmul.f32 %v10347_v32, %v10347_v32  ;;  %v2423_v60 = vadd.f32 %v2422_v25, %v2364_v47  ;;  %v10362_v39 = vadd.f32 %v2097_v2, %v10075_v57 }
 0x26a   :  { %v2465_v36 = vadd.f32 %v2464_v35, %v2366_v56  ;;  %v10365_v17 = vadd.f32 %v2210_v33, %v10077_v14  ;;  %v2403_v13 = vadd.f32 %v2402_v5, %v2367_v26  ;;  %v10368_v37 = vadd.f32 %v2101_v19, %v10079_v16  ;;  %v2103_v35 = vpop.f32.mrf.mxu1  ;;  %v2216_v47 = vpop.f32.mrf.mxu0 }
 0x26b   :  { %13900 = vst [vmem:[#allocation53_spill] sm:$0xff] %v10362_v39  ;;  %v2445_v61 = vadd.f32 %v2444_v44, %v2369_v63  ;;  %v10371_v58 = vadd.f32 %v2214_v53, %v10081_v45  ;;  %v2272_v59 = vadd.f32 %v2271_v27, %v10362_v39  ;;  %v2368_v25 = vmul.f32 %v10362_v39, %v10362_v39  ;;  %v13907_v53 = vld [vmem:[#allocation16_spill] sm:$0xff]  ;;  %v13963_v39 = vld [vmem:[#allocation14_spill] sm:$0xff] }
 0x26c   :  { %13901 = vst [vmem:[#allocation54_spill] sm:$0xff] %v10365_v17  ;;  %13902 = vst [vmem:[#allocation55_spill] sm:$0xff] %v10368_v37  ;;  %v2314_v57 = vadd.f32 %v2313_v24, %v10365_v17  ;;  %v2370_v14 = vmul.f32 %v10365_v17, %v10365_v17  ;;  %v2252_v5 = vadd.f32 %v2251_v12, %v10368_v37  ;;  %v13905_v24 = vld [vmem:[#allocation15_spill] sm:$0xff]  ;;  %v2105_v26 = vpop.f32.mrf.mxu1  ;;  %v2218_v63 = vpop.f32.mrf.mxu0 }
 0x26d   :  { %13903 = vst [vmem:[#allocation56_spill] sm:$0xff] %v10371_v58  ;;  %v2371_v16 = vmul.f32 %v10368_v37, %v10368_v37  ;;  %v2294_v45 = vadd.f32 %v2293_v49, %v10371_v58  ;;  %v2373_v44 = vmul.f32 %v10371_v58, %v10371_v58  ;;  %v2424_v27 = vadd.f32 %v2423_v60, %v2368_v25  ;;  %v13909_v37 = vld [vmem:[#allocation17_spill] sm:$0xff] }
 0x26e   :  { %v2466_v56 = vadd.f32 %v2465_v36, %v2370_v14  ;;  %v10386_v2 = vadd.f32 %v2103_v35, %v10083_v55  ;;  %v10389_v33 = vadd.f32 %v2216_v47, %v13905_v24  ;;  %v10392_v32 = vadd.f32 %v2105_v26, %v13907_v53  ;;  %v2107_v25 = vpop.f32.mrf.mxu1  ;;  %v2220_v14 = vpop.f32.mrf.mxu0 }
 0x26f   :  { %v2404_v19 = vadd.f32 %v2403_v13, %v2371_v16  ;;  %v2446_v12 = vadd.f32 %v2445_v61, %v2373_v44  ;;  %v10395_v49 = vadd.f32 %v2218_v63, %v13909_v37  ;;  %v13911_v16 = vld [vmem:[#allocation18_spill] sm:$0xff] }
 0x270   :  { %13904 = vst [vmem:[#allocation57_spill] sm:$0xff] %v10386_v2  ;;  %13906 = vst [vmem:[#allocation15_spill] sm:$0xff] %v10389_v33  ;;  %v2273_v58 = vadd.f32 %v2272_v59, %v10386_v2  ;;  %v2372_v60 = vmul.f32 %v10386_v2, %v10386_v2  ;;  %v2315_v55 = vadd.f32 %v2314_v57, %v10389_v33  ;;  %v13913_v57 = vld [vmem:[#allocation19_spill] sm:$0xff]  ;;  %v2111_v26 = vpop.f32.mrf.mxu1  ;;  %v2224_v63 = vpop.f32.mrf.mxu0 }
 0x271   :  { %13908 = vst [vmem:[#allocation16_spill] sm:$0xff] %v10392_v32  ;;  %13910 = vst [vmem:[#allocation17_spill] sm:$0xff] %v10395_v49  ;;  %v2374_v36 = vmul.f32 %v10389_v33, %v10389_v33  ;;  %v2253_v13 = vadd.f32 %v2252_v5, %v10392_v32  ;;  %v2375_v61 = vmul.f32 %v10392_v32, %v10392_v32  ;;  %v13915_v33 = vld [vmem:[#allocation20_spill] sm:$0xff]  ;;  %v13917_v32 = vld [vmem:[#allocation21_spill] sm:$0xff] }
 0x272   :  { %v2295_v37 = vadd.f32 %v2294_v45, %v10395_v49  ;;  %v2377_v59 = vmul.f32 %v10395_v49, %v10395_v49  ;;  %v2425_v35 = vadd.f32 %v2424_v27, %v2372_v60  ;;  %v10410_v44 = vadd.f32 %v2107_v25, %v13911_v16  ;;  %v2226_v25 = vpop.f32.mrf.mxu0 }
 0x273   :  { %v2467_v47 = vadd.f32 %v2466_v56, %v2374_v36  ;;  %v10413_v24 = vadd.f32 %v2220_v14, %v13913_v57  ;;  %v2405_v53 = vadd.f32 %v2404_v19, %v2375_v61  ;;  %v10416_v2 = vadd.f32 %v2111_v26, %v13915_v33  ;;  %v2113_v36 = vpop.f32.mrf.mxu1  ;;  %v13919_v61 = vld [vmem:[#allocation22_spill] sm:$0xff] }
 0x274   :  { %13912 = vst [vmem:[#allocation18_spill] sm:$0xff] %v10410_v44  ;;  %v2447_v5 = vadd.f32 %v2446_v12, %v2377_v59  ;;  %v10419_v45 = vadd.f32 %v2224_v63, %v13917_v32  ;;  %v2274_v49 = vadd.f32 %v2273_v58, %v10410_v44  ;;  %v2376_v27 = vmul.f32 %v10410_v44, %v10410_v44  ;;  %v2228_v26 = vpop.f32.mrf.mxu0 }
 0x275   :  { %13914 = vst [vmem:[#allocation19_spill] sm:$0xff] %v10413_v24  ;;  %13916 = vst [vmem:[#allocation20_spill] sm:$0xff] %v10416_v2  ;;  %v2316_v56 = vadd.f32 %v2315_v55, %v10413_v24  ;;  %v2378_v60 = vmul.f32 %v10413_v24, %v10413_v24  ;;  %v2254_v19 = vadd.f32 %v2253_v13, %v10416_v2  ;;  %v13921_v55 = vld [vmem:[#allocation23_spill] sm:$0xff]  ;;  %v2115_v57 = vpop.f32.mrf.mxu1  ;;  %v13923_v24 = vld [vmem:[#allocation24_spill] sm:$0xff] }
 0x276   :  { %13918 = vst [vmem:[#allocation21_spill] sm:$0xff] %v10419_v45  ;;  %v2379_v33 = vmul.f32 %v10416_v2, %v10416_v2  ;;  %v2296_v32 = vadd.f32 %v2295_v37, %v10419_v45  ;;  %v2381_v58 = vmul.f32 %v10419_v45, %v10419_v45  ;;  %v2426_v12 = vadd.f32 %v2425_v35, %v2376_v27  ;;  %v13925_v2 = vld [vmem:[#allocation25_spill] sm:$0xff] }
 0x277   :  { %v2468_v14 = vadd.f32 %v2467_v47, %v2378_v60  ;;  %v10434_v59 = vadd.f32 %v2113_v36, %v13919_v61  ;;  %v10437_v16 = vadd.f32 %v2226_v25, %v13921_v55  ;;  %v10440_v44 = vadd.f32 %v2115_v57, %v13923_v24  ;;  %v2117_v60 = vpop.f32.mrf.mxu1  ;;  %v2230_v36 = vpop.f32.mrf.mxu0 }
 0x278   :  { %v2406_v63 = vadd.f32 %v2405_v53, %v2379_v33  ;;  %v2448_v13 = vadd.f32 %v2447_v5, %v2381_v58  ;;  %v10443_v37 = vadd.f32 %v2228_v26, %v13925_v2  ;;  %v13927_v33 = vld [vmem:[#allocation26_spill] sm:$0xff] }
 0x279   :  { %13920 = vst [vmem:[#allocation22_spill] sm:$0xff] %v10434_v59  ;;  %13922 = vst [vmem:[#allocation23_spill] sm:$0xff] %v10437_v16  ;;  %v2275_v45 = vadd.f32 %v2274_v49, %v10434_v59  ;;  %v2380_v35 = vmul.f32 %v10434_v59, %v10434_v59  ;;  %v2317_v47 = vadd.f32 %v2316_v56, %v10437_v16  ;;  %v13929_v56 = vld [vmem:[#allocation27_spill] sm:$0xff]  ;;  %v2121_v55 = vpop.f32.mrf.mxu1  ;;  %v2234_v57 = vpop.f32.mrf.mxu0 }
 0x27a   :  { %13924 = vst [vmem:[#allocation24_spill] sm:$0xff] %v10440_v44  ;;  %13926 = vst [vmem:[#allocation25_spill] sm:$0xff] %v10443_v37  ;;  %v2382_v27 = vmul.f32 %v10437_v16, %v10437_v16  ;;  %v2255_v53 = vadd.f32 %v2254_v19, %v10440_v44  ;;  %v2383_v24 = vmul.f32 %v10440_v44, %v10440_v44  ;;  %v13931_v16 = vld [vmem:[#allocation28_spill] sm:$0xff]  ;;  %v13933_v44 = vld [vmem:[#allocation29_spill] sm:$0xff] }
 0x27b   :  { %v2297_v2 = vadd.f32 %v2296_v32, %v10443_v37  ;;  %v2385_v49 = vmul.f32 %v10443_v37, %v10443_v37  ;;  %v2427_v5 = vadd.f32 %v2426_v12, %v2380_v35  ;;  %v10458_v58 = vadd.f32 %v2117_v60, %v13927_v33  ;;  %v2236_v60 = vpop.f32.mrf.mxu0 }
 0x27c   :  { %v2469_v25 = vadd.f32 %v2468_v14, %v2382_v27  ;;  %v10461_v61 = vadd.f32 %v2230_v36, %v13929_v56  ;;  %v2407_v26 = vadd.f32 %v2406_v63, %v2383_v24  ;;  %v10464_v59 = vadd.f32 %v2121_v55, %v13931_v16  ;;  %v2123_v27 = vpop.f32.mrf.mxu1  ;;  %v13935_v24 = vld [vmem:[#allocation30_spill] sm:$0xff] }
 0x27d   :  { %13928 = vst [vmem:[#allocation26_spill] sm:$0xff] %v10458_v58  ;;  %v2449_v19 = vadd.f32 %v2448_v13, %v2385_v49  ;;  %v10467_v32 = vadd.f32 %v2234_v57, %v13933_v44  ;;  %v2276_v37 = vadd.f32 %v2275_v45, %v10458_v58  ;;  %v2384_v12 = vmul.f32 %v10458_v58, %v10458_v58  ;;  %v2238_v55 = vpop.f32.mrf.mxu0 }
 0x27e   :  { %13930 = vst [vmem:[#allocation27_spill] sm:$0xff] %v10461_v61  ;;  %13932 = vst [vmem:[#allocation28_spill] sm:$0xff] %v10464_v59  ;;  %v2318_v14 = vadd.f32 %v2317_v47, %v10461_v61  ;;  %v2386_v35 = vmul.f32 %v10461_v61, %v10461_v61  ;;  %v2256_v63 = vadd.f32 %v2255_v53, %v10464_v59  ;;  %v13937_v47 = vld [vmem:[#allocation31_spill] sm:$0xff]  ;;  %v2125_v56 = vpop.f32.mrf.mxu1  ;;  %v13939_v61 = vld [vmem:[#allocation32_spill] sm:$0xff] }
 0x27f   :  { %13934 = vst [vmem:[#allocation29_spill] sm:$0xff] %v10467_v32  ;;  %v2387_v16 = vmul.f32 %v10464_v59, %v10464_v59  ;;  %v2298_v44 = vadd.f32 %v2297_v2, %v10467_v32  ;;  %v2389_v45 = vmul.f32 %v10467_v32, %v10467_v32  ;;  %v2428_v13 = vadd.f32 %v2427_v5, %v2384_v12  ;;  %v13941_v59 = vld [vmem:[#allocation33_spill] sm:$0xff] }
 0x280   :  { %v2470_v36 = vadd.f32 %v2469_v25, %v2386_v35  ;;  %v10482_v49 = vadd.f32 %v2123_v27, %v13935_v24  ;;  %v10485_v33 = vadd.f32 %v2236_v60, %v13937_v47  ;;  %v10488_v58 = vadd.f32 %v2125_v56, %v13939_v61  ;;  %v2127_v35 = vpop.f32.mrf.mxu1  ;;  %v2240_v27 = vpop.f32.mrf.mxu0 }
 0x281   :  { %v2408_v57 = vadd.f32 %v2407_v26, %v2387_v16  ;;  %v2450_v53 = vadd.f32 %v2449_v19, %v2389_v45  ;;  %v10491_v2 = vadd.f32 %v2238_v55, %v13941_v59  ;;  %v13943_v16 = vld [vmem:[#allocation34_spill] sm:$0xff] }
 0x282   :  { %13936 = vst [vmem:[#allocation30_spill] sm:$0xff] %v10482_v49  ;;  %13938 = vst [vmem:[#allocation31_spill] sm:$0xff] %v10485_v33  ;;  %v2277_v32 = vadd.f32 %v2276_v37, %v10482_v49  ;;  %v2388_v5 = vmul.f32 %v10482_v49, %v10482_v49  ;;  %v2319_v25 = vadd.f32 %v2318_v14, %v10485_v33  ;;  %v13945_v14 = vld [vmem:[#allocation35_spill] sm:$0xff] }
 0x283   :  { %13940 = vst [vmem:[#allocation32_spill] sm:$0xff] %v10488_v58  ;;  %13942 = vst [vmem:[#allocation33_spill] sm:$0xff] %v10491_v2  ;;  %v2390_v12 = vmul.f32 %v10485_v33, %v10485_v33  ;;  %v2257_v26 = vadd.f32 %v2256_v63, %v10488_v58  ;;  %v2391_v61 = vmul.f32 %v10488_v58, %v10488_v58 }
 0x284   :  { %v2299_v59 = vadd.f32 %v2298_v44, %v10491_v2  ;;  %v2393_v37 = vmul.f32 %v10491_v2, %v10491_v2  ;;  %v2429_v19 = vadd.f32 %v2428_v13, %v2388_v5  ;;  %v10506_v45 = vadd.f32 %v2127_v35, %v13943_v16 }
 0x285   :  { %v2471_v60 = vadd.f32 %v2470_v36, %v2390_v12  ;;  %v10509_v24 = vadd.f32 %v2240_v27, %v13945_v14  ;;  %v2258_v47 = vrot.slane %v2257_v26, 4  ;;  %v2409_v56 = vadd.f32 %v2408_v57, %v2391_v61 }
 0x286   :  { %13944 = vst [vmem:[#allocation34_spill] sm:$0xff] %v10506_v45  ;;  %v2300_v55 = vrot.slane %v2299_v59, 4  ;;  %v2451_v63 = vadd.f32 %v2450_v53, %v2393_v37  ;;  %v2278_v49 = vadd.f32 %v2277_v32, %v10506_v45  ;;  %v2392_v44 = vmul.f32 %v10506_v45, %v10506_v45 }
 0x287   :  { %v2320_v58 = vadd.f32 %v2319_v25, %v10509_v24  ;;  %v2394_v13 = vmul.f32 %v10509_v24, %v10509_v24  ;;  %v2259_v36 = vadd.f32 %v2258_v47, %v2257_v26  ;;  %v2410_v5 = vrot.slane %v2409_v56, 4 }
 0x288   :  { %v2301_v12 = vadd.f32 %v2300_v55, %v2299_v59  ;;  %v2452_v35 = vrot.slane %v2451_v63, 4  ;;  %v2279_v27 = vrot.slane %v2278_v49, 4  ;;  %v2430_v16 = vadd.f32 %v2429_v19, %v2392_v44 }
 0x289   :  { %v2321_v14 = vrot.slane %v2320_v58, 4  ;;  %v2472_v57 = vadd.f32 %v2471_v60, %v2394_v13  ;;  %v2260_v61 = vrot.slane %v2259_v36, 2  ;;  %v2411_v53 = vadd.f32 %v2410_v5, %v2409_v56 }
 0x28a   :  { %v2302_v37 = vrot.slane %v2301_v12, 2  ;;  %v2453_v32 = vadd.f32 %v2452_v35, %v2451_v63  ;;  %v2280_v2 = vadd.f32 %v2279_v27, %v2278_v49  ;;  %v2431_v33 = vrot.slane %v2430_v16, 4 }
 0x28b   :  { %v2322_v45 = vadd.f32 %v2321_v14, %v2320_v58  ;;  %v2473_v18 = vrot.slane %v2472_v57, 4  ;;  %v2261_v25 = vadd.f32 %v2260_v61, %v2259_v36  ;;  %v2412_v38 = vrot.slane %v2411_v53, 2 }
 0x28c   :  { %v2303_v51 = vadd.f32 %v2302_v37, %v2301_v12  ;;  %v2454_v17 = vrot.slane %v2453_v32, 2  ;;  %v2281_v26 = vrot.slane %v2280_v2, 2  ;;  %v2432_v47 = vadd.f32 %v2431_v33, %v2430_v16 }
 0x28d   :  { %v2323_v59 = vrot.slane %v2322_v45, 2  ;;  %v2474_v55 = vadd.f32 %v2473_v18, %v2472_v57  ;;  %v2262_v42 = vrot.slane %v2261_v25, 1  ;;  %v2413_v19 = vadd.f32 %v2412_v38, %v2411_v53  ;;  %v2919_v53 = vld [vmem:[#allocation5 + $0x2a0] sm:$0xff] }
 0x28e   :  { %v2304_v44 = vrot.slane %v2303_v51, 1  ;;  %v2455_v60 = vadd.f32 %v2454_v17, %v2453_v32  ;;  %v2282_v13 = vadd.f32 %v2281_v26, %v2280_v2  ;;  %v2433_v56 = vrot.slane %v2432_v47, 2 }
 0x28f   :  { %v2324_v5 = vadd.f32 %v2323_v59, %v2322_v45  ;;  %v2475_v63 = vrot.slane %v2474_v55, 2  ;;  %v2263_v49 = vadd.f32 %v2262_v42, %v2261_v25  ;;  %v2414_v35 = vrot.slane %v2413_v19, 1  ;;  %v2915_v45 = vld [vmem:[#allocation5 + $0x280] sm:$0xff] }
 0x290   :  { %v2305_v58 = vadd.f32 %v2304_v44, %v2303_v51  ;;  %v2456_v27 = vrot.slane %v2455_v60, 1  ;;  %v2283_v36 = vrot.slane %v2282_v13, 1  ;;  %v2434_v14 = vadd.f32 %v2433_v56, %v2432_v47  ;;  %v3043_v56 = vld [vmem:[#allocation5 + $0x680] sm:$0xff] }
 0x291   :  { %v2325_v12 = vrot.slane %v2324_v5, 1  ;;  %v2476_v61 = vadd.f32 %v2475_v63, %v2474_v55  ;;  %v10517_v37 = vmul.f32 0.0078125, %v2263_v49  ;;  %v2415_v33 = vadd.f32 %v2414_v35, %v2413_v19 }
 0x292   :  { %v10519_v18 = vmul.f32 0.0078125, %v2305_v58  ;;  %v2457_v38 = vadd.f32 %v2456_v27, %v2455_v60  ;;  %v2284_v16 = vadd.f32 %v2283_v36, %v2282_v13  ;;  %v2435_v17 = vrot.slane %v2434_v14, 1  ;;  %v2907_v27 = vld [vmem:[#allocation5 + $0x240] sm:$0xff] }
 0x293   :  { %v2326_v2 = vadd.f32 %v2325_v12, %v2324_v5  ;;  %v2477_v57 = vrot.slane %v2476_v61, 1  ;;  %v2479_v42 = vmul.f32 0.0078125, %v2415_v33  ;;  %v2483_v51 = vmul.f32 %v10517_v37, %v10517_v37  ;;  %v3047_v5 = vld [vmem:[#allocation5 + $0x6a0] sm:$0xff] }
 0x294   :  { %v2481_v32 = vmul.f32 0.0078125, %v2457_v38  ;;  %v2485_v25 = vmul.f32 %v10519_v18, %v10519_v18  ;;  %v10525_v26 = vmul.f32 0.0078125, %v2284_v16  ;;  %v2436_v47 = vadd.f32 %v2435_v17, %v2434_v14  ;;  %v2911_v36 = vld [vmem:[#allocation5 + $0x260] sm:$0xff] }
 0x295   :  { %v10527_v59 = vmul.f32 0.0078125, %v2326_v2  ;;  %v2478_v55 = vadd.f32 %v2477_v57, %v2476_v61  ;;  %v2487_v19 = vsub.f32 %v2479_v42, %v2483_v51  ;;  %v8143_v60 = vcombine.high %v10151_v52, %v10155_v43  ;;  %v3035_v33 = vld [vmem:[#allocation5 + $0x640] sm:$0xff] }
 0x296   :  { %v2489_v44 = vsub.f32 %v2481_v32, %v2485_v25  ;;  %v8006_v13 = vcombine.low %v2915_v45, %v2919_v53  ;;  %v2480_v63 = vmul.f32 0.0078125, %v2436_v47  ;;  %v2484_v49 = vmul.f32 %v10525_v26, %v10525_v26  ;;  %v3039_v38 = vld [vmem:[#allocation5 + $0x660] sm:$0xff] }
 0x297   :  { %v2482_v35 = vmul.f32 0.0078125, %v2478_v55  ;;  %v2486_v58 = vmul.f32 %v10527_v59, %v10527_v59  ;;  %v2491_v14 = vmax.f32 %v2487_v19, 0.0  ;;  %4508 = vmatprep.subr.bf16.mxu0 %v8143_v60  ;;  %v8007_v61 = vcombine.high %v2915_v45, %v2919_v53  ;;  %v2899_v51 = vld [vmem:[#allocation5 + $0x200] sm:$0xff] }
 0x298   :  { %v2493_v12 = vmax.f32 %v2489_v44, 0.0  ;;  %v2488_v16 = vsub.f32 %v2480_v63, %v2484_v49  ;;  %v13946_v2 = vcombine.low %v10151_v52, %v10155_v43  ;;  %v8134_v57 = vcombine.low %v3043_v56, %v3047_v5  ;;  %v2903_v32 = vld [vmem:[#allocation5 + $0x220] sm:$0xff] }
 0x299   :  { %v2490_v17 = vsub.f32 %v2482_v35, %v2486_v58  ;;  %v8135_v42 = vcombine.high %v3043_v56, %v3047_v5  ;;  %v2496_v25 = vadd.f32 1e-05, %v2491_v14  ;;  %4397 = vmatprep.subr.bf16.mxu1 %v8007_v61  ;;  %v7999_v55 = vcombine.high %v2907_v27, %v2911_v36  ;;  %v3027_v60 = vld [vmem:[#allocation5 + $0x600] sm:$0xff]  ;;  %v10538_v5 = vld [vmem:[#allocation5 + $0x1c8] sm:$0xff] }
 0x29a   :  { %4509 = vmatpush2.bf16.msra.mxu0 %v13946_v2  ;;  %v2498_v47 = vadd.f32 1e-05, %v2493_v12  ;;  %v2492_v19 = vmax.f32 %v2488_v16, 0.0  ;;  %4398 = vmatpush2.bf16.msra.mxu1 %v8006_v13  ;;  %v7998_v45 = vcombine.low %v2907_v27, %v2911_v36  ;;  %v8127_v53 = vcombine.high %v3035_v33, %v3039_v38  ;;  %v3031_v63 = vld [vmem:[#allocation5 + $0x620] sm:$0xff]  ;;  %v10540_v35 = vld [vmem:[#allocation5 + $0x1e8] sm:$0xff] }
 0x29b   :  { %v2494_v44 = vmax.f32 %v2490_v17, 0.0  ;;  %4510 = vmatprep.subr.bf16.mxu0 %v8135_v42  ;;  %4399 = vmatprep.subr.bf16.mxu1 %v7999_v55  ;;  %v7991_v49 = vcombine.high %v2899_v51, %v2903_v32  ;;  %8771 = vrsqrt.f32 %v2496_v25  ;;  %v8126_v56 = vcombine.low %v3035_v33, %v3039_v38  ;;  %v10542_v27 = vld [vmem:[#allocation5 + $0x5c8] sm:$0xff]  ;;  %v2495_v25 = vld [vmem:[%s13568_s9] sm:$0xf] }
 0x29c   :  { %v2497_v43 = vadd.f32 1e-05, %v2492_v19  ;;  %8773 = vrsqrt.f32 %v2498_v47  ;;  %v8119_v58 = vcombine.high %v3027_v60, %v3031_v63  ;;  %v7990_v13 = vcombine.low %v2899_v51, %v2903_v32  ;;  %v10544_v36 = vld [vmem:[#allocation5 + $0x5e8] sm:$0xff] }
 0x29d   :  { %v2499_v52 = vadd.f32 1e-05, %v2494_v44  ;;  %v7985_v14 = vcombine.high %v10538_v5, %v10540_v35  ;;  %v8118_v12 = vcombine.low %v3027_v60, %v3031_v63  ;;  %v8113_v61 = vcombine.high %v10542_v27, %v10544_v36  ;;  %v13947_v42 = vld [vmem:[#allocation12_spill] sm:$0xff]  ;;  %v13948_v63 = vld [vmem:[#allocation11_spill] sm:$0xff] }
 0x29e   :  { %4511 = vmatpush2.bf16.msra.mxu0 %v8134_v57  ;;  %8775 = vrsqrt.f32 %v2497_v43  ;;  %4400 = vmatpush2.bf16.msra.mxu1 %v7998_v45  ;;  %v10555_v47 = vld [vmem:[#allocation5 + $0x188] sm:$0xff]  ;;  %v10571_v43 = vsub.s32 3, %v13948_v63 }
 0x29f   :  { %4512 = vmatprep.subr.bf16.mxu0 %v8127_v53  ;;  %8777 = vrsqrt.f32 %v2499_v52  ;;  %4401 = vmatprep.subr.bf16.mxu1 %v7991_v49  ;;  %v10557_v55 = vld [vmem:[#allocation5 + $0x1a8] sm:$0xff]  ;;  %v10568_v49 = vsub.s32 2, %v13948_v63 }
 0x2a0   :  { %v10559_v19 = vld [vmem:[#allocation5 + $0x588] sm:$0xff]  ;;  %13950 = vst [vmem:[#allocation58_spill] sm:$0xff] %v10571_v43 }
 0x2a1   :  { %v10561_v45 = vld [vmem:[#allocation5 + $0x5a8] sm:$0xff]  ;;  %13949 = vst [vmem:[#allocation35_spill] sm:$0xff] %v10568_v49 }
 0x2a2   :  { %4513 = vmatpush2.bf16.msra.mxu0 %v8126_v56  ;;  %4402 = vmatpush2.bf16.msra.mxu1 %v7990_v13  ;;  %v10563_v53 = vld [vmem:[#allocation5 + $0x148] sm:$0xff] }
 0x2a3   :  { %4514 = vmatprep.subr.bf16.mxu0 %v8119_v58  ;;  %4597 = vmatprep.subr.bf16.mxu1 %v7985_v14  ;;  %v10565_v60 = vld [vmem:[#allocation5 + $0x168] sm:$0xff] }
 0x2a4   :  { %v10573_v52 = vld [vmem:[#allocation5 + $0x548] sm:$0xff] }
 0x2a5   :  { %13951 = vst [vmem:[#allocation59_spill] sm:$0xff] %v10573_v52  ;;  %v10575_v56 = vld [vmem:[#allocation5 + $0x568] sm:$0xff] }
 0x2a6   :  { %4515 = vmatpush2.bf16.msra.mxu0 %v8118_v12  ;;  %13952 = vst [vmem:[#allocation60_spill] sm:$0xff] %v10575_v56  ;;  %v10577_v58 = vld [vmem:[#allocation5 + $0x108] sm:$0xff] }
 0x2a7   :  { %4710 = vmatprep.subr.bf16.mxu0 %v8113_v61  ;;  %13953 = vst [vmem:[#allocation61_spill] sm:$0xff] %v10577_v58  ;;  %v10608_v14 = vld [vmem:[#allocation5 + $0xe8] sm:$0xff] }
 0x2a8   :  { %v8772_v33 = vpop.eup %8771  ;;  %13958 = vst [vmem:[#allocation66_spill] sm:$0xff] %v10608_v14  ;;  %v10622_v61 = vld [vmem:[#allocation5 + $0x88] sm:$0xff] }
 0x2a9   :  { %v8774_v38 = vpop.eup %8773  ;;  %13961 = vst [vmem:[#allocation69_spill] sm:$0xff] %v10622_v61  ;;  %v10654_v58 = vld [vmem:[#allocation5 + $0x448] sm:$0xff] }
 0x2aa   :  { %v10664_v14 = vld [vmem:[#allocation5 + $0x468] sm:$0xff] }
 0x2ab   :  { %v8776_v16 = vpop.eup %8775  ;;  %13966 = vst [vmem:[#allocation72_spill] sm:$0xff] %v10664_v14  ;;  %v10684_v52 = vld [vmem:[#allocation5 + $0x3c8] sm:$0xff]  ;;  %v2534_v14 = vld [vmem:[%s13569_s10] sm:$0xf] }
 0x2ac   :  { %v8778_v17 = vpop.eup %8777  ;;  %v2508_v2 = vcombine.low %v8772_v33, %v8776_v16  ;;  %v10586_v33 = vld [vmem:[#allocation5 + $0x128] sm:$0xff]  ;;  %13972 = vst [vmem:[#allocation78_spill] sm:$0xff] %v10684_v52 }
 0x2ad   :  { %v2509_v57 = vcombine.low %v8774_v38, %v8778_v17  ;;  %13954 = vst [vmem:[#allocation62_spill] sm:$0xff] %v10586_v33  ;;  %v10588_v38 = vld [vmem:[#allocation5 + $0x508] sm:$0xff]  ;;  %v13962_v17 = vld [vmem:[#allocation13_spill] sm:$0xff] }
 0x2ae   :  { %v2516_v51 = vrot.slane %v2508_v2, %v13947_v42  ;;  %13955 = vst [vmem:[#allocation63_spill] sm:$0xff] %v10588_v38  ;;  %v10590_v16 = vld [vmem:[#allocation5 + $0x528] sm:$0xff] }
 0x2af   :  { %v2523_v32 = vrot.slane %v2509_v57, %v13947_v42  ;;  %13956 = vst [vmem:[#allocation64_spill] sm:$0xff] %v10590_v16  ;;  %v10610_v2 = vld [vmem:[#allocation5 + $0x4c8] sm:$0xff] }
 0x2b0   :  { %13959 = vst [vmem:[#allocation67_spill] sm:$0xff] %v10610_v2  ;;  %v10612_v57 = vld [vmem:[#allocation5 + $0x4e8] sm:$0xff] }
 0x2b1   :  { %v2524_v44 = vcombine.low %v2516_v51, %v2523_v32  ;;  %v10600_v32 = vld [vmem:[#allocation5 + $0xc8] sm:$0xff]  ;;  %13960 = vst [vmem:[#allocation68_spill] sm:$0xff] %v10612_v57 }
 0x2b2   :  { %13957 = vst [vmem:[#allocation65_spill] sm:$0xff] %v10600_v32  ;;  %v10652_v33 = vld [vmem:[#allocation5 + $0x68] sm:$0xff] }
 0x2b3   :  { %v2531_v13 = vrot.slane %v2524_v44, %v13947_v42  ;;  %13965 = vst [vmem:[#allocation71_spill] sm:$0xff] %v10652_v33  ;;  %v10668_v57 = vld [vmem:[#allocation5 + $0x28] sm:$0xff] }
 0x2b4   :  { %13968 = vst [vmem:[#allocation74_spill] sm:$0xff] %v10668_v57  ;;  %v10682_v32 = vld [vmem:[#allocation5 + $0x428] sm:$0xff] }
 0x2b5   :  { %v2533_v44 = vmul.f32 %v2531_v13, %v2495_v25  ;;  %v10636_v25 = vld [vmem:[#allocation5 + $0xa8] sm:$0xff]  ;;  %13971 = vst [vmem:[#allocation77_spill] sm:$0xff] %v10682_v32 }
 0x2b6   :  { %13964 = vst [vmem:[#allocation70_spill] sm:$0xff] %v10636_v25  ;;  %v10638_v13 = vld [vmem:[#allocation5 + $0x488] sm:$0xff] }
 0x2b7   :  { %v10625_v63 = vrot.slane %v2533_v44, %v13962_v17  ;;  %v10628_v9 = vrot.slane %v2533_v44, %v13963_v39  ;;  %v10631_v28 = vrot.slane %v2533_v44, %v10568_v49  ;;  %v10634_v51 = vrot.slane %v2533_v44, %v10571_v43  ;;  %v10650_v44 = vld [vmem:[#allocation5 + $0x48] sm:$0xff] }
 0x2b8   :  { %v10694_v25 = vld [vmem:[#allocation5 + $0x7e8] sm:$0xff] }
 0x2b9   :  { %v2556_v56 = vmul.f32 %v10625_v63, %v10517_v37  ;;  %v2557_v12 = vmul.f32 %v10628_v9, %v10525_v26  ;;  %v2558_v16 = vmul.f32 %v10631_v28, %v10519_v18  ;;  %v2559_v38 = vmul.f32 %v10634_v51, %v10527_v59  ;;  %v10680_v59 = vld [vmem:[#allocation5 + $0x408] sm:$0xff]  ;;  %13975 = vst [vmem:[#allocation81_spill] sm:$0xff] %v10694_v25  ;;  %v13981_v25 = vld [vmem:[#allocation37_spill] sm:$0xff] }
 0x2ba   :  { %v10672_v2 = vmul.f32 %v10634_v51, %v10509_v24  ;;  %13970 = vst [vmem:[#allocation76_spill] sm:$0xff] %v10680_v59  ;;  %v10692_v26 = vld [vmem:[#allocation5 + $0x7c8] sm:$0xff] }
 0x2bb   :  { %v2564_v54 = vcombine.low %v2556_v56, %v2557_v12  ;;  %v2565_v11 = vcombine.low %v2558_v16, %v2559_v38  ;;  %13974 = vst [vmem:[#allocation80_spill] sm:$0xff] %v10692_v26  ;;  %v10704_v38 = vld [vmem:[#allocation5 + $0x388] sm:$0xff]  ;;  %v13982_v26 = vld [vmem:[#allocation39_spill] sm:$0xff] }
 0x2bc   :  { %13969 = vst [vmem:[#allocation75_spill] sm:$0xff] %v10672_v2  ;;  %v10690_v2 = vld [vmem:[#allocation5 + $0x3e8] sm:$0xff]  ;;  %13976 = vst [vmem:[#allocation82_spill] sm:$0xff] %v10704_v38  ;;  %v13980_v38 = vld [vmem:[#allocation38_spill] sm:$0xff] }
 0x2bd   :  { %13973 = vst [vmem:[#allocation79_spill] sm:$0xff] %v10690_v2  ;;  %v10706_v16 = vld [vmem:[#allocation5 + $0x3a8] sm:$0xff]  ;;  %v2572_v37 = vrot.slane %v2564_v54, %v13947_v42  ;;  %v2579_v24 = vrot.slane %v2565_v11, %v13947_v42  ;;  %v2591_v54 = vmul.f32 %v10628_v9, %v10136_v20  ;;  %v2595_v11 = vmul.f32 %v10628_v9, %v10166_v48 }
 0x2be   :  { %13977 = vst [vmem:[#allocation83_spill] sm:$0xff] %v10706_v16  ;;  %v10714_v33 = vld [vmem:[#allocation5 + $0x788] sm:$0xff]  ;;  %v2594_v20 = vmul.f32 %v10625_v63, %v13980_v38  ;;  %v2592_v48 = vmul.f32 %v10631_v28, %v13981_v25  ;;  %v13983_v38 = vld [vmem:[#allocation41_spill] sm:$0xff]  ;;  %v2602_v25 = vmul.f32 %v10625_v63, %v10200_v6 }
 0x2bf   :  { %v10716_v56 = vld [vmem:[#allocation5 + $0x7a8] sm:$0xff]  ;;  %v2580_v18 = vcombine.low %v2572_v37, %v2579_v24  ;;  %v2593_v37 = vmul.f32 %v10634_v51, %v10139_v41  ;;  %v2596_v41 = vmul.f32 %v10631_v28, %v13982_v26  ;;  %v2599_v24 = vmul.f32 %v10628_v9, %v10194_v22 }
 0x2c0   :  { %v13978_v61 = vld [vmem:[#allocation40_spill] sm:$0xff]  ;;  %v2598_v2 = vmul.f32 %v10625_v63, %v13983_v38  ;;  %v2600_v26 = vmul.f32 %v10631_v28, %v10177_v15  ;;  %v2604_v22 = vmul.f32 %v10631_v28, %v10203_v50  ;;  %v2611_v15 = vmul.f32 %v10628_v9, %v10266_v31 }
 0x2c1   :  { %v2587_v57 = vrot.slane %v2580_v18, %v13947_v42  ;;  %v2597_v21 = vmul.f32 %v10634_v51, %v13978_v61  ;;  %v13979_v12 = vld [vmem:[#allocation36_spill] sm:$0xff]  ;;  %v2603_v18 = vmul.f32 %v10628_v9, %v10218_v29  ;;  %v2601_v61 = vmul.f32 %v10634_v51, %v10197_v0 }
 0x2c2   :  { %v2590_v16 = vmul.f32 %v10625_v63, %v13979_v12  ;;  %v2605_v12 = vmul.f32 %v10634_v51, %v10221_v10  ;;  %v2607_v29 = vmul.f32 %v10628_v9, %v10242_v7  ;;  %v2609_v50 = vmul.f32 %v10634_v51, %v10245_v8 }
 0x2c3   :  { %v2589_v42 = vsub.f32 %v2534_v14, %v2587_v57  ;;  %v2613_v7 = vmul.f32 %v10634_v51, %v10269_v3  ;;  %v2606_v57 = vmul.f32 %v10625_v63, %v10224_v30 }
 0x2c5   :  { %v10773_v0 = vrot.slane %v2589_v42, %v13962_v17  ;;  %v10776_v10 = vrot.slane %v2589_v42, %v13963_v39  ;;  %v10779_v14 = vrot.slane %v2589_v42, %v10568_v49  ;;  %v10782_v6 = vrot.slane %v2589_v42, %v10571_v43 }
 0x2c6   :  { %v2610_v42 = vmul.f32 %v10625_v63, %v10248_v23 }
 0x2c7   :  { %v2676_v38 = vadd.f32 %v10776_v10, %v2591_v54  ;;  %v2680_v49 = vadd.f32 %v10776_v10, %v2595_v11  ;;  %v2678_v39 = vadd.f32 %v10782_v6, %v2593_v37  ;;  %v2682_v31 = vadd.f32 %v10782_v6, %v2597_v21 }
 0x2c8   :  { %v2675_v43 = vadd.f32 %v10773_v0, %v2590_v16  ;;  %v2679_v8 = vadd.f32 %v10773_v0, %v2594_v20  ;;  %v2677_v3 = vadd.f32 %v10779_v14, %v2592_v48  ;;  %v10803_v54 = vmul.f32 %v10631_v28, %v10227_v4 }
 0x2c9   :  { %v2740_v17 = vmax.f32 %v2676_v38, 0.0  ;;  %v2744_v52 = vmax.f32 %v2680_v49, 0.0  ;;  %v2742_v30 = vmax.f32 %v2678_v39, 0.0  ;;  %v2746_v11 = vmax.f32 %v2682_v31, 0.0 }
 0x2ca   :  { %v2739_v37 = vmax.f32 %v2675_v43, 0.0  ;;  %v2743_v32 = vmax.f32 %v2679_v8, 0.0  ;;  %v2681_v23 = vadd.f32 %v10779_v14, %v2596_v41  ;;  %v2741_v21 = vmax.f32 %v2677_v3, 0.0 }
 0x2cb   :  { %v10806_v59 = vpack.c.bf16 %v2744_v52, %v2740_v17  ;;  %v2684_v16 = vadd.f32 %v10776_v10, %v2599_v24  ;;  %v2688_v20 = vadd.f32 %v10776_v10, %v2603_v18  ;;  %v10810_v48 = vpack.c.bf16 %v2746_v11, %v2742_v30 }
 0x2cc   :  { %v10812_v49 = vpack.c.bf16 %v2743_v32, %v2739_v37  ;;  %v2745_v39 = vmax.f32 %v2681_v23, 0.0  ;;  %v2686_v4 = vadd.f32 %v10782_v6, %v2601_v61  ;;  %v2690_v41 = vadd.f32 %v10782_v6, %v2605_v12 }
 0x2cd   :  { %4403 = vmatprep.mubr.bf16.mxu1 %v10806_v59  ;;  %v2748_v43 = vmax.f32 %v2684_v16, 0.0  ;;  %v2752_v38 = vmax.f32 %v2688_v20, 0.0  ;;  %v2683_v52 = vadd.f32 %v10773_v0, %v2598_v2  ;;  %4516 = vmatprep.mubr.bf16.mxu0 %v10810_v48  ;;  %v2687_v32 = vadd.f32 %v10773_v0, %v2602_v25 }
 0x2ce   :  { %4404 = vmatmul.mubr.bf16.vlgmr.msra.gmra.mxu1 %v10812_v49  ;;  %v10820_v17 = vpack.c.bf16 %v2745_v39, %v2741_v21  ;;  %v2750_v24 = vmax.f32 %v2686_v4, 0.0  ;;  %v2685_v18 = vadd.f32 %v10779_v14, %v2600_v26  ;;  %v13984_v61 = vcombine.low %v10538_v5, %v10540_v35 }
 0x2cf   :  { %v10827_v31 = vpack.c.bf16 %v2752_v38, %v2748_v43  ;;  %v2754_v12 = vmax.f32 %v2690_v41, 0.0  ;;  %v2689_v2 = vadd.f32 %v10779_v14, %v2604_v22  ;;  %v2615_v8 = vmul.f32 %v10628_v9, %v10290_v40 }
 0x2d0   :  { %4598 = vmatpush1.bf16.msra.mxu1 %v13984_v61  ;;  %4517 = vmatmul.mubr.bf16.vlgmr.msra.gmra.mxu0 %v10820_v17  ;;  %v13985_v3 = vcombine.high %v10555_v47, %v10557_v55  ;;  %v2747_v25 = vmax.f32 %v2683_v52, 0.0  ;;  %v2751_v26 = vmax.f32 %v2687_v32, 0.0  ;;  %v2692_v30 = vadd.f32 %v10776_v10, %v2607_v29  ;;  %v13992_v52 = vld [vmem:[#allocation42_spill] sm:$0xff]  ;;  %v13994_v32 = vld [vmem:[#allocation60_spill] sm:$0xff] }
 0x2d1   :  { %v2696_v5 = vadd.f32 %v10776_v10, %v2611_v15  ;;  %v13986_v35 = vcombine.low %v10542_v27, %v10544_v36  ;;  %4413 = vmatprep.mubr.bf16.mxu1 %v10827_v31  ;;  %v10842_v22 = vpack.c.bf16 %v2754_v12, %v2750_v24  ;;  %v2749_v40 = vmax.f32 %v2685_v18, 0.0 }
 0x2d2   :  { %4599 = vmatprep.subr.bf16.mxu1 %v13985_v3  ;;  %v2694_v11 = vadd.f32 %v10782_v6, %v2609_v50  ;;  %v2698_v37 = vadd.f32 %v10782_v6, %v2613_v7  ;;  %v13987_v23 = vcombine.high %v10559_v19, %v10561_v45  ;;  %v2753_v29 = vmax.f32 %v2689_v2, 0.0 }
 0x2d3   :  { %4711 = vmatpush1.bf16.msra.mxu0 %v13986_v35  ;;  %v2756_v21 = vmax.f32 %v2692_v30, 0.0  ;;  %v2760_v15 = vmax.f32 %v2696_v5, 0.0  ;;  %v2691_v16 = vadd.f32 %v10773_v0, %v2606_v57  ;;  %4526 = vmatprep.mubr.bf16.mxu0 %v10842_v22  ;;  %v13988_v27 = vcombine.low %v10555_v47, %v10557_v55  ;;  %v13990_v55 = vld [vmem:[#allocation46_spill] sm:$0xff]  ;;  %v14000_v5 = vld [vmem:[#allocation44_spill] sm:$0xff] }
 0x2d4   :  { %4712 = vmatprep.subr.bf16.mxu0 %v13987_v23  ;;  %v2758_v36 = vmax.f32 %v2694_v11, 0.0  ;;  %v2762_v20 = vmax.f32 %v2698_v37, 0.0  ;;  %v2695_v50 = vadd.f32 %v10773_v0, %v2610_v42  ;;  %v2619_v7 = vmul.f32 %v10628_v9, %v10314_v1  ;;  %v13998_v30 = vld [vmem:[#allocation62_spill] sm:$0xff] }
 0x2d5   :  { %4600 = vmatpush1.bf16.msra.mxu1 %v13988_v27  ;;  %v13989_v39 = vcombine.high %v10563_v53, %v10565_v60  ;;  %v10860_v4 = vpack.c.bf16 %v2751_v26, %v2747_v25  ;;  %v2612_v57 = vmul.f32 %v10631_v28, %v10251_v62  ;;  %v2617_v47 = vmul.f32 %v10634_v51, %v10293_v46  ;;  %v13993_v62 = vld [vmem:[#allocation59_spill] sm:$0xff]  ;;  %v13997_v26 = vld [vmem:[#allocation61_spill] sm:$0xff] }
 0x2d6   :  { %v2621_v43 = vmul.f32 %v10634_v51, %v13990_v55  ;;  %v13991_v42 = vcombine.low %v10559_v19, %v10561_v45  ;;  %v10871_v1 = vpack.c.bf16 %v2760_v15, %v2756_v21  ;;  %v2700_v38 = vadd.f32 %v10776_v10, %v2615_v8  ;;  %v14004_v21 = vld [vmem:[#allocation49_spill] sm:$0xff]  ;;  %v14010_v55 = vld [vmem:[#allocation54_spill] sm:$0xff] }
 0x2d7   :  { %4601 = vmatprep.subr.bf16.mxu1 %v13989_v39  ;;  %v2704_v41 = vadd.f32 %v10776_v10, %v2619_v7  ;;  %v2614_v24 = vmul.f32 %v10625_v63, %v13992_v52  ;;  %v13995_v18 = vcombine.high %v13993_v62, %v13994_v32  ;;  %4414 = vmatmul.mubr.bf16.gmra.mxu1 %v10860_v4  ;;  %v2755_v61 = vmax.f32 %v2691_v16, 0.0  ;;  %v14005_v16 = vld [vmem:[#allocation53_spill] sm:$0xff] }
 0x2d8   :  { %4713 = vmatpush1.bf16.msra.mxu0 %v13991_v42  ;;  %v10881_v46 = vpack.c.bf16 %v2753_v29, %v2749_v40  ;;  %v2693_v19 = vadd.f32 %v10779_v14, %v10803_v54  ;;  %v2697_v45 = vadd.f32 %v10779_v14, %v2612_v57  ;;  %v13996_v12 = vcombine.low %v10563_v53, %v10565_v60  ;;  %v14001_v53 = vld [vmem:[#allocation43_spill] sm:$0xff]  ;;  %v14002_v40 = vld [vmem:[#allocation45_spill] sm:$0xff]  ;;  %v14009_v57 = vld [vmem:[#allocation50_spill] sm:$0xff] }
 0x2d9   :  { %4714 = vmatprep.subr.bf16.mxu0 %v13995_v18  ;;  %4423 = vmatprep.mubr.bf16.mxu1 %v10871_v1  ;;  %v10890_v2 = vpack.c.bf16 %v2762_v20, %v2758_v36  ;;  %v2759_v8 = vmax.f32 %v2695_v50, 0.0  ;;  %v2702_v3 = vadd.f32 %v10782_v6, %v2617_v47  ;;  %v2706_v25 = vadd.f32 %v10782_v6, %v2621_v43  ;;  %v14006_v36 = vld [vmem:[#allocation63_spill] sm:$0xff]  ;;  %v14007_v20 = vld [vmem:[#allocation64_spill] sm:$0xff]  ;;  %v14013_v18 = vld [vmem:[#allocation65_spill] sm:$0xff] }
 0x2da   :  { %4602 = vmatpush1.bf16.msra.mxu1 %v13996_v12  ;;  %4527 = vmatmul.mubr.bf16.gmra.mxu0 %v10881_v46  ;;  %v13999_v54 = vcombine.high %v13997_v26, %v13998_v30  ;;  %v2618_v35 = vmul.f32 %v10625_v63, %v14000_v5  ;;  %v2616_v60 = vmul.f32 %v10631_v28, %v14001_v53  ;;  %v2764_v23 = vmax.f32 %v2700_v38, 0.0 }
 0x2db   :  { %v2620_v11 = vmul.f32 %v10631_v28, %v14002_v40  ;;  %v14003_v37 = vcombine.low %v13993_v62, %v13994_v32  ;;  %4536 = vmatprep.mubr.bf16.mxu0 %v10890_v2  ;;  %v2768_v29 = vmax.f32 %v2704_v41, 0.0  ;;  %v2623_v15 = vmul.f32 %v10628_v9, %v14004_v21  ;;  %v14012_v62 = vld [vmem:[#allocation47_spill] sm:$0xff]  ;;  %v14019_v40 = vld [vmem:[#allocation68_spill] sm:$0xff] }
 0x2dc   :  { %4603 = vmatprep.subr.bf16.mxu1 %v13999_v54  ;;  %v2627_v27 = vmul.f32 %v10628_v9, %v14005_v16  ;;  %v14008_v50 = vcombine.high %v14006_v36, %v14007_v20  ;;  %v2757_v7 = vmax.f32 %v2693_v19, 0.0  ;;  %v2761_v39 = vmax.f32 %v2697_v45, 0.0  ;;  %v14014_v19 = vld [vmem:[#allocation66_spill] sm:$0xff] }
 0x2dd   :  { %4715 = vmatpush1.bf16.msra.mxu0 %v14003_v37  ;;  %v2625_v47 = vmul.f32 %v10634_v51, %v14009_v57  ;;  %v2629_v43 = vmul.f32 %v10634_v51, %v14010_v55  ;;  %v14011_v42 = vcombine.low %v13997_v26, %v13998_v30  ;;  %v10922_v38 = vpack.c.bf16 %v2759_v8, %v2755_v61  ;;  %v14017_v30 = vld [vmem:[#allocation51_spill] sm:$0xff] }
 0x2de   :  { %4716 = vmatprep.subr.bf16.mxu0 %v14008_v50  ;;  %v2766_v41 = vmax.f32 %v2702_v3, 0.0  ;;  %v2770_v52 = vmax.f32 %v2706_v25, 0.0  ;;  %v2622_v32 = vmul.f32 %v10625_v63, %v14012_v62  ;;  %v14015_v45 = vcombine.high %v14013_v18, %v14014_v19  ;;  %v10966_v62 = vld [vmem:[#allocation5 + $0x368] sm:$0xff] }
 0x2df   :  { %4604 = vmatpush1.bf16.msra.mxu1 %v14011_v42  ;;  %v2699_v12 = vadd.f32 %v10773_v0, %v2614_v24  ;;  %v2703_v54 = vadd.f32 %v10773_v0, %v2618_v35  ;;  %v2701_v5 = vadd.f32 %v10779_v14, %v2616_v60  ;;  %v2705_v26 = vadd.f32 %v10779_v14, %v2620_v11  ;;  %v14018_v24 = vld [vmem:[#allocation67_spill] sm:$0xff]  ;;  %v14021_v11 = vld [vmem:[#allocation48_spill] sm:$0xff] }
 0x2e0   :  { %4605 = vmatprep.subr.bf16.mxu1 %v14015_v45  ;;  %v14016_v61 = vcombine.low %v14006_v36, %v14007_v20  ;;  %v10936_v8 = vpack.c.bf16 %v2768_v29, %v2764_v23  ;;  %v2708_v3 = vadd.f32 %v10776_v10, %v2623_v15  ;;  %v2712_v25 = vadd.f32 %v10776_v10, %v2627_v27  ;;  %v14022_v23 = vld [vmem:[#allocation52_spill] sm:$0xff]  ;;  %v14024_v36 = vld [vmem:[#allocation69_spill] sm:$0xff]  ;;  %v14025_v20 = vld [vmem:[#allocation70_spill] sm:$0xff] }
 0x2e1   :  { %v2626_v53 = vmul.f32 %v10625_v63, %v14017_v30  ;;  %v14020_v35 = vcombine.high %v14018_v24, %v14019_v40  ;;  %4424 = vmatmul.mubr.bf16.gmra.mxu1 %v10922_v38  ;;  %v10946_v60 = vpack.c.bf16 %v2761_v39, %v2757_v7  ;;  %v2624_v37 = vmul.f32 %v10631_v28, %v14021_v11  ;;  %v10964_v42 = vld [vmem:[#allocation5 + $0x348] sm:$0xff] }
 0x2e2   :  { %4717 = vmatpush1.bf16.msra.mxu0 %v14016_v61  ;;  %v2628_v29 = vmul.f32 %v10631_v28, %v14022_v23  ;;  %v14023_v21 = vcombine.low %v14013_v18, %v14014_v19  ;;  %4433 = vmatprep.mubr.bf16.mxu1 %v10936_v8  ;;  %v10956_v15 = vpack.c.bf16 %v2770_v52, %v2766_v41  ;;  %v2763_v7 = vmax.f32 %v2699_v12, 0.0  ;;  %v14034_v23 = vld [vmem:[#allocation15_spill] sm:$0xff] }
 0x2e3   :  { %4718 = vmatprep.subr.bf16.mxu0 %v14020_v35  ;;  %v2710_v16 = vadd.f32 %v10782_v6, %v2625_v47  ;;  %v2714_v27 = vadd.f32 %v10782_v6, %v2629_v43  ;;  %4537 = vmatmul.mubr.bf16.gmra.mxu0 %v10946_v60  ;;  %v14026_v50 = vcombine.high %v14024_v36, %v14025_v20  ;;  %v2767_v39 = vmax.f32 %v2703_v54, 0.0  ;;  %v14029_v54 = vld [vmem:[#allocation57_spill] sm:$0xff] }
 0x2e4   :  { %4606 = vmatpush1.bf16.msra.mxu1 %v14023_v21  ;;  %v2765_v57 = vmax.f32 %v2701_v5, 0.0  ;;  %v2769_v55 = vmax.f32 %v2705_v26, 0.0  ;;  %v14027_v41 = vcombine.low %v14018_v24, %v14019_v40  ;;  %4546 = vmatprep.mubr.bf16.mxu0 %v10956_v15  ;;  %v2772_v47 = vmax.f32 %v2708_v3, 0.0  ;;  %v14030_v26 = vld [vmem:[#allocation18_spill] sm:$0xff]  ;;  %v14032_v24 = vld [vmem:[#allocation71_spill] sm:$0xff] }
 0x2e5   :  { %4607 = vmatprep.subr.bf16.mxu1 %v14026_v50  ;;  %v2776_v43 = vmax.f32 %v2712_v25, 0.0  ;;  %v2707_v52 = vadd.f32 %v10773_v0, %v2622_v32  ;;  %v2711_v18 = vadd.f32 %v10773_v0, %v2626_v53  ;;  %v14028_v19 = vcombine.high %v10638_v13, %v10640_v34 }
 0x2e6   :  { %4719 = vmatpush1.bf16.msra.mxu0 %v14027_v41  ;;  %v2709_v45 = vadd.f32 %v10779_v14, %v2624_v37  ;;  %v2713_v12 = vadd.f32 %v10779_v14, %v2628_v29  ;;  %v2631_v5 = vmul.f32 %v10628_v9, %v14029_v54  ;;  %v2635_v61 = vmul.f32 %v10628_v9, %v14030_v26  ;;  %v14037_v41 = vld [vmem:[#allocation72_spill] sm:$0xff] }
 0x2e7   :  { %4720 = vmatprep.subr.bf16.mxu0 %v14028_v19  ;;  %v14031_v3 = vcombine.low %v14024_v36, %v14025_v20  ;;  %v2774_v32 = vmax.f32 %v2710_v16, 0.0  ;;  %v2778_v25 = vmax.f32 %v2714_v27, 0.0  ;;  %v14033_v40 = vcombine.high %v10650_v44, %v14032_v24  ;;  %v14036_v20 = vld [vmem:[#allocation19_spill] sm:$0xff] }
 0x2e8   :  { %v10993_v35 = vpack.c.bf16 %v2767_v39, %v2763_v7  ;;  %v2716_v11 = vadd.f32 %v10776_v10, %v2631_v5  ;;  %v2720_v37 = vadd.f32 %v10776_v10, %v2635_v61  ;;  %v2633_v29 = vmul.f32 %v10634_v51, %v14034_v23  ;;  %v11006_v7 = vld [vmem:[#allocation5 + $0x748] sm:$0xff]  ;;  %v14047_v23 = vld [vmem:[#allocation77_spill] sm:$0xff] }
 0x2e9   :  { %4608 = vmatpush1.bf16.msra.mxu1 %v14031_v3  ;;  %v14035_v21 = vcombine.low %v10638_v13, %v10640_v34  ;;  %v11002_v16 = vpack.c.bf16 %v2776_v43, %v2772_v47  ;;  %v2771_v27 = vmax.f32 %v2707_v52, 0.0  ;;  %v2775_v36 = vmax.f32 %v2711_v18, 0.0  ;;  %v11008_v39 = vld [vmem:[#allocation5 + $0x768] sm:$0xff]  ;;  %v14043_v3 = vld [vmem:[#allocation75_spill] sm:$0xff] }
 0x2ea   :  { %4609 = vmatprep.subr.bf16.mxu1 %v14033_v40  ;;  %v2637_v50 = vmul.f32 %v10634_v51, %v14036_v20  ;;  %v14038_v19 = vcombine.high %v10654_v58, %v14037_v41  ;;  %4434 = vmatmul.mubr.bf16.gmra.mxu1 %v10993_v35  ;;  %v11014_v54 = vpack.c.bf16 %v2769_v55, %v2765_v57  ;;  %v2773_v34 = vmax.f32 %v2709_v45, 0.0  ;;  %v14040_v57 = vld [vmem:[#allocation73_spill] sm:$0xff]  ;;  %v14041_v55 = vld [vmem:[#allocation74_spill] sm:$0xff]  ;;  %v14045_v40 = vld [vmem:[#allocation55_spill] sm:$0xff] }
 0x2eb   :  { %4721 = vmatpush1.bf16.msra.mxu0 %v14035_v21  ;;  %v2777_v13 = vmax.f32 %v2713_v12, 0.0  ;;  %v2718_v47 = vadd.f32 %v10782_v6, %v2633_v29  ;;  %v14039_v43 = vcombine.low %v10650_v44, %v14032_v24  ;;  %4443 = vmatprep.mubr.bf16.mxu1 %v11002_v16  ;;  %v11021_v52 = vpack.c.bf16 %v2778_v25, %v2774_v32  ;;  %v14062_v44 = vld [vmem:[#allocation81_spill] sm:$0xff]  ;;  %v14069_v61 = vld [vmem:[#allocation20_spill] sm:$0xff] }
 0x2ec   :  { %4722 = vmatprep.subr.bf16.mxu0 %v14038_v19  ;;  %v2722_v18 = vadd.f32 %v10782_v6, %v2637_v50  ;;  %4547 = vmatmul.mubr.bf16.gmra.mxu0 %v11014_v54  ;;  %v14042_v45 = vcombine.high %v14040_v57, %v14041_v55  ;;  %v2780_v12 = vmax.f32 %v2716_v11, 0.0  ;;  %v2784_v26 = vmax.f32 %v2720_v37, 0.0  ;;  %v14046_v37 = vld [vmem:[#allocation76_spill] sm:$0xff] }
 0x2ed   :  { %4610 = vmatpush1.bf16.msra.mxu1 %v14039_v43  ;;  %v11036_v32 = vadd.f32 %v10782_v6, %v14043_v3  ;;  %v14044_v25 = vcombine.low %v10654_v58, %v14037_v41  ;;  %4556 = vmatprep.mubr.bf16.mxu0 %v11021_v52  ;;  %v11042_v24 = vpack.c.bf16 %v2775_v36, %v2771_v27  ;;  %v2782_v20 = vmax.f32 %v2718_v47, 0.0  ;;  %v14049_v50 = vld [vmem:[#allocation16_spill] sm:$0xff]  ;;  %v14055_v47 = vld [vmem:[#allocation79_spill] sm:$0xff] }
 0x2ee   :  { %4611 = vmatprep.subr.bf16.mxu1 %v14042_v45  ;;  %v2630_v11 = vmul.f32 %v10625_v63, %v14045_v40  ;;  %v14048_v29 = vcombine.high %v14046_v37, %v14047_v23  ;;  %v11049_v21 = vpack.c.bf16 %v2777_v13, %v2773_v34  ;;  %v2634_v19 = vmul.f32 %v10625_v63, %v14049_v50  ;;  %v14050_v43 = vld [vmem:[#allocation56_spill] sm:$0xff]  ;;  %v14052_v45 = vld [vmem:[#allocation22_spill] sm:$0xff] }
 0x2ef   :  { %4723 = vmatpush1.bf16.msra.mxu0 %v14044_v25  ;;  %v2632_v58 = vmul.f32 %v10631_v28, %v14050_v43  ;;  %v14051_v27 = vcombine.low %v14040_v57, %v14041_v55  ;;  %v2786_v36 = vmax.f32 %v2722_v18, 0.0  ;;  %v2639_v3 = vmul.f32 %v10628_v9, %v14052_v45  ;;  %v14053_v25 = vld [vmem:[#allocation26_spill] sm:$0xff]  ;;  %v14057_v43 = vld [vmem:[#allocation17_spill] sm:$0xff]  ;;  %v14058_v18 = vld [vmem:[#allocation23_spill] sm:$0xff] }
 0x2f0   :  { %4724 = vmatprep.subr.bf16.mxu0 %v14048_v29  ;;  %v2715_v41 = vadd.f32 %v10773_v0, %v2630_v11  ;;  %v2643_v34 = vmul.f32 %v10628_v9, %v14053_v25  ;;  %v14054_v13 = vld [vmem:[#allocation78_spill] sm:$0xff]  ;;  %v11066_v29 = vpack.c.bf16 %v2784_v26, %v2780_v12  ;;  %v2719_v50 = vadd.f32 %v10773_v0, %v2634_v19  ;;  %v11073_v11 = vld [vmem:[#allocation5 + $0x308] sm:$0xff]  ;;  %v14060_v19 = vld [vmem:[#allocation27_spill] sm:$0xff] }
 0x2f1   :  { %4612 = vmatpush1.bf16.msra.mxu1 %v14051_v27  ;;  %v14056_v40 = vcombine.high %v14054_v13, %v14055_v47  ;;  %v2636_v57 = vmul.f32 %v10631_v28, %v14057_v43  ;;  %v2641_v55 = vmul.f32 %v10634_v51, %v14058_v18  ;;  %v11075_v27 = vld [vmem:[#allocation5 + $0x328] sm:$0xff]  ;;  %v14059_v45 = vcombine.low %v14046_v37, %v14047_v23  ;;  %v14064_v23 = vld [vmem:[#allocation31_spill] sm:$0xff] }
 0x2f2   :  { %v2717_v25 = vadd.f32 %v10779_v14, %v2632_v58  ;;  %v2724_v12 = vadd.f32 %v10776_v10, %v2639_v3  ;;  %v2728_v26 = vadd.f32 %v10776_v10, %v2643_v34  ;;  %v14061_v43 = vld [vmem:[#allocation80_spill] sm:$0xff]  ;;  %4444 = vmatmul.mubr.bf16.gmra.mxu1 %v11042_v24  ;;  %v2649_v58 = vmul.f32 %v10634_v51, %v14064_v23 }
 0x2f3   :  { %4613 = vmatprep.subr.bf16.mxu1 %v14056_v40  ;;  %4725 = vmatpush1.bf16.msra.mxu0 %v14059_v45  ;;  %v2645_v40 = vmul.f32 %v10634_v51, %v14060_v19  ;;  %v14063_v18 = vcombine.high %v14061_v43, %v14062_v44  ;;  %v2721_v53 = vadd.f32 %v10779_v14, %v2636_v57  ;;  %v2802_v3 = vmax.f32 %v11036_v32, 0.0  ;;  %v14071_v5 = vld [vmem:[#allocation24_spill] sm:$0xff] }
 0x2f4   :  { %v2726_v37 = vadd.f32 %v10782_v6, %v2641_v55  ;;  %v14065_v34 = vcombine.low %v14054_v13, %v14055_v47  ;;  %4453 = vmatprep.mubr.bf16.mxu1 %v11066_v29  ;;  %v11098_v45 = vpack.c.bf16 %v2786_v36, %v2782_v20  ;;  %v8025_v57 = vcombine.high %v11073_v11, %v11075_v27  ;;  %v14066_v55 = vld [vmem:[#allocation82_spill] sm:$0xff] }
 0x2f5   :  { %4726 = vmatprep.subr.bf16.mxu0 %v14063_v18  ;;  %v2730_v19 = vadd.f32 %v10782_v6, %v2645_v40  ;;  %4557 = vmatmul.mubr.bf16.gmra.mxu0 %v11049_v21  ;;  %v14067_v18 = vld [vmem:[#allocation83_spill] sm:$0xff]  ;;  %v2779_v32 = vmax.f32 %v2715_v41, 0.0  ;;  %v2783_v23 = vmax.f32 %v2719_v50, 0.0  ;;  %v2638_v13 = vmul.f32 %v10625_v63, %v14069_v61 }
 0x2f6   :  { %4614 = vmatpush2.bf16.msra.mxu1 %v14065_v34  ;;  %v14068_v51 = vcombine.high %v14066_v55, %v14067_v18  ;;  %v2734_v47 = vadd.f32 %v10782_v6, %v2649_v58  ;;  %v14070_v20 = vcombine.low %v14061_v43, %v14062_v44  ;;  %4566 = vmatprep.mubr.bf16.mxu0 %v11098_v45  ;;  %v2781_v36 = vmax.f32 %v2717_v25, 0.0  ;;  %v3064_v6 = vld [vmem:[#allocation5 + $0x728] sm:$0xff] }
 0x2f7   :  { %v2788_v40 = vmax.f32 %v2724_v12, 0.0  ;;  %v2792_v34 = vmax.f32 %v2728_v26, 0.0  ;;  %v2642_v30 = vmul.f32 %v10625_v63, %v14071_v5  ;;  %v14072_v41 = vcombine.high %v10714_v33, %v10716_v56  ;;  %v14074_v26 = vld [vmem:[#allocation30_spill] sm:$0xff] }
 0x2f8   :  { %4615 = vmatprep.subr.bf16.mxu1 %v14068_v51  ;;  %4727 = vmatpush2.bf16.msra.mxu0 %v14070_v20  ;;  %v2785_v50 = vmax.f32 %v2721_v53, 0.0  ;;  %v2790_v61 = vmax.f32 %v2726_v37, 0.0  ;;  %v3060_v51 = vld [vmem:[#allocation5 + $0x708] sm:$0xff]  ;;  %v2723_v58 = vadd.f32 %v10773_v0, %v2638_v13  ;;  %v2798_v44 = vmax.f32 %v2734_v47, 0.0  ;;  %v14075_v20 = vld [vmem:[#allocation34_spill] sm:$0xff]  ;;  %v14077_v13 = vld [vmem:[#allocation21_spill] sm:$0xff] }
 0x2f9   :  { %4728 = vmatprep.subr.bf16.mxu0 %v14072_v41  ;;  %v14073_v43 = vcombine.low %v14066_v55, %v14067_v18  ;;  %v2794_v25 = vmax.f32 %v2730_v19, 0.0  ;;  %v2727_v12 = vadd.f32 %v10773_v0, %v2642_v30  ;;  %v2647_v5 = vmul.f32 %v10628_v9, %v14074_v26  ;;  %v14078_v55 = vld [vmem:[#allocation25_spill] sm:$0xff]  ;;  %v2924_v26 = vld [vmem:[#allocation5 + $0x2c8] sm:$0xff] }
 0x2fa   :  { %v2651_v41 = vmul.f32 %v10628_v9, %v14075_v20  ;;  %v14076_v53 = vcombine.high %v10964_v42, %v10966_v62  ;;  %v11131_v37 = vpack.c.bf16 %v2783_v23, %v2779_v32  ;;  %v2640_v47 = vmul.f32 %v10631_v28, %v14077_v13  ;;  %v2928_v20 = vld [vmem:[#allocation5 + $0x2e8] sm:$0xff] }
 0x2fb   :  { %4616 = vmatpush2.bf16.msra.mxu1 %v14073_v43  ;;  %v2644_v19 = vmul.f32 %v10631_v28, %v14078_v55  ;;  %v11137_v18 = vpack.c.bf16 %v2802_v3, %v2798_v44  ;;  %v14079_v30 = vcombine.low %v10714_v33, %v10716_v56  ;;  %v11142_v43 = vpack.c.bf16 %v2792_v34, %v2788_v40  ;;  %v3052_v44 = vld [vmem:[#allocation5 + $0x6c8] sm:$0xff] }
 0x2fc   :  { %4617 = vmatprep.subr.bf16.mxu1 %v14076_v53  ;;  %v8153_v9 = vcombine.high %v3060_v51, %v3064_v6  ;;  %v2732_v32 = vadd.f32 %v10776_v10, %v2647_v5  ;;  %v2736_v23 = vadd.f32 %v10776_v10, %v2651_v41  ;;  %v14080_v53 = vcombine.high %v11006_v7, %v11008_v39  ;;  %v3056_v33 = vld [vmem:[#allocation5 + $0x6e8] sm:$0xff] }
 0x2fd   :  { %4729 = vmatpush2.bf16.msra.mxu0 %v14079_v30  ;;  %4454 = vmatmul.mubr.bf16.gmra.mxu1 %v11131_v37  ;;  %v11150_v3 = vpack.c.bf16 %v2785_v50, %v2781_v36  ;;  %v2725_v56 = vadd.f32 %v10779_v14, %v2640_v47  ;;  %v2729_v40 = vadd.f32 %v10779_v14, %v2644_v19  ;;  %v2787_v41 = vmax.f32 %v2723_v58, 0.0  ;;  %v2916_v13 = vld [vmem:[#allocation5 + $0x288] sm:$0xff] }
 0x2fe   :  { %4730 = vmatprep.subr.bf16.mxu0 %v14080_v53  ;;  %v14081_v34 = vcombine.low %v10964_v42, %v10966_v62  ;;  %4463 = vmatprep.mubr.bf16.mxu1 %v11142_v43  ;;  %v11158_v10 = vpack.c.bf16 %v2794_v25, %v2790_v61  ;;  %v8024_v5 = vcombine.low %v11073_v11, %v11075_v27  ;;  %v2791_v36 = vmax.f32 %v2727_v12, 0.0  ;;  %v2920_v47 = vld [vmem:[#allocation5 + $0x2a8] sm:$0xff] }
 0x2ff   :  { %4567 = vmatmul.mubr.bf16.gmra.mxu0 %v11150_v3  ;;  %v8017_v50 = vcombine.high %v2924_v26, %v2928_v20  ;;  %v14082_v55 = vcombine.low %v11006_v7, %v11008_v39  ;;  %v8152_v42 = vcombine.low %v3060_v51, %v3064_v6  ;;  %v8145_v62 = vcombine.high %v3052_v44, %v3056_v33  ;;  %v3044_v58 = vld [vmem:[#allocation5 + $0x688] sm:$0xff] }
 0x300   :  { %4618 = vmatpush2.bf16.msra.mxu1 %v14081_v34  ;;  %4576 = vmatprep.mubr.bf16.mxu0 %v11158_v10  ;;  %v2796_v61 = vmax.f32 %v2732_v32, 0.0  ;;  %v2800_v25 = vmax.f32 %v2736_v23, 0.0  ;;  %v2789_v11 = vmax.f32 %v2725_v56, 0.0  ;;  %v2793_v27 = vmax.f32 %v2729_v40, 0.0  ;;  %v3048_v12 = vld [vmem:[#allocation5 + $0x6a8] sm:$0xff]  ;;  %v14086_v23 = vld [vmem:[#allocation33_spill] sm:$0xff] }
 0x301   :  { %4619 = vmatprep.subr.bf16.mxu1 %v8025_v57  ;;  %4731 = vmatpush2.bf16.msra.mxu0 %v14082_v55  ;;  %v14083_v19 = vld [vmem:[#allocation28_spill] sm:$0xff]  ;;  %v8016_v7 = vcombine.low %v2924_v26, %v2928_v20  ;;  %v11171_v39 = vpack.c.bf16 %v2791_v36, %v2787_v41  ;;  %v8009_v34 = vcombine.high %v2916_v13, %v2920_v47 }
 0x302   :  { %4732 = vmatprep.subr.bf16.mxu0 %v8153_v9  ;;  %v2646_v57 = vmul.f32 %v10625_v63, %v14083_v19  ;;  %v14084_v30 = vld [vmem:[#allocation32_spill] sm:$0xff]  ;;  %v14085_v9 = vld [vmem:[#allocation29_spill] sm:$0xff]  ;;  %v2652_v56 = vmul.f32 %v10631_v28, %v14086_v23  ;;  %v8144_v40 = vcombine.low %v3052_v44, %v3056_v33  ;;  %v11179_v55 = vpack.c.bf16 %v2800_v25, %v2796_v61 }
 0x303   :  { %v2650_v53 = vmul.f32 %v10625_v63, %v14084_v30  ;;  %v2648_v32 = vmul.f32 %v10631_v28, %v14085_v9  ;;  %v8137_v63 = vcombine.high %v3044_v58, %v3048_v12  ;;  %v2908_v26 = vld [vmem:[#allocation5 + $0x248] sm:$0xff]  ;;  %v8008_v28 = vcombine.low %v2916_v13, %v2920_v47  ;;  %v3025_v9 = vld [vmem:[#allocation5 + $0x5f0] sm:$0xff] }
 0x304   :  { %4620 = vmatpush2.bf16.msra.mxu1 %v8024_v5  ;;  %v2731_v51 = vadd.f32 %v10773_v0, %v2646_v57  ;;  %v2912_v20 = vld [vmem:[#allocation5 + $0x268] sm:$0xff]  ;;  %v11182_v5 = vpack.c.bf16 %v2793_v27, %v2789_v11  ;;  %v2737_v41 = vadd.f32 %v10779_v14, %v2652_v56  ;;  %v2885_v56 = vld [vmem:[#allocation5 + $0x190] sm:$0xff] }
 0x305   :  { %4621 = vmatprep.subr.bf16.mxu1 %v8017_v50  ;;  %v2735_v6 = vadd.f32 %v10773_v0, %v2650_v53  ;;  %4733 = vmatpush2.bf16.msra.mxu0 %v8152_v42  ;;  %v2733_v0 = vadd.f32 %v10779_v14, %v2648_v32  ;;  %v3036_v36 = vld [vmem:[#allocation5 + $0x648] sm:$0xff]  ;;  %v8001_v33 = vcombine.high %v2908_v26, %v2912_v20 }
 0x306   :  { %4734 = vmatprep.subr.bf16.mxu0 %v8145_v62  ;;  %4464 = vmatmul.mubr.bf16.gmra.mxu1 %v11171_v39  ;;  %v3040_v44 = vld [vmem:[#allocation5 + $0x668] sm:$0xff]  ;;  %v2795_v50 = vmax.f32 %v2731_v51, 0.0  ;;  %v8136_v62 = vcombine.low %v3044_v58, %v3048_v12  ;;  %v2801_v27 = vmax.f32 %v2737_v41, 0.0  ;;  %v8000_v13 = vcombine.low %v2908_v26, %v2912_v20  ;;  %v3013_v20 = vld [vmem:[#allocation5 + $0x590] sm:$0xff] }
 0x307   :  { %4473 = vmatprep.mubr.bf16.mxu1 %v11179_v55  ;;  %4577 = vmatmul.mubr.bf16.gmra.mxu0 %v11182_v5  ;;  %v2799_v42 = vmax.f32 %v2735_v6, 0.0  ;;  %v2900_v61 = vld [vmem:[#allocation5 + $0x208] sm:$0xff]  ;;  %v8129_v14 = vcombine.high %v3036_v36, %v3040_v44  ;;  %v2797_v11 = vmax.f32 %v2733_v0, 0.0  ;;  %v8128_v53 = vcombine.low %v3036_v36, %v3040_v44  ;;  %v3021_v6 = vld [vmem:[#allocation5 + $0x5d0] sm:$0xff] }
 0x308   :  { %4622 = vmatpush2.bf16.msra.mxu1 %v8016_v7  ;;  %4586 = vmatprep.mubr.bf16.mxu0 %v11137_v18  ;;  %v2904_v25 = vld [vmem:[#allocation5 + $0x228] sm:$0xff]  ;;  %v2893_v7 = vld [vmem:[#allocation5 + $0x1d0] sm:$0xff] }
 0x309   :  { %4623 = vmatprep.subr.bf16.mxu1 %v8009_v34  ;;  %4735 = vmatpush2.bf16.msra.mxu0 %v8144_v40  ;;  %v3028_v47 = vld [vmem:[#allocation5 + $0x608] sm:$0xff]  ;;  %v11189_v57 = vpack.c.bf16 %v2799_v42, %v2795_v50  ;;  %v7993_v30 = vcombine.high %v2900_v61, %v2904_v25  ;;  %v2897_v34 = vld [vmem:[#allocation5 + $0x1f0] sm:$0xff]  ;;  %v11192_v58 = vpack.c.bf16 %v2801_v27, %v2797_v11 }
 0x30a   :  { %4736 = vmatprep.subr.bf16.mxu0 %v8137_v63  ;;  %v3032_v19 = vld [vmem:[#allocation5 + $0x628] sm:$0xff]  ;;  %v7992_v51 = vcombine.low %v2900_v61, %v2904_v25  ;;  %v7987_v32 = vcombine.high %v2893_v7, %v2897_v34  ;;  %v2889_v40 = vld [vmem:[#allocation5 + $0x1b0] sm:$0xff]  ;;  %v8115_v63 = vcombine.high %v3021_v6, %v3025_v9  ;;  %v7986_v26 = vcombine.low %v2893_v7, %v2897_v34 }
 0x30b   :  { %v8121_v12 = vcombine.high %v3028_v47, %v3032_v19  ;;  %v8120_v23 = vcombine.low %v3028_v47, %v3032_v19  ;;  %v3017_v0 = vld [vmem:[#allocation5 + $0x5b0] sm:$0xff]  ;;  %v7979_v41 = vcombine.high %v2885_v56, %v2889_v40  ;;  %v7978_v50 = vcombine.low %v2885_v56, %v2889_v40 }
 0x30c   :  { %4624 = vmatpush2.bf16.msra.mxu1 %v8008_v28  ;;  %v8114_v28 = vcombine.low %v3021_v6, %v3025_v9  ;;  %v2877_v36 = vld [vmem:[#allocation5 + $0x150] sm:$0xff]  ;;  %v8106_v25 = vcombine.low %v3013_v20, %v3017_v0 }
 0x30d   :  { %4625 = vmatprep.subr.bf16.mxu1 %v8001_v33  ;;  %4737 = vmatpush2.bf16.msra.mxu0 %v8136_v62  ;;  %v2881_v44 = vld [vmem:[#allocation5 + $0x170] sm:$0xff]  ;;  %v8107_v33 = vcombine.high %v3013_v20, %v3017_v0 }
 0x30e   :  { %4738 = vmatprep.subr.bf16.mxu0 %v8129_v14  ;;  %4474 = vmatmul.mubr.bf16.gmra.mxu1 %v11189_v57  ;;  %v3005_v42 = vld [vmem:[#allocation5 + $0x550] sm:$0xff]  ;;  %v7971_v61 = vcombine.high %v2877_v36, %v2881_v44 }
 0x30f   :  { %4629 = vmatprep.mubr.bf16.mxu1 %v10806_v59  ;;  %4587 = vmatmul.mubr.bf16.gmra.mxu0 %v11192_v58  ;;  %v3009_v62 = vld [vmem:[#allocation5 + $0x570] sm:$0xff] }
 0x310   :  { %4626 = vmatpush2.bf16.msra.mxu1 %v8000_v13  ;;  %4742 = vmatprep.mubr.bf16.mxu0 %v10810_v48  ;;  %v2869_v14 = vld [vmem:[#allocation5 + $0x110] sm:$0xff]  ;;  %v8099_v27 = vcombine.high %v3005_v42, %v3009_v62  ;;  %v7970_v13 = vcombine.low %v2877_v36, %v2881_v44 }
 0x311   :  { %4627 = vmatprep.subr.bf16.mxu1 %v7993_v30  ;;  %4739 = vmatpush2.bf16.msra.mxu0 %v8128_v53  ;;  %v2873_v11 = vld [vmem:[#allocation5 + $0x130] sm:$0xff]  ;;  %v8098_v53 = vcombine.low %v3005_v42, %v3009_v62 }
 0x312   :  { %4740 = vmatprep.subr.bf16.mxu0 %v8121_v12  ;;  %v2997_v47 = vld [vmem:[#allocation5 + $0x510] sm:$0xff]  ;;  %v7963_v30 = vcombine.high %v2869_v14, %v2873_v11 }
 0x313   :  { %v3001_v19 = vld [vmem:[#allocation5 + $0x530] sm:$0xff] }
 0x314   :  { %4628 = vmatpush2.bf16.msra.mxu1 %v7992_v51  ;;  %v2861_v7 = vld [vmem:[#allocation5 + $0xd0] sm:$0xff]  ;;  %v8091_v12 = vcombine.high %v2997_v47, %v3001_v19  ;;  %v7962_v51 = vcombine.low %v2869_v14, %v2873_v11 }
 0x315   :  { %4823 = vmatprep.subr.bf16.mxu1 %v7987_v32  ;;  %4741 = vmatpush2.bf16.msra.mxu0 %v8120_v23  ;;  %v2865_v34 = vld [vmem:[#allocation5 + $0xf0] sm:$0xff]  ;;  %v8090_v23 = vcombine.low %v2997_v47, %v3001_v19 }
 0x316   :  { %4936 = vmatprep.subr.bf16.mxu0 %v8115_v63  ;;  %v2989_v6 = vld [vmem:[#allocation5 + $0x4d0] sm:$0xff]  ;;  %v7955_v32 = vcombine.high %v2861_v7, %v2865_v34 }
 0x317   :  { %4630 = vmatmul.mubr.bf16.vlgmr.msra.gmra.mxu1 %v10812_v49  ;;  %v2993_v9 = vld [vmem:[#allocation5 + $0x4f0] sm:$0xff] }
 0x318   :  { %4824 = vmatpush1.bf16.msra.mxu1 %v7986_v26  ;;  %4639 = vmatprep.mubr.bf16.mxu1 %v10827_v31  ;;  %v2853_v56 = vld [vmem:[#allocation5 + $0x90] sm:$0xff]  ;;  %v8083_v63 = vcombine.high %v2989_v6, %v2993_v9  ;;  %v7954_v26 = vcombine.low %v2861_v7, %v2865_v34 }
 0x319   :  { %4743 = vmatmul.mubr.bf16.vlgmr.msra.gmra.mxu0 %v10820_v17  ;;  %4825 = vmatprep.subr.bf16.mxu1 %v7979_v41  ;;  %v2857_v40 = vld [vmem:[#allocation5 + $0xb0] sm:$0xff] }
 0x31a   :  { %4937 = vmatpush1.bf16.msra.mxu0 %v8114_v28  ;;  %4752 = vmatprep.mubr.bf16.mxu0 %v10842_v22  ;;  %v2981_v20 = vld [vmem:[#allocation5 + $0x490] sm:$0xff]  ;;  %v7947_v41 = vcombine.high %v2853_v56, %v2857_v40  ;;  %v8082_v28 = vcombine.low %v2989_v6, %v2993_v9 }
 0x31b   :  { %4938 = vmatprep.subr.bf16.mxu0 %v8107_v33  ;;  %v2985_v0 = vld [vmem:[#allocation5 + $0x4b0] sm:$0xff] }
 0x31c   :  { %4826 = vmatpush1.bf16.msra.mxu1 %v7978_v50  ;;  %v2845_v36 = vld [vmem:[#allocation5 + $0x50] sm:$0xff]  ;;  %v8075_v33 = vcombine.high %v2981_v20, %v2985_v0  ;;  %v7946_v50 = vcombine.low %v2853_v56, %v2857_v40 }
 0x31d   :  { %4827 = vmatprep.subr.bf16.mxu1 %v7971_v61  ;;  %v2849_v44 = vld [vmem:[#allocation5 + $0x70] sm:$0xff] }
 0x31e   :  { %4939 = vmatpush1.bf16.msra.mxu0 %v8106_v25  ;;  %v2973_v42 = vld [vmem:[#allocation5 + $0x450] sm:$0xff]  ;;  %v7939_v61 = vcombine.high %v2845_v36, %v2849_v44  ;;  %v8074_v25 = vcombine.low %v2981_v20, %v2985_v0 }
 0x31f   :  { %4940 = vmatprep.subr.bf16.mxu0 %v8099_v27  ;;  %4640 = vmatmul.mubr.bf16.gmra.mxu1 %v10860_v4  ;;  %v2977_v62 = vld [vmem:[#allocation5 + $0x470] sm:$0xff] }
 0x320   :  { %4828 = vmatpush1.bf16.msra.mxu1 %v7970_v13  ;;  %4649 = vmatprep.mubr.bf16.mxu1 %v10871_v1  ;;  %v2837_v14 = vld [vmem:[#allocation5 + $0x10] sm:$0xff]  ;;  %v8067_v27 = vcombine.high %v2973_v42, %v2977_v62  ;;  %v7938_v13 = vcombine.low %v2845_v36, %v2849_v44 }
 0x321   :  { %4753 = vmatmul.mubr.bf16.gmra.mxu0 %v10881_v46  ;;  %4829 = vmatprep.subr.bf16.mxu1 %v7963_v30  ;;  %v2841_v11 = vld [vmem:[#allocation5 + $0x30] sm:$0xff] }
 0x322   :  { %4941 = vmatpush1.bf16.msra.mxu0 %v8098_v53  ;;  %4762 = vmatprep.mubr.bf16.mxu0 %v10890_v2  ;;  %v2965_v47 = vld [vmem:[#allocation5 + $0x410] sm:$0xff]  ;;  %v7931_v30 = vcombine.high %v2837_v14, %v2841_v11  ;;  %v8066_v53 = vcombine.low %v2973_v42, %v2977_v62 }
 0x323   :  { %4942 = vmatprep.subr.bf16.mxu0 %v8091_v12  ;;  %v2969_v19 = vld [vmem:[#allocation5 + $0x430] sm:$0xff] }
 0x324   :  { %4830 = vmatpush1.bf16.msra.mxu1 %v7962_v51  ;;  %v2957_v7 = vld [vmem:[#allocation5 + $0x3d0] sm:$0xff]  ;;  %v8059_v12 = vcombine.high %v2965_v47, %v2969_v19  ;;  %v7930_v51 = vcombine.low %v2837_v14, %v2841_v11 }
 0x325   :  { %4831 = vmatprep.subr.bf16.mxu1 %v7955_v32  ;;  %v2961_v34 = vld [vmem:[#allocation5 + $0x3f0] sm:$0xff] }
 0x326   :  { %4943 = vmatpush1.bf16.msra.mxu0 %v8090_v23  ;;  %v3085_v6 = vld [vmem:[#allocation5 + $0x7d0] sm:$0xff]  ;;  %v8051_v32 = vcombine.high %v2957_v7, %v2961_v34  ;;  %v8058_v23 = vcombine.low %v2965_v47, %v2969_v19 }
 0x327   :  { %4944 = vmatprep.subr.bf16.mxu0 %v8083_v63  ;;  %4650 = vmatmul.mubr.bf16.gmra.mxu1 %v10922_v38  ;;  %v3089_v9 = vld [vmem:[#allocation5 + $0x7f0] sm:$0xff] }
 0x328   :  { %4832 = vmatpush1.bf16.msra.mxu1 %v7954_v26  ;;  %4659 = vmatprep.mubr.bf16.mxu1 %v10936_v8  ;;  %v2949_v56 = vld [vmem:[#allocation5 + $0x390] sm:$0xff]  ;;  %v8179_v63 = vcombine.high %v3085_v6, %v3089_v9  ;;  %v8050_v26 = vcombine.low %v2957_v7, %v2961_v34 }
 0x329   :  { %4763 = vmatmul.mubr.bf16.gmra.mxu0 %v10946_v60  ;;  %4833 = vmatprep.subr.bf16.mxu1 %v7947_v41  ;;  %v2953_v40 = vld [vmem:[#allocation5 + $0x3b0] sm:$0xff] }
 0x32a   :  { %4945 = vmatpush1.bf16.msra.mxu0 %v8082_v28  ;;  %4772 = vmatprep.mubr.bf16.mxu0 %v10956_v15  ;;  %v3077_v20 = vld [vmem:[#allocation5 + $0x790] sm:$0xff]  ;;  %v8043_v41 = vcombine.high %v2949_v56, %v2953_v40  ;;  %v8178_v28 = vcombine.low %v3085_v6, %v3089_v9 }
 0x32b   :  { %4946 = vmatprep.subr.bf16.mxu0 %v8075_v33  ;;  %v3081_v0 = vld [vmem:[#allocation5 + $0x7b0] sm:$0xff] }
 0x32c   :  { %4834 = vmatpush1.bf16.msra.mxu1 %v7946_v50  ;;  %v2941_v36 = vld [vmem:[#allocation5 + $0x350] sm:$0xff]  ;;  %v8171_v33 = vcombine.high %v3077_v20, %v3081_v0  ;;  %v8042_v50 = vcombine.low %v2949_v56, %v2953_v40 }
 0x32d   :  { %4835 = vmatprep.subr.bf16.mxu1 %v7939_v61  ;;  %v2945_v44 = vld [vmem:[#allocation5 + $0x370] sm:$0xff] }
 0x32e   :  { %4947 = vmatpush1.bf16.msra.mxu0 %v8074_v25  ;;  %v3069_v42 = vld [vmem:[#allocation5 + $0x750] sm:$0xff]  ;;  %v8035_v61 = vcombine.high %v2941_v36, %v2945_v44  ;;  %v8170_v25 = vcombine.low %v3077_v20, %v3081_v0 }
 0x32f   :  { %4948 = vmatprep.subr.bf16.mxu0 %v8067_v27  ;;  %4660 = vmatmul.mubr.bf16.gmra.mxu1 %v10993_v35  ;;  %v3073_v62 = vld [vmem:[#allocation5 + $0x770] sm:$0xff] }
 0x330   :  { %4836 = vmatpush1.bf16.msra.mxu1 %v7938_v13  ;;  %4669 = vmatprep.mubr.bf16.mxu1 %v11002_v16  ;;  %v2933_v14 = vld [vmem:[#allocation5 + $0x310] sm:$0xff]  ;;  %v8163_v27 = vcombine.high %v3069_v42, %v3073_v62  ;;  %v8034_v13 = vcombine.low %v2941_v36, %v2945_v44 }
 0x331   :  { %4773 = vmatmul.mubr.bf16.gmra.mxu0 %v11014_v54  ;;  %4837 = vmatprep.subr.bf16.mxu1 %v7931_v30  ;;  %v2937_v11 = vld [vmem:[#allocation5 + $0x330] sm:$0xff] }
 0x332   :  { %4949 = vmatpush1.bf16.msra.mxu0 %v8066_v53  ;;  %4782 = vmatprep.mubr.bf16.mxu0 %v11021_v52  ;;  %v3061_v47 = vld [vmem:[#allocation5 + $0x710] sm:$0xff]  ;;  %v8027_v30 = vcombine.high %v2933_v14, %v2937_v11  ;;  %v8162_v53 = vcombine.low %v3069_v42, %v3073_v62 }
 0x333   :  { %4950 = vmatprep.subr.bf16.mxu0 %v8059_v12  ;;  %v3065_v19 = vld [vmem:[#allocation5 + $0x730] sm:$0xff] }
 0x334   :  { %4838 = vmatpush1.bf16.msra.mxu1 %v7930_v51  ;;  %v2925_v7 = vld [vmem:[#allocation5 + $0x2d0] sm:$0xff]  ;;  %v8155_v12 = vcombine.high %v3061_v47, %v3065_v19  ;;  %v8026_v51 = vcombine.low %v2933_v14, %v2937_v11 }
 0x335   :  { %4839 = vmatprep.subr.bf16.mxu1 %v8051_v32  ;;  %v2929_v34 = vld [vmem:[#allocation5 + $0x2f0] sm:$0xff] }
 0x336   :  { %4951 = vmatpush1.bf16.msra.mxu0 %v8058_v23  ;;  %v3053_v6 = vld [vmem:[#allocation5 + $0x6d0] sm:$0xff]  ;;  %v8019_v32 = vcombine.high %v2925_v7, %v2929_v34  ;;  %v8154_v23 = vcombine.low %v3061_v47, %v3065_v19 }
 0x337   :  { %4952 = vmatprep.subr.bf16.mxu0 %v8179_v63  ;;  %4670 = vmatmul.mubr.bf16.gmra.mxu1 %v11042_v24  ;;  %v3057_v9 = vld [vmem:[#allocation5 + $0x6f0] sm:$0xff] }
 0x338   :  { %4840 = vmatpush2.bf16.msra.mxu1 %v8050_v26  ;;  %4679 = vmatprep.mubr.bf16.mxu1 %v11066_v29  ;;  %v2917_v56 = vld [vmem:[#allocation5 + $0x290] sm:$0xff]  ;;  %v8147_v63 = vcombine.high %v3053_v6, %v3057_v9  ;;  %v8018_v26 = vcombine.low %v2925_v7, %v2929_v34  ;;  %v2894_v7 = vld [vmem:[#allocation5 + $0x1d8] sm:$0xff] }
 0x339   :  { %4783 = vmatmul.mubr.bf16.gmra.mxu0 %v11049_v21  ;;  %4841 = vmatprep.subr.bf16.mxu1 %v8043_v41  ;;  %v2921_v40 = vld [vmem:[#allocation5 + $0x2b0] sm:$0xff]  ;;  %v2898_v34 = vld [vmem:[#allocation5 + $0x1f8] sm:$0xff] }
 0x33a   :  { %4953 = vmatpush2.bf16.msra.mxu0 %v8178_v28  ;;  %4792 = vmatprep.mubr.bf16.mxu0 %v11098_v45  ;;  %v3045_v20 = vld [vmem:[#allocation5 + $0x690] sm:$0xff]  ;;  %v8011_v41 = vcombine.high %v2917_v56, %v2921_v40  ;;  %v8146_v28 = vcombine.low %v3053_v6, %v3057_v9  ;;  %v3022_v6 = vld [vmem:[#allocation5 + $0x5d8] sm:$0xff] }
 0x33b   :  { %4954 = vmatprep.subr.bf16.mxu0 %v8171_v33  ;;  %v3049_v0 = vld [vmem:[#allocation5 + $0x6b0] sm:$0xff]  ;;  %v3026_v9 = vld [vmem:[#allocation5 + $0x5f8] sm:$0xff] }
 0x33c   :  { %4842 = vmatpush2.bf16.msra.mxu1 %v8042_v50  ;;  %v2909_v36 = vld [vmem:[#allocation5 + $0x250] sm:$0xff]  ;;  %v8139_v33 = vcombine.high %v3045_v20, %v3049_v0  ;;  %v8010_v50 = vcombine.low %v2917_v56, %v2921_v40  ;;  %v2886_v56 = vld [vmem:[#allocation5 + $0x198] sm:$0xff] }
 0x33d   :  { %4843 = vmatprep.subr.bf16.mxu1 %v8035_v61  ;;  %v2913_v44 = vld [vmem:[#allocation5 + $0x270] sm:$0xff]  ;;  %v2890_v40 = vld [vmem:[#allocation5 + $0x1b8] sm:$0xff] }
 0x33e   :  { %4955 = vmatpush2.bf16.msra.mxu0 %v8170_v25  ;;  %v3037_v42 = vld [vmem:[#allocation5 + $0x650] sm:$0xff]  ;;  %v8003_v61 = vcombine.high %v2909_v36, %v2913_v44  ;;  %v8138_v25 = vcombine.low %v3045_v20, %v3049_v0  ;;  %v3014_v20 = vld [vmem:[#allocation5 + $0x598] sm:$0xff] }
 0x33f   :  { %4956 = vmatprep.subr.bf16.mxu0 %v8163_v27  ;;  %4680 = vmatmul.mubr.bf16.gmra.mxu1 %v11131_v37  ;;  %v3041_v62 = vld [vmem:[#allocation5 + $0x670] sm:$0xff]  ;;  %v3018_v0 = vld [vmem:[#allocation5 + $0x5b8] sm:$0xff] }
 0x340   :  { %4844 = vmatpush2.bf16.msra.mxu1 %v8034_v13  ;;  %4689 = vmatprep.mubr.bf16.mxu1 %v11142_v43  ;;  %v2901_v14 = vld [vmem:[#allocation5 + $0x210] sm:$0xff]  ;;  %v8131_v27 = vcombine.high %v3037_v42, %v3041_v62  ;;  %v8002_v13 = vcombine.low %v2909_v36, %v2913_v44  ;;  %v2878_v36 = vld [vmem:[#allocation5 + $0x158] sm:$0xff] }
 0x341   :  { %4793 = vmatmul.mubr.bf16.gmra.mxu0 %v11150_v3  ;;  %4845 = vmatprep.subr.bf16.mxu1 %v8027_v30  ;;  %v2905_v11 = vld [vmem:[#allocation5 + $0x230] sm:$0xff]  ;;  %v2882_v44 = vld [vmem:[#allocation5 + $0x178] sm:$0xff] }
 0x342   :  { %4957 = vmatpush2.bf16.msra.mxu0 %v8162_v53  ;;  %4802 = vmatprep.mubr.bf16.mxu0 %v11158_v10  ;;  %v3029_v47 = vld [vmem:[#allocation5 + $0x610] sm:$0xff]  ;;  %v7995_v30 = vcombine.high %v2901_v14, %v2905_v11  ;;  %v8130_v53 = vcombine.low %v3037_v42, %v3041_v62  ;;  %v3006_v42 = vld [vmem:[#allocation5 + $0x558] sm:$0xff] }
 0x343   :  { %4958 = vmatprep.subr.bf16.mxu0 %v8155_v12  ;;  %v3033_v19 = vld [vmem:[#allocation5 + $0x630] sm:$0xff]  ;;  %v3010_v62 = vld [vmem:[#allocation5 + $0x578] sm:$0xff] }
 0x344   :  { %4846 = vmatpush2.bf16.msra.mxu1 %v8026_v51  ;;  %v8123_v12 = vcombine.high %v3029_v47, %v3033_v19  ;;  %v7994_v51 = vcombine.low %v2901_v14, %v2905_v11  ;;  %v2870_v14 = vld [vmem:[#allocation5 + $0x118] sm:$0xff] }
 0x345   :  { %4847 = vmatprep.subr.bf16.mxu1 %v8019_v32  ;;  %v7989_v32 = vcombine.high %v2894_v7, %v2898_v34  ;;  %v2874_v11 = vld [vmem:[#allocation5 + $0x138] sm:$0xff] }
 0x346   :  { %4959 = vmatpush2.bf16.msra.mxu0 %v8154_v23  ;;  %v8122_v23 = vcombine.low %v3029_v47, %v3033_v19  ;;  %v2998_v47 = vld [vmem:[#allocation5 + $0x518] sm:$0xff] }
 0x347   :  { %4960 = vmatprep.subr.bf16.mxu0 %v8147_v63  ;;  %4690 = vmatmul.mubr.bf16.gmra.mxu1 %v11171_v39  ;;  %v8117_v63 = vcombine.high %v3022_v6, %v3026_v9  ;;  %v3002_v19 = vld [vmem:[#allocation5 + $0x538] sm:$0xff] }
 0x348   :  { %4848 = vmatpush2.bf16.msra.mxu1 %v8018_v26  ;;  %4699 = vmatprep.mubr.bf16.mxu1 %v11179_v55  ;;  %v7988_v26 = vcombine.low %v2894_v7, %v2898_v34  ;;  %v2862_v7 = vld [vmem:[#allocation5 + $0xd8] sm:$0xff] }
 0x349   :  { %4803 = vmatmul.mubr.bf16.gmra.mxu0 %v11182_v5  ;;  %4849 = vmatprep.subr.bf16.mxu1 %v8011_v41  ;;  %v7981_v41 = vcombine.high %v2886_v56, %v2890_v40  ;;  %v2866_v34 = vld [vmem:[#allocation5 + $0xf8] sm:$0xff] }
 0x34a   :  { %4961 = vmatpush2.bf16.msra.mxu0 %v8146_v28  ;;  %4812 = vmatprep.mubr.bf16.mxu0 %v11137_v18  ;;  %v8116_v28 = vcombine.low %v3022_v6, %v3026_v9  ;;  %v2990_v6 = vld [vmem:[#allocation5 + $0x4d8] sm:$0xff] }
 0x34b   :  { %4962 = vmatprep.subr.bf16.mxu0 %v8139_v33  ;;  %v8109_v33 = vcombine.high %v3014_v20, %v3018_v0  ;;  %v2994_v9 = vld [vmem:[#allocation5 + $0x4f8] sm:$0xff] }
 0x34c   :  { %4850 = vmatpush2.bf16.msra.mxu1 %v8010_v50  ;;  %v7980_v50 = vcombine.low %v2886_v56, %v2890_v40  ;;  %v2854_v56 = vld [vmem:[#allocation5 + $0x98] sm:$0xff] }
 0x34d   :  { %4851 = vmatprep.subr.bf16.mxu1 %v8003_v61  ;;  %v7973_v61 = vcombine.high %v2878_v36, %v2882_v44  ;;  %v2858_v40 = vld [vmem:[#allocation5 + $0xb8] sm:$0xff] }
 0x34e   :  { %4963 = vmatpush2.bf16.msra.mxu0 %v8138_v25  ;;  %v8108_v25 = vcombine.low %v3014_v20, %v3018_v0  ;;  %v2982_v20 = vld [vmem:[#allocation5 + $0x498] sm:$0xff] }
 0x34f   :  { %4964 = vmatprep.subr.bf16.mxu0 %v8131_v27  ;;  %4700 = vmatmul.mubr.bf16.gmra.mxu1 %v11189_v57  ;;  %v8101_v27 = vcombine.high %v3006_v42, %v3010_v62  ;;  %v2986_v0 = vld [vmem:[#allocation5 + $0x4b8] sm:$0xff] }
 0x350   :  { %4852 = vmatpush2.bf16.msra.mxu1 %v8002_v13  ;;  %4855 = vmatprep.mubr.bf16.mxu1 %v10806_v59  ;;  %v7972_v13 = vcombine.low %v2878_v36, %v2882_v44  ;;  %v2846_v36 = vld [vmem:[#allocation5 + $0x58] sm:$0xff] }
 0x351   :  { %4813 = vmatmul.mubr.bf16.gmra.mxu0 %v11192_v58  ;;  %4853 = vmatprep.subr.bf16.mxu1 %v7995_v30  ;;  %v7965_v30 = vcombine.high %v2870_v14, %v2874_v11  ;;  %v2850_v44 = vld [vmem:[#allocation5 + $0x78] sm:$0xff] }
 0x352   :  { %4965 = vmatpush2.bf16.msra.mxu0 %v8130_v53  ;;  %4968 = vmatprep.mubr.bf16.mxu0 %v10810_v48  ;;  %v8100_v53 = vcombine.low %v3006_v42, %v3010_v62  ;;  %v2974_v42 = vld [vmem:[#allocation5 + $0x458] sm:$0xff] }
 0x353   :  { %4966 = vmatprep.subr.bf16.mxu0 %v8123_v12  ;;  %v8093_v12 = vcombine.high %v2998_v47, %v3002_v19  ;;  %v2978_v62 = vld [vmem:[#allocation5 + $0x478] sm:$0xff] }
 0x354   :  { %4854 = vmatpush2.bf16.msra.mxu1 %v7994_v51  ;;  %v7964_v51 = vcombine.low %v2870_v14, %v2874_v11  ;;  %v2838_v14 = vld [vmem:[#allocation5 + $0x18] sm:$0xff] }
 0x355   :  { %5049 = vmatprep.subr.bf16.mxu1 %v7989_v32  ;;  %v7957_v32 = vcombine.high %v2862_v7, %v2866_v34  ;;  %v2842_v11 = vld [vmem:[#allocation5 + $0x38] sm:$0xff] }
 0x356   :  { %4967 = vmatpush2.bf16.msra.mxu0 %v8122_v23  ;;  %v8092_v23 = vcombine.low %v2998_v47, %v3002_v19  ;;  %v2966_v47 = vld [vmem:[#allocation5 + $0x418] sm:$0xff] }
 0x357   :  { %5162 = vmatprep.subr.bf16.mxu0 %v8117_v63  ;;  %4856 = vmatmul.mubr.bf16.vlgmr.msra.gmra.mxu1 %v10812_v49  ;;  %v8085_v63 = vcombine.high %v2990_v6, %v2994_v9  ;;  %v2970_v19 = vld [vmem:[#allocation5 + $0x438] sm:$0xff] }
 0x358   :  { %5050 = vmatpush1.bf16.msra.mxu1 %v7988_v26  ;;  %4865 = vmatprep.mubr.bf16.mxu1 %v10827_v31  ;;  %v7956_v26 = vcombine.low %v2862_v7, %v2866_v34  ;;  %v2958_v7 = vld [vmem:[#allocation5 + $0x3d8] sm:$0xff] }
 0x359   :  { %4969 = vmatmul.mubr.bf16.vlgmr.msra.gmra.mxu0 %v10820_v17  ;;  %5051 = vmatprep.subr.bf16.mxu1 %v7981_v41  ;;  %v7949_v41 = vcombine.high %v2854_v56, %v2858_v40  ;;  %v2962_v34 = vld [vmem:[#allocation5 + $0x3f8] sm:$0xff] }
 0x35a   :  { %5163 = vmatpush1.bf16.msra.mxu0 %v8116_v28  ;;  %4978 = vmatprep.mubr.bf16.mxu0 %v10842_v22  ;;  %v8084_v28 = vcombine.low %v2990_v6, %v2994_v9  ;;  %v3086_v6 = vld [vmem:[#allocation5 + $0x7d8] sm:$0xff] }
 0x35b   :  { %5164 = vmatprep.subr.bf16.mxu0 %v8109_v33  ;;  %v8077_v33 = vcombine.high %v2982_v20, %v2986_v0  ;;  %v3090_v9 = vld [vmem:[#allocation5 + $0x7f8] sm:$0xff] }
 0x35c   :  { %5052 = vmatpush1.bf16.msra.mxu1 %v7980_v50  ;;  %v7948_v50 = vcombine.low %v2854_v56, %v2858_v40  ;;  %v2950_v56 = vld [vmem:[#allocation5 + $0x398] sm:$0xff] }
 0x35d   :  { %5053 = vmatprep.subr.bf16.mxu1 %v7973_v61  ;;  %v7941_v61 = vcombine.high %v2846_v36, %v2850_v44  ;;  %v2954_v40 = vld [vmem:[#allocation5 + $0x3b8] sm:$0xff] }
 0x35e   :  { %5165 = vmatpush1.bf16.msra.mxu0 %v8108_v25  ;;  %v8076_v25 = vcombine.low %v2982_v20, %v2986_v0  ;;  %v3078_v20 = vld [vmem:[#allocation5 + $0x798] sm:$0xff] }
 0x35f   :  { %5166 = vmatprep.subr.bf16.mxu0 %v8101_v27  ;;  %4866 = vmatmul.mubr.bf16.gmra.mxu1 %v10860_v4  ;;  %v8069_v27 = vcombine.high %v2974_v42, %v2978_v62  ;;  %v3082_v0 = vld [vmem:[#allocation5 + $0x7b8] sm:$0xff] }
 0x360   :  { %5054 = vmatpush1.bf16.msra.mxu1 %v7972_v13  ;;  %4875 = vmatprep.mubr.bf16.mxu1 %v10871_v1  ;;  %v7940_v13 = vcombine.low %v2846_v36, %v2850_v44  ;;  %v2942_v36 = vld [vmem:[#allocation5 + $0x358] sm:$0xff] }
 0x361   :  { %4979 = vmatmul.mubr.bf16.gmra.mxu0 %v10881_v46  ;;  %5055 = vmatprep.subr.bf16.mxu1 %v7965_v30  ;;  %v7933_v30 = vcombine.high %v2838_v14, %v2842_v11  ;;  %v2946_v44 = vld [vmem:[#allocation5 + $0x378] sm:$0xff] }
 0x362   :  { %5167 = vmatpush1.bf16.msra.mxu0 %v8100_v53  ;;  %4988 = vmatprep.mubr.bf16.mxu0 %v10890_v2  ;;  %v8068_v53 = vcombine.low %v2974_v42, %v2978_v62  ;;  %v3070_v42 = vld [vmem:[#allocation5 + $0x758] sm:$0xff] }
 0x363   :  { %5168 = vmatprep.subr.bf16.mxu0 %v8093_v12  ;;  %v8061_v12 = vcombine.high %v2966_v47, %v2970_v19  ;;  %v3074_v62 = vld [vmem:[#allocation5 + $0x778] sm:$0xff] }
 0x364   :  { %5056 = vmatpush1.bf16.msra.mxu1 %v7964_v51  ;;  %v7932_v51 = vcombine.low %v2838_v14, %v2842_v11  ;;  %v2934_v14 = vld [vmem:[#allocation5 + $0x318] sm:$0xff] }
 0x365   :  { %5057 = vmatprep.subr.bf16.mxu1 %v7957_v32  ;;  %v8053_v32 = vcombine.high %v2958_v7, %v2962_v34  ;;  %v2938_v11 = vld [vmem:[#allocation5 + $0x338] sm:$0xff] }
 0x366   :  { %5169 = vmatpush1.bf16.msra.mxu0 %v8092_v23  ;;  %v8060_v23 = vcombine.low %v2966_v47, %v2970_v19  ;;  %v3062_v47 = vld [vmem:[#allocation5 + $0x718] sm:$0xff] }
 0x367   :  { %5170 = vmatprep.subr.bf16.mxu0 %v8085_v63  ;;  %4876 = vmatmul.mubr.bf16.gmra.mxu1 %v10922_v38  ;;  %v8181_v63 = vcombine.high %v3086_v6, %v3090_v9  ;;  %v3066_v19 = vld [vmem:[#allocation5 + $0x738] sm:$0xff] }
 0x368   :  { %5058 = vmatpush1.bf16.msra.mxu1 %v7956_v26  ;;  %4885 = vmatprep.mubr.bf16.mxu1 %v10936_v8  ;;  %v8052_v26 = vcombine.low %v2958_v7, %v2962_v34  ;;  %v2926_v7 = vld [vmem:[#allocation5 + $0x2d8] sm:$0xff] }
 0x369   :  { %4989 = vmatmul.mubr.bf16.gmra.mxu0 %v10946_v60  ;;  %5059 = vmatprep.subr.bf16.mxu1 %v7949_v41  ;;  %v8045_v41 = vcombine.high %v2950_v56, %v2954_v40  ;;  %v2930_v34 = vld [vmem:[#allocation5 + $0x2f8] sm:$0xff] }
 0x36a   :  { %5171 = vmatpush1.bf16.msra.mxu0 %v8084_v28  ;;  %4998 = vmatprep.mubr.bf16.mxu0 %v10956_v15  ;;  %v8180_v28 = vcombine.low %v3086_v6, %v3090_v9  ;;  %v3054_v6 = vld [vmem:[#allocation5 + $0x6d8] sm:$0xff] }
 0x36b   :  { %5172 = vmatprep.subr.bf16.mxu0 %v8077_v33  ;;  %v8173_v33 = vcombine.high %v3078_v20, %v3082_v0  ;;  %v3058_v9 = vld [vmem:[#allocation5 + $0x6f8] sm:$0xff] }
 0x36c   :  { %5060 = vmatpush1.bf16.msra.mxu1 %v7948_v50  ;;  %v8044_v50 = vcombine.low %v2950_v56, %v2954_v40  ;;  %v2918_v56 = vld [vmem:[#allocation5 + $0x298] sm:$0xff] }
 0x36d   :  { %5061 = vmatprep.subr.bf16.mxu1 %v7941_v61  ;;  %v8037_v61 = vcombine.high %v2942_v36, %v2946_v44  ;;  %v2922_v40 = vld [vmem:[#allocation5 + $0x2b8] sm:$0xff] }
 0x36e   :  { %5173 = vmatpush1.bf16.msra.mxu0 %v8076_v25  ;;  %v8172_v25 = vcombine.low %v3078_v20, %v3082_v0  ;;  %v3046_v20 = vld [vmem:[#allocation5 + $0x698] sm:$0xff] }
 0x36f   :  { %5174 = vmatprep.subr.bf16.mxu0 %v8069_v27  ;;  %4886 = vmatmul.mubr.bf16.gmra.mxu1 %v10993_v35  ;;  %v8165_v27 = vcombine.high %v3070_v42, %v3074_v62  ;;  %v3050_v0 = vld [vmem:[#allocation5 + $0x6b8] sm:$0xff] }
 0x370   :  { %5062 = vmatpush1.bf16.msra.mxu1 %v7940_v13  ;;  %4895 = vmatprep.mubr.bf16.mxu1 %v11002_v16  ;;  %v8036_v13 = vcombine.low %v2942_v36, %v2946_v44  ;;  %v2910_v36 = vld [vmem:[#allocation5 + $0x258] sm:$0xff] }
 0x371   :  { %4999 = vmatmul.mubr.bf16.gmra.mxu0 %v11014_v54  ;;  %5063 = vmatprep.subr.bf16.mxu1 %v7933_v30  ;;  %v8029_v30 = vcombine.high %v2934_v14, %v2938_v11  ;;  %v2914_v44 = vld [vmem:[#allocation5 + $0x278] sm:$0xff] }
 0x372   :  { %5175 = vmatpush1.bf16.msra.mxu0 %v8068_v53  ;;  %5008 = vmatprep.mubr.bf16.mxu0 %v11021_v52  ;;  %v8164_v53 = vcombine.low %v3070_v42, %v3074_v62  ;;  %v3038_v42 = vld [vmem:[#allocation5 + $0x658] sm:$0xff] }
 0x373   :  { %5176 = vmatprep.subr.bf16.mxu0 %v8061_v12  ;;  %v8157_v12 = vcombine.high %v3062_v47, %v3066_v19  ;;  %v3042_v62 = vld [vmem:[#allocation5 + $0x678] sm:$0xff] }
 0x374   :  { %5064 = vmatpush1.bf16.msra.mxu1 %v7932_v51  ;;  %v8028_v51 = vcombine.low %v2934_v14, %v2938_v11  ;;  %v2902_v14 = vld [vmem:[#allocation5 + $0x218] sm:$0xff] }
 0x375   :  { %5065 = vmatprep.subr.bf16.mxu1 %v8053_v32  ;;  %v8021_v32 = vcombine.high %v2926_v7, %v2930_v34  ;;  %v2906_v11 = vld [vmem:[#allocation5 + $0x238] sm:$0xff] }
 0x376   :  { %5177 = vmatpush1.bf16.msra.mxu0 %v8060_v23  ;;  %v8156_v23 = vcombine.low %v3062_v47, %v3066_v19  ;;  %v3030_v47 = vld [vmem:[#allocation5 + $0x618] sm:$0xff] }
 0x377   :  { %5178 = vmatprep.subr.bf16.mxu0 %v8181_v63  ;;  %4896 = vmatmul.mubr.bf16.gmra.mxu1 %v11042_v24  ;;  %v8149_v63 = vcombine.high %v3054_v6, %v3058_v9  ;;  %v3034_v19 = vld [vmem:[#allocation5 + $0x638] sm:$0xff] }
 0x378   :  { %5066 = vmatpush2.bf16.msra.mxu1 %v8052_v26  ;;  %4905 = vmatprep.mubr.bf16.mxu1 %v11066_v29  ;;  %v8020_v26 = vcombine.low %v2926_v7, %v2930_v34  ;;  %v8125_v7 = vcombine.high %v3030_v47, %v3034_v19  ;;  %v7996_v34 = vcombine.low %v2902_v14, %v2906_v11 }
 0x379   :  { %5009 = vmatmul.mubr.bf16.gmra.mxu0 %v11049_v21  ;;  %5067 = vmatprep.subr.bf16.mxu1 %v8045_v41  ;;  %v8013_v41 = vcombine.high %v2918_v56, %v2922_v40 }
 0x37a   :  { %5179 = vmatpush2.bf16.msra.mxu0 %v8180_v28  ;;  %5018 = vmatprep.mubr.bf16.mxu0 %v11098_v45  ;;  %v8148_v28 = vcombine.low %v3054_v6, %v3058_v9 }
 0x37b   :  { %5180 = vmatprep.subr.bf16.mxu0 %v8173_v33  ;;  %v8141_v33 = vcombine.high %v3046_v20, %v3050_v0 }
 0x37c   :  { %5068 = vmatpush2.bf16.msra.mxu1 %v8044_v50  ;;  %v8012_v50 = vcombine.low %v2918_v56, %v2922_v40 }
 0x37d   :  { %5069 = vmatprep.subr.bf16.mxu1 %v8037_v61  ;;  %v8005_v61 = vcombine.high %v2910_v36, %v2914_v44 }
 0x37e   :  { %5181 = vmatpush2.bf16.msra.mxu0 %v8172_v25  ;;  %v8140_v25 = vcombine.low %v3046_v20, %v3050_v0 }
 0x37f   :  { %5182 = vmatprep.subr.bf16.mxu0 %v8165_v27  ;;  %4906 = vmatmul.mubr.bf16.gmra.mxu1 %v11131_v37  ;;  %v8133_v27 = vcombine.high %v3038_v42, %v3042_v62 }
 0x380   :  { %5070 = vmatpush2.bf16.msra.mxu1 %v8036_v13  ;;  %4915 = vmatprep.mubr.bf16.mxu1 %v11142_v43  ;;  %v8004_v13 = vcombine.low %v2910_v36, %v2914_v44 }
 0x381   :  { %5019 = vmatmul.mubr.bf16.gmra.mxu0 %v11150_v3  ;;  %5071 = vmatprep.subr.bf16.mxu1 %v8029_v30  ;;  %v7997_v30 = vcombine.high %v2902_v14, %v2906_v11 }
 0x382   :  { %5183 = vmatpush2.bf16.msra.mxu0 %v8164_v53  ;;  %5028 = vmatprep.mubr.bf16.mxu0 %v11158_v10  ;;  %v8132_v53 = vcombine.low %v3038_v42, %v3042_v62 }
 0x383   :  { %5184 = vmatprep.subr.bf16.mxu0 %v8157_v12  ;;  %v8124_v12 = vcombine.low %v3030_v47, %v3034_v19 }
 0x384   :  { %5072 = vmatpush2.bf16.msra.mxu1 %v8028_v51 }
 0x385   :  { %5073 = vmatprep.subr.bf16.mxu1 %v8021_v32 }
 0x386   :  { %5185 = vmatpush2.bf16.msra.mxu0 %v8156_v23 }
 0x387   :  { %5186 = vmatprep.subr.bf16.mxu0 %v8149_v63  ;;  %4916 = vmatmul.mubr.bf16.gmra.mxu1 %v11171_v39 }
 0x388   :  { %5074 = vmatpush2.bf16.msra.mxu1 %v8020_v26  ;;  %4925 = vmatprep.mubr.bf16.mxu1 %v11179_v55 }
 0x389   :  { %5029 = vmatmul.mubr.bf16.gmra.mxu0 %v11182_v5  ;;  %5075 = vmatprep.subr.bf16.mxu1 %v8013_v41 }
 0x38a   :  { %5187 = vmatpush2.bf16.msra.mxu0 %v8148_v28  ;;  %5038 = vmatprep.mubr.bf16.mxu0 %v11137_v18 }
 0x38b   :  { %5188 = vmatprep.subr.bf16.mxu0 %v8141_v33 }
 0x38c   :  { %5076 = vmatpush2.bf16.msra.mxu1 %v8012_v50 }
 0x38d   :  { %5077 = vmatprep.subr.bf16.mxu1 %v8005_v61 }
 0x38e   :  { %5189 = vmatpush2.bf16.msra.mxu0 %v8140_v25  ;;  %v4405_v51 = vpop.f32.mrf.mxu1 }
 0x38f   :  { %5190 = vmatprep.subr.bf16.mxu0 %v8133_v27  ;;  %4926 = vmatmul.mubr.bf16.gmra.mxu1 %v11189_v57 }
 0x390   :  { %5078 = vmatpush2.bf16.msra.mxu1 %v8004_v13  ;;  %5081 = vmatprep.mubr.bf16.mxu1 %v10806_v59  ;;  %v4518_v6 = vpop.f32.mrf.mxu0  ;;  %v4407_v59 = vpop.f32.mrf.mxu1 }
 0x391   :  { %5039 = vmatmul.mubr.bf16.gmra.mxu0 %v11192_v58  ;;  %5079 = vmatprep.subr.bf16.mxu1 %v7997_v30  ;;  %v11264_v9 = vadd.f32 %v4518_v6, %v4405_v51 }
 0x392   :  { %5191 = vmatpush2.bf16.msra.mxu0 %v8132_v53  ;;  %5194 = vmatprep.mubr.bf16.mxu0 %v10810_v48  ;;  %v4520_v32 = vpop.f32.mrf.mxu0  ;;  %v4409_v23 = vpop.f32.mrf.mxu1 }
 0x393   :  { %5192 = vmatprep.subr.bf16.mxu0 %v8125_v7  ;;  %14087 = vst [vmem:[#allocation40_spill] sm:$0xff] %v11264_v9  ;;  %v11267_v48 = vadd.f32 %v4520_v32, %v4407_v59 }
 0x394   :  { %5080 = vmatpush2.bf16.msra.mxu1 %v7996_v34  ;;  %v4522_v56 = vpop.f32.mrf.mxu0  ;;  %v4411_v40 = vpop.f32.mrf.mxu1 }
 0x395   :  { %14088 = vst [vmem:[#allocation36_spill] sm:$0xff] %v11267_v48  ;;  %v11269_v63 = vadd.f32 %v4522_v56, %v4409_v23 }
 0x396   :  { %5193 = vmatpush2.bf16.msra.mxu0 %v8124_v12  ;;  %v4524_v26 = vpop.f32.mrf.mxu0 }
 0x397   :  { %5082 = vmatmul.mubr.bf16.vlgmr.msra.gmra.mxu1 %v10812_v49  ;;  %14089 = vst [vmem:[#allocation38_spill] sm:$0xff] %v11269_v63  ;;  %v4415_v49 = vpop.f32.mrf.mxu1 }
 0x398   :  { %5091 = vmatprep.mubr.bf16.mxu1 %v10827_v31  ;;  %v11272_v31 = vadd.f32 %v4524_v26, %v4411_v40 }
 0x399   :  { %5195 = vmatmul.mubr.bf16.vlgmr.msra.gmra.mxu0 %v10820_v17 }
 0x39a   :  { %5204 = vmatprep.mubr.bf16.mxu0 %v10842_v22  ;;  %14090 = vst [vmem:[#allocation37_spill] sm:$0xff] %v11272_v31  ;;  %v4528_v17 = vpop.f32.mrf.mxu0  ;;  %v4417_v22 = vpop.f32.mrf.mxu1 }
 0x39b   :  { %v11276_v20 = vadd.f32 %v4528_v17, %v4415_v49 }
 0x39c   :  { %v4530_v0 = vpop.f32.mrf.mxu0  ;;  %v4419_v41 = vpop.f32.mrf.mxu1 }
 0x39d   :  { %14091 = vst [vmem:[#allocation39_spill] sm:$0xff] %v11276_v20  ;;  %v11279_v28 = vadd.f32 %v4530_v0, %v4417_v22 }
 0x39e   :  { %v4532_v36 = vpop.f32.mrf.mxu0  ;;  %v4421_v44 = vpop.f32.mrf.mxu1 }
 0x39f   :  { %5092 = vmatmul.mubr.bf16.gmra.mxu1 %v10860_v4  ;;  %14092 = vst [vmem:[#allocation41_spill] sm:$0xff] %v11279_v28  ;;  %v11281_v33 = vadd.f32 %v4532_v36, %v4419_v41 }
 0x3a0   :  { %5101 = vmatprep.mubr.bf16.mxu1 %v10871_v1  ;;  %v4534_v4 = vpop.f32.mrf.mxu0 }
 0x3a1   :  { %5205 = vmatmul.mubr.bf16.gmra.mxu0 %v10881_v46  ;;  %14093 = vst [vmem:[#allocation46_spill] sm:$0xff] %v11281_v33  ;;  %v4425_v50 = vpop.f32.mrf.mxu1  ;;  %v11284_v1 = vadd.f32 %v4534_v4, %v4421_v44 }
 0x3a2   :  { %5214 = vmatprep.mubr.bf16.mxu0 %v10890_v2 }
 0x3a3   :  { %14094 = vst [vmem:[#allocation42_spill] sm:$0xff] %v11284_v1  ;;  %v4538_v46 = vpop.f32.mrf.mxu0  ;;  %v4427_v2 = vpop.f32.mrf.mxu1 }
 0x3a4   :  { %v11288_v42 = vadd.f32 %v4538_v46, %v4425_v50 }
 0x3a5   :  { %v4540_v62 = vpop.f32.mrf.mxu0  ;;  %v4429_v61 = vpop.f32.mrf.mxu1 }
 0x3a6   :  { %14095 = vst [vmem:[#allocation59_spill] sm:$0xff] %v11288_v42  ;;  %v11291_v25 = vadd.f32 %v4540_v62, %v4427_v2 }
 0x3a7   :  { %5102 = vmatmul.mubr.bf16.gmra.mxu1 %v10922_v38  ;;  %v4542_v14 = vpop.f32.mrf.mxu0  ;;  %v4431_v11 = vpop.f32.mrf.mxu1 }
 0x3a8   :  { %5111 = vmatprep.mubr.bf16.mxu1 %v10936_v8  ;;  %14096 = vst [vmem:[#allocation60_spill] sm:$0xff] %v11291_v25  ;;  %v11293_v27 = vadd.f32 %v4542_v14, %v4429_v61 }
 0x3a9   :  { %5215 = vmatmul.mubr.bf16.gmra.mxu0 %v10946_v60  ;;  %v4544_v38 = vpop.f32.mrf.mxu0 }
 0x3aa   :  { %5224 = vmatprep.mubr.bf16.mxu0 %v10956_v15  ;;  %14097 = vst [vmem:[#allocation61_spill] sm:$0xff] %v11293_v27  ;;  %v4435_v13 = vpop.f32.mrf.mxu1  ;;  %v11296_v8 = vadd.f32 %v4544_v38, %v4431_v11 }
 0x3ac   :  { %14098 = vst [vmem:[#allocation62_spill] sm:$0xff] %v11296_v8  ;;  %v4548_v60 = vpop.f32.mrf.mxu0  ;;  %v4437_v15 = vpop.f32.mrf.mxu1 }
 0x3ad   :  { %v11300_v47 = vadd.f32 %v4548_v60, %v4435_v13 }
 0x3ae   :  { %v4550_v19 = vpop.f32.mrf.mxu0  ;;  %v4439_v30 = vpop.f32.mrf.mxu1 }
 0x3af   :  { %5112 = vmatmul.mubr.bf16.gmra.mxu1 %v10993_v35  ;;  %14099 = vst [vmem:[#allocation44_spill] sm:$0xff] %v11300_v47  ;;  %v11303_v53 = vadd.f32 %v4550_v19, %v4437_v15 }
 0x3b0   :  { %5121 = vmatprep.mubr.bf16.mxu1 %v11002_v16  ;;  %v4552_v7 = vpop.f32.mrf.mxu0  ;;  %v4441_v34 = vpop.f32.mrf.mxu1 }
 0x3b1   :  { %5225 = vmatmul.mubr.bf16.gmra.mxu0 %v11014_v54  ;;  %14100 = vst [vmem:[#allocation43_spill] sm:$0xff] %v11303_v53  ;;  %v11305_v12 = vadd.f32 %v4552_v7, %v4439_v30 }
 0x3b2   :  { %5234 = vmatprep.mubr.bf16.mxu0 %v11021_v52  ;;  %v4554_v35 = vpop.f32.mrf.mxu0  ;;  %v4445_v51 = vpop.f32.mrf.mxu1 }
 0x3b3   :  { %14101 = vst [vmem:[#allocation45_spill] sm:$0xff] %v11305_v12  ;;  %v11308_v16 = vadd.f32 %v4554_v35, %v4441_v34 }
 0x3b4   :  { %v4447_v52 = vpop.f32.mrf.mxu1 }
 0x3b5   :  { %14102 = vst [vmem:[#allocation49_spill] sm:$0xff] %v11308_v16  ;;  %v4558_v54 = vpop.f32.mrf.mxu0 }
 0x3b6   :  { %v11312_v6 = vadd.f32 %v4558_v54, %v4445_v51  ;;  %v4449_v32 = vpop.f32.mrf.mxu1 }
 0x3b7   :  { %5122 = vmatmul.mubr.bf16.gmra.mxu1 %v11042_v24  ;;  %v4560_v59 = vpop.f32.mrf.mxu0 }
 0x3b8   :  { %5131 = vmatprep.mubr.bf16.mxu1 %v11066_v29  ;;  %14103 = vst [vmem:[#allocation53_spill] sm:$0xff] %v11312_v6  ;;  %v11315_v23 = vadd.f32 %v4560_v59, %v4447_v52  ;;  %v11317_v40 = vpop.f32.mrf.mxu1 }
 0x3b9   :  { %5235 = vmatmul.mubr.bf16.gmra.mxu0 %v11049_v21  ;;  %v4562_v56 = vpop.f32.mrf.mxu0 }
 0x3ba   :  { %5244 = vmatprep.mubr.bf16.mxu0 %v11098_v45  ;;  %14104 = vst [vmem:[#allocation63_spill] sm:$0xff] %v11315_v23  ;;  %v11319_v24 = vadd.f32 %v4562_v56, %v4449_v32 }
 0x3bb   :  { %v11321_v26 = vpop.f32.mrf.mxu0 }
 0x3bc   :  { %14105 = vst [vmem:[#allocation64_spill] sm:$0xff] %v11319_v24 }
 0x3bd   :  { %v4455_v29 = vpop.f32.mrf.mxu1 }
 0x3bf   :  { %5132 = vmatmul.mubr.bf16.gmra.mxu1 %v11131_v37  ;;  %v4568_v21 = vpop.f32.mrf.mxu0  ;;  %v4457_v45 = vpop.f32.mrf.mxu1 }
 0x3c0   :  { %5141 = vmatprep.mubr.bf16.mxu1 %v11142_v43  ;;  %v11326_v49 = vadd.f32 %v4568_v21, %v4455_v29 }
 0x3c1   :  { %5245 = vmatmul.mubr.bf16.gmra.mxu0 %v11150_v3  ;;  %v4570_v17 = vpop.f32.mrf.mxu0  ;;  %v4459_v22 = vpop.f32.mrf.mxu1 }
 0x3c2   :  { %14106 = vst [vmem:[#allocation50_spill] sm:$0xff] %v11326_v49  ;;  %5254 = vmatprep.mubr.bf16.mxu0 %v11158_v10  ;;  %v11329_v0 = vadd.f32 %v4570_v17, %v4457_v45 }
 0x3c3   :  { %v4572_v41 = vpop.f32.mrf.mxu0  ;;  %v11331_v36 = vpop.f32.mrf.mxu1 }
 0x3c4   :  { %14107 = vst [vmem:[#allocation54_spill] sm:$0xff] %v11329_v0  ;;  %v11333_v44 = vadd.f32 %v4572_v41, %v4459_v22 }
 0x3c5   :  { %v11335_v37 = vpop.f32.mrf.mxu0 }
 0x3c6   :  { %14108 = vst [vmem:[#allocation47_spill] sm:$0xff] %v11333_v44  ;;  %v4465_v43 = vpop.f32.mrf.mxu1 }
 0x3c7   :  { %5142 = vmatmul.mubr.bf16.gmra.mxu1 %v11171_v39  ;;  %v4578_v3 = vpop.f32.mrf.mxu0 }
 0x3c8   :  { %5151 = vmatprep.mubr.bf16.mxu1 %v11179_v55  ;;  %v4467_v10 = vpop.f32.mrf.mxu1  ;;  %v11340_v4 = vadd.f32 %v4578_v3, %v4465_v43 }
 0x3c9   :  { %5255 = vmatmul.mubr.bf16.gmra.mxu0 %v11182_v5  ;;  %v4580_v50 = vpop.f32.mrf.mxu0 }
 0x3ca   :  { %14109 = vst [vmem:[#allocation65_spill] sm:$0xff] %v11340_v4  ;;  %5264 = vmatprep.mubr.bf16.mxu0 %v11137_v18  ;;  %v4469_v46 = vpop.f32.mrf.mxu1  ;;  %v11343_v2 = vadd.f32 %v4580_v50, %v4467_v10 }
 0x3cb   :  { %v4582_v62 = vpop.f32.mrf.mxu0 }
 0x3cc   :  { %14110 = vst [vmem:[#allocation66_spill] sm:$0xff] %v11343_v2  ;;  %v11345_v61 = vpop.f32.mrf.mxu1  ;;  %v11347_v14 = vadd.f32 %v4582_v62, %v4469_v46 }
 0x3cd   :  { %v11349_v39 = vpop.f32.mrf.mxu0 }
 0x3ce   :  { %14111 = vst [vmem:[#allocation51_spill] sm:$0xff] %v11347_v14  ;;  %v4475_v55 = vpop.f32.mrf.mxu1 }
 0x3cf   :  { %5152 = vmatmul.mubr.bf16.gmra.mxu1 %v11189_v57  ;;  %v4588_v5 = vpop.f32.mrf.mxu0 }
 0x3d0   :  { %v4477_v11 = vpop.f32.mrf.mxu1  ;;  %v11353_v38 = vadd.f32 %v4588_v5, %v4475_v55 }
 0x3d1   :  { %5265 = vmatmul.mubr.bf16.gmra.mxu0 %v11192_v58  ;;  %v4590_v18 = vpop.f32.mrf.mxu0 }
 0x3d2   :  { %14112 = vst [vmem:[#allocation67_spill] sm:$0xff] %v11353_v38  ;;  %v4479_v13 = vpop.f32.mrf.mxu1  ;;  %v11355_v60 = vadd.f32 %v4590_v18, %v4477_v11 }
 0x3d3   :  { %v4592_v15 = vpop.f32.mrf.mxu0 }
 0x3d4   :  { %14113 = vst [vmem:[#allocation68_spill] sm:$0xff] %v11355_v60  ;;  %v11357_v19 = vpop.f32.mrf.mxu1  ;;  %v11359_v30 = vadd.f32 %v4592_v15, %v4479_v13 }
 0x3d5   :  { %v11361_v7 = vpop.f32.mrf.mxu0 }
 0x3d6   :  { %14114 = vst [vmem:[#allocation48_spill] sm:$0xff] %v11359_v30 }
 0x3d7   :  { %v4631_v34 = vpop.f32.mrf.mxu1 }
 0x3d9   :  { %v4744_v35 = vpop.f32.mrf.mxu0  ;;  %v4633_v57 = vpop.f32.mrf.mxu1 }
 0x3da   :  { %v11363_v51 = vadd.f32 %v4744_v35, %v4631_v34 }
 0x3db   :  { %v4746_v58 = vpop.f32.mrf.mxu0  ;;  %v4635_v54 = vpop.f32.mrf.mxu1 }
 0x3dc   :  { %14115 = vst [vmem:[#allocation52_spill] sm:$0xff] %v11363_v51  ;;  %v11365_v52 = vadd.f32 %v4746_v58, %v4633_v57 }
 0x3dd   :  { %v4748_v59 = vpop.f32.mrf.mxu0  ;;  %v11367_v32 = vpop.f32.mrf.mxu1 }
 0x3de   :  { %14116 = vst [vmem:[#allocation69_spill] sm:$0xff] %v11365_v52  ;;  %v11369_v56 = vadd.f32 %v4748_v59, %v4635_v54 }
 0x3df   :  { %v11371_v29 = vpop.f32.mrf.mxu0  ;;  %v4641_v21 = vpop.f32.mrf.mxu1 }
 0x3e0   :  { %14117 = vst [vmem:[#allocation70_spill] sm:$0xff] %v11369_v56 }
 0x3e1   :  { %v4754_v45 = vpop.f32.mrf.mxu0  ;;  %v4643_v17 = vpop.f32.mrf.mxu1 }
 0x3e2   :  { %v11373_v22 = vadd.f32 %v4754_v45, %v4641_v21 }
 0x3e3   :  { %v4756_v41 = vpop.f32.mrf.mxu0  ;;  %v4645_v43 = vpop.f32.mrf.mxu1 }
 0x3e4   :  { %14118 = vst [vmem:[#allocation57_spill] sm:$0xff] %v11373_v22  ;;  %v11375_v3 = vadd.f32 %v4756_v41, %v4643_v17 }
 0x3e5   :  { %v4758_v10 = vpop.f32.mrf.mxu0  ;;  %v11377_v50 = vpop.f32.mrf.mxu1 }
 0x3e6   :  { %14119 = vst [vmem:[#allocation18_spill] sm:$0xff] %v11375_v3  ;;  %v11379_v46 = vadd.f32 %v4758_v10, %v4645_v43 }
 0x3e7   :  { %v11381_v62 = vpop.f32.mrf.mxu0  ;;  %v4651_v55 = vpop.f32.mrf.mxu1 }
 0x3e8   :  { %14120 = vst [vmem:[#allocation71_spill] sm:$0xff] %v11379_v46 }
 0x3e9   :  { %v4764_v5 = vpop.f32.mrf.mxu0  ;;  %v4653_v11 = vpop.f32.mrf.mxu1 }
 0x3ea   :  { %v11383_v18 = vadd.f32 %v4764_v5, %v4651_v55 }
 0x3eb   :  { %v4766_v13 = vpop.f32.mrf.mxu0  ;;  %v4655_v15 = vpop.f32.mrf.mxu1 }
 0x3ec   :  { %14121 = vst [vmem:[#allocation15_spill] sm:$0xff] %v11383_v18  ;;  %v11385_v34 = vadd.f32 %v4766_v13, %v4653_v11 }
 0x3ed   :  { %v4768_v35 = vpop.f32.mrf.mxu0  ;;  %v11387_v57 = vpop.f32.mrf.mxu1 }
 0x3ee   :  { %14122 = vst [vmem:[#allocation19_spill] sm:$0xff] %v11385_v34  ;;  %v11389_v58 = vadd.f32 %v4768_v35, %v4655_v15 }
 0x3ef   :  { %v11391_v54 = vpop.f32.mrf.mxu0  ;;  %v4661_v59 = vpop.f32.mrf.mxu1 }
 0x3f0   :  { %14123 = vst [vmem:[#allocation72_spill] sm:$0xff] %v11389_v58  ;;  %14124 = vst [vmem:[#allocation73_spill] sm:$0xff] %v11391_v54 }
 0x3f1   :  { %v4774_v21 = vpop.f32.mrf.mxu0  ;;  %v4663_v45 = vpop.f32.mrf.mxu1 }
 0x3f2   :  { %v11393_v17 = vadd.f32 %v4774_v21, %v4661_v59 }
 0x3f3   :  { %v4776_v41 = vpop.f32.mrf.mxu0  ;;  %v4665_v43 = vpop.f32.mrf.mxu1 }
 0x3f4   :  { %14125 = vst [vmem:[#allocation74_spill] sm:$0xff] %v11393_v17  ;;  %v11395_v10 = vadd.f32 %v4776_v41, %v4663_v45 }
 0x3f5   :  { %v4778_v55 = vpop.f32.mrf.mxu0  ;;  %v11397_v5 = vpop.f32.mrf.mxu1 }
 0x3f6   :  { %14126 = vst [vmem:[#allocation75_spill] sm:$0xff] %v11395_v10  ;;  %14127 = vst [vmem:[#allocation55_spill] sm:$0xff] %v11397_v5  ;;  %v11399_v11 = vadd.f32 %v4778_v55, %v4665_v43 }
 0x3f7   :  { %v11401_v13 = vpop.f32.mrf.mxu0  ;;  %v4671_v15 = vpop.f32.mrf.mxu1 }
 0x3f8   :  { %14128 = vst [vmem:[#allocation76_spill] sm:$0xff] %v11399_v11  ;;  %14129 = vst [vmem:[#allocation77_spill] sm:$0xff] %v11401_v13 }
 0x3f9   :  { %v4784_v35 = vpop.f32.mrf.mxu0  ;;  %v4673_v58 = vpop.f32.mrf.mxu1 }
 0x3fa   :  { %v11403_v34 = vadd.f32 %v4784_v35, %v4671_v15 }
 0x3fb   :  { %v4786_v18 = vpop.f32.mrf.mxu0  ;;  %v4675_v54 = vpop.f32.mrf.mxu1 }
 0x3fc   :  { %14130 = vst [vmem:[#allocation16_spill] sm:$0xff] %v11403_v34  ;;  %v11405_v59 = vadd.f32 %v4786_v18, %v4673_v58 }
 0x3fd   :  { %v4788_v21 = vpop.f32.mrf.mxu0  ;;  %v11407_v17 = vpop.f32.mrf.mxu1 }
 0x3fe   :  { %14131 = vst [vmem:[#allocation56_spill] sm:$0xff] %v11405_v59  ;;  %v11409_v45 = vadd.f32 %v4788_v21, %v4675_v54  ;;  %v5459_v21 = vmul.f32 %v11269_v63, %v11269_v63 }
 0x3ff   :  { %v11411_v41 = vpop.f32.mrf.mxu0  ;;  %v4681_v43 = vpop.f32.mrf.mxu1 }
 0x400   :  { %14132 = vst [vmem:[#allocation22_spill] sm:$0xff] %v11409_v45  ;;  %14133 = vst [vmem:[#allocation26_spill] sm:$0xff] %v11411_v41  ;;  %v5296_v41 = vadd.f32 %v11272_v31, %v11267_v48 }
 0x401   :  { %v4794_v55 = vpop.f32.mrf.mxu0  ;;  %v4683_v11 = vpop.f32.mrf.mxu1 }
 0x402   :  { %v11413_v10 = vadd.f32 %v4794_v55, %v4681_v43  ;;  %v5275_v43 = vadd.f32 %v11269_v63, %v11264_v9 }
 0x403   :  { %v4796_v13 = vpop.f32.mrf.mxu0  ;;  %v4685_v5 = vpop.f32.mrf.mxu1 }
 0x404   :  { %14134 = vst [vmem:[#allocation78_spill] sm:$0xff] %v11413_v10  ;;  %v11415_v15 = vadd.f32 %v4796_v13, %v4683_v11  ;;  %v5451_v11 = vmul.f32 %v11264_v9, %v11264_v9  ;;  %v5452_v9 = vmul.f32 %v11267_v48, %v11267_v48 }
 0x405   :  { %v4798_v35 = vpop.f32.mrf.mxu0  ;;  %v11417_v34 = vpop.f32.mrf.mxu1 }
 0x406   :  { %14135 = vst [vmem:[#allocation79_spill] sm:$0xff] %v11415_v15  ;;  %14136 = vst [vmem:[#allocation17_spill] sm:$0xff] %v11417_v34  ;;  %v11419_v18 = vadd.f32 %v4798_v35, %v4685_v5  ;;  %v5467_v5 = vmul.f32 %v11276_v20, %v11276_v20  ;;  %v5276_v15 = vadd.f32 %v5275_v43, %v11276_v20 }
 0x407   :  { %v11421_v58 = vpop.f32.mrf.mxu0  ;;  %v4691_v54 = vpop.f32.mrf.mxu1 }
 0x408   :  { %14137 = vst [vmem:[#allocation23_spill] sm:$0xff] %v11419_v18  ;;  %14138 = vst [vmem:[#allocation27_spill] sm:$0xff] %v11421_v58  ;;  %v5460_v18 = vmul.f32 %v11272_v31, %v11272_v31  ;;  %v5579_v58 = vadd.f32 %v5459_v21, %v5451_v11  ;;  %v5483_v21 = vmul.f32 %v11288_v42, %v11288_v42 }
 0x409   :  { %v4804_v45 = vpop.f32.mrf.mxu0  ;;  %v4693_v59 = vpop.f32.mrf.mxu1 }
 0x40a   :  { %v11427_v55 = vadd.f32 %v4804_v45, %v4691_v54  ;;  %v5475_v45 = vmul.f32 %v11281_v33, %v11281_v33  ;;  %v5580_v43 = vadd.f32 %v5579_v58, %v5467_v5  ;;  %v5600_v20 = vadd.f32 %v5460_v18, %v5452_v9 }
 0x40b   :  { %v4806_v13 = vpop.f32.mrf.mxu0  ;;  %v4695_v35 = vpop.f32.mrf.mxu1  ;;  %v5491_v58 = vmul.f32 %v11293_v27, %v11293_v27 }
 0x40c   :  { %14139 = vst [vmem:[#allocation80_spill] sm:$0xff] %v11427_v55  ;;  %v11436_v10 = vadd.f32 %v4806_v13, %v4693_v59  ;;  %v5277_v55 = vadd.f32 %v5276_v15, %v11281_v33  ;;  %v5468_v59 = vmul.f32 %v11279_v28, %v11279_v28  ;;  %v5297_v15 = vadd.f32 %v5296_v41, %v11279_v28 }
 0x40d   :  { %v4808_v54 = vpop.f32.mrf.mxu0  ;;  %v11440_v63 = vpop.f32.mrf.mxu1  ;;  %v5484_v41 = vmul.f32 %v11291_v25, %v11291_v25 }
 0x40e   :  { %14140 = vst [vmem:[#allocation81_spill] sm:$0xff] %v11436_v10  ;;  %v11445_v34 = vadd.f32 %v4808_v54, %v4695_v35  ;;  %v5278_v10 = vadd.f32 %v5277_v55, %v11288_v42  ;;  %v5581_v35 = vadd.f32 %v5580_v43, %v5475_v45  ;;  %v5476_v54 = vmul.f32 %v11284_v1, %v11284_v1 }
 0x40f   :  { %v11453_v11 = vpop.f32.mrf.mxu0  ;;  %v4701_v13 = vpop.f32.mrf.mxu1  ;;  %v5298_v9 = vadd.f32 %v5297_v15, %v11284_v1  ;;  %v5499_v43 = vmul.f32 %v11300_v47, %v11300_v47 }
 0x410   :  { %14141 = vst [vmem:[#allocation31_spill] sm:$0xff] %v11445_v34  ;;  %14142 = vst [vmem:[#allocation82_spill] sm:$0xff] %v11453_v11  ;;  %v5279_v31 = vadd.f32 %v5278_v10, %v11293_v27  ;;  %v5601_v34 = vadd.f32 %v5600_v20, %v5468_v59  ;;  %v5582_v18 = vadd.f32 %v5581_v35, %v5483_v21 }
 0x411   :  { %v4814_v5 = vpop.f32.mrf.mxu0  ;;  %v4703_v33 = vpop.f32.mrf.mxu1  ;;  %v5299_v10 = vadd.f32 %v5298_v9, %v11291_v25  ;;  %v5492_v21 = vmul.f32 %v11296_v8, %v11296_v8 }
 0x412   :  { %v11462_v48 = vadd.f32 %v4814_v5, %v4701_v13  ;;  %v5280_v45 = vadd.f32 %v5279_v31, %v11300_v47  ;;  %v5602_v11 = vadd.f32 %v5601_v34, %v5476_v54  ;;  %v5583_v13 = vadd.f32 %v5582_v18, %v5491_v58 }
 0x413   :  { %v4816_v55 = vpop.f32.mrf.mxu0  ;;  %v4705_v42 = vpop.f32.mrf.mxu1  ;;  %v5507_v31 = vmul.f32 %v11305_v12, %v11305_v12  ;;  %v5515_v18 = vmul.f32 %v11312_v6, %v11312_v6 }
 0x414   :  { %14143 = vst [vmem:[#allocation83_spill] sm:$0xff] %v11462_v48  ;;  %v11470_v28 = vadd.f32 %v4816_v55, %v4703_v33  ;;  %v5281_v15 = vadd.f32 %v5280_v45, %v11305_v12  ;;  %v5300_v33 = vadd.f32 %v5299_v10, %v11296_v8  ;;  %v5603_v54 = vadd.f32 %v5602_v11, %v5484_v41 }
 0x415   :  { %v4818_v20 = vpop.f32.mrf.mxu0  ;;  %v11473_v59 = vpop.f32.mrf.mxu1  ;;  %v5584_v58 = vadd.f32 %v5583_v13, %v5499_v43  ;;  %v5500_v45 = vmul.f32 %v11303_v53, %v11303_v53  ;;  %v5523_v11 = vmul.f32 %v11319_v24, %v11319_v24  ;;  %v5508_v43 = vmul.f32 %v11308_v16, %v11308_v16 }
 0x416   :  { %14144 = vst [vmem:[#allocation20_spill] sm:$0xff] %v11470_v28  ;;  %v11480_v35 = vadd.f32 %v4818_v20, %v4705_v42  ;;  %v5282_v9 = vadd.f32 %v5281_v15, %v11312_v6  ;;  %v5301_v55 = vadd.f32 %v5300_v33, %v11303_v53  ;;  %v5604_v20 = vadd.f32 %v5603_v54, %v5492_v21  ;;  %v14167_v53 = vld [vmem:[#allocation19_spill] sm:$0xff] }
 0x417   :  { %v11483_v5 = vpop.f32.mrf.mxu0  ;;  %v4857_v34 = vpop.f32.mrf.mxu1  ;;  %v5585_v47 = vadd.f32 %v5584_v58, %v5507_v31  ;;  %v11499_v13 = vadd.f32 %v11321_v26, %v11317_v40  ;;  %v5531_v54 = vmul.f32 %v11326_v49, %v11326_v49 }
 0x418   :  { %14145 = vst [vmem:[#allocation24_spill] sm:$0xff] %v11480_v35  ;;  %v5283_v10 = vadd.f32 %v5282_v9, %v11319_v24  ;;  %v5302_v41 = vadd.f32 %v5301_v55, %v11308_v16  ;;  %v5605_v58 = vadd.f32 %v5604_v20, %v5500_v45  ;;  %v5516_v55 = vmul.f32 %v11315_v23, %v11315_v23 }
 0x419   :  { %v4970_v12 = vpop.f32.mrf.mxu0  ;;  %v4859_v42 = vpop.f32.mrf.mxu1  ;;  %14146 = vst [vmem:[#allocation30_spill] sm:$0xff] %v11499_v13  ;;  %v5586_v21 = vadd.f32 %v5585_v47, %v5515_v18  ;;  %v5539_v47 = vmul.f32 %v11333_v44, %v11333_v44  ;;  %v11519_v45 = vadd.f32 %v11335_v37, %v11331_v36 }
 0x41a   :  { %v11501_v15 = vadd.f32 %v4970_v12, %v4857_v34  ;;  %v5284_v31 = vadd.f32 %v5283_v10, %v11326_v49  ;;  %v5303_v9 = vadd.f32 %v5302_v41, %v11315_v23  ;;  %v5606_v18 = vadd.f32 %v5605_v58, %v5508_v43  ;;  %v14165_v23 = vld [vmem:[#allocation15_spill] sm:$0xff] }
 0x41b   :  { %v4972_v33 = vpop.f32.mrf.mxu0  ;;  %v4861_v6 = vpop.f32.mrf.mxu1  ;;  %v5587_v12 = vadd.f32 %v5586_v21, %v5523_v11  ;;  %14149 = vst [vmem:[#allocation25_spill] sm:$0xff] %v11519_v45  ;;  %v5524_v11 = vmul.f32 %v11499_v13, %v11499_v13  ;;  %v5547_v43 = vmul.f32 %v11340_v4, %v11340_v4 }
 0x41c   :  { %14147 = vst [vmem:[#allocation34_spill] sm:$0xff] %v11501_v15  ;;  %v11509_v24 = vadd.f32 %v4972_v33, %v4859_v42  ;;  %v5285_v34 = vadd.f32 %v5284_v31, %v11333_v44  ;;  %v5304_v10 = vadd.f32 %v5303_v9, %v11499_v13  ;;  %v5607_v31 = vadd.f32 %v5606_v18, %v5516_v55 }
 0x41d   :  { %v4974_v40 = vpop.f32.mrf.mxu0  ;;  %v11511_v26 = vpop.f32.mrf.mxu1  ;;  %v5588_v33 = vadd.f32 %v5587_v12, %v5531_v54  ;;  %v5555_v44 = vmul.f32 %v11347_v14, %v11347_v14  ;;  %v11539_v12 = vadd.f32 %v11349_v39, %v11345_v61 }
 0x41e   :  { %14148 = vst [vmem:[#allocation21_spill] sm:$0xff] %v11509_v24  ;;  %v11521_v20 = vadd.f32 %v4974_v40, %v4861_v6  ;;  %v5286_v21 = vadd.f32 %v5285_v34, %v11340_v4  ;;  %v5305_v58 = vadd.f32 %v5304_v10, %v11329_v0  ;;  %v5532_v6 = vmul.f32 %v11329_v0, %v11329_v0 }
 0x41f   :  { %v11523_v42 = vpop.f32.mrf.mxu0  ;;  %v4867_v41 = vpop.f32.mrf.mxu1  ;;  %v5589_v37 = vadd.f32 %v5588_v33, %v5539_v47  ;;  %14151 = vst [vmem:[#allocation32_spill] sm:$0xff] %v11539_v12  ;;  %v5608_v10 = vadd.f32 %v5607_v31, %v5524_v11  ;;  %v5540_v47 = vmul.f32 %v11519_v45, %v11519_v45  ;;  %v5548_v11 = vmul.f32 %v11343_v2, %v11343_v2 }
 0x420   :  { %14150 = vst [vmem:[#allocation28_spill] sm:$0xff] %v11521_v20  ;;  %v5287_v40 = vadd.f32 %v5286_v21, %v11347_v14  ;;  %v5306_v54 = vadd.f32 %v5305_v58, %v11519_v45  ;;  %v5563_v21 = vmul.f32 %v11353_v38, %v11353_v38 }
 0x421   :  { %v4980_v9 = vpop.f32.mrf.mxu0  ;;  %v4869_v36 = vpop.f32.mrf.mxu1  ;;  %v5590_v4 = vadd.f32 %v5589_v37, %v5547_v43  ;;  %v5571_v37 = vmul.f32 %v11359_v30, %v11359_v30 }
 0x422   :  { %v11541_v55 = vadd.f32 %v4980_v9, %v4867_v41  ;;  %v5288_v49 = vadd.f32 %v5287_v40, %v11353_v38  ;;  %v5307_v33 = vadd.f32 %v5306_v54, %v11343_v2  ;;  %v5609_v41 = vadd.f32 %v5608_v10, %v5532_v6 }
 0x423   :  { %v4982_v34 = vpop.f32.mrf.mxu0  ;;  %v4871_v18 = vpop.f32.mrf.mxu1  ;;  %v5591_v43 = vadd.f32 %v5590_v4, %v5555_v44  ;;  %v11561_v40 = vadd.f32 %v11361_v7, %v11357_v19  ;;  %v5556_v44 = vmul.f32 %v11539_v12, %v11539_v12  ;;  %v5564_v19 = vmul.f32 %v11355_v60, %v11355_v60 }
 0x424   :  { %14152 = vst [vmem:[#allocation29_spill] sm:$0xff] %v11541_v55  ;;  %v11549_v58 = vadd.f32 %v4982_v34, %v4869_v36  ;;  %v5289_v31 = vadd.f32 %v5288_v49, %v11359_v30  ;;  %v5308_v9 = vadd.f32 %v5307_v33, %v11539_v12  ;;  %v5610_v34 = vadd.f32 %v5609_v41, %v5540_v47 }
 0x425   :  { %v4984_v61 = vpop.f32.mrf.mxu0  ;;  %v11551_v39 = vpop.f32.mrf.mxu1  ;;  %14154 = vst [vmem:[#allocation84_spill] sm:$0xff] %v11561_v40  ;;  %v5592_v4 = vadd.f32 %v5591_v43, %v5563_v21  ;;  %v5572_v21 = vmul.f32 %v11561_v40, %v11561_v40  ;;  %v11579_v43 = vadd.f32 %v11371_v29, %v11367_v32  ;;  %v11597_v29 = vadd.f32 %v11381_v62, %v11377_v50 }
 0x426   :  { %14153 = vst [vmem:[#allocation33_spill] sm:$0xff] %v11549_v58  ;;  %v11563_v36 = vadd.f32 %v4984_v61, %v4871_v18  ;;  %v5309_v49 = vadd.f32 %v5308_v9, %v11355_v60  ;;  %v5290_v38 = vrot.slane %v5289_v31, 4  ;;  %v5611_v14 = vadd.f32 %v5610_v34, %v5548_v11 }
 0x427   :  { %v11565_v54 = vpop.f32.mrf.mxu0  ;;  %v4877_v6 = vpop.f32.mrf.mxu1  ;;  %v5593_v7 = vadd.f32 %v5592_v4, %v5571_v37  ;;  %14157 = vst [vmem:[#allocation87_spill] sm:$0xff] %v11579_v43  ;;  %v5462_v32 = vmul.f32 %v11579_v43, %v11579_v43  ;;  %14160 = vst [vmem:[#allocation90_spill] sm:$0xff] %v11597_v29  ;;  %v5470_v50 = vmul.f32 %v11375_v3, %v11375_v3 }
 0x428   :  { %14155 = vst [vmem:[#allocation85_spill] sm:$0xff] %v11563_v36  ;;  %v5310_v18 = vadd.f32 %v5309_v49, %v11561_v40  ;;  %v5612_v41 = vadd.f32 %v5611_v14, %v5556_v44  ;;  %v5291_v34 = vadd.f32 %v5290_v38, %v5289_v31  ;;  %v5461_v44 = vmul.f32 %v11369_v56, %v11369_v56 }
 0x429   :  { %v4990_v10 = vpop.f32.mrf.mxu0  ;;  %v4879_v33 = vpop.f32.mrf.mxu1  ;;  %v5594_v4 = vrot.slane %v5593_v7, 4  ;;  %v5317_v12 = vadd.f32 %v11369_v56, %v11363_v51 }
 0x42a   :  { %v11570_v30 = vadd.f32 %v4990_v10, %v4877_v6  ;;  %v5613_v37 = vadd.f32 %v5612_v41, %v5564_v19  ;;  %v5311_v49 = vrot.slane %v5310_v18, 4  ;;  %v5453_v19 = vmul.f32 %v11363_v51, %v11363_v51 }
 0x42b   :  { %v4992_v61 = vpop.f32.mrf.mxu0  ;;  %v4881_v47 = vpop.f32.mrf.mxu1  ;;  %v11605_v41 = vadd.f32 %v5594_v4, %v5593_v7  ;;  %v5338_v7 = vadd.f32 %v11579_v43, %v11365_v52  ;;  %v5478_v4 = vmul.f32 %v11597_v29, %v11597_v29 }
 0x42c   :  { %14156 = vst [vmem:[#allocation86_spill] sm:$0xff] %v11570_v30  ;;  %v11581_v9 = vadd.f32 %v4992_v61, %v4879_v33  ;;  %v11591_v40 = vadd.f32 %v5613_v37, %v5572_v21  ;;  %v5292_v33 = vrot.slane %v5291_v34, 2  ;;  %v5469_v61 = vmul.f32 %v11373_v22, %v11373_v22 }
 0x42d   :  { %v4994_v6 = vpop.f32.mrf.mxu0  ;;  %v11583_v11 = vpop.f32.mrf.mxu1  ;;  %v11607_v21 = vadd.f32 %v5311_v49, %v5310_v18  ;;  %v5621_v2 = vadd.f32 %v5461_v44, %v5453_v19  ;;  %v14163_v49 = vld [vmem:[#allocation73_spill] sm:$0xff]  ;;  %v5318_v44 = vadd.f32 %v5317_v12, %v11373_v22 }
 0x42e   :  { %14158 = vst [vmem:[#allocation88_spill] sm:$0xff] %v11581_v9  ;;  %v11585_v10 = vadd.f32 %v4994_v6, %v4881_v47  ;;  %v5454_v6 = vmul.f32 %v11365_v52, %v11365_v52  ;;  %v11625_v45 = vadd.f32 %v14163_v49, %v11387_v57  ;;  %v5486_v57 = vmul.f32 %v14167_v53, %v14167_v53 }
 0x42f   :  { %v11587_v60 = vpop.f32.mrf.mxu0  ;;  %v4887_v14 = vpop.f32.mrf.mxu1  ;;  %v5622_v19 = vadd.f32 %v5621_v2, %v5469_v61  ;;  %v11640_v8 = vadd.f32 %v5292_v33, %v5291_v34  ;;  %v5319_v2 = vadd.f32 %v5318_v44, %v11379_v46  ;;  %v14168_v61 = vld [vmem:[#allocation72_spill] sm:$0xff]  ;;  %v14172_v44 = vld [vmem:[#allocation74_spill] sm:$0xff] }
 0x430   :  { %14159 = vst [vmem:[#allocation89_spill] sm:$0xff] %v11585_v10  ;;  %v5642_v18 = vadd.f32 %v5462_v32, %v5454_v6  ;;  %14164 = vst [vmem:[#allocation73_spill] sm:$0xff] %v11625_v45  ;;  %v5615_v32 = vrot.slane %v11591_v40, 4  ;;  %v5339_v6 = vadd.f32 %v5338_v7, %v11375_v3  ;;  %v14169_v7 = vld [vmem:[#allocation55_spill] sm:$0xff] }
 0x431   :  { %v5000_v38 = vpop.f32.mrf.mxu0  ;;  %v4889_v31 = vpop.f32.mrf.mxu1  ;;  %v5320_v34 = vadd.f32 %v5319_v2, %v14165_v23  ;;  %v14175_v2 = vld [vmem:[#allocation76_spill] sm:$0xff] }
 0x432   :  { %v11603_v47 = vadd.f32 %v5000_v38, %v4887_v14  ;;  %v5477_v14 = vmul.f32 %v11379_v46, %v11379_v46  ;;  %v5643_v16 = vadd.f32 %v5642_v18, %v5470_v50  ;;  %v5494_v50 = vmul.f32 %v11625_v45, %v11625_v45  ;;  %v14170_v18 = vld [vmem:[#allocation77_spill] sm:$0xff]  ;;  %v14174_v46 = vld [vmem:[#allocation75_spill] sm:$0xff] }
 0x433   :  { %v5002_v62 = vpop.f32.mrf.mxu0  ;;  %v4891_v37 = vpop.f32.mrf.mxu1  ;;  %v11650_v22 = vadd.f32 %v14170_v18, %v14169_v7  ;;  %v5321_v56 = vadd.f32 %v5320_v34, %v14168_v61  ;;  %v11687_v43 = vadd.f32 %v5615_v32, %v11591_v40 }
 0x434   :  { %14161 = vst [vmem:[#allocation91_spill] sm:$0xff] %v11603_v47  ;;  %v11617_v38 = vadd.f32 %v5002_v62, %v4889_v31  ;;  %v5485_v31 = vmul.f32 %v14165_v23, %v14165_v23  ;;  %v5623_v12 = vadd.f32 %v5622_v19, %v5477_v14  ;;  %v5644_v25 = vadd.f32 %v5643_v16, %v5478_v4 }
 0x435   :  { %v5004_v0 = vpop.f32.mrf.mxu0  ;;  %v11627_v13 = vpop.f32.mrf.mxu1  ;;  %14171 = vst [vmem:[#allocation55_spill] sm:$0xff] %v11650_v22  ;;  %v5501_v14 = vmul.f32 %v14172_v44, %v14172_v44 }
 0x436   :  { %14162 = vst [vmem:[#allocation92_spill] sm:$0xff] %v11617_v38  ;;  %v11632_v62 = vadd.f32 %v5004_v0, %v4891_v37  ;;  %v5493_v0 = vmul.f32 %v14168_v61, %v14168_v61  ;;  %v5340_v37 = vadd.f32 %v5339_v6, %v11597_v29  ;;  %v5624_v33 = vadd.f32 %v5623_v12, %v5485_v31  ;;  %v14181_v61 = vld [vmem:[#allocation56_spill] sm:$0xff] }
 0x437   :  { %v11638_v49 = vpop.f32.mrf.mxu0  ;;  %v4897_v27 = vpop.f32.mrf.mxu1  ;;  %v5596_v6 = vrot.slane %v11605_v41, 2  ;;  %v5645_v4 = vadd.f32 %v5644_v25, %v5486_v57  ;;  %v5502_v29 = vmul.f32 %v14174_v46, %v14174_v46  ;;  %v5509_v31 = vmul.f32 %v14175_v2, %v14175_v2  ;;  %v14177_v25 = vld [vmem:[#allocation26_spill] sm:$0xff] }
 0x438   :  { %14166 = vst [vmem:[#allocation93_spill] sm:$0xff] %v11632_v62  ;;  %v5341_v16 = vadd.f32 %v5340_v37, %v14167_v53  ;;  %v5625_v51 = vadd.f32 %v5624_v33, %v5493_v0  ;;  %v5510_v37 = vmul.f32 %v11650_v22, %v11650_v22  ;;  %v11671_v57 = vadd.f32 %v14177_v25, %v11407_v17  ;;  %v14179_v33 = vld [vmem:[#allocation16_spill] sm:$0xff] }
 0x439   :  { %v5010_v3 = vpop.f32.mrf.mxu0  ;;  %v4899_v1 = vpop.f32.mrf.mxu1  ;;  %v5322_v0 = vadd.f32 %v5321_v56, %v14172_v44  ;;  %v5518_v17 = vmul.f32 %v14181_v61, %v14181_v61 }
 0x43a   :  { %v11655_v19 = vadd.f32 %v5010_v3, %v4897_v27  ;;  %v5342_v27 = vadd.f32 %v5341_v16, %v11625_v45  ;;  %v5646_v3 = vadd.f32 %v5645_v4, %v5494_v50  ;;  %14178 = vst [vmem:[#allocation26_spill] sm:$0xff] %v11671_v57  ;;  %v5626_v34 = vadd.f32 %v5625_v51, %v5501_v14  ;;  %v14182_v14 = vld [vmem:[#allocation22_spill] sm:$0xff] }
 0x43b   :  { %v5012_v7 = vpop.f32.mrf.mxu0  ;;  %v4901_v18 = vpop.f32.mrf.mxu1  ;;  %v5313_v50 = vrot.slane %v11607_v21, 2  ;;  %v5323_v51 = vadd.f32 %v5322_v0, %v14175_v2  ;;  %v14185_v0 = vld [vmem:[#allocation78_spill] sm:$0xff]  ;;  %v14187_v2 = vld [vmem:[#allocation79_spill] sm:$0xff] }
 0x43c   :  { %14173 = vst [vmem:[#allocation77_spill] sm:$0xff] %v11655_v19  ;;  %v11664_v12 = vadd.f32 %v5012_v7, %v4899_v1  ;;  %v5517_v1 = vmul.f32 %v14179_v33, %v14179_v33  ;;  %v5343_v16 = vadd.f32 %v5342_v27, %v14174_v46  ;;  %v5647_v4 = vadd.f32 %v5646_v3, %v5502_v29  ;;  %v14183_v27 = vld [vmem:[#allocation17_spill] sm:$0xff]  ;;  %v14184_v3 = vld [vmem:[#allocation27_spill] sm:$0xff] }
 0x43d   :  { %v5014_v23 = vpop.f32.mrf.mxu0  ;;  %v11673_v53 = vpop.f32.mrf.mxu1  ;;  %v5627_v56 = vadd.f32 %v5626_v34, %v5509_v31  ;;  %v5526_v29 = vmul.f32 %v11671_v57, %v11671_v57  ;;  %v11697_v46 = vadd.f32 %v14184_v3, %v14183_v27  ;;  %v5324_v40 = vadd.f32 %v5323_v51, %v14179_v33  ;;  %v14188_v51 = vld [vmem:[#allocation23_spill] sm:$0xff] }
 0x43e   :  { %14176 = vst [vmem:[#allocation94_spill] sm:$0xff] %v11664_v12  ;;  %v11678_v7 = vadd.f32 %v5014_v23, %v4901_v18  ;;  %v5525_v23 = vmul.f32 %v14182_v14, %v14182_v14  ;;  %v5344_v18 = vadd.f32 %v5343_v16, %v11650_v22  ;;  %v5648_v44 = vadd.f32 %v5647_v4, %v5510_v37 }
 0x43f   :  { %v11684_v25 = vpop.f32.mrf.mxu0  ;;  %v4907_v45 = vpop.f32.mrf.mxu1  ;;  %v5628_v32 = vadd.f32 %v5627_v56, %v5517_v1  ;;  %v5533_v31 = vmul.f32 %v14185_v0, %v14185_v0  ;;  %v5294_v16 = vrot.slane %v11640_v8, 1  ;;  %v5534_v22 = vmul.f32 %v14187_v2, %v14187_v2 }
 0x440   :  { %14180 = vst [vmem:[#allocation95_spill] sm:$0xff] %v11678_v7  ;;  %v5345_v37 = vadd.f32 %v5344_v18, %v14181_v61  ;;  %v5649_v4 = vadd.f32 %v5648_v44, %v5518_v17  ;;  %v5325_v12 = vadd.f32 %v5324_v40, %v14182_v14  ;;  %v5541_v1 = vmul.f32 %v14188_v51, %v14188_v51  ;;  %v14190_v44 = vld [vmem:[#allocation82_spill] sm:$0xff] }
 0x441   :  { %v5020_v52 = vpop.f32.mrf.mxu0  ;;  %v4909_v7 = vpop.f32.mrf.mxu1  ;;  %v5629_v19 = vadd.f32 %v5628_v32, %v5525_v23  ;;  %v5542_v18 = vmul.f32 %v11697_v46, %v11697_v46  ;;  %v11718_v17 = vadd.f32 %v14190_v44, %v11440_v63  ;;  %v11721_v40 = vadd.f32 %v5596_v6, %v11605_v41  ;;  %v14194_v6 = vld [vmem:[#allocation31_spill] sm:$0xff] }
 0x442   :  { %v11702_v34 = vadd.f32 %v5020_v52, %v4907_v45  ;;  %v5346_v52 = vadd.f32 %v5345_v37, %v11671_v57  ;;  %v5650_v45 = vadd.f32 %v5649_v4, %v5526_v29  ;;  %v5326_v23 = vadd.f32 %v5325_v12, %v14185_v0  ;;  %v14192_v4 = vld [vmem:[#allocation81_spill] sm:$0xff] }
 0x443   :  { %v5022_v27 = vpop.f32.mrf.mxu0  ;;  %v4911_v3 = vpop.f32.mrf.mxu1  ;;  %v5630_v32 = vadd.f32 %v5629_v19, %v5533_v31  ;;  %v5550_v14 = vmul.f32 %v14192_v4, %v14192_v4  ;;  %v5557_v12 = vmul.f32 %v14194_v6, %v14194_v6  ;;  %v5617_v31 = vrot.slane %v11687_v43, 2 }
 0x444   :  { %14186 = vst [vmem:[#allocation17_spill] sm:$0xff] %v11702_v34  ;;  %v11711_v56 = vadd.f32 %v5022_v27, %v4909_v7  ;;  %v14191_v7 = vld [vmem:[#allocation80_spill] sm:$0xff]  ;;  %v5347_v29 = vadd.f32 %v5346_v52, %v14187_v2  ;;  %v5651_v37 = vadd.f32 %v5650_v45, %v5534_v22  ;;  %v5558_v45 = vmul.f32 %v11718_v17, %v11718_v17 }
 0x445   :  { %v5024_v33 = vpop.f32.mrf.mxu0  ;;  %v4913_v61 = vpop.f32.mrf.mxu1  ;;  %v5549_v27 = vmul.f32 %v14191_v7, %v14191_v7  ;;  %v5631_v41 = vadd.f32 %v5630_v32, %v5541_v1  ;;  %v5565_v1 = vmul.f32 %v11462_v48, %v11462_v48 }
 0x446   :  { %14189 = vst [vmem:[#allocation27_spill] sm:$0xff] %v11711_v56  ;;  %v11729_v57 = vadd.f32 %v5024_v33, %v4911_v3  ;;  %v5327_v56 = vadd.f32 %v5326_v23, %v14188_v51  ;;  %v5348_v52 = vadd.f32 %v5347_v29, %v11697_v46  ;;  %v5652_v22 = vadd.f32 %v5651_v37, %v5542_v18 }
 0x447   :  { %v5026_v63 = vpop.f32.mrf.mxu0  ;;  %v4917_v44 = vpop.f32.mrf.mxu1  ;;  %v5632_v2 = vadd.f32 %v5631_v41, %v5549_v27  ;;  %v11751_v18 = vadd.f32 %v11523_v42, %v11511_v26  ;;  %v5566_v41 = vmul.f32 %v11470_v28, %v11470_v28 }
 0x448   :  { %14193 = vst [vmem:[#allocation23_spill] sm:$0xff] %v11729_v57  ;;  %v11734_v19 = vadd.f32 %v5026_v63, %v4913_v61  ;;  %v5328_v0 = vadd.f32 %v5327_v56, %v14191_v7  ;;  %v11746_v61 = vadd.f32 %v5313_v50, %v11607_v21  ;;  %v5349_v32 = vadd.f32 %v5348_v52, %v14192_v4 }
 0x449   :  { %v5030_v33 = vpop.f32.mrf.mxu0  ;;  %v4919_v3 = vpop.f32.mrf.mxu1  ;;  %v5653_v29 = vadd.f32 %v5652_v22, %v5550_v14  ;;  %14197 = vst [vmem:[#allocation96_spill] sm:$0xff] %v11751_v18  ;;  %v5633_v27 = vadd.f32 %v5632_v2, %v5557_v12  ;;  %v11759_v21 = vadd.f32 %v5294_v16, %v11640_v8  ;;  %v11762_v50 = vadd.f32 %v5617_v31, %v11687_v43 }
 0x44a   :  { %14195 = vst [vmem:[#allocation82_spill] sm:$0xff] %v11734_v19  ;;  %v11743_v23 = vadd.f32 %v5030_v33, %v4917_v44  ;;  %v5329_v56 = vadd.f32 %v5328_v0, %v14194_v6  ;;  %v5350_v14 = vadd.f32 %v5349_v32, %v11718_v17  ;;  %v5359_v2 = vadd.f32 %v11521_v20, %v11501_v15 }
 0x44b   :  { %v5032_v37 = vpop.f32.mrf.mxu0  ;;  %v4921_v63 = vpop.f32.mrf.mxu1  ;;  %v5654_v26 = vadd.f32 %v5653_v29, %v5558_v45  ;;  %v5634_v0 = vadd.f32 %v5633_v27, %v5565_v1  ;;  %v5463_v8 = vmul.f32 %v11521_v20, %v11521_v20  ;;  %v5380_v43 = vadd.f32 %v11751_v18, %v11509_v24 }
 0x44c   :  { %14196 = vst [vmem:[#allocation81_spill] sm:$0xff] %v11743_v23  ;;  %v11756_v44 = vadd.f32 %v5032_v37, %v4919_v3  ;;  %v5330_v22 = vadd.f32 %v5329_v56, %v11462_v48  ;;  %v5351_v33 = vadd.f32 %v5350_v14, %v11470_v28  ;;  %v11777_v16 = vadd.f32 %v11565_v54, %v11551_v39 }
 0x44d   :  { %v5034_v42 = vpop.f32.mrf.mxu0  ;;  %v4923_v52 = vpop.f32.mrf.mxu1  ;;  %v11779_v3 = vadd.f32 %v5654_v26, %v5566_v41  ;;  %v5360_v32 = vadd.f32 %v5359_v2, %v11541_v55  ;;  %v5455_v37 = vmul.f32 %v11501_v15, %v11501_v15  ;;  %v5471_v39 = vmul.f32 %v11541_v55, %v11541_v55 }
 0x44e   :  { %14198 = vst [vmem:[#allocation97_spill] sm:$0xff] %v11756_v44  ;;  %v11768_v12 = vadd.f32 %v5034_v42, %v4921_v63  ;;  %14200 = vst [vmem:[#allocation99_spill] sm:$0xff] %v11777_v16  ;;  %v11782_v1 = vadd.f32 %v5330_v22, %v11480_v35  ;;  %v5464_v63 = vmul.f32 %v11751_v18, %v11751_v18 }
 0x44f   :  { %v5036_v31 = vpop.f32.mrf.mxu0  ;;  %v4927_v45 = vpop.f32.mrf.mxu1  ;;  %v5381_v54 = vadd.f32 %v5380_v43, %v11549_v58  ;;  %v5573_v41 = vmul.f32 %v11480_v35, %v11480_v35  ;;  %v5456_v14 = vmul.f32 %v11509_v24, %v11509_v24  ;;  %v5361_v26 = vadd.f32 %v5360_v32, %v11563_v36 }
 0x450   :  { %14199 = vst [vmem:[#allocation98_spill] sm:$0xff] %v11768_v12  ;;  %v11785_v29 = vadd.f32 %v5036_v31, %v4923_v52  ;;  %v5663_v52 = vadd.f32 %v5463_v8, %v5455_v37  ;;  %v5472_v22 = vmul.f32 %v11549_v58, %v11549_v58  ;;  %v11806_v43 = vadd.f32 %v11587_v60, %v11583_v11 }
 0x451   :  { %v5040_v56 = vpop.f32.mrf.mxu0  ;;  %v4929_v27 = vpop.f32.mrf.mxu1  ;;  %v5382_v2 = vadd.f32 %v5381_v54, %v11777_v16  ;;  %v11810_v20 = vadd.f32 %v11483_v5, %v11473_v59  ;;  %v5362_v8 = vadd.f32 %v5361_v26, %v11570_v30  ;;  %v5332_v37 = vrot.slane %v11782_v1, 4 }
 0x452   :  { %14201 = vst [vmem:[#allocation100_spill] sm:$0xff] %v11785_v29  ;;  %v11799_v42 = vadd.f32 %v5040_v56, %v4927_v45  ;;  %14203 = vst [vmem:[#allocation102_spill] sm:$0xff] %v11806_v43  ;;  %v5479_v45 = vmul.f32 %v11563_v36, %v11563_v36  ;;  %v5684_v54 = vadd.f32 %v5464_v63, %v5456_v14 }
 0x453   :  { %v5042_v31 = vpop.f32.mrf.mxu0  ;;  %v4931_v55 = vpop.f32.mrf.mxu1  ;;  %14204 = vst [vmem:[#allocation103_spill] sm:$0xff] %v11810_v20  ;;  %v5664_v56 = vadd.f32 %v5663_v52, %v5471_v39  ;;  %v5383_v60 = vadd.f32 %v5382_v2, %v11581_v9  ;;  %v5480_v15 = vmul.f32 %v11777_v16, %v11777_v16  ;;  %v5487_v59 = vmul.f32 %v11570_v30, %v11570_v30  ;;  %v14210_v30 = vld [vmem:[#allocation77_spill] sm:$0xff] }
 0x454   :  { %14202 = vst [vmem:[#allocation101_spill] sm:$0xff] %v11799_v42  ;;  %v11815_v32 = vadd.f32 %v5042_v31, %v4929_v27  ;;  %v5363_v5 = vadd.f32 %v5362_v8, %v11585_v10  ;;  %v11826_v27 = vadd.f32 %v5634_v0, %v5573_v41  ;;  %v5685_v26 = vadd.f32 %v5684_v54, %v5472_v22 }
 0x455   :  { %v5044_v11 = vpop.f32.mrf.mxu0  ;;  %v4933_v58 = vpop.f32.mrf.mxu1  ;;  %v5384_v63 = vadd.f32 %v5383_v60, %v11806_v43  ;;  %v11831_v39 = vadd.f32 %v11638_v49, %v11627_v13  ;;  %v5665_v2 = vadd.f32 %v5664_v56, %v5479_v45  ;;  %v5488_v31 = vmul.f32 %v11581_v9, %v11581_v9 }
 0x456   :  { %14205 = vst [vmem:[#allocation104_spill] sm:$0xff] %v11815_v32  ;;  %v11824_v36 = vadd.f32 %v5044_v11, %v4931_v55  ;;  %v5364_v8 = vadd.f32 %v5363_v5, %v11603_v47  ;;  %v11841_v0 = vadd.f32 %v5351_v33, %v11810_v20  ;;  %v5574_v41 = vmul.f32 %v11810_v20, %v11810_v20  ;;  %v8576_v33 = vld [vmem:[%s13573_s14 + $0x174] ss:$8 sps:$4 sm:$0xff]   ;;  %v8571_v5 = vld [vmem:[%s13573_s14 + $0x70] ss:$8 sps:$4 sm:$0xff]  }
 0x457   :  { %14207 = vst [vmem:[#allocation106_spill] sm:$0xff] %v11831_v39  ;;  %v5046_v14 = vpop.f32.mrf.mxu0  ;;  %v11833_v52 = vpop.f32.mrf.mxu1  ;;  %v5495_v13 = vmul.f32 %v11585_v10, %v11585_v10  ;;  %v5385_v49 = vadd.f32 %v5384_v63, %v11617_v38  ;;  %v5686_v54 = vadd.f32 %v5685_v26, %v5480_v15  ;;  %v5666_v56 = vadd.f32 %v5665_v2, %v5487_v59  ;;  %v8574_v63 = vld [vmem:[%s13573_s14 + $0x170] ss:$8 sps:$4 sm:$0xff]  }
 0x458   :  { %14206 = vst [vmem:[#allocation105_spill] sm:$0xff] %v11824_v36  ;;  %v11838_v55 = vadd.f32 %v5046_v14, %v4933_v58  ;;  %v8573_v58 = vld [vmem:[%s13573_s14 + $0x74] ss:$8 sps:$4 sm:$0xff]   ;;  %v5496_v60 = vmul.f32 %v11806_v43, %v11806_v43  ;;  %v5365_v11 = vadd.f32 %v5364_v8, %v11632_v62  ;;  %v5503_v14 = vmul.f32 %v11603_v47, %v11603_v47 }
 0x459   :  { %v11848_v22 = vpop.f32.mrf.mxu0  ;;  %v11850_v45 = vpop.f32.mrf.mxu1  ;;  %v5386_v10 = vadd.f32 %v5385_v49, %v11831_v39  ;;  %v11872_v15 = vadd.f32 %v11684_v25, %v11673_v53  ;;  %7233 = vmatprep.subr.bf16.mxu1 %v8573_v58  ;;  %7346 = vmatprep.subr.bf16.mxu0 %v8576_v33  ;;  %v5687_v2 = vadd.f32 %v5686_v54, %v5488_v31  ;;  %v14211_v25 = vld [vmem:[#allocation94_spill] sm:$0xff]  ;;  %v8579_v31 = vld [vmem:[%s13573_s14 + $0x64] ss:$8 sps:$4 sm:$0xff]  }
 0x45a   :  { %14208 = vst [vmem:[#allocation107_spill] sm:$0xff] %v11838_v55  ;;  %v5504_v8 = vmul.f32 %v11617_v38, %v11617_v38  ;;  %v5366_v43 = vadd.f32 %v5365_v11, %v14210_v30  ;;  %7234 = vmatpush1.bf16.msra.mxu1 %v8571_v5  ;;  %7347 = vmatpush1.bf16.msra.mxu0 %v8574_v63  ;;  %v8582_v33 = vld [vmem:[%s13573_s14 + $0x164] ss:$8 sps:$4 sm:$0xff]   ;;  %v8580_v11 = vld [vmem:[%s13573_s14 + $0x160] ss:$8 sps:$4 sm:$0xff]  }
 0x45b   :  { %14209 = vst [vmem:[#allocation108_spill] sm:$0xff] %v11872_v15  ;;  %v11874_v59 = vpop.f32.mrf.mxu0  ;;  %v11876_v26 = vpop.f32.mrf.mxu1  ;;  %v11882_v49 = vadd.f32 %v5332_v37, %v11782_v1  ;;  %v5667_v47 = vadd.f32 %v5666_v56, %v5495_v13  ;;  %v5511_v53 = vmul.f32 %v11632_v62, %v11632_v62  ;;  %v5387_v9 = vadd.f32 %v5386_v10, %v14211_v25  ;;  %v14212_v10 = vld [vmem:[#allocation95_spill] sm:$0xff] }
 0x45c   :  { %v11898_v1 = vadd.f32 %v11779_v3, %v5574_v41  ;;  %v5688_v37 = vadd.f32 %v5687_v2, %v5496_v60  ;;  %v5512_v13 = vmul.f32 %v11831_v39, %v11831_v39  ;;  %v5367_v54 = vadd.f32 %v5366_v43, %v14212_v10  ;;  %v8577_v56 = vld [vmem:[%s13573_s14 + $0x60] ss:$8 sps:$4 sm:$0xff]   ;;  %7235 = vmatprep.subr.bf16.mxu1 %v8579_v31  ;;  %v8585_v43 = vld [vmem:[%s13573_s14 + $0x54] ss:$8 sps:$4 sm:$0xff]  }
 0x45d   :  { %v11887_v16 = vpop.f32.mrf.mxu0  ;;  %v11889_v58 = vpop.f32.mrf.mxu1  ;;  %v5668_v5 = vadd.f32 %v5667_v47, %v5503_v14  ;;  %v5519_v63 = vmul.f32 %v14210_v30, %v14210_v30  ;;  %v5388_v3 = vadd.f32 %v5387_v9, %v11872_v15  ;;  %7348 = vmatprep.subr.bf16.mxu0 %v8582_v33  ;;  %v5520_v62 = vmul.f32 %v14211_v25, %v14211_v25  ;;  %v8583_v9 = vld [vmem:[%s13573_s14 + $0x50] ss:$8 sps:$4 sm:$0xff]   ;;  %v8588_v31 = vld [vmem:[%s13573_s14 + $0x154] ss:$8 sps:$4 sm:$0xff]   ;;  %v8591_v25 = vld [vmem:[%s13573_s14 + $0x44] ss:$8 sps:$4 sm:$0xff]  }
 0x45e   :  { %v5689_v2 = vadd.f32 %v5688_v37, %v5504_v8  ;;  %v5368_v47 = vadd.f32 %v5367_v54, %v11702_v34  ;;  %7236 = vmatpush1.bf16.msra.mxu1 %v8577_v56  ;;  %7349 = vmatpush1.bf16.msra.mxu0 %v8580_v11  ;;  %v8586_v14 = vld [vmem:[%s13573_s14 + $0x150] ss:$8 sps:$4 sm:$0xff]   ;;  %v5636_v8 = vrot.slane %v11826_v27, 4  ;;  %v5527_v37 = vmul.f32 %v14212_v10, %v14212_v10  ;;  %v14213_v54 = vld [vmem:[#allocation27_spill] sm:$0xff] }
 0x45f   :  { %v11912_v41 = vpop.f32.mrf.mxu0  ;;  %v11914_v60 = vpop.f32.mrf.mxu1  ;;  %v5669_v33 = vadd.f32 %v5668_v5, %v5511_v53  ;;  %v5389_v56 = vadd.f32 %v5388_v3, %v14213_v54  ;;  %7237 = vmatprep.subr.bf16.mxu1 %v8585_v43  ;;  %v5353_v39 = vrot.slane %v11841_v0, 4  ;;  %v5528_v53 = vmul.f32 %v11872_v15, %v11872_v15  ;;  %7350 = vmatprep.subr.bf16.mxu0 %v8588_v31  ;;  %v8594_v3 = vld [vmem:[%s13573_s14 + $0x144] ss:$8 sps:$4 sm:$0xff]  }
 0x460   :  { %v5690_v38 = vadd.f32 %v5689_v2, %v5512_v13  ;;  %v5369_v5 = vadd.f32 %v5368_v47, %v11729_v57  ;;  %v5657_v10 = vrot.slane %v11898_v1, 4  ;;  %v5535_v18 = vmul.f32 %v11702_v34, %v11702_v34 }
 0x461   :  { %v11935_v11 = vpop.f32.mrf.mxu0  ;;  %v11937_v30 = vpop.f32.mrf.mxu1  ;;  %v5670_v43 = vadd.f32 %v5669_v33, %v5519_v63  ;;  %v5390_v24 = vadd.f32 %v5389_v56, %v11734_v19  ;;  %v5598_v2 = vrot.slane %v11721_v40, 1  ;;  %v5536_v31 = vmul.f32 %v14213_v54, %v14213_v54  ;;  %v8589_v63 = vld [vmem:[%s13573_s14 + $0x40] ss:$8 sps:$4 sm:$0xff]  }
 0x462   :  { %v5691_v47 = vadd.f32 %v5690_v38, %v5520_v62  ;;  %v5370_v15 = vadd.f32 %v5369_v5, %v11743_v23  ;;  %7238 = vmatpush1.bf16.msra.mxu1 %v8583_v9  ;;  %7351 = vmatpush1.bf16.msra.mxu0 %v8586_v14  ;;  %v8592_v33 = vld [vmem:[%s13573_s14 + $0x140] ss:$8 sps:$4 sm:$0xff]   ;;  %v11968_v56 = vadd.f32 %v5636_v8, %v11826_v27  ;;  %v8597_v14 = vld [vmem:[%s13573_s14 + $0x34] ss:$8 sps:$4 sm:$0xff]  }
 0x463   :  { %v11953_v35 = vpop.f32.mrf.mxu0  ;;  %v11955_v13 = vpop.f32.mrf.mxu1  ;;  %v5671_v34 = vadd.f32 %v5670_v43, %v5527_v37  ;;  %v5543_v38 = vmul.f32 %v11729_v57, %v11729_v57  ;;  %v5391_v62 = vadd.f32 %v5390_v24, %v11756_v44  ;;  %7239 = vmatprep.subr.bf16.mxu1 %v8591_v25  ;;  %v5354_v54 = vadd.f32 %v5353_v39, %v11841_v0  ;;  %v8600_v24 = vld [vmem:[%s13573_s14 + $0x134] ss:$8 sps:$4 sm:$0xff]  }
 0x464   :  { %v5692_v48 = vadd.f32 %v5691_v47, %v5528_v53  ;;  %v5544_v27 = vmul.f32 %v11734_v19, %v11734_v19  ;;  %v5371_v8 = vadd.f32 %v5370_v15, %v11768_v12  ;;  %7352 = vmatprep.subr.bf16.mxu0 %v8594_v3  ;;  %v5658_v37 = vadd.f32 %v5657_v10, %v11898_v1 }
 0x465   :  { %v11973_v5 = vpop.f32.mrf.mxu0  ;;  %v11975_v9 = vpop.f32.mrf.mxu1  ;;  %v5672_v25 = vadd.f32 %v5671_v34, %v5535_v18  ;;  %v5551_v43 = vmul.f32 %v11743_v23, %v11743_v23  ;;  %v5392_v57 = vadd.f32 %v5391_v62, %v11785_v29  ;;  %v5315_v53 = vrot.slane %v11746_v61, 1  ;;  %v8595_v34 = vld [vmem:[%s13573_s14 + $0x30] ss:$8 sps:$4 sm:$0xff]  }
 0x466   :  { %v5693_v15 = vadd.f32 %v5692_v48, %v5536_v31  ;;  %v5552_v3 = vmul.f32 %v11756_v44, %v11756_v44  ;;  %v5372_v47 = vadd.f32 %v5371_v8, %v11799_v42  ;;  %7240 = vmatpush1.bf16.msra.mxu1 %v8589_v63  ;;  %7353 = vmatpush1.bf16.msra.mxu0 %v8592_v33  ;;  %v8598_v18 = vld [vmem:[%s13573_s14 + $0x130] ss:$8 sps:$4 sm:$0xff]   ;;  %v5334_v1 = vrot.slane %v11882_v49, 2  ;;  %v8603_v33 = vld [vmem:[%s13573_s14 + $0x24] ss:$8 sps:$4 sm:$0xff]  }
 0x467   :  { %v11991_v39 = vpop.f32.mrf.mxu0  ;;  %v11993_v0 = vpop.f32.mrf.mxu1  ;;  %v5673_v10 = vadd.f32 %v5672_v25, %v5543_v38  ;;  %v5559_v48 = vmul.f32 %v11768_v12, %v11768_v12  ;;  %v5393_v31 = vadd.f32 %v5392_v57, %v11815_v32  ;;  %7241 = vmatprep.subr.bf16.mxu1 %v8597_v14  ;;  %v8606_v8 = vld [vmem:[%s13573_s14 + $0x124] ss:$8 sps:$4 sm:$0xff]   ;;  %v5638_v38 = vrot.slane %v11968_v56, 2  ;;  %7354 = vmatprep.subr.bf16.mxu0 %v8600_v24  ;;  %v8601_v24 = vld [vmem:[%s13573_s14 + $0x20] ss:$8 sps:$4 sm:$0xff]  }
 0x468   :  { %v5355_v25 = vrot.slane %v5354_v54, 2  ;;  %v5694_v23 = vadd.f32 %v5693_v15, %v5544_v27  ;;  %v5373_v12 = vadd.f32 %v5372_v47, %v11824_v36  ;;  %v5560_v44 = vmul.f32 %v11785_v29, %v11785_v29 }
 0x469   :  { %v12009_v62 = vpop.f32.mrf.mxu0  ;;  %v12011_v63 = vpop.f32.mrf.mxu1  ;;  %v5674_v57 = vadd.f32 %v5673_v10, %v5551_v43  ;;  %v5567_v14 = vmul.f32 %v11799_v42, %v11799_v42  ;;  %v5394_v19 = vadd.f32 %v5393_v31, %v11838_v55  ;;  %v5599_v6 = vadd.f32 %v5598_v2, %v11721_v40  ;;  %v8604_v43 = vld [vmem:[%s13573_s14 + $0x120] ss:$8 sps:$4 sm:$0xff]   ;;  %v8609_v2 = vld [vmem:[%s13573_s14 + $0x14] ss:$8 sps:$4 sm:$0xff]  }
 0x46a   :  { %v5316_v27 = vadd.f32 %v5315_v53, %v11746_v61  ;;  %v5659_v15 = vrot.slane %v5658_v37, 2  ;;  %v5695_v47 = vadd.f32 %v5694_v23, %v5552_v3  ;;  %7242 = vmatpush1.bf16.msra.mxu1 %v8595_v34  ;;  %7355 = vmatpush1.bf16.msra.mxu0 %v8598_v18  ;;  %v5568_v31 = vmul.f32 %v11815_v32, %v11815_v32  ;;  %v8612_v53 = vld [vmem:[%s13573_s14 + $0x114] ss:$8 sps:$4 sm:$0xff]  }
 0x46b   :  { %v12026_v20 = vpop.f32.mrf.mxu0  ;;  %v12028_v28 = vpop.f32.mrf.mxu1  ;;  %v5675_v10 = vadd.f32 %v5674_v57, %v5559_v48  ;;  %v5575_v40 = vmul.f32 %v11824_v36, %v11824_v36  ;;  %7243 = vmatprep.subr.bf16.mxu1 %v8603_v33  ;;  %7356 = vmatprep.subr.bf16.mxu0 %v8606_v8  ;;  %v5335_v3 = vadd.f32 %v5334_v1, %v11882_v49  ;;  %v5374_v48 = vrot.slane %v5373_v12, 4  ;;  %v8607_v49 = vld [vmem:[%s13573_s14 + $0x10] ss:$8 sps:$4 sm:$0xff]  }
 0x46c   :  { %v5639_v34 = vadd.f32 %v5638_v38, %v11968_v56  ;;  %v5356_v18 = vadd.f32 %v5355_v25, %v5354_v54  ;;  %v5696_v57 = vadd.f32 %v5695_v47, %v5560_v44  ;;  %v5395_v42 = vrot.slane %v5394_v19, 4  ;;  %v8610_v44 = vld [vmem:[%s13573_s14 + $0x110] ss:$8 sps:$4 sm:$0xff]  }
 0x46d   :  { %v12042_v61 = vpop.f32.mrf.mxu0  ;;  %v12044_v23 = vpop.f32.mrf.mxu1  ;;  %v5676_v36 = vadd.f32 %v5675_v10, %v5567_v14  ;;  %v5576_v33 = vmul.f32 %v11838_v55, %v11838_v55  ;;  %v5619_v29 = vrot.slane %v11762_v50, 1  ;;  %v5660_v7 = vadd.f32 %v5659_v15, %v5658_v37  ;;  %v8615_v37 = vld [vmem:[%s13573_s14 + $0x4] ss:$8 sps:$4 sm:$0xff]  }
 0x46e   :  { %7244 = vmatpush1.bf16.msra.mxu1 %v8601_v24  ;;  %7357 = vmatpush1.bf16.msra.mxu0 %v8604_v43  ;;  %v12067_v54 = vmul.f32 0.0078125, %v5316_v27  ;;  %v5697_v56 = vadd.f32 %v5696_v57, %v5568_v31  ;;  %v8618_v14 = vld [vmem:[%s13573_s14 + $0x104] ss:$8 sps:$4 sm:$0xff]   ;;  %v12080_v15 = vmul.f32 0.0078125, %v11759_v21  ;;  %v5336_v27 = vrot.slane %v5335_v3, 1 }
 0x46f   :  { %v12056_v8 = vpop.f32.mrf.mxu0  ;;  %v12058_v32 = vpop.f32.mrf.mxu1  ;;  %v5677_v1 = vadd.f32 %v5676_v36, %v5575_v40  ;;  %7245 = vmatprep.subr.bf16.mxu1 %v8609_v2  ;;  %7358 = vmatprep.subr.bf16.mxu0 %v8612_v53  ;;  %v5640_v47 = vrot.slane %v5639_v34, 1  ;;  %v5375_v36 = vadd.f32 %v5374_v48, %v5373_v12  ;;  %v12082_v24 = vmul.f32 0.0078125, %v5599_v6  ;;  %v8613_v6 = vld [vmem:[%s13573_s14] ss:$8 sps:$4 sm:$0xff]  }
 0x470   :  { %v5357_v43 = vrot.slane %v5356_v18, 1  ;;  %v5396_v10 = vadd.f32 %v5395_v42, %v5394_v19  ;;  %v5698_v31 = vadd.f32 %v5697_v56, %v5576_v33  ;;  %v5620_v53 = vadd.f32 %v5619_v29, %v11762_v50 }
 0x471   :  { %v12069_v38 = vpop.f32.mrf.mxu0  ;;  %v12071_v25 = vpop.f32.mrf.mxu1  ;;  %v5661_v57 = vrot.slane %v5660_v7, 1  ;;  %v12091_v55 = vadd.f32 %v11848_v22, %v11833_v52  ;;  %v12095_v21 = vadd.f32 %v11887_v16, %v11876_v26  ;;  %v12102_v19 = vmul.f32 %v12067_v54, %v12067_v54  ;;  %v8616_v52 = vld [vmem:[%s13573_s14 + $0x100] ss:$8 sps:$4 sm:$0xff]   ;;  %v8621_v22 = vld [vmem:[%s13573_s14 + $0xf4] ss:$8 sps:$4 sm:$0xff]  }
 0x472   :  { %7246 = vmatpush1.bf16.msra.mxu1 %v8607_v49  ;;  %7359 = vmatpush1.bf16.msra.mxu0 %v8610_v44  ;;  %v5678_v50 = vrot.slane %v5677_v1, 4  ;;  %v12106_v12 = vadd.f32 %v11874_v59, %v11850_v45  ;;  %v12110_v29 = vadd.f32 %v11912_v41, %v11889_v58  ;;  %v5337_v45 = vadd.f32 %v5336_v27, %v5335_v3  ;;  %v8624_v41 = vld [vmem:[%s13573_s14 + $0x1f4] ss:$8 sps:$4 sm:$0xff]  }
 0x473   :  { %v12084_v40 = vpop.f32.mrf.mxu0  ;;  %v12086_v2 = vpop.f32.mrf.mxu1  ;;  %14214 = vst [vmem:[#allocation109_spill] sm:$0xff] %v12095_v21  ;;  %7247 = vmatprep.subr.bf16.mxu1 %v8615_v37  ;;  %7360 = vmatprep.subr.bf16.mxu0 %v8618_v14  ;;  %v12122_v59 = vadd.f32 %v5640_v47, %v5639_v34  ;;  %v5376_v26 = vrot.slane %v5375_v36, 2  ;;  %v12126_v58 = vadd.f32 %v11935_v11, %v11914_v60  ;;  %v5397_v33 = vrot.slane %v5396_v10, 2 }
 0x474   :  { %v12131_v48 = vadd.f32 %v5357_v43, %v5356_v18  ;;  %v5699_v49 = vrot.slane %v5698_v31, 4  ;;  %v12135_v44 = vadd.f32 %v11953_v35, %v11937_v30  ;;  %v12141_v56 = vadd.f32 %v5661_v57, %v5660_v7  ;;  %v8619_v30 = vld [vmem:[%s13573_s14 + $0xf0] ss:$8 sps:$4 sm:$0xff]  }
 0x475   :  { %v12112_v16 = vpop.f32.mrf.mxu0  ;;  %v12114_v42 = vpop.f32.mrf.mxu1  ;;  %14215 = vst [vmem:[#allocation110_spill] sm:$0xff] %v12126_v58  ;;  %v5457_v60 = vmul.f32 %v12091_v55, %v12091_v55  ;;  %v5465_v11 = vmul.f32 %v12095_v21, %v12095_v21  ;;  %v12149_v18 = vadd.f32 %v11973_v5, %v11955_v13  ;;  %v12154_v35 = vmul.f32 0.0078125, %v5620_v53  ;;  %v8622_v13 = vld [vmem:[%s13573_s14 + $0x1f0] ss:$8 sps:$4 sm:$0xff]   ;;  %v8627_v5 = vld [vmem:[%s13573_s14 + $0xe4] ss:$8 sps:$4 sm:$0xff]  }
 0x476   :  { %14216 = vst [vmem:[#allocation111_spill] sm:$0xff] %v12135_v44  ;;  %7248 = vmatpush1.bf16.msra.mxu1 %v8613_v6  ;;  %v12156_v37 = vadd.f32 %v5678_v50, %v5677_v1  ;;  %v5458_v7 = vmul.f32 %v12106_v12, %v12106_v12  ;;  %v5466_v14 = vmul.f32 %v12110_v29, %v12110_v29  ;;  %v8630_v6 = vld [vmem:[%s13573_s14 + $0x1e4] ss:$8 sps:$4 sm:$0xff]  }
 0x477   :  { %v12137_v3 = vpop.f32.mrf.mxu0  ;;  %v12139_v34 = vpop.f32.mrf.mxu1  ;;  %14217 = vst [vmem:[#allocation112_spill] sm:$0xff] %v12149_v18  ;;  %7361 = vmatpush1.bf16.msra.mxu0 %v8616_v52  ;;  %7249 = vmatprep.subr.bf16.mxu1 %v8621_v22  ;;  %v12172_v1 = vadd.f32 %v5376_v26, %v5375_v36  ;;  %v5473_v43 = vmul.f32 %v12126_v58, %v12126_v58 }
 0x478   :  { %v12178_v53 = vadd.f32 %v11991_v39, %v11975_v9  ;;  %v12182_v57 = vadd.f32 %v12009_v62, %v11993_v0  ;;  %7362 = vmatprep.subr.bf16.mxu0 %v8624_v41  ;;  %v12187_v50 = vadd.f32 %v5397_v33, %v5396_v10  ;;  %v12189_v36 = vadd.f32 %v5699_v49, %v5698_v31  ;;  %v8625_v31 = vld [vmem:[%s13573_s14 + $0xe0] ss:$8 sps:$4 sm:$0xff]  }
 0x479   :  { %v12162_v27 = vpop.f32.mrf.mxu0  ;;  %v12164_v47 = vpop.f32.mrf.mxu1  ;;  %v5401_v52 = vadd.f32 %v12095_v21, %v12091_v55  ;;  %v5474_v9 = vmul.f32 %v12135_v44, %v12135_v44  ;;  %v5705_v0 = vadd.f32 %v5465_v11, %v5457_v60  ;;  %v5481_v62 = vmul.f32 %v12149_v18, %v12149_v18 }
 0x47a   :  { %14218 = vst [vmem:[#allocation113_spill] sm:$0xff] %v12178_v53  ;;  %14219 = vst [vmem:[#allocation114_spill] sm:$0xff] %v12182_v57  ;;  %v12201_v26 = vadd.f32 %v12026_v20, %v12011_v63  ;;  %v12205_v10 = vadd.f32 %v12042_v61, %v12028_v28  ;;  %7250 = vmatpush2.bf16.msra.mxu1 %v8619_v30  ;;  %v12210_v41 = vmul.f32 0.0078125, %v5337_v45  ;;  %v8628_v28 = vld [vmem:[%s13573_s14 + $0x1e0] ss:$8 sps:$4 sm:$0xff]  }
 0x47b   :  { %v5238_v39 = vpop.f32.mrf.mxu0  ;;  %v12195_v22 = vpop.f32.mrf.mxu1  ;;  %v5422_v33 = vadd.f32 %v12110_v29, %v12106_v12  ;;  %v5726_v49 = vadd.f32 %v5466_v14, %v5458_v7  ;;  %v5402_v60 = vadd.f32 %v5401_v52, %v12126_v58  ;;  %7363 = vmatpush2.bf16.msra.mxu0 %v8622_v13  ;;  %7251 = vmatprep.subr.bf16.mxu1 %v8627_v5  ;;  %v8633_v63 = vld [vmem:[%s13573_s14 + $0xd4] ss:$8 sps:$4 sm:$0xff]  }
 0x47c   :  { %14220 = vst [vmem:[#allocation115_spill] sm:$0xff] %v12201_v26  ;;  %14221 = vst [vmem:[#allocation116_spill] sm:$0xff] %v12205_v10  ;;  %v5706_v61 = vadd.f32 %v5705_v0, %v5473_v43  ;;  %v5482_v45 = vmul.f32 %v12178_v53, %v12178_v53  ;;  %v5489_v30 = vmul.f32 %v12182_v57, %v12182_v57  ;;  %7364 = vmatprep.subr.bf16.mxu0 %v8630_v6  ;;  %v8636_v14 = vld [vmem:[%s13573_s14 + $0x1d4] ss:$8 sps:$4 sm:$0xff]  }
 0x47d   :  { %v5240_v11 = vpop.f32.mrf.mxu0  ;;  %v12215_v20 = vpop.f32.mrf.mxu1  ;;  %v12229_v7 = vadd.f32 %v12056_v8, %v12044_v23  ;;  %v5423_v13 = vadd.f32 %v5422_v33, %v12135_v44  ;;  %v5727_v5 = vadd.f32 %v5726_v49, %v5474_v9  ;;  %v5403_v43 = vadd.f32 %v5402_v60, %v12149_v18  ;;  %v8631_v9 = vld [vmem:[%s13573_s14 + $0xd0] ss:$8 sps:$4 sm:$0xff]  }
 0x47e   :  { %v12238_v52 = vadd.f32 %v12069_v38, %v12058_v32  ;;  %v5707_v21 = vadd.f32 %v5706_v61, %v5481_v62  ;;  %v5490_v23 = vmul.f32 %v12201_v26, %v12201_v26  ;;  %v5497_v8 = vmul.f32 %v12205_v10, %v12205_v10  ;;  %7252 = vmatpush2.bf16.msra.mxu1 %v8625_v31 }
 0x47f   :  { %14222 = vst [vmem:[#allocation117_spill] sm:$0xff] %v12229_v7  ;;  %v5242_v0 = vpop.f32.mrf.mxu0  ;;  %v5133_v58 = vpop.f32.mrf.mxu1  ;;  %v12246_v6 = vadd.f32 %v12084_v40, %v12071_v25  ;;  %v12252_v32 = vmul.f32 0.0078125, %v12131_v48  ;;  %v5424_v38 = vadd.f32 %v5423_v13, %v12178_v53  ;;  %v5404_v62 = vadd.f32 %v5403_v43, %v12182_v57  ;;  %7365 = vmatpush2.bf16.msra.mxu0 %v8628_v28  ;;  %v8634_v25 = vld [vmem:[%s13573_s14 + $0x1d0] ss:$8 sps:$4 sm:$0xff]   ;;  %v8639_v40 = vld [vmem:[%s13573_s14 + $0xc4] ss:$8 sps:$4 sm:$0xff]  }
 0x480   :  { %14223 = vst [vmem:[#allocation118_spill] sm:$0xff] %v12238_v52  ;;  %v12258_v33 = vadd.f32 %v12112_v16, %v12086_v2  ;;  %7253 = vmatprep.subr.bf16.mxu1 %v8633_v63  ;;  %v5728_v48 = vadd.f32 %v5727_v5, %v5482_v45  ;;  %v5708_v31 = vadd.f32 %v5707_v21, %v5489_v30  ;;  %v8642_v16 = vld [vmem:[%s13573_s14 + $0x1c4] ss:$8 sps:$4 sm:$0xff]   ;;  %v8637_v43 = vld [vmem:[%s13573_s14 + $0xc0] ss:$8 sps:$4 sm:$0xff]  }
 0x481   :  { %14224 = vst [vmem:[#allocation119_spill] sm:$0xff] %v12246_v6  ;;  %v5246_v49 = vpop.f32.mrf.mxu0  ;;  %v5135_v60 = vpop.f32.mrf.mxu1  ;;  %v5498_v61 = vmul.f32 %v12229_v7, %v12229_v7  ;;  %v12270_v2 = vadd.f32 %v12137_v3, %v12114_v42  ;;  %7366 = vmatprep.subr.bf16.mxu0 %v8636_v14  ;;  %v5425_v28 = vadd.f32 %v5424_v38, %v12201_v26  ;;  %v12292_v38 = vmul.f32 0.0078125, %v12141_v56  ;;  %v8645_v56 = vld [vmem:[%s13573_s14 + $0xb4] ss:$8 sps:$4 sm:$0xff]  }
 0x482   :  { %14225 = vst [vmem:[#allocation120_spill] sm:$0xff] %v12258_v33  ;;  %v5405_v63 = vadd.f32 %v5404_v62, %v12205_v10  ;;  %v5505_v45 = vmul.f32 %v12238_v52, %v12238_v52  ;;  %v12281_v21 = vadd.f32 %v12162_v27, %v12139_v34  ;;  %v5729_v42 = vadd.f32 %v5728_v48, %v5490_v23 }
 0x483   :  { %14226 = vst [vmem:[#allocation121_spill] sm:$0xff] %v12270_v2  ;;  %v5248_v30 = vpop.f32.mrf.mxu0  ;;  %v5137_v13 = vpop.f32.mrf.mxu1  ;;  %v5709_v3 = vadd.f32 %v5708_v31, %v5497_v8  ;;  %v5506_v14 = vmul.f32 %v12246_v6, %v12246_v6  ;;  %v12286_v5 = vadd.f32 %v5238_v39, %v12164_v47  ;;  %7254 = vmatpush2.bf16.msra.mxu1 %v8631_v9  ;;  %v8640_v47 = vld [vmem:[%s13573_s14 + $0x1c0] ss:$8 sps:$4 sm:$0xff]  }
 0x484   :  { %14227 = vst [vmem:[#allocation122_spill] sm:$0xff] %v12281_v21  ;;  %v5426_v34 = vadd.f32 %v5425_v28, %v12229_v7  ;;  %v5513_v27 = vmul.f32 %v12258_v33, %v12258_v33  ;;  %v12298_v23 = vadd.f32 %v5240_v11, %v12195_v22  ;;  %7367 = vmatpush2.bf16.msra.mxu0 %v8634_v25  ;;  %v8648_v11 = vld [vmem:[%s13573_s14 + $0x1b4] ss:$8 sps:$4 sm:$0xff]  }
 0x485   :  { %14228 = vst [vmem:[#allocation123_spill] sm:$0xff] %v12286_v5  ;;  %v5250_v8 = vpop.f32.mrf.mxu0  ;;  %v5139_v62 = vpop.f32.mrf.mxu1  ;;  %7255 = vmatprep.subr.bf16.mxu1 %v8639_v40  ;;  %v5730_v39 = vadd.f32 %v5729_v42, %v5498_v61  ;;  %v5406_v9 = vadd.f32 %v5405_v63, %v12238_v52  ;;  %v5514_v48 = vmul.f32 %v12270_v2, %v12270_v2 }
 0x486   :  { %14229 = vst [vmem:[#allocation124_spill] sm:$0xff] %v12298_v23  ;;  %v12310_v22 = vadd.f32 %v5242_v0, %v12215_v20  ;;  %7368 = vmatprep.subr.bf16.mxu0 %v8642_v16  ;;  %v5710_v25 = vadd.f32 %v5709_v3, %v5505_v45  ;;  %v5427_v40 = vadd.f32 %v5426_v34, %v12246_v6  ;;  %v8643_v16 = vld [vmem:[%s13573_s14 + $0xb0] ss:$8 sps:$4 sm:$0xff]   ;;  %v5701_v45 = vrot.slane %v12189_v36, 2 }
 0x487   :  { %v5521_v31 = vmul.f32 %v12281_v21, %v12281_v21  ;;  %v12318_v61 = vadd.f32 %v5246_v49, %v5133_v58  ;;  %v5252_v28 = vpop.f32.mrf.mxu0  ;;  %v5143_v63 = vpop.f32.mrf.mxu1  ;;  %v5731_v42 = vadd.f32 %v5730_v39, %v5506_v14  ;;  %v5407_v52 = vadd.f32 %v5406_v9, %v12258_v33  ;;  %7256 = vmatpush2.bf16.msra.mxu1 %v8637_v43 }
 0x488   :  { %14230 = vst [vmem:[#allocation125_spill] sm:$0xff] %v12310_v22  ;;  %v5522_v20 = vmul.f32 %v12286_v5, %v12286_v5  ;;  %v12323_v0 = vadd.f32 %v5248_v30, %v5135_v60  ;;  %v5711_v3 = vadd.f32 %v5710_v25, %v5513_v27  ;;  %v5529_v58 = vmul.f32 %v12298_v23, %v12298_v23  ;;  %v8646_v60 = vld [vmem:[%s13573_s14 + $0x1b0] ss:$8 sps:$4 sm:$0xff]   ;;  %v8651_v30 = vld [vmem:[%s13573_s14 + $0xa4] ss:$8 sps:$4 sm:$0xff]  }
 0x489   :  { %14231 = vst [vmem:[#allocation126_spill] sm:$0xff] %v12318_v61  ;;  %v12331_v49 = vadd.f32 %v5250_v8, %v5137_v13  ;;  %v5256_v14 = vpop.f32.mrf.mxu0  ;;  %v5145_v34 = vpop.f32.mrf.mxu1  ;;  %7369 = vmatpush2.bf16.msra.mxu0 %v8640_v47  ;;  %7257 = vmatprep.subr.bf16.mxu1 %v8645_v56  ;;  %v5428_v43 = vadd.f32 %v5427_v40, %v12270_v2  ;;  %v8654_v8 = vld [vmem:[%s13573_s14 + $0x1a4] ss:$8 sps:$4 sm:$0xff]  }
 0x48a   :  { %14232 = vst [vmem:[#allocation127_spill] sm:$0xff] %v12323_v0  ;;  %v5732_v27 = vadd.f32 %v5731_v42, %v5514_v48  ;;  %v5408_v39 = vadd.f32 %v5407_v52, %v12281_v21  ;;  %v5530_v13 = vmul.f32 %v12310_v22, %v12310_v22  ;;  %7370 = vmatprep.subr.bf16.mxu0 %v8648_v11 }
 0x48b   :  { %14233 = vst [vmem:[#allocation128_spill] sm:$0xff] %v12331_v49  ;;  %v5712_v47 = vadd.f32 %v5711_v3, %v5521_v31  ;;  %v5537_v56 = vmul.f32 %v12318_v61, %v12318_v61  ;;  %v12348_v9 = vadd.f32 %v5252_v28, %v5139_v62  ;;  %v12350_v25 = vadd.f32 %v5256_v14, %v5143_v63  ;;  %v5258_v40 = vpop.f32.mrf.mxu0  ;;  %v5147_v48 = vpop.f32.mrf.mxu1  ;;  %v8649_v31 = vld [vmem:[%s13573_s14 + $0xa0] ss:$8 sps:$4 sm:$0xff]  }
 0x48c   :  { %v5429_v52 = vadd.f32 %v5428_v43, %v12286_v5  ;;  %v5733_v42 = vadd.f32 %v5732_v27, %v5522_v20  ;;  %v5409_v21 = vadd.f32 %v5408_v39, %v12298_v23  ;;  %v5538_v11 = vmul.f32 %v12323_v0, %v12323_v0  ;;  %7258 = vmatpush2.bf16.msra.mxu1 %v8643_v16  ;;  %v8652_v16 = vld [vmem:[%s13573_s14 + $0x1a0] ss:$8 sps:$4 sm:$0xff]   ;;  %v8657_v43 = vld [vmem:[%s13573_s14 + $0x94] ss:$8 sps:$4 sm:$0xff]  }
 0x48d   :  { %14234 = vst [vmem:[#allocation129_spill] sm:$0xff] %v12348_v9  ;;  %14235 = vst [vmem:[#allocation130_spill] sm:$0xff] %v12350_v25  ;;  %v5680_v62 = vrot.slane %v12156_v37, 2  ;;  %v5713_v28 = vadd.f32 %v5712_v47, %v5529_v58  ;;  %v5545_v63 = vmul.f32 %v12331_v49, %v12331_v49  ;;  %v12362_v3 = vadd.f32 %v5258_v40, %v5145_v34  ;;  %v5260_v14 = vpop.f32.mrf.mxu0  ;;  %v5149_v20 = vpop.f32.mrf.mxu1  ;;  %v8660_v34 = vld [vmem:[%s13573_s14 + $0x194] ss:$8 sps:$4 sm:$0xff]  }
 0x48e   :  { %7371 = vmatpush2.bf16.msra.mxu0 %v8646_v60  ;;  %7259 = vmatprep.subr.bf16.mxu1 %v8651_v30  ;;  %v5430_v27 = vadd.f32 %v5429_v52, %v12310_v22  ;;  %v5734_v58 = vadd.f32 %v5733_v42, %v5530_v13  ;;  %v5410_v39 = vadd.f32 %v5409_v21, %v12318_v61 }
 0x48f   :  { %14236 = vst [vmem:[#allocation131_spill] sm:$0xff] %v12362_v3  ;;  %v12372_v47 = vadd.f32 %v5260_v14, %v5147_v48  ;;  %7372 = vmatprep.subr.bf16.mxu0 %v8654_v8  ;;  %v12378_v60 = vadd.f32 %v5701_v45, %v12189_v36  ;;  %v5714_v30 = vadd.f32 %v5713_v28, %v5537_v56  ;;  %v5262_v13 = vpop.f32.mrf.mxu0  ;;  %v5153_v42 = vpop.f32.mrf.mxu1  ;;  %v8655_v36 = vld [vmem:[%s13573_s14 + $0x90] ss:$8 sps:$4 sm:$0xff]   ;;  %v5399_v45 = vrot.slane %v12187_v50, 1 }
 0x490   :  { %v5546_v40 = vmul.f32 %v12348_v9, %v12348_v9  ;;  %v5553_v52 = vmul.f32 %v12350_v25, %v12350_v25  ;;  %v5431_v21 = vadd.f32 %v5430_v27, %v12323_v0  ;;  %v5735_v48 = vadd.f32 %v5734_v58, %v5538_v11  ;;  %7260 = vmatpush2.bf16.msra.mxu1 %v8649_v31  ;;  %v8658_v31 = vld [vmem:[%s13573_s14 + $0x190] ss:$8 sps:$4 sm:$0xff]  }
 0x491   :  { %14237 = vst [vmem:[#allocation132_spill] sm:$0xff] %v12372_v47  ;;  %v5411_v8 = vadd.f32 %v5410_v39, %v12331_v49  ;;  %v12386_v14 = vadd.f32 %v5262_v13, %v5149_v20  ;;  %v5715_v56 = vadd.f32 %v5714_v30, %v5545_v63  ;;  %v5554_v28 = vmul.f32 %v12362_v3, %v12362_v3  ;;  %v5266_v27 = vpop.f32.mrf.mxu0  ;;  %v5155_v11 = vpop.f32.mrf.mxu1  ;;  %v8663_v20 = vld [vmem:[%s13573_s14 + $0x84] ss:$8 sps:$4 sm:$0xff]  }
 0x492   :  { %v5561_v61 = vmul.f32 %v12372_v47, %v12372_v47  ;;  %7373 = vmatpush2.bf16.msra.mxu0 %v8652_v16  ;;  %7261 = vmatprep.subr.bf16.mxu1 %v8657_v43  ;;  %v5378_v63 = vrot.slane %v12172_v1, 1  ;;  %v5432_v58 = vadd.f32 %v5431_v21, %v12348_v9  ;;  %v12405_v30 = vadd.f32 %v5266_v27, %v5153_v42  ;;  %v8666_v16 = vld [vmem:[%s13573_s14 + $0x184] ss:$8 sps:$4 sm:$0xff]  }
 0x493   :  { %14238 = vst [vmem:[#allocation133_spill] sm:$0xff] %v12386_v14  ;;  %v5412_v39 = vadd.f32 %v5411_v8, %v12350_v25  ;;  %7374 = vmatprep.subr.bf16.mxu0 %v8660_v34  ;;  %v5681_v43 = vadd.f32 %v5680_v62, %v12156_v37  ;;  %v5736_v13 = vadd.f32 %v5735_v48, %v5546_v40  ;;  %v5268_v23 = vpop.f32.mrf.mxu0  ;;  %v5157_v22 = vpop.f32.mrf.mxu1  ;;  %v8661_v37 = vld [vmem:[%s13573_s14 + $0x80] ss:$8 sps:$4 sm:$0xff]   ;;  %v5703_v40 = vrot.slane %v12378_v60, 1 }
 0x494   :  { %14239 = vst [vmem:[#allocation134_spill] sm:$0xff] %v12405_v30  ;;  %v5716_v49 = vadd.f32 %v5715_v56, %v5553_v52  ;;  %v5562_v0 = vmul.f32 %v12386_v14, %v12386_v14  ;;  %v5433_v21 = vadd.f32 %v5432_v58, %v12362_v3  ;;  %v5569_v34 = vmul.f32 %v12405_v30, %v12405_v30 }
 0x495   :  { %v5413_v8 = vadd.f32 %v5412_v39, %v12372_v47  ;;  %v12417_v42 = vadd.f32 %v5268_v23, %v5155_v11  ;;  %7262 = vmatpush2.bf16.msra.mxu1 %v8655_v36  ;;  %v5400_v62 = vadd.f32 %v5399_v45, %v12187_v50  ;;  %v5737_v52 = vadd.f32 %v5736_v13, %v5554_v28  ;;  %v5270_v56 = vpop.f32.mrf.mxu0  ;;  %v5159_v27 = vpop.f32.mrf.mxu1  ;;  %v8664_v23 = vld [vmem:[%s13573_s14 + $0x180] ss:$8 sps:$4 sm:$0xff]   ;;  %v8669_v36 = vld [vmem:[%s13573_s14 + $0x274] ss:$8 sps:$4 sm:$0xff]  }
 0x496   :  { %v5717_v48 = vadd.f32 %v5716_v49, %v5561_v61  ;;  %7375 = vmatpush2.bf16.msra.mxu0 %v8658_v31  ;;  %7263 = vmatprep.subr.bf16.mxu1 %v8663_v20  ;;  %v5434_v11 = vadd.f32 %v5433_v21, %v12386_v14  ;;  %v12434_v61 = vadd.f32 %v5270_v56, %v5157_v22  ;;  %v8672_v49 = vld [vmem:[%s13573_s14 + $0x374] ss:$8 sps:$4 sm:$0xff]   ;;  %v5682_v31 = vrot.slane %v5681_v43, 1  ;;  %v14270_v14 = vld [vmem:[#allocation59_spill] sm:$0xff] }
 0x497   :  { %14240 = vst [vmem:[#allocation135_spill] sm:$0xff] %v12417_v42  ;;  %v5414_v50 = vadd.f32 %v5413_v8, %v12405_v30  ;;  %v5570_v45 = vmul.f32 %v12417_v42, %v12417_v42  ;;  %7376 = vmatprep.subr.bf16.mxu0 %v8666_v16  ;;  %v5379_v28 = vadd.f32 %v5378_v63, %v12172_v1  ;;  %v5272_v39 = vpop.f32.mrf.mxu0  ;;  %v12448_v56 = vmul.f32 0.0078125, %v5400_v62 }
 0x498   :  { %14241 = vst [vmem:[#allocation136_spill] sm:$0xff] %v12434_v61  ;;  %v5738_v20 = vadd.f32 %v5737_v52, %v5562_v0  ;;  %v5718_v58 = vadd.f32 %v5717_v48, %v5569_v34  ;;  %v5435_v13 = vadd.f32 %v5434_v11, %v12417_v42  ;;  %v5577_v8 = vmul.f32 %v12434_v61, %v12434_v61 }
 0x499   :  { %v5415_v21 = vadd.f32 %v5414_v50, %v12434_v61  ;;  %v12444_v22 = vadd.f32 %v5272_v39, %v5159_v27  ;;  %7264 = vmatpush2.bf16.msra.mxu1 %v8661_v37  ;;  %v5758_v16 = vmul.f32 %v12252_v32, %v12252_v32  ;;  %v5704_v1 = vadd.f32 %v5703_v40, %v12378_v60 }
 0x49a   :  { %v5739_v0 = vadd.f32 %v5738_v20, %v5570_v45  ;;  %7377 = vmatpush2.bf16.msra.mxu0 %v8664_v23  ;;  %7459 = vmatprep.subr.bf16.mxu1 %v8669_v36  ;;  %v5719_v34 = vadd.f32 %v5718_v58, %v5577_v8  ;;  %v5749_v37 = vmul.f32 0.0078125, %v12122_v59  ;;  %v5757_v27 = vmul.f32 %v12210_v41, %v12210_v41 }
 0x49b   :  { %14242 = vst [vmem:[#allocation137_spill] sm:$0xff] %v12444_v22  ;;  %v5416_v63 = vrot.slane %v5415_v21, 4  ;;  %v5436_v52 = vadd.f32 %v5435_v13, %v12444_v22  ;;  %v5578_v48 = vmul.f32 %v12444_v22, %v12444_v22  ;;  %7572 = vmatprep.subr.bf16.mxu0 %v8672_v49  ;;  %v12457_v62 = vmul.f32 0.0078125, %v5379_v28  ;;  %v14275_v22 = vld [vmem:[#allocation49_spill] sm:$0xff] }
 0x49c   :  { %v5683_v11 = vadd.f32 %v5682_v31, %v5681_v43  ;;  %v5720_v40 = vrot.slane %v5719_v34, 4  ;;  %v5755_v50 = vmul.f32 %v12080_v15, %v12080_v15  ;;  %v5766_v45 = vsub.f32 %v12292_v38, %v5758_v16 }
 0x49d   :  { %v5417_v60 = vadd.f32 %v5416_v63, %v5415_v21  ;;  %v5437_v23 = vrot.slane %v5436_v52, 4  ;;  %v5740_v36 = vadd.f32 %v5739_v0, %v5578_v48  ;;  %v5752_v20 = vmul.f32 0.0078125, %v5704_v1 }
 0x49e   :  { %v5760_v49 = vmul.f32 %v12448_v56, %v12448_v56  ;;  %v5721_v58 = vadd.f32 %v5720_v40, %v5719_v34  ;;  %v5764_v43 = vsub.f32 %v12154_v35, %v12102_v19  ;;  %v5765_v28 = vsub.f32 %v5749_v37, %v5757_v27 }
 0x49f   :  { %v5418_v59 = vrot.slane %v5417_v60, 2  ;;  %v5438_v39 = vadd.f32 %v5437_v23, %v5436_v52  ;;  %v5741_v13 = vrot.slane %v5740_v36, 4  ;;  %v5751_v31 = vmul.f32 0.0078125, %v5683_v11 }
 0x4a0   :  { %v5759_v21 = vmul.f32 %v12457_v62, %v12457_v62  ;;  %v5722_v0 = vrot.slane %v5721_v58, 2  ;;  %v5763_v16 = vsub.f32 %v12082_v24, %v5755_v50  ;;  %v5774_v1 = vmax.f32 %v5766_v45, 0.0 }
 0x4a1   :  { %v5419_v8 = vadd.f32 %v5418_v59, %v5417_v60  ;;  %v5439_v63 = vrot.slane %v5438_v39, 2  ;;  %v5742_v38 = vadd.f32 %v5741_v13, %v5740_v36  ;;  %v5768_v48 = vsub.f32 %v5752_v20, %v5760_v49 }
 0x4a2   :  { %v5723_v34 = vadd.f32 %v5722_v0, %v5721_v58  ;;  %v5772_v23 = vmax.f32 %v5764_v43, 0.0  ;;  %v5773_v30 = vmax.f32 %v5765_v28, 0.0  ;;  %v5767_v19 = vsub.f32 %v5751_v31, %v5759_v21 }
 0x4a3   :  { %v5420_v61 = vrot.slane %v5419_v8, 1  ;;  %v5440_v52 = vadd.f32 %v5439_v63, %v5438_v39  ;;  %v5743_v40 = vrot.slane %v5742_v38, 2  ;;  %v5771_v47 = vmax.f32 %v5763_v16, 0.0 }
 0x4a4   :  { %v5724_v37 = vrot.slane %v5723_v34, 1  ;;  %v5783_v60 = vadd.f32 1e-05, %v5774_v1  ;;  %v5776_v59 = vmax.f32 %v5768_v48, 0.0  ;;  %v5781_v45 = vadd.f32 1e-05, %v5772_v23 }
 0x4a5   :  { %v5421_v35 = vadd.f32 %v5420_v61, %v5419_v8  ;;  %v5441_v27 = vrot.slane %v5440_v52, 1  ;;  %v5744_v11 = vadd.f32 %v5743_v40, %v5742_v38  ;;  %v5782_v20 = vadd.f32 1e-05, %v5773_v30 }
 0x4a6   :  { %v5725_v36 = vadd.f32 %v5724_v37, %v5723_v34  ;;  %v5775_v49 = vmax.f32 %v5767_v19, 0.0  ;;  %v5780_v43 = vadd.f32 1e-05, %v5771_v47  ;;  %8779 = vrsqrt.f32 %v5783_v60 }
 0x4a7   :  { %v12469_v25 = vmul.f32 0.0078125, %v5421_v35  ;;  %v5442_v24 = vadd.f32 %v5441_v27, %v5440_v52  ;;  %v5745_v50 = vrot.slane %v5744_v11, 1  ;;  %v5785_v28 = vadd.f32 1e-05, %v5776_v59  ;;  %v14243_v27 = vld [vmem:[#allocation12_spill] sm:$0xff] }
 0x4a8   :  { %v5753_v58 = vmul.f32 0.0078125, %v5725_v36  ;;  %8781 = vrsqrt.f32 %v5781_v45  ;;  %v5784_v0 = vadd.f32 1e-05, %v5775_v49 }
 0x4a9   :  { %v5761_v39 = vmul.f32 %v12469_v25, %v12469_v25  ;;  %v12473_v13 = vmul.f32 0.0078125, %v5442_v24  ;;  %v5746_v61 = vadd.f32 %v5745_v50, %v5744_v11  ;;  %8783 = vrsqrt.f32 %v5782_v20 }
 0x4aa   :  { %8785 = vrsqrt.f32 %v5780_v43 }
 0x4ab   :  { %v5769_v31 = vsub.f32 %v5753_v58, %v5761_v39  ;;  %v5754_v21 = vmul.f32 0.0078125, %v5746_v61  ;;  %v5762_v8 = vmul.f32 %v12473_v13, %v12473_v13  ;;  %8787 = vrsqrt.f32 %v5785_v28  ;;  %v5779_v61 = vld [vmem:[%s13571_s12] sm:$0xff] }
 0x4ac   :  { %8789 = vrsqrt.f32 %v5784_v0  ;;  %v14244_v28 = vld [vmem:[#allocation11_spill] sm:$0xff] }
 0x4ad   :  { %v5777_v30 = vmax.f32 %v5769_v31, 0.0  ;;  %v5770_v63 = vsub.f32 %v5754_v21, %v5762_v8  ;;  %v13821_v31 = vsub.s32 4, %v14244_v28  ;;  %v13819_v21 = vsub.s32 5, %v14244_v28 }
 0x4ae   :  { %v13820_v8 = vsub.s32 6, %v14244_v28  ;;  %v13818_v0 = vsub.s32 7, %v14244_v28  ;;  %v14276_v9 = vsub.s32 4, %v14244_v28 }
 0x4af   :  { %v5786_v38 = vadd.f32 1e-05, %v5777_v30  ;;  %v5778_v16 = vmax.f32 %v5770_v63, 0.0  ;;  %v14245_v63 = vld [vmem:[#allocation13_spill] sm:$0xff] }
 0x4b1   :  { %v5787_v1 = vadd.f32 1e-05, %v5778_v16  ;;  %8791 = vrsqrt.f32 %v5786_v38  ;;  %v14246_v16 = vld [vmem:[#allocation14_spill] sm:$0xff] }
 0x4b3   :  { %8793 = vrsqrt.f32 %v5787_v1  ;;  %v8780_v47 = vpop.eup %8779 }
 0x4b5   :  { %v8782_v48 = vpop.eup %8781 }
 0x4b6   :  { %v8784_v34 = vpop.eup %8783 }
 0x4b7   :  { %v8786_v52 = vpop.eup %8785  ;;  %v5805_v40 = vcombine.low %v8784_v34, %v8780_v47  ;;  %v14247_v47 = vld [vmem:[#allocation35_spill] sm:$0xff]  ;;  %v14248_v34 = vld [vmem:[#allocation58_spill] sm:$0xff] }
 0x4b8   :  { %v8788_v23 = vpop.eup %8787  ;;  %v5804_v19 = vcombine.low %v8786_v52, %v8782_v48 }
 0x4b9   :  { %v8790_v35 = vpop.eup %8789  ;;  %v5821_v11 = vrot.slane %v5805_v40, %v14243_v27 }
 0x4ba   :  { %v5806_v60 = vcombine.low %v8790_v35, %v8788_v23  ;;  %v5814_v36 = vrot.slane %v5804_v19, %v14243_v27 }
 0x4bc   :  { %v5836_v50 = vcombine.low %v5814_v36, %v5821_v11  ;;  %v5828_v45 = vrot.slane %v5806_v60, %v14243_v27 }
 0x4be   :  { %v8792_v37 = vpop.eup %8791  ;;  %v5844_v58 = vrot.slane %v5836_v50, %v14243_v27 }
 0x4c0   :  { %v8794_v59 = vpop.eup %8793 }
 0x4c1   :  { %v5807_v24 = vcombine.low %v8792_v37, %v8794_v59 }
 0x4c3   :  { %v5835_v20 = vrot.slane %v5807_v24, %v14243_v27 }
 0x4c5   :  { %v5837_v49 = vcombine.low %v5828_v45, %v5835_v20 }
 0x4c7   :  { %v5851_v39 = vrot.slane %v5837_v49, %v14243_v27 }
 0x4c9   :  { %v5852_v43 = vcombine.low %v5844_v58, %v5851_v39 }
 0x4cb   :  { %v5854_v30 = vmul.f32 %v5852_v43, %v5779_v61  ;;  %v14250_v61 = vld [vmem:[#allocation36_spill] sm:$0xff]  ;;  %v14251_v43 = vld [vmem:[#allocation37_spill] sm:$0xff] }
 0x4cd   :  { %v12491_v38 = vrot.slane %v5854_v30, %v14245_v63  ;;  %v12494_v1 = vrot.slane %v5854_v30, %v14246_v16  ;;  %v12497_v48 = vrot.slane %v5854_v30, %v14247_v47  ;;  %v12500_v52 = vrot.slane %v5854_v30, %v14248_v34 }
 0x4ce   :  { %v12504_v40 = vrot.slane %v5854_v30, %v13821_v31  ;;  %v12508_v23 = vrot.slane %v5854_v30, %v13819_v21  ;;  %v12512_v19 = vrot.slane %v5854_v30, %v13820_v8  ;;  %v12516_v35 = vrot.slane %v5854_v30, %v13818_v0  ;;  %v14264_v0 = vld [vmem:[#allocation57_spill] sm:$0xff] }
 0x4cf   :  { %v5897_v37 = vmul.f32 %v12491_v38, %v12080_v15  ;;  %v5898_v11 = vmul.f32 %v12494_v1, %v12067_v54  ;;  %v5899_v60 = vmul.f32 %v12497_v48, %v12210_v41  ;;  %v5900_v59 = vmul.f32 %v12500_v52, %v12252_v32 }
 0x4d0   :  { %14249 = vst [vmem:[#allocation12_spill] sm:$0xff] %v12512_v19  ;;  %v5901_v36 = vmul.f32 %v12504_v40, %v12457_v62  ;;  %v5902_v24 = vmul.f32 %v12508_v23, %v12448_v56  ;;  %v5903_v50 = vmul.f32 %v12512_v19, %v12469_v25  ;;  %v5904_v15 = vmul.f32 %v12516_v35, %v12473_v13 }
 0x4d1   :  { %v5913_v45 = vcombine.low %v5897_v37, %v5898_v11  ;;  %v5914_v54 = vcombine.low %v5899_v60, %v5900_v59  ;;  %v5965_v25 = vmul.f32 %v12494_v1, %v14250_v61  ;;  %v5973_v13 = vmul.f32 %v12494_v1, %v14251_v43  ;;  %v14252_v37 = vld [vmem:[#allocation69_spill] sm:$0xff]  ;;  %v14253_v60 = vld [vmem:[#allocation87_spill] sm:$0xff]  ;;  %v14261_v43 = vld [vmem:[#allocation90_spill] sm:$0xff] }
 0x4d2   :  { %v5915_v20 = vcombine.low %v5901_v36, %v5902_v24  ;;  %v5916_v49 = vcombine.low %v5903_v50, %v5904_v15  ;;  %v5967_v11 = vmul.f32 %v12500_v52, %v14252_v37  ;;  %v5975_v59 = vmul.f32 %v12500_v52, %v14253_v60  ;;  %v14254_v36 = vld [vmem:[#allocation40_spill] sm:$0xff]  ;;  %v14255_v15 = vld [vmem:[#allocation38_spill] sm:$0xff] }
 0x4d3   :  { %v5923_v41 = vrot.slane %v5913_v45, %v14243_v27  ;;  %v5930_v32 = vrot.slane %v5914_v54, %v14243_v27  ;;  %v5964_v24 = vmul.f32 %v12491_v38, %v14254_v36  ;;  %v5972_v45 = vmul.f32 %v12491_v38, %v14255_v15  ;;  %v14256_v54 = vld [vmem:[#allocation52_spill] sm:$0xff]  ;;  %v14262_v36 = vld [vmem:[#allocation39_spill] sm:$0xff] }
 0x4d4   :  { %v5937_v58 = vrot.slane %v5915_v20, %v14243_v27  ;;  %v5944_v62 = vrot.slane %v5916_v49, %v14243_v27  ;;  %v5966_v20 = vmul.f32 %v12497_v48, %v14256_v54  ;;  %v14257_v49 = vld [vmem:[#allocation70_spill] sm:$0xff]  ;;  %v5991_v37 = vmul.f32 %v12500_v52, %v14261_v43 }
 0x4d5   :  { %v5945_v39 = vcombine.low %v5923_v41, %v5930_v32  ;;  %v5974_v41 = vmul.f32 %v12497_v48, %v14257_v49  ;;  %v5855_v32 = vld [vmem:[%s13572_s13] sm:$0xff]  ;;  %v5980_v15 = vmul.f32 %v12491_v38, %v14262_v36  ;;  %v14263_v54 = vld [vmem:[#allocation46_spill] sm:$0xff]  ;;  %v5982_v21 = vmul.f32 %v12497_v48, %v14264_v0 }
 0x4d6   :  { %v5946_v56 = vcombine.low %v5937_v58, %v5944_v62  ;;  %v14258_v58 = vld [vmem:[#allocation41_spill] sm:$0xff]  ;;  %v5988_v49 = vmul.f32 %v12491_v38, %v14263_v54 }
 0x4d7   :  { %v5953_v30 = vrot.slane %v5945_v39, %v14243_v27  ;;  %v5981_v62 = vmul.f32 %v12494_v1, %v14258_v58  ;;  %v14259_v39 = vld [vmem:[#allocation42_spill] sm:$0xff]  ;;  %v14265_v58 = vld [vmem:[#allocation71_spill] sm:$0xff]  ;;  %v14269_v54 = vld [vmem:[#allocation73_spill] sm:$0xff] }
 0x4d8   :  { %v5960_v50 = vrot.slane %v5946_v56, %v14243_v27  ;;  %v5989_v61 = vmul.f32 %v12494_v1, %v14259_v39  ;;  %v14260_v27 = vld [vmem:[#allocation18_spill] sm:$0xff]  ;;  %v5990_v8 = vmul.f32 %v12497_v48, %v14265_v58  ;;  %v14266_v39 = vld [vmem:[#allocation60_spill] sm:$0xff]  ;;  %v12591_v0 = vmul.f32 %v12500_v52, %v14269_v54 }
 0x4d9   :  { %v5983_v56 = vmul.f32 %v12500_v52, %v14260_v27  ;;  %v12577_v31 = vmul.f32 %v12494_v1, %v14266_v39  ;;  %v14267_v27 = vld [vmem:[#allocation62_spill] sm:$0xff]  ;;  %v12595_v58 = vmul.f32 %v12491_v38, %v14270_v14  ;;  %v14271_v39 = vld [vmem:[#allocation61_spill] sm:$0xff]  ;;  %v12615_v14 = vmul.f32 %v12494_v1, %v14275_v22 }
 0x4da   :  { %v5961_v60 = vcombine.low %v5953_v30, %v5960_v50  ;;  %v12581_v43 = vmul.f32 %v12494_v1, %v14267_v27  ;;  %v14268_v30 = vld [vmem:[#allocation19_spill] sm:$0xff]  ;;  %v12599_v3 = vmul.f32 %v12491_v38, %v14271_v39 }
 0x4db   :  { %v12585_v50 = vmul.f32 %v12500_v52, %v14268_v30  ;;  %v14272_v27 = vld [vmem:[#allocation15_spill] sm:$0xff]  ;;  %v14273_v30 = vld [vmem:[#allocation72_spill] sm:$0xff] }
 0x4dc   :  { %v12587_v36 = vsub.f32 %v5855_v32, %v5961_v60  ;;  %v12603_v42 = vmul.f32 %v12497_v48, %v14272_v27  ;;  %v12607_v32 = vmul.f32 %v12497_v48, %v14273_v30  ;;  %v14274_v60 = vld [vmem:[#allocation43_spill] sm:$0xff] }
 0x4dd   :  { %v12611_v54 = vmul.f32 %v12494_v1, %v14274_v60 }
 0x4de   :  { %v12619_v39 = vrot.slane %v12587_v36, %v14245_v63  ;;  %v12623_v27 = vrot.slane %v12587_v36, %v14246_v16  ;;  %v12627_v30 = vrot.slane %v12587_v36, %v14247_v47  ;;  %v12631_v60 = vrot.slane %v12587_v36, %v14248_v34  ;;  %v14279_v16 = vld [vmem:[#allocation75_spill] sm:$0xff] }
 0x4df   :  { %v12636_v22 = vrot.slane %v12587_v36, %v14276_v9  ;;  %v14277_v63 = vsub.s32 6, %v14244_v28  ;;  %v12645_v33 = vmul.f32 %v12500_v52, %v14279_v16  ;;  %v14280_v47 = vld [vmem:[#allocation55_spill] sm:$0xff] }
 0x4e0   :  { %v12649_v2 = vmul.f32 %v12500_v52, %v14280_v47  ;;  %v6134_v34 = vadd.f32 %v12623_v27, %v5965_v25  ;;  %v6142_v6 = vadd.f32 %v12623_v27, %v5973_v13  ;;  %v6136_v9 = vadd.f32 %v12631_v60, %v5967_v11 }
 0x4e1   :  { %v12641_v5 = vrot.slane %v12587_v36, %v14277_v63  ;;  %v6144_v10 = vadd.f32 %v12631_v60, %v5975_v59  ;;  %v6133_v57 = vadd.f32 %v12619_v39, %v5964_v24  ;;  %v6141_v63 = vadd.f32 %v12619_v39, %v5972_v45  ;;  %v8667_v59 = vld [vmem:[%s13573_s14 + $0x270] ss:$8 sps:$4 sm:$0xff]  }
 0x4e2   :  { %v6135_v7 = vadd.f32 %v12627_v30, %v5966_v20  ;;  %v6143_v16 = vadd.f32 %v12627_v30, %v5974_v41  ;;  %v6262_v26 = vmax.f32 %v6134_v34, 0.0  ;;  %v6270_v18 = vmax.f32 %v6142_v6, 0.0  ;;  %v12665_v24 = vld [vmem:[%s13573_s14 + $0x370] ss:$8 sps:$4 sm:$0xff]  }
 0x4e3   :  { %14278 = vst [vmem:[#allocation11_spill] sm:$0xff] %v12641_v5  ;;  %v6264_v47 = vmax.f32 %v6136_v9, 0.0  ;;  %v6272_v53 = vmax.f32 %v6144_v10, 0.0  ;;  %v6261_v44 = vmax.f32 %v6133_v57, 0.0  ;;  %v6269_v25 = vmax.f32 %v6141_v63, 0.0 }
 0x4e4   :  { %v6263_v5 = vmax.f32 %v6135_v7, 0.0  ;;  %v6271_v13 = vmax.f32 %v6143_v16, 0.0  ;;  %v6390_v19 = vpack.c.bf16 %v6270_v18, %v6262_v26  ;;  %v6150_v45 = vadd.f32 %v12623_v27, %v5981_v62  ;;  %v12677_v26 = vld [vmem:[%s13573_s14 + $0x364] ss:$8 sps:$4 sm:$0xff]  }
 0x4e5   :  { %v6392_v11 = vpack.c.bf16 %v6272_v53, %v6264_v47  ;;  %v6158_v6 = vadd.f32 %v12623_v27, %v5989_v61  ;;  %v6389_v10 = vpack.c.bf16 %v6269_v25, %v6261_v44  ;;  %v6152_v7 = vadd.f32 %v12631_v60, %v5983_v56  ;;  %v8675_v53 = vld [vmem:[%s13573_s14 + $0x264] ss:$8 sps:$4 sm:$0xff]   ;;  %v12701_v25 = vld [vmem:[%s13573_s14 + $0x354] ss:$8 sps:$4 sm:$0xff]  }
 0x4e6   :  { %v6391_v57 = vpack.c.bf16 %v6271_v13, %v6263_v5  ;;  %v6160_v18 = vadd.f32 %v12631_v60, %v5991_v37  ;;  %7265 = vmatprep.mubr.bf16.mxu1 %v6390_v19  ;;  %v6278_v20 = vmax.f32 %v6150_v45, 0.0  ;;  %v6149_v44 = vadd.f32 %v12619_v39, %v5980_v15  ;;  %v8673_v19 = vld [vmem:[%s13573_s14 + $0x260] ss:$8 sps:$4 sm:$0xff]  }
 0x4e7   :  { %7378 = vmatprep.mubr.bf16.mxu0 %v6392_v11  ;;  %v6286_v41 = vmax.f32 %v6158_v6, 0.0  ;;  %v6157_v5 = vadd.f32 %v12619_v39, %v5988_v49  ;;  %7266 = vmatmul.mubr.bf16.vlgmr.msra.gmra.mxu1 %v6389_v10  ;;  %v6280_v62 = vmax.f32 %v6152_v7, 0.0  ;;  %v6151_v56 = vadd.f32 %v12627_v30, %v5982_v21  ;;  %v12690_v15 = vld [vmem:[%s13573_s14 + $0x360] ss:$8 sps:$4 sm:$0xff]   ;;  %v14282_v7 = vld [vmem:[#allocation45_spill] sm:$0xff] }
 0x4e8   :  { %7379 = vmatmul.mubr.bf16.vlgmr.msra.gmra.mxu0 %v6391_v57  ;;  %v6288_v61 = vmax.f32 %v6160_v18, 0.0  ;;  %v6159_v37 = vadd.f32 %v12627_v30, %v5990_v8  ;;  %7460 = vmatpush1.bf16.msra.mxu1 %v8667_v59  ;;  %v6277_v49 = vmax.f32 %v6149_v44, 0.0  ;;  %v6166_v21 = vadd.f32 %v12623_v27, %v12577_v31  ;;  %v8681_v8 = vld [vmem:[%s13573_s14 + $0x254] ss:$8 sps:$4 sm:$0xff]   ;;  %v14281_v45 = vld [vmem:[#allocation44_spill] sm:$0xff] }
 0x4e9   :  { %v6398_v34 = vpack.c.bf16 %v6286_v41, %v6278_v20  ;;  %7573 = vmatpush1.bf16.msra.mxu0 %v12665_v24  ;;  %v6285_v9 = vmax.f32 %v6157_v5, 0.0  ;;  %7461 = vmatprep.subr.bf16.mxu1 %v8675_v53  ;;  %v6279_v16 = vmax.f32 %v6151_v56, 0.0  ;;  %v6174_v13 = vadd.f32 %v12623_v27, %v12581_v43  ;;  %v14283_v53 = vld [vmem:[#allocation74_spill] sm:$0xff] }
 0x4ea   :  { %v6400_v63 = vpack.c.bf16 %v6288_v61, %v6280_v62  ;;  %7574 = vmatprep.subr.bf16.mxu0 %v12677_v26  ;;  %v6287_v47 = vmax.f32 %v6159_v37, 0.0  ;;  %v6294_v31 = vmax.f32 %v6166_v21, 0.0  ;;  %v6168_v11 = vadd.f32 %v12631_v60, %v12585_v50  ;;  %v8679_v50 = vld [vmem:[%s13573_s14 + $0x250] ss:$8 sps:$4 sm:$0xff]  }
 0x4eb   :  { %7275 = vmatprep.mubr.bf16.mxu1 %v6398_v34  ;;  %v6176_v59 = vadd.f32 %v12631_v60, %v12591_v0  ;;  %v6012_v6 = vmul.f32 %v12491_v38, %v14281_v45  ;;  %v6397_v10 = vpack.c.bf16 %v6285_v9, %v6277_v49  ;;  %v6302_v57 = vmax.f32 %v6174_v13, 0.0  ;;  %v12724_v5 = vld [vmem:[%s13573_s14 + $0x350] ss:$8 sps:$4 sm:$0xff]   ;;  %v12739_v34 = vld [vmem:[%s13573_s14 + $0x344] ss:$8 sps:$4 sm:$0xff]  }
 0x4ec   :  { %7388 = vmatprep.mubr.bf16.mxu0 %v6400_v63  ;;  %v6020_v18 = vmul.f32 %v12491_v38, %v14282_v7  ;;  %v6014_v43 = vmul.f32 %v12497_v48, %v14283_v53  ;;  %7462 = vmatpush1.bf16.msra.mxu1 %v8673_v19  ;;  %v6399_v0 = vpack.c.bf16 %v6287_v47, %v6279_v16  ;;  %v6296_v20 = vmax.f32 %v6168_v11, 0.0  ;;  %v14285_v63 = vld [vmem:[#allocation63_spill] sm:$0xff]  ;;  %v14286_v16 = vld [vmem:[#allocation30_spill] sm:$0xff]  ;;  %v14287_v47 = vld [vmem:[#allocation56_spill] sm:$0xff] }
 0x4ed   :  { %7575 = vmatpush1.bf16.msra.mxu0 %v12690_v15  ;;  %v6304_v41 = vmax.f32 %v6176_v59, 0.0  ;;  %v6165_v44 = vadd.f32 %v12619_v39, %v12595_v58  ;;  %7463 = vmatprep.subr.bf16.mxu1 %v8681_v8  ;;  %v6173_v62 = vadd.f32 %v12619_v39, %v12599_v3  ;;  %v6167_v61 = vadd.f32 %v12627_v30, %v12603_v42  ;;  %v8687_v58 = vld [vmem:[%s13573_s14 + $0x244] ss:$8 sps:$4 sm:$0xff]   ;;  %v8693_v13 = vld [vmem:[%s13573_s14 + $0x234] ss:$8 sps:$4 sm:$0xff]  }
 0x4ee   :  { %7576 = vmatprep.subr.bf16.mxu0 %v12701_v25  ;;  %v6175_v56 = vadd.f32 %v12627_v30, %v12607_v32  ;;  %v6406_v37 = vpack.c.bf16 %v6302_v57, %v6294_v31  ;;  %v6182_v19 = vadd.f32 %v12623_v27, %v12611_v54  ;;  %v6190_v3 = vadd.f32 %v12623_v27, %v12615_v14  ;;  %v14284_v42 = vld [vmem:[#allocation76_spill] sm:$0xff] }
 0x4ef   :  { %v6022_v49 = vmul.f32 %v12497_v48, %v14284_v42  ;;  %7276 = vmatmul.mubr.bf16.gmra.mxu1 %v6397_v10  ;;  %v6408_v32 = vpack.c.bf16 %v6304_v41, %v6296_v20  ;;  %v6184_v9 = vadd.f32 %v12631_v60, %v12645_v33  ;;  %v6192_v21 = vadd.f32 %v12631_v60, %v12649_v2  ;;  %v8685_v54 = vld [vmem:[%s13573_s14 + $0x240] ss:$8 sps:$4 sm:$0xff]   ;;  %v12773_v10 = vld [vmem:[%s13573_s14 + $0x334] ss:$8 sps:$4 sm:$0xff]   ;;  %v8699_v42 = vld [vmem:[%s13573_s14 + $0x224] ss:$8 sps:$4 sm:$0xff]  }
 0x4f0   :  { %7389 = vmatmul.mubr.bf16.gmra.mxu0 %v6399_v0  ;;  %7464 = vmatpush1.bf16.msra.mxu1 %v8679_v50  ;;  %v12757_v14 = vld [vmem:[%s13573_s14 + $0x340] ss:$8 sps:$4 sm:$0xff]   ;;  %v6029_v8 = vmul.f32 %v12494_v1, %v14285_v63  ;;  %v6037_v33 = vmul.f32 %v12494_v1, %v14286_v16  ;;  %v6031_v2 = vmul.f32 %v12500_v52, %v14287_v47  ;;  %v6293_v31 = vmax.f32 %v6165_v44, 0.0 }
 0x4f1   :  { %7285 = vmatprep.mubr.bf16.mxu1 %v6406_v37  ;;  %7398 = vmatprep.mubr.bf16.mxu0 %v6408_v32  ;;  %v6301_v11 = vmax.f32 %v6173_v62, 0.0  ;;  %v6295_v59 = vmax.f32 %v6167_v61, 0.0  ;;  %v6303_v45 = vmax.f32 %v6175_v56, 0.0  ;;  %v6310_v57 = vmax.f32 %v6182_v19, 0.0  ;;  %v8691_v62 = vld [vmem:[%s13573_s14 + $0x230] ss:$8 sps:$4 sm:$0xff]  }
 0x4f2   :  { %7577 = vmatpush1.bf16.msra.mxu0 %v12724_v5  ;;  %7465 = vmatprep.subr.bf16.mxu1 %v8687_v58  ;;  %v6318_v7 = vmax.f32 %v6190_v3, 0.0  ;;  %v12776_v53 = vadd.f32 %v12619_v39, %v6012_v6  ;;  %v6189_v50 = vadd.f32 %v12619_v39, %v6020_v18  ;;  %v6312_v0 = vmax.f32 %v6184_v9, 0.0  ;;  %v14288_v37 = vld [vmem:[#allocation26_spill] sm:$0xff]  ;;  %v8697_v47 = vld [vmem:[%s13573_s14 + $0x220] ss:$8 sps:$4 sm:$0xff]  }
 0x4f3   :  { %7578 = vmatprep.subr.bf16.mxu0 %v12739_v34  ;;  %v6320_v20 = vmax.f32 %v6192_v21, 0.0  ;;  %v6183_v41 = vadd.f32 %v12627_v30, %v6014_v43  ;;  %v6191_v44 = vadd.f32 %v12627_v30, %v6022_v49  ;;  %v6198_v61 = vadd.f32 %v12623_v27, %v6029_v8  ;;  %v12792_v43 = vld [vmem:[%s13573_s14 + $0x330] ss:$8 sps:$4 sm:$0xff]   ;;  %v12802_v49 = vld [vmem:[%s13573_s14 + $0x324] ss:$8 sps:$4 sm:$0xff]  }
 0x4f4   :  { %7466 = vmatpush1.bf16.msra.mxu1 %v8685_v54  ;;  %v6206_v56 = vadd.f32 %v12623_v27, %v6037_v33  ;;  %v6039_v6 = vmul.f32 %v12500_v52, %v14288_v37  ;;  %v6405_v18 = vpack.c.bf16 %v6301_v11, %v6293_v31  ;;  %v6407_v58 = vpack.c.bf16 %v6303_v45, %v6295_v59  ;;  %v14289_v21 = vld [vmem:[#allocation53_spill] sm:$0xff]  ;;  %v14290_v31 = vld [vmem:[#allocation64_spill] sm:$0xff] }
 0x4f5   :  { %7467 = vmatprep.subr.bf16.mxu1 %v8693_v13  ;;  %v6200_v19 = vadd.f32 %v12631_v60, %v6031_v2  ;;  %v6414_v3 = vpack.c.bf16 %v6318_v7, %v6310_v57  ;;  %v6309_v32 = vmax.f32 %v12776_v53, 0.0  ;;  %v6028_v54 = vmul.f32 %v12491_v38, %v14289_v21  ;;  %v12820_v45 = vld [vmem:[%s13573_s14 + $0x320] ss:$8 sps:$4 sm:$0xff]   ;;  %v8705_v57 = vld [vmem:[%s13573_s14 + $0x214] ss:$8 sps:$4 sm:$0xff]  }
 0x4f6   :  { %7579 = vmatpush1.bf16.msra.mxu0 %v12757_v14  ;;  %v6208_v9 = vadd.f32 %v12631_v60, %v6039_v6  ;;  %v6416_v63 = vpack.c.bf16 %v6320_v20, %v6312_v0  ;;  %v6317_v8 = vmax.f32 %v6189_v50, 0.0  ;;  %v6311_v16 = vmax.f32 %v6183_v41, 0.0  ;;  %v14291_v53 = vld [vmem:[#allocation16_spill] sm:$0xff]  ;;  %v14292_v0 = vld [vmem:[#allocation22_spill] sm:$0xff]  ;;  %v14294_v37 = vld [vmem:[#allocation25_spill] sm:$0xff] }
 0x4f7   :  { %7580 = vmatprep.subr.bf16.mxu0 %v12773_v10  ;;  %7286 = vmatmul.mubr.bf16.gmra.mxu1 %v6405_v18  ;;  %v6319_v33 = vmax.f32 %v6191_v44, 0.0  ;;  %v6326_v2 = vmax.f32 %v6198_v61, 0.0  ;;  %v6334_v13 = vmax.f32 %v6206_v56, 0.0  ;;  %v6036_v11 = vmul.f32 %v12491_v38, %v14290_v31  ;;  %v14293_v41 = vld [vmem:[#allocation54_spill] sm:$0xff]  ;;  %v14295_v18 = vld [vmem:[#allocation79_spill] sm:$0xff] }
 0x4f8   :  { %7399 = vmatmul.mubr.bf16.gmra.mxu0 %v6407_v58  ;;  %7468 = vmatpush1.bf16.msra.mxu1 %v8691_v62  ;;  %v12814_v59 = vadd.f32 %v12619_v39, %v6028_v54  ;;  %v6328_v7 = vmax.f32 %v6200_v19, 0.0  ;;  %v6030_v50 = vmul.f32 %v12497_v48, %v14291_v53  ;;  %v6038_v20 = vmul.f32 %v12497_v48, %v14292_v0  ;;  %v12835_v62 = vld [vmem:[%s13573_s14 + $0x314] ss:$8 sps:$4 sm:$0xff]   ;;  %v12856_v53 = vld [vmem:[%s13573_s14 + $0x310] ss:$8 sps:$4 sm:$0xff]  }
 0x4f9   :  { %7295 = vmatprep.mubr.bf16.mxu1 %v6414_v3  ;;  %7408 = vmatprep.mubr.bf16.mxu0 %v6416_v63  ;;  %v6045_v44 = vmul.f32 %v12494_v1, %v14293_v41  ;;  %v6336_v61 = vmax.f32 %v6208_v9, 0.0  ;;  %v6205_v56 = vadd.f32 %v12619_v39, %v6036_v11  ;;  %v6053_v6 = vmul.f32 %v12494_v1, %v14294_v37  ;;  %v8703_v9 = vld [vmem:[%s13573_s14 + $0x210] ss:$8 sps:$4 sm:$0xff]   ;;  %v8711_v0 = vld [vmem:[%s13573_s14 + $0x204] ss:$8 sps:$4 sm:$0xff]  }
 0x4fa   :  { %7581 = vmatpush1.bf16.msra.mxu0 %v12792_v43  ;;  %7469 = vmatprep.subr.bf16.mxu1 %v8699_v42  ;;  %v6047_v58 = vmul.f32 %v12500_v52, %v14295_v18  ;;  %v6199_v19 = vadd.f32 %v12627_v30, %v6030_v50  ;;  %v6207_v3 = vadd.f32 %v12627_v30, %v6038_v20 }
 0x4fb   :  { %7582 = vmatprep.subr.bf16.mxu0 %v12802_v49  ;;  %v6214_v42 = vadd.f32 %v12623_v27, %v6045_v44  ;;  %v6055_v21 = vmul.f32 %v12500_v52, %v11697_v46  ;;  %v6222_v54 = vadd.f32 %v12623_v27, %v6053_v6  ;;  %v6413_v31 = vpack.c.bf16 %v6317_v8, %v6309_v32  ;;  %v12866_v32 = vld [vmem:[%s13573_s14 + $0x304] ss:$8 sps:$4 sm:$0xff]   ;;  %v8717_v6 = vld [vmem:[%s13573_s14 + $0x2f4] ss:$8 sps:$4 sm:$0xff]  }
 0x4fc   :  { %7470 = vmatpush1.bf16.msra.mxu1 %v8697_v47  ;;  %v6216_v63 = vadd.f32 %v12631_v60, %v6047_v58  ;;  %v6415_v11 = vpack.c.bf16 %v6319_v33, %v6311_v16  ;;  %v6422_v47 = vpack.c.bf16 %v6334_v13, %v6326_v2  ;;  %v6424_v50 = vpack.c.bf16 %v6336_v61, %v6328_v7  ;;  %v14296_v16 = vld [vmem:[#allocation50_spill] sm:$0xff]  ;;  %v8709_v7 = vld [vmem:[%s13573_s14 + $0x200] ss:$8 sps:$4 sm:$0xff]  }
 0x4fd   :  { %7471 = vmatprep.subr.bf16.mxu1 %v8705_v57  ;;  %v6224_v46 = vadd.f32 %v12631_v60, %v6055_v21  ;;  %v6325_v8 = vmax.f32 %v12814_v59, 0.0  ;;  %v6044_v33 = vmul.f32 %v12491_v38, %v14296_v16  ;;  %v6333_v57 = vmax.f32 %v6205_v56, 0.0  ;;  %v14297_v61 = vld [vmem:[#allocation47_spill] sm:$0xff]  ;;  %v14298_v58 = vld [vmem:[#allocation78_spill] sm:$0xff] }
 0x4fe   :  { %7583 = vmatpush1.bf16.msra.mxu0 %v12820_v45  ;;  %v6327_v20 = vmax.f32 %v6199_v19, 0.0  ;;  %v6335_v2 = vmax.f32 %v6207_v3, 0.0  ;;  %v6342_v13 = vmax.f32 %v6214_v42, 0.0  ;;  %v6350_v41 = vmax.f32 %v6222_v54, 0.0  ;;  %v12883_v56 = vld [vmem:[%s13573_s14 + $0x300] ss:$8 sps:$4 sm:$0xff]  }
 0x4ff   :  { %7584 = vmatprep.subr.bf16.mxu0 %v12835_v62  ;;  %7296 = vmatmul.mubr.bf16.gmra.mxu1 %v6413_v31  ;;  %v6344_v44 = vmax.f32 %v6216_v63, 0.0  ;;  %v6052_v59 = vmul.f32 %v12491_v38, %v14297_v61  ;;  %v12877_v37 = vadd.f32 %v12619_v39, %v6044_v33  ;;  %v6352_v18 = vmax.f32 %v6224_v46, 0.0  ;;  %v14299_v42 = vld [vmem:[#allocation66_spill] sm:$0xff]  ;;  %v14300_v63 = vld [vmem:[#allocation32_spill] sm:$0xff] }
 0x500   :  { %7409 = vmatmul.mubr.bf16.gmra.mxu0 %v6415_v11  ;;  %7472 = vmatpush1.bf16.msra.mxu1 %v8703_v9  ;;  %v6046_v19 = vmul.f32 %v12497_v48, %v14298_v58  ;;  %v6054_v3 = vmul.f32 %v12497_v48, %v14188_v51  ;;  %v6061_v21 = vmul.f32 %v12494_v1, %v14299_v42  ;;  %v12898_v9 = vld [vmem:[%s13573_s14 + $0x3f4] ss:$8 sps:$4 sm:$0xff]  }
 0x501   :  { %7305 = vmatprep.mubr.bf16.mxu1 %v6422_v47  ;;  %7418 = vmatprep.mubr.bf16.mxu0 %v6424_v50  ;;  %v6221_v54 = vadd.f32 %v12619_v39, %v6052_v59  ;;  %v6069_v31 = vmul.f32 %v12494_v1, %v14300_v63  ;;  %v6063_v47 = vmul.f32 %v12500_v52, %v14192_v4  ;;  %v8715_v50 = vld [vmem:[%s13573_s14 + $0x2f0] ss:$8 sps:$4 sm:$0xff]   ;;  %v6341_v58 = vmax.f32 %v12877_v37, 0.0 }
 0x502   :  { %7585 = vmatpush1.bf16.msra.mxu0 %v12856_v53  ;;  %7473 = vmatprep.subr.bf16.mxu1 %v8711_v0  ;;  %v6215_v11 = vadd.f32 %v12627_v30, %v6046_v19  ;;  %v6223_v51 = vadd.f32 %v12627_v30, %v6054_v3  ;;  %v6230_v46 = vadd.f32 %v12623_v27, %v6061_v21  ;;  %v12918_v59 = vld [vmem:[%s13573_s14 + $0x3f0] ss:$8 sps:$4 sm:$0xff]   ;;  %v14303_v3 = vld [vmem:[#allocation80_spill] sm:$0xff] }
 0x503   :  { %7586 = vmatprep.subr.bf16.mxu0 %v12866_v32  ;;  %v6421_v0 = vpack.c.bf16 %v6333_v57, %v6325_v8  ;;  %v6423_v16 = vpack.c.bf16 %v6335_v2, %v6327_v20  ;;  %v6238_v33 = vadd.f32 %v12623_v27, %v6069_v31  ;;  %v6071_v61 = vmul.f32 %v12500_v52, %v11718_v17  ;;  %v8723_v17 = vld [vmem:[%s13573_s14 + $0x2e4] ss:$8 sps:$4 sm:$0xff]   ;;  %v8721_v21 = vld [vmem:[%s13573_s14 + $0x2e0] ss:$8 sps:$4 sm:$0xff]  }
 0x504   :  { %7474 = vmatpush1.bf16.msra.mxu1 %v8709_v7  ;;  %v6430_v4 = vpack.c.bf16 %v6350_v41, %v6342_v13  ;;  %v6432_v7 = vpack.c.bf16 %v6352_v18, %v6344_v44  ;;  %v6232_v8 = vadd.f32 %v12631_v60, %v6063_v47  ;;  %v12929_v57 = vld [vmem:[%s13573_s14 + $0x3e4] ss:$8 sps:$4 sm:$0xff]   ;;  %v6349_v20 = vmax.f32 %v6221_v54, 0.0  ;;  %v14301_v13 = vld [vmem:[#allocation65_spill] sm:$0xff] }
 0x505   :  { %7475 = vmatprep.subr.bf16.mxu1 %v8717_v6  ;;  %v6240_v2 = vadd.f32 %v12631_v60, %v6071_v61  ;;  %v6060_v41 = vmul.f32 %v12491_v38, %v14301_v13  ;;  %v14302_v44 = vld [vmem:[#allocation51_spill] sm:$0xff]  ;;  %v6343_v6 = vmax.f32 %v6215_v11, 0.0  ;;  %v6351_v18 = vmax.f32 %v6223_v51, 0.0  ;;  %v14306_v61 = vld [vmem:[#allocation84_spill] sm:$0xff] }
 0x506   :  { %7587 = vmatpush1.bf16.msra.mxu0 %v12883_v56  ;;  %v6068_v37 = vmul.f32 %v12491_v38, %v14302_v44  ;;  %v6358_v19 = vmax.f32 %v6230_v46, 0.0  ;;  %v6062_v42 = vmul.f32 %v12497_v48, %v14303_v3  ;;  %v6366_v54 = vmax.f32 %v6238_v33, 0.0  ;;  %v14304_v47 = vld [vmem:[#allocation31_spill] sm:$0xff]  ;;  %v8729_v46 = vld [vmem:[%s13573_s14 + $0x2d4] ss:$8 sps:$4 sm:$0xff]  }
 0x507   :  { %7588 = vmatprep.subr.bf16.mxu0 %v12898_v9  ;;  %7306 = vmatmul.mubr.bf16.gmra.mxu1 %v6421_v0  ;;  %v12942_v63 = vadd.f32 %v12619_v39, %v6060_v41  ;;  %v6070_v11 = vmul.f32 %v12497_v48, %v14304_v47  ;;  %v12953_v51 = vld [vmem:[%s13573_s14 + $0x3e0] ss:$8 sps:$4 sm:$0xff]   ;;  %v6368_v13 = vmax.f32 %v6240_v2, 0.0  ;;  %v6429_v47 = vpack.c.bf16 %v6349_v20, %v6341_v58 }
 0x508   :  { %7419 = vmatmul.mubr.bf16.gmra.mxu0 %v6423_v16  ;;  %7476 = vmatpush2.bf16.msra.mxu1 %v8715_v50  ;;  %v12945_v31 = vadd.f32 %v12619_v39, %v6068_v37  ;;  %v6360_v50 = vmax.f32 %v6232_v8, 0.0  ;;  %v6231_v0 = vadd.f32 %v12627_v30, %v6062_v42  ;;  %v14305_v16 = vld [vmem:[#allocation68_spill] sm:$0xff]  ;;  %v14308_v37 = vld [vmem:[#allocation103_spill] sm:$0xff] }
 0x509   :  { %7315 = vmatprep.mubr.bf16.mxu1 %v6430_v4  ;;  %7428 = vmatprep.mubr.bf16.mxu0 %v6432_v7  ;;  %v6077_v33 = vmul.f32 %v12494_v1, %v14305_v16  ;;  %v6085_v4 = vmul.f32 %v12494_v1, %v14306_v61  ;;  %v12967_v7 = vld [vmem:[%s13573_s14 + $0x3d4] ss:$8 sps:$4 sm:$0xff]   ;;  %v6239_v41 = vadd.f32 %v12627_v30, %v6070_v11  ;;  %v14307_v8 = vld [vmem:[#allocation20_spill] sm:$0xff]  ;;  %v6357_v58 = vmax.f32 %v12942_v63, 0.0  ;;  %v14309_v20 = vld [vmem:[#allocation67_spill] sm:$0xff] }
 0x50a   :  { %7589 = vmatpush2.bf16.msra.mxu0 %v12918_v59  ;;  %7477 = vmatprep.subr.bf16.mxu1 %v8723_v17  ;;  %v6079_v44 = vmul.f32 %v12500_v52, %v14307_v8  ;;  %v6087_v3 = vmul.f32 %v12500_v52, %v14308_v37  ;;  %v8727_v17 = vld [vmem:[%s13573_s14 + $0x2d0] ss:$8 sps:$4 sm:$0xff]   ;;  %v6431_v16 = vpack.c.bf16 %v6351_v18, %v6343_v6  ;;  %v12997_v6 = vld [vmem:[%s13573_s14 + $0x3c4] ss:$8 sps:$4 sm:$0xff]   ;;  %v6365_v18 = vmax.f32 %v12945_v31, 0.0 }
 0x50b   :  { %7590 = vmatprep.subr.bf16.mxu0 %v12929_v57  ;;  %v6246_v42 = vadd.f32 %v12623_v27, %v6077_v33  ;;  %v6254_v1 = vadd.f32 %v12623_v27, %v6085_v4  ;;  %v12985_v52 = vld [vmem:[%s13573_s14 + $0x3d0] ss:$8 sps:$4 sm:$0xff]   ;;  %v6438_v27 = vpack.c.bf16 %v6366_v54, %v6358_v19  ;;  %v6076_v33 = vmul.f32 %v12491_v38, %v14309_v20  ;;  %v14310_v63 = vld [vmem:[#allocation48_spill] sm:$0xff]  ;;  %v14311_v31 = vld [vmem:[#allocation83_spill] sm:$0xff] }
 0x50c   :  { %7478 = vmatpush2.bf16.msra.mxu1 %v8721_v21  ;;  %v6248_v2 = vadd.f32 %v12631_v60, %v6079_v44  ;;  %v6256_v11 = vadd.f32 %v12631_v60, %v6087_v3  ;;  %v8735_v21 = vld [vmem:[%s13573_s14 + $0x2c4] ss:$8 sps:$4 sm:$0xff]   ;;  %v6440_v60 = vpack.c.bf16 %v6368_v13, %v6360_v50  ;;  %v6359_v19 = vmax.f32 %v6231_v0, 0.0  ;;  %v8733_v50 = vld [vmem:[%s13573_s14 + $0x2c0] ss:$8 sps:$4 sm:$0xff]  }
 0x50d   :  { %7479 = vmatprep.subr.bf16.mxu1 %v8729_v46  ;;  %v6367_v54 = vmax.f32 %v6239_v41, 0.0  ;;  %v6374_v46 = vmax.f32 %v6246_v42, 0.0  ;;  %v6382_v61 = vmax.f32 %v6254_v1, 0.0  ;;  %v6084_v4 = vmul.f32 %v12491_v38, %v14310_v63  ;;  %v14312_v41 = vld [vmem:[#allocation24_spill] sm:$0xff]  ;;  %v8741_v1 = vld [vmem:[%s13573_s14 + $0x2b4] ss:$8 sps:$4 sm:$0xff]  }
 0x50e   :  { %7591 = vmatpush2.bf16.msra.mxu0 %v12953_v51  ;;  %v6245_v8 = vadd.f32 %v12619_v39, %v6076_v33  ;;  %v6376_v13 = vmax.f32 %v6248_v2, 0.0  ;;  %v6384_v44 = vmax.f32 %v6256_v11, 0.0  ;;  %v6078_v0 = vmul.f32 %v12497_v48, %v14311_v31  ;;  %v13019_v42 = vld [vmem:[%s13573_s14 + $0x3c0] ss:$8 sps:$4 sm:$0xff]   ;;  %v8739_v33 = vld [vmem:[%s13573_s14 + $0x2b0] ss:$8 sps:$4 sm:$0xff]  }
 0x50f   :  { %7592 = vmatprep.subr.bf16.mxu0 %v12967_v7  ;;  %7316 = vmatmul.mubr.bf16.gmra.mxu1 %v6429_v47  ;;  %v6086_v37 = vmul.f32 %v12497_v48, %v14312_v41  ;;  %v14313_v3 = vsub.s32 5, %v14244_v28  ;;  %v13029_v48 = vld [vmem:[%s13573_s14 + $0x3b4] ss:$8 sps:$4 sm:$0xff]   ;;  %v14314_v11 = vsub.s32 7, %v14244_v28  ;;  %v6439_v20 = vpack.c.bf16 %v6367_v54, %v6359_v19  ;;  %v14316_v31 = vld [vmem:[#allocation96_spill] sm:$0xff] }
 0x510   :  { %7429 = vmatmul.mubr.bf16.gmra.mxu0 %v6431_v16  ;;  %7480 = vmatpush2.bf16.msra.mxu1 %v8727_v17  ;;  %v6253_v17 = vadd.f32 %v12619_v39, %v6084_v4  ;;  %v6247_v47 = vadd.f32 %v12627_v30, %v6078_v0  ;;  %v14315_v39 = vld [vmem:[#allocation21_spill] sm:$0xff]  ;;  %v6448_v63 = vpack.c.bf16 %v6384_v44, %v6376_v13  ;;  %v6373_v4 = vmax.f32 %v6245_v8, 0.0  ;;  %v8747_v54 = vld [vmem:[%s13573_s14 + $0x2a4] ss:$8 sps:$4 sm:$0xff]   ;;  %v14317_v13 = vld [vmem:[#allocation34_spill] sm:$0xff] }
 0x511   :  { %7325 = vmatprep.mubr.bf16.mxu1 %v6438_v27  ;;  %v13013_v38 = vrot.slane %v12587_v36, %v14313_v3  ;;  %7438 = vmatprep.mubr.bf16.mxu0 %v6440_v60  ;;  %v6255_v2 = vadd.f32 %v12627_v30, %v6086_v37  ;;  %v13036_v16 = vrot.slane %v12587_v36, %v14314_v11  ;;  %v13049_v28 = vld [vmem:[%s13573_s14 + $0x3b0] ss:$8 sps:$4 sm:$0xff]   ;;  %v14318_v0 = vld [vmem:[#allocation28_spill] sm:$0xff] }
 0x512   :  { %7593 = vmatpush2.bf16.msra.mxu0 %v12985_v52  ;;  %7481 = vmatprep.subr.bf16.mxu1 %v8735_v21  ;;  %v6437_v27 = vpack.c.bf16 %v6365_v18, %v6357_v58  ;;  %v5969_v21 = vmul.f32 %v12508_v23, %v14315_v39  ;;  %v6446_v60 = vpack.c.bf16 %v6382_v61, %v6374_v46  ;;  %v6381_v36 = vmax.f32 %v6253_v17, 0.0  ;;  %v13063_v46 = vld [vmem:[%s13573_s14 + $0x3a4] ss:$8 sps:$4 sm:$0xff]   ;;  %v8745_v37 = vld [vmem:[%s13573_s14 + $0x2a0] ss:$8 sps:$4 sm:$0xff]  }
 0x513   :  { %7594 = vmatprep.subr.bf16.mxu0 %v12997_v6  ;;  %v5977_v30 = vmul.f32 %v12508_v23, %v14316_v31  ;;  %v5971_v18 = vmul.f32 %v12516_v35, %v12106_v12  ;;  %v5979_v19 = vmul.f32 %v12516_v35, %v12110_v29  ;;  %v6375_v61 = vmax.f32 %v6247_v47, 0.0  ;;  %v8753_v17 = vld [vmem:[%s13573_s14 + $0x294] ss:$8 sps:$4 sm:$0xff]  }
 0x514   :  { %7482 = vmatpush2.bf16.msra.mxu1 %v8733_v50  ;;  %v6138_v58 = vadd.f32 %v13013_v38, %v5969_v21  ;;  %v6383_v8 = vmax.f32 %v6255_v2, 0.0  ;;  %v5968_v12 = vmul.f32 %v12504_v40, %v14317_v13  ;;  %v5976_v41 = vmul.f32 %v12504_v40, %v14318_v0  ;;  %v14319_v21 = vld [vmem:[#allocation12_spill] sm:$0xff]  ;;  %v14320_v31 = vld [vmem:[#allocation109_spill] sm:$0xff] }
 0x515   :  { %7483 = vmatprep.subr.bf16.mxu1 %v8741_v1  ;;  %v6146_v50 = vadd.f32 %v13013_v38, %v5977_v30  ;;  %v6140_v29 = vadd.f32 %v13036_v16, %v5971_v18  ;;  %v6148_v44 = vadd.f32 %v13036_v16, %v5979_v19  ;;  %v13080_v1 = vld [vmem:[%s13573_s14 + $0x3a0] ss:$8 sps:$4 sm:$0xff]   ;;  %v6445_v11 = vpack.c.bf16 %v6381_v36, %v6373_v4  ;;  %v8751_v4 = vld [vmem:[%s13573_s14 + $0x290] ss:$8 sps:$4 sm:$0xff]  }
 0x516   :  { %7595 = vmatpush2.bf16.msra.mxu0 %v13019_v42  ;;  %v6137_v3 = vadd.f32 %v12636_v22, %v5968_v12  ;;  %v6266_v47 = vmax.f32 %v6138_v58, 0.0  ;;  %v6145_v2 = vadd.f32 %v12636_v22, %v5976_v41  ;;  %v5978_v30 = vmul.f32 %v14319_v21, %v14320_v31  ;;  %v14321_v58 = vld [vmem:[#allocation33_spill] sm:$0xff]  ;;  %v14322_v19 = vld [vmem:[#allocation11_spill] sm:$0xff] }
 0x517   :  { %7596 = vmatprep.subr.bf16.mxu0 %v13029_v48  ;;  %7326 = vmatmul.mubr.bf16.gmra.mxu1 %v6437_v27  ;;  %v6447_v27 = vpack.c.bf16 %v6383_v8, %v6375_v61  ;;  %v6274_v39 = vmax.f32 %v6146_v50, 0.0  ;;  %v5985_v18 = vmul.f32 %v12508_v23, %v14321_v58  ;;  %v14323_v61 = vld [vmem:[#allocation99_spill] sm:$0xff]  ;;  %v13110_v13 = vld [vmem:[%s13573_s14 + $0x390] ss:$8 sps:$4 sm:$0xff]  }
 0x518   :  { %7439 = vmatmul.mubr.bf16.gmra.mxu0 %v6439_v20  ;;  %7484 = vmatpush2.bf16.msra.mxu1 %v8739_v33  ;;  %v13090_v20 = vld [vmem:[%s13573_s14 + $0x394] ss:$8 sps:$4 sm:$0xff]   ;;  %v5970_v33 = vmul.f32 %v14319_v21, %v12091_v55  ;;  %v6265_v36 = vmax.f32 %v6137_v3, 0.0  ;;  %v5993_v8 = vmul.f32 %v12508_v23, %v14323_v61  ;;  %v14324_v55 = vld [vmem:[#allocation111_spill] sm:$0xff]  ;;  %v6273_v12 = vmax.f32 %v6145_v2, 0.0 }
 0x519   :  { %7335 = vmatprep.mubr.bf16.mxu1 %v6446_v60  ;;  %7448 = vmatprep.mubr.bf16.mxu0 %v6448_v63  ;;  %v6268_v60 = vmax.f32 %v6140_v29, 0.0  ;;  %v6276_v63 = vmax.f32 %v6148_v44, 0.0  ;;  %v5987_v50 = vmul.f32 %v12516_v35, %v14324_v55  ;;  %v6147_v29 = vadd.f32 %v14322_v19, %v5978_v30  ;;  %v14325_v0 = vld [vmem:[#allocation113_spill] sm:$0xff]  ;;  %v8759_v3 = vld [vmem:[%s13573_s14 + $0x284] ss:$8 sps:$4 sm:$0xff]   ;;  %v14330_v55 = vld [vmem:[#allocation110_spill] sm:$0xff] }
 0x51a   :  { %7597 = vmatpush2.bf16.msra.mxu0 %v13049_v28  ;;  %7485 = vmatprep.subr.bf16.mxu1 %v8747_v54  ;;  %v6139_v54 = vadd.f32 %v14322_v19, %v5970_v33  ;;  %v6154_v44 = vadd.f32 %v13013_v38, %v5985_v18  ;;  %v5995_v41 = vmul.f32 %v12516_v35, %v14325_v0  ;;  %v13135_v58 = vld [vmem:[%s13573_s14 + $0x380] ss:$8 sps:$4 sm:$0xff]  }
 0x51b   :  { %7598 = vmatprep.subr.bf16.mxu0 %v13063_v46  ;;  %v6162_v2 = vadd.f32 %v13013_v38, %v5993_v8  ;;  %v6156_v33 = vadd.f32 %v13036_v16, %v5987_v50  ;;  %v6396_v31 = vpack.c.bf16 %v6276_v63, %v6268_v60  ;;  %14327 = vst [vmem:[#allocation58_spill] sm:$0xff] %v13135_v58  ;;  %v14328_v63 = vld [vmem:[#allocation29_spill] sm:$0xff] }
 0x51c   :  { %7486 = vmatpush2.bf16.msra.mxu1 %v8745_v37  ;;  %v6394_v37 = vpack.c.bf16 %v6274_v39, %v6266_v47  ;;  %v6164_v30 = vadd.f32 %v13036_v16, %v5995_v41  ;;  %v8757_v47 = vld [vmem:[%s13573_s14 + $0x280] ss:$8 sps:$4 sm:$0xff]   ;;  %v6267_v39 = vmax.f32 %v6139_v54, 0.0  ;;  %v6282_v60 = vmax.f32 %v6154_v44, 0.0  ;;  %v14329_v54 = vld [vmem:[#allocation85_spill] sm:$0xff] }
 0x51d   :  { %7487 = vmatprep.subr.bf16.mxu1 %v8753_v17  ;;  %v13123_v17 = vld [vmem:[%s13573_s14 + $0x384] ss:$8 sps:$4 sm:$0xff]   ;;  %v5984_v18 = vmul.f32 %v12504_v40, %v14328_v63  ;;  %v6284_v61 = vmax.f32 %v6156_v33, 0.0  ;;  %v5992_v8 = vmul.f32 %v12504_v40, %v14329_v54  ;;  %v5986_v50 = vmul.f32 %v14319_v21, %v14330_v55  ;;  %v14335_v54 = vld [vmem:[#allocation117_spill] sm:$0xff] }
 0x51e   :  { %7599 = vmatpush2.bf16.msra.mxu0 %v13080_v1  ;;  %14326 = vst [vmem:[#allocation35_spill] sm:$0xff] %v13123_v17  ;;  %v6292_v0 = vmax.f32 %v6164_v30, 0.0  ;;  %v8859_v30 = vld [vmem:[%s13573_s14 + $0x374] ss:$8 sps:$4 sm:$0xff]  }
 0x51f   :  { %7600 = vmatprep.subr.bf16.mxu0 %v13090_v20  ;;  %7336 = vmatmul.mubr.bf16.gmra.mxu1 %v6445_v11  ;;  %v6393_v11 = vpack.c.bf16 %v6273_v12, %v6265_v36  ;;  %v6153_v41 = vadd.f32 %v12636_v22, %v5984_v18  ;;  %v14331_v36 = vld [vmem:[#allocation112_spill] sm:$0xff] }
 0x520   :  { %7449 = vmatmul.mubr.bf16.gmra.mxu0 %v6447_v27  ;;  %7488 = vmatpush2.bf16.msra.mxu1 %v8751_v4  ;;  %v6275_v27 = vmax.f32 %v6147_v29, 0.0  ;;  %v6290_v4 = vmax.f32 %v6162_v2, 0.0  ;;  %v5994_v12 = vmul.f32 %v14319_v21, %v14331_v36  ;;  %v14332_v29 = vld [vmem:[#allocation88_spill] sm:$0xff]  ;;  %v14333_v2 = vld [vmem:[#allocation102_spill] sm:$0xff] }
 0x521   :  { %7491 = vmatprep.mubr.bf16.mxu1 %v6394_v37  ;;  %7604 = vmatprep.mubr.bf16.mxu0 %v6396_v31  ;;  %v6001_v44 = vmul.f32 %v12508_v23, %v14332_v29  ;;  %v6161_v37 = vadd.f32 %v12636_v22, %v5992_v8  ;;  %v6009_v33 = vmul.f32 %v12508_v23, %v14333_v2  ;;  %v14334_v31 = vld [vmem:[#allocation115_spill] sm:$0xff] }
 0x522   :  { %7601 = vmatpush2.bf16.msra.mxu0 %v13110_v13  ;;  %7489 = vmatprep.subr.bf16.mxu1 %v8759_v3  ;;  %v6155_v3 = vadd.f32 %v14322_v19, %v5986_v50  ;;  %v6003_v63 = vmul.f32 %v12516_v35, %v14334_v31  ;;  %v6163_v18 = vadd.f32 %v14322_v19, %v5994_v12 }
 0x523   :  { %7602 = vmatprep.subr.bf16.mxu0 %v13123_v17  ;;  %v6011_v8 = vmul.f32 %v12516_v35, %v14335_v54  ;;  %v6395_v55 = vpack.c.bf16 %v6275_v27, %v6267_v39  ;;  %v6178_v50 = vadd.f32 %v13013_v38, %v6009_v33  ;;  %v6402_v29 = vpack.c.bf16 %v6290_v4, %v6282_v60  ;;  %v14337_v33 = vld [vmem:[#allocation89_spill] sm:$0xff]  ;;  %v14338_v60 = vld [vmem:[#allocation114_spill] sm:$0xff] }
 0x524   :  { %7490 = vmatpush2.bf16.msra.mxu1 %v8757_v47  ;;  %v6170_v47 = vadd.f32 %v13013_v38, %v6001_v44  ;;  %v6172_v36 = vadd.f32 %v13036_v16, %v6003_v63  ;;  %v6404_v2 = vpack.c.bf16 %v6292_v0, %v6284_v61  ;;  %v6289_v12 = vmax.f32 %v6161_v37, 0.0  ;;  %v14336_v44 = vld [vmem:[#allocation86_spill] sm:$0xff] }
 0x525   :  { %8310 = vmatprep.subr.bf16.mxu1 %v8859_v30  ;;  %v6180_v31 = vadd.f32 %v13036_v16, %v6011_v8  ;;  %v6281_v30 = vmax.f32 %v6153_v41, 0.0  ;;  %v6000_v17 = vmul.f32 %v12504_v40, %v14336_v44  ;;  %v6291_v39 = vmax.f32 %v6163_v18, 0.0  ;;  %v14339_v41 = vld [vmem:[#allocation116_spill] sm:$0xff] }
 0x526   :  { %7603 = vmatpush2.bf16.msra.mxu0 %v13135_v58  ;;  %v6283_v58 = vmax.f32 %v6155_v3, 0.0  ;;  %v6298_v27 = vmax.f32 %v6170_v47, 0.0  ;;  %v6002_v4 = vmul.f32 %v14319_v21, %v14338_v60  ;;  %v6300_v61 = vmax.f32 %v6172_v36, 0.0  ;;  %v14340_v47 = vld [vmem:[#allocation92_spill] sm:$0xff]  ;;  %v14343_v36 = vld [vmem:[#allocation121_spill] sm:$0xff] }
 0x527   :  { %7492 = vmatmul.mubr.bf16.vlgmr.msra.gmra.mxu1 %v6393_v11  ;;  %v6008_v11 = vmul.f32 %v12504_v40, %v14337_v33  ;;  %v6169_v0 = vadd.f32 %v12636_v22, %v6000_v17  ;;  %v6010_v37 = vmul.f32 %v14319_v21, %v14339_v41  ;;  %v6308_v3 = vmax.f32 %v6180_v31, 0.0 }
 0x528   :  { %8326 = vmatpush1.bf16.msra.mxu1 %v12665_v24  ;;  %7501 = vmatprep.mubr.bf16.mxu1 %v6402_v29  ;;  %v6306_v24 = vmax.f32 %v6178_v50, 0.0  ;;  %v6171_v18 = vadd.f32 %v14322_v19, %v6002_v4  ;;  %v6017_v54 = vmul.f32 %v12508_v23, %v14340_v47  ;;  %v14342_v50 = vld [vmem:[#allocation119_spill] sm:$0xff]  ;;  %v6027_v29 = vmul.f32 %v12516_v35, %v14343_v36 }
 0x529   :  { %7605 = vmatmul.mubr.bf16.vlgmr.msra.gmra.mxu0 %v6395_v55  ;;  %8311 = vmatprep.subr.bf16.mxu1 %v12677_v26  ;;  %v6177_v63 = vadd.f32 %v12636_v22, %v6008_v11  ;;  %v6179_v8 = vadd.f32 %v14322_v19, %v6010_v37  ;;  %v14341_v26 = vld [vmem:[#allocation106_spill] sm:$0xff]  ;;  %v6019_v17 = vmul.f32 %v12516_v35, %v14342_v50  ;;  %v6297_v41 = vmax.f32 %v6169_v0, 0.0 }
 0x52a   :  { %7614 = vmatprep.mubr.bf16.mxu0 %v6404_v2  ;;  %v6025_v55 = vmul.f32 %v12508_v23, %v14341_v26  ;;  %v6401_v2 = vpack.c.bf16 %v6289_v12, %v6281_v30  ;;  %v6186_v31 = vadd.f32 %v13013_v38, %v6017_v54  ;;  %v6403_v44 = vpack.c.bf16 %v6291_v39, %v6283_v58  ;;  %v14344_v58 = vld [vmem:[#allocation91_spill] sm:$0xff]  ;;  %v14346_v0 = vld [vmem:[#allocation118_spill] sm:$0xff] }
 0x52b   :  { %v6196_v11 = vadd.f32 %v13036_v16, %v6027_v29  ;;  %v6410_v60 = vpack.c.bf16 %v6306_v24, %v6298_v27  ;;  %v6412_v4 = vpack.c.bf16 %v6308_v3, %v6300_v61  ;;  %v6305_v37 = vmax.f32 %v6177_v63, 0.0  ;;  %v14345_v27 = vld [vmem:[#allocation93_spill] sm:$0xff]  ;;  %v14347_v63 = vld [vmem:[#allocation120_spill] sm:$0xff] }
 0x52c   :  { %8327 = vmatpush1.bf16.msra.mxu1 %v12690_v15  ;;  %v6194_v33 = vadd.f32 %v13013_v38, %v6025_v55  ;;  %v6188_v15 = vadd.f32 %v13036_v16, %v6019_v17  ;;  %v6299_v47 = vmax.f32 %v6171_v18, 0.0  ;;  %v6314_v30 = vmax.f32 %v6186_v31, 0.0  ;;  %v14348_v55 = vld [vmem:[#allocation94_spill] sm:$0xff]  ;;  %v14349_v17 = vld [vmem:[#allocation108_spill] sm:$0xff]  ;;  %v14350_v31 = vld [vmem:[#allocation123_spill] sm:$0xff] }
 0x52d   :  { %8312 = vmatprep.subr.bf16.mxu1 %v12701_v25  ;;  %v6307_v25 = vmax.f32 %v6179_v8, 0.0  ;;  %v6016_v12 = vmul.f32 %v12504_v40, %v14344_v58  ;;  %v6324_v26 = vmax.f32 %v6196_v11, 0.0  ;;  %v6024_v24 = vmul.f32 %v12504_v40, %v14345_v27 }
 0x52e   :  { %v6322_v39 = vmax.f32 %v6194_v33, 0.0  ;;  %v6316_v54 = vmax.f32 %v6188_v15, 0.0  ;;  %v6409_v61 = vpack.c.bf16 %v6305_v37, %v6297_v41  ;;  %v6018_v3 = vmul.f32 %v14319_v21, %v14346_v0  ;;  %v14351_v33 = vld [vmem:[#allocation125_spill] sm:$0xff] }
 0x52f   :  { %7502 = vmatmul.mubr.bf16.gmra.mxu1 %v6401_v2  ;;  %v6026_v18 = vmul.f32 %v14319_v21, %v14347_v63  ;;  %v6411_v8 = vpack.c.bf16 %v6307_v25, %v6299_v47  ;;  %v6033_v50 = vmul.f32 %v12508_v23, %v14348_v55  ;;  %v6041_v36 = vmul.f32 %v12508_v23, %v14349_v17  ;;  %v14352_v37 = vld [vmem:[#allocation77_spill] sm:$0xff]  ;;  %v14353_v25 = vld [vmem:[#allocation95_spill] sm:$0xff] }
 0x530   :  { %8328 = vmatpush1.bf16.msra.mxu1 %v12724_v5  ;;  %7511 = vmatprep.mubr.bf16.mxu1 %v6410_v60  ;;  %v6185_v5 = vadd.f32 %v12636_v22, %v6016_v12  ;;  %v6187_v29 = vadd.f32 %v14322_v19, %v6018_v3  ;;  %v6418_v15 = vpack.c.bf16 %v6322_v39, %v6314_v30  ;;  %v14354_v39 = vld [vmem:[#allocation122_spill] sm:$0xff]  ;;  %v14356_v63 = vld [vmem:[#allocation27_spill] sm:$0xff] }
 0x531   :  { %7615 = vmatmul.mubr.bf16.gmra.mxu0 %v6403_v44  ;;  %8313 = vmatprep.subr.bf16.mxu1 %v12739_v34  ;;  %v6193_v34 = vadd.f32 %v12636_v22, %v6024_v24  ;;  %v6195_v2 = vadd.f32 %v14322_v19, %v6026_v18  ;;  %v6035_v44 = vmul.f32 %v12516_v35, %v14350_v31 }
 0x532   :  { %7624 = vmatprep.mubr.bf16.mxu0 %v6412_v4  ;;  %v6420_v11 = vpack.c.bf16 %v6324_v26, %v6316_v54  ;;  %v6202_v60 = vadd.f32 %v13013_v38, %v6033_v50  ;;  %v6210_v4 = vadd.f32 %v13013_v38, %v6041_v36  ;;  %v6032_v47 = vmul.f32 %v12504_v40, %v14352_v37  ;;  %v14355_v26 = vld [vmem:[#allocation124_spill] sm:$0xff] }
 0x533   :  { %v6204_v41 = vadd.f32 %v13036_v16, %v6035_v44  ;;  %v6040_v58 = vmul.f32 %v12504_v40, %v14353_v25  ;;  %v6313_v30 = vmax.f32 %v6185_v5, 0.0  ;;  %v6321_v12 = vmax.f32 %v6193_v34, 0.0 }
 0x534   :  { %8329 = vmatpush1.bf16.msra.mxu1 %v12757_v14  ;;  %v6043_v14 = vmul.f32 %v12516_v35, %v14351_v33  ;;  %v6034_v54 = vmul.f32 %v14319_v21, %v14354_v39  ;;  %v6042_v27 = vmul.f32 %v14319_v21, %v14355_v26  ;;  %v6315_v24 = vmax.f32 %v6187_v29, 0.0  ;;  %v14358_v33 = vld [vmem:[#allocation127_spill] sm:$0xff] }
 0x535   :  { %8314 = vmatprep.subr.bf16.mxu1 %v12773_v10  ;;  %v6201_v0 = vadd.f32 %v12636_v22, %v6032_v47  ;;  %v6209_v3 = vadd.f32 %v12636_v22, %v6040_v58  ;;  %v6049_v18 = vmul.f32 %v12508_v23, %v14356_v63  ;;  %v6330_v55 = vmax.f32 %v6202_v60, 0.0  ;;  %v14360_v58 = vld [vmem:[#allocation17_spill] sm:$0xff]  ;;  %v14362_v26 = vld [vmem:[#allocation23_spill] sm:$0xff] }
 0x536   :  { %v6212_v10 = vadd.f32 %v13036_v16, %v6043_v14  ;;  %v6211_v5 = vadd.f32 %v14322_v19, %v6042_v27  ;;  %v6338_v50 = vmax.f32 %v6210_v4, 0.0  ;;  %v6332_v17 = vmax.f32 %v6204_v41, 0.0 }
 0x537   :  { %7512 = vmatmul.mubr.bf16.gmra.mxu1 %v6409_v61  ;;  %v6323_v61 = vmax.f32 %v6195_v2, 0.0  ;;  %v6417_v29 = vpack.c.bf16 %v6321_v12, %v6313_v30  ;;  %v6218_v2 = vadd.f32 %v13013_v38, %v6049_v18  ;;  %v6329_v31 = vmax.f32 %v6201_v0, 0.0  ;;  %v14361_v12 = vld [vmem:[#allocation137_spill] sm:$0xff] }
 0x538   :  { %8330 = vmatpush1.bf16.msra.mxu1 %v12792_v43  ;;  %7521 = vmatprep.mubr.bf16.mxu1 %v6418_v15  ;;  %v6203_v43 = vadd.f32 %v14322_v19, %v6034_v54  ;;  %v6340_v36 = vmax.f32 %v6212_v10, 0.0  ;;  %v6337_v44 = vmax.f32 %v6209_v3, 0.0  ;;  %v6051_v14 = vmul.f32 %v12516_v35, %v14358_v33  ;;  %v14359_v15 = vld [vmem:[#allocation129_spill] sm:$0xff]  ;;  %v14364_v3 = vld [vmem:[#allocation135_spill] sm:$0xff] }
 0x539   :  { %7625 = vmatmul.mubr.bf16.gmra.mxu0 %v6411_v8  ;;  %8315 = vmatprep.subr.bf16.mxu1 %v12802_v49  ;;  %v14357_v8 = vld [vmem:[#allocation82_spill] sm:$0xff]  ;;  %v6419_v60 = vpack.c.bf16 %v6323_v61, %v6315_v24  ;;  %v6339_v41 = vmax.f32 %v6211_v5, 0.0  ;;  %v6048_v30 = vmul.f32 %v12504_v40, %v14360_v58  ;;  %v6091_v39 = vmul.f32 %v12516_v35, %v14361_v12  ;;  %v14370_v58 = vld [vmem:[#allocation81_spill] sm:$0xff] }
 0x53a   :  { %7634 = vmatprep.mubr.bf16.mxu0 %v6420_v11  ;;  %v6057_v34 = vmul.f32 %v12508_v23, %v14357_v8  ;;  %v6059_v11 = vmul.f32 %v12516_v35, %v14359_v15  ;;  %v6331_v4 = vmax.f32 %v6203_v43, 0.0  ;;  %v6428_v10 = vpack.c.bf16 %v6340_v36, %v6332_v17  ;;  %v14363_v61 = vld [vmem:[#allocation126_spill] sm:$0xff] }
 0x53b   :  { %v6220_v37 = vadd.f32 %v13036_v16, %v6051_v14  ;;  %v6425_v54 = vpack.c.bf16 %v6337_v44, %v6329_v31  ;;  %v6056_v27 = vmul.f32 %v12504_v40, %v14362_v26  ;;  %v6050_v0 = vmul.f32 %v14319_v21, %v14363_v61  ;;  %v14369_v44 = vld [vmem:[#allocation133_spill] sm:$0xff] }
 0x53c   :  { %8331 = vmatpush1.bf16.msra.mxu1 %v12820_v45  ;;  %v6226_v49 = vadd.f32 %v13013_v38, %v6057_v34  ;;  %v6426_v45 = vpack.c.bf16 %v6338_v50, %v6330_v55  ;;  %v6228_v47 = vadd.f32 %v13036_v16, %v6059_v11  ;;  %v6427_v24 = vpack.c.bf16 %v6339_v41, %v6331_v4  ;;  %v14365_v55 = vld [vmem:[#allocation128_spill] sm:$0xff]  ;;  %v14366_v50 = vld [vmem:[#allocation97_spill] sm:$0xff] }
 0x53d   :  { %8316 = vmatprep.subr.bf16.mxu1 %v12835_v62  ;;  %v6346_v62 = vmax.f32 %v6218_v2, 0.0  ;;  %v6083_v43 = vmul.f32 %v12516_v35, %v14364_v3  ;;  %v6348_v5 = vmax.f32 %v6220_v37, 0.0  ;;  %v6225_v18 = vadd.f32 %v12636_v22, %v6056_v27  ;;  %v14372_v27 = vld [vmem:[#allocation130_spill] sm:$0xff]  ;;  %v14374_v3 = vld [vmem:[#allocation104_spill] sm:$0xff] }
 0x53e   :  { %v6354_v25 = vmax.f32 %v6226_v49, 0.0  ;;  %v6356_v63 = vmax.f32 %v6228_v47, 0.0  ;;  %v6260_v8 = vadd.f32 %v13036_v16, %v6091_v39  ;;  %v6065_v17 = vmul.f32 %v12508_v23, %v14366_v50  ;;  %v14368_v49 = vld [vmem:[#allocation131_spill] sm:$0xff] }
 0x53f   :  { %7522 = vmatmul.mubr.bf16.gmra.mxu1 %v6417_v29  ;;  %v6252_v36 = vadd.f32 %v13036_v16, %v6083_v43  ;;  %v14367_v29 = vld [vmem:[#allocation100_spill] sm:$0xff]  ;;  %v6067_v31 = vmul.f32 %v12516_v35, %v14368_v49  ;;  %v6219_v14 = vadd.f32 %v14322_v19, %v6050_v0  ;;  %v6081_v43 = vmul.f32 %v12508_v23, %v14374_v3  ;;  %v14376_v49 = vld [vmem:[#allocation101_spill] sm:$0xff] }
 0x540   :  { %8332 = vmatpush1.bf16.msra.mxu1 %v12856_v53  ;;  %7531 = vmatprep.mubr.bf16.mxu1 %v6426_v45  ;;  %v6217_v53 = vadd.f32 %v12636_v22, %v6048_v30  ;;  %v6434_v34 = vpack.c.bf16 %v6354_v25, %v6346_v62  ;;  %v6073_v2 = vmul.f32 %v12508_v23, %v14367_v29  ;;  %v6388_v33 = vmax.f32 %v6260_v8, 0.0 }
 0x541   :  { %7635 = vmatmul.mubr.bf16.gmra.mxu0 %v6419_v60  ;;  %8317 = vmatprep.subr.bf16.mxu1 %v12866_v32  ;;  %v6058_v32 = vmul.f32 %v14319_v21, %v14365_v55  ;;  %v6234_v11 = vadd.f32 %v13013_v38, %v6065_v17  ;;  %v6380_v60 = vmax.f32 %v6252_v36, 0.0  ;;  %v6436_v4 = vpack.c.bf16 %v6356_v63, %v6348_v5  ;;  %v14375_v5 = vld [vmem:[#allocation107_spill] sm:$0xff] }
 0x542   :  { %7644 = vmatprep.mubr.bf16.mxu0 %v6428_v10  ;;  %v6236_v41 = vadd.f32 %v13036_v16, %v6067_v31  ;;  %v6353_v10 = vmax.f32 %v6225_v18, 0.0  ;;  %v6347_v47 = vmax.f32 %v6219_v14, 0.0  ;;  %v6064_v30 = vmul.f32 %v12504_v40, %v14370_v58 }
 0x543   :  { %v6227_v15 = vadd.f32 %v14322_v19, %v6058_v32  ;;  %v13285_v37 = vpack.c.bf16 %v6388_v33, %v6380_v60  ;;  %v6362_v25 = vmax.f32 %v6234_v11, 0.0  ;;  %v6089_v63 = vmul.f32 %v12508_v23, %v14375_v5  ;;  %v14378_v11 = vld [vmem:[#allocation134_spill] sm:$0xff] }
 0x544   :  { %8333 = vmatpush1.bf16.msra.mxu1 %v12883_v56  ;;  %v6075_v56 = vmul.f32 %v12516_v35, %v14369_v44  ;;  %v6345_v35 = vmax.f32 %v6217_v53, 0.0  ;;  %v6364_v39 = vmax.f32 %v6236_v41, 0.0  ;;  %v14373_v53 = vld [vmem:[#allocation132_spill] sm:$0xff]  ;;  %v6233_v61 = vadd.f32 %v12636_v22, %v6064_v30  ;;  %v14377_v44 = vld [vmem:[#allocation105_spill] sm:$0xff] }
 0x545   :  { %8318 = vmatprep.subr.bf16.mxu1 %v12898_v9  ;;  %v6242_v9 = vadd.f32 %v13013_v38, %v6073_v2  ;;  %v6355_v62 = vmax.f32 %v6227_v15, 0.0  ;;  %v6258_v32 = vadd.f32 %v13013_v38, %v6089_v63  ;;  %v6080_v31 = vmul.f32 %v12504_v40, %v14376_v49 }
 0x546   :  { %v6244_v45 = vadd.f32 %v13036_v16, %v6075_v56  ;;  %v6433_v26 = vpack.c.bf16 %v6353_v10, %v6345_v35  ;;  %v6361_v50 = vmax.f32 %v6233_v61, 0.0  ;;  %v6088_v56 = vmul.f32 %v12504_v40, %v14377_v44 }
 0x547   :  { %7532 = vmatmul.mubr.bf16.gmra.mxu1 %v6425_v54  ;;  %v6370_v12 = vmax.f32 %v6242_v9, 0.0  ;;  %v14371_v54 = vld [vmem:[#allocation98_spill] sm:$0xff]  ;;  %v6386_v2 = vmax.f32 %v6258_v32, 0.0 }
 0x548   :  { %8334 = vmatpush2.bf16.msra.mxu1 %v12918_v59  ;;  %7541 = vmatprep.mubr.bf16.mxu1 %v6434_v34  ;;  %v6372_v16 = vmax.f32 %v6244_v45, 0.0  ;;  %v6072_v59 = vmul.f32 %v12504_v40, %v14371_v54  ;;  %v6257_v33 = vadd.f32 %v12636_v22, %v6088_v56  ;;  %v14381_v45 = vld [vmem:[#allocation58_spill] sm:$0xff] }
 0x549   :  { %7645 = vmatmul.mubr.bf16.gmra.mxu0 %v6427_v24  ;;  %8319 = vmatprep.subr.bf16.mxu1 %v12929_v57  ;;  %v6066_v24 = vmul.f32 %v14319_v21, %v14372_v27  ;;  %v6074_v57 = vmul.f32 %v14319_v21, %v14373_v53  ;;  %v6442_v34 = vpack.c.bf16 %v6370_v12, %v6362_v25 }
 0x54a   :  { %7654 = vmatprep.mubr.bf16.mxu0 %v6436_v4  ;;  %v6241_v0 = vadd.f32 %v12636_v22, %v6072_v59  ;;  %v6444_v55 = vpack.c.bf16 %v6372_v16, %v6364_v39  ;;  %v6385_v40 = vmax.f32 %v6257_v33, 0.0 }
 0x54b   :  { %v6235_v18 = vadd.f32 %v14322_v19, %v6066_v24  ;;  %v6243_v8 = vadd.f32 %v14322_v19, %v6074_v57 }
 0x54c   :  { %8335 = vmatpush2.bf16.msra.mxu1 %v12953_v51  ;;  %v6435_v51 = vpack.c.bf16 %v6355_v62, %v6347_v47  ;;  %v6369_v17 = vmax.f32 %v6241_v0, 0.0 }
 0x54d   :  { %8320 = vmatprep.subr.bf16.mxu1 %v12967_v7  ;;  %v6250_v7 = vadd.f32 %v13013_v38, %v6081_v43  ;;  %v6363_v23 = vmax.f32 %v6235_v18, 0.0  ;;  %v6371_v36 = vmax.f32 %v6243_v8, 0.0  ;;  %v6249_v38 = vadd.f32 %v12636_v22, %v6080_v31 }
 0x54f   :  { %7542 = vmatmul.mubr.bf16.gmra.mxu1 %v6433_v26  ;;  %v6378_v29 = vmax.f32 %v6250_v7, 0.0  ;;  %v6377_v15 = vmax.f32 %v6249_v38, 0.0 }
 0x550   :  { %8336 = vmatpush2.bf16.msra.mxu1 %v12985_v52  ;;  %7551 = vmatprep.mubr.bf16.mxu1 %v6442_v34  ;;  %v6441_v52 = vpack.c.bf16 %v6369_v17, %v6361_v50 }
 0x551   :  { %7655 = vmatmul.mubr.bf16.gmra.mxu0 %v6435_v51  ;;  %8321 = vmatprep.subr.bf16.mxu1 %v12997_v6  ;;  %v6443_v6 = vpack.c.bf16 %v6371_v36, %v6363_v23  ;;  %v6450_v14 = vpack.c.bf16 %v6386_v2, %v6378_v29  ;;  %v6449_v22 = vpack.c.bf16 %v6385_v40, %v6377_v15 }
 0x552   :  { %7664 = vmatprep.mubr.bf16.mxu0 %v6444_v55 }
 0x554   :  { %8337 = vmatpush2.bf16.msra.mxu1 %v13019_v42  ;;  %v6082_v42 = vmul.f32 %v14319_v21, %v14378_v11  ;;  %v6581_v11 = vld [vmem:[%s13574_s15] sm:$0x3]  ;;  %s8967_s15 = smov [#allocation7]  }
 0x555   :  { %8322 = vmatprep.subr.bf16.mxu1 %v13029_v48  ;;  %v14379_v48 = vld [vmem:[#allocation136_spill] sm:$0xff]  ;;  %s7754_s30 = sshll.u32 %s8967_s15, 4  ;;  %s7755_s30 = int_to_ptr.vmem [resolvable:$true] %s7754_s30 }
 0x556   :  { %v6090_v60 = vmul.f32 %v14319_v21, %v14379_v48  ;;  %v6251_v4 = vadd.f32 %v14322_v19, %v6082_v42  ;;  %s8900_s12 = scalar_lea.vmem %s7755_s30, 4096  ;;  %p8905_p11 = scmp.lt.s32.totalorder %s7755_s30, %s7755_s30 }
 0x557   :  { %7552 = vmatmul.mubr.bf16.gmra.mxu1 %v6441_v52  ;;  %p8901_p10 = scmp.ne.s32.totalorder %s7755_s30, %s8900_s12  ;;  %p8906_p12 = scmp.lt.s32.totalorder %s8900_s12, %s8900_s12 }
 0x558   :  { %8338 = vmatpush2.bf16.msra.mxu1 %v13049_v28  ;;  %7561 = vmatprep.mubr.bf16.mxu1 %v6450_v14  ;;  %v6259_v28 = vadd.f32 %v14322_v19, %v6090_v60  ;;  %v6379_v9 = vmax.f32 %v6251_v4, 0.0  ;;  %v14391_v4 = vld [vmem:[#allocation13_spill] sm:$0xff] }
 0x559   :  { %7665 = vmatmul.mubr.bf16.gmra.mxu0 %v6443_v6  ;;  %8323 = vmatprep.subr.bf16.mxu1 %v13063_v46  ;;  %v14380_v46 = vld [vmem:[#allocation35_spill] sm:$0xff]  ;;  %p8907_p13 = por %p8906_p12, %p8905_p11 }
 0x55a   :  { %v6387_v41 = vmax.f32 %v6259_v28, 0.0  ;;  %v13448_v28 = vrot.slane %v6581_v11, %v14391_v4 }
 0x55b   :  { %p8908_p0 = pnand %p8907_p13, %p8901_p10 }
 0x55c   :  { %8339 = vmatpush2.bf16.msra.mxu1 %v13080_v1  ;;  %v6451_v21 = vpack.c.bf16 %v6387_v41, %v6379_v9  ;;  %v14392_v41 = vld [vmem:[#allocation14_spill] sm:$0xff] }
 0x55d   :  { %8324 = vmatprep.subr.bf16.mxu1 %v13090_v20 }
 0x55f   :  { %7562 = vmatmul.mubr.bf16.gmra.mxu1 %v6449_v22 }
 0x560   :  { %8340 = vmatpush2.bf16.msra.mxu1 %v13110_v13  ;;  %7674 = vmatprep.mubr.bf16.mxu1 %v13285_v37 }
 0x561   :  { %8325 = vmatprep.subr.bf16.mxu1 %v14380_v46 }
 0x564   :  { %8341 = vmatpush2.bf16.msra.mxu1 %v14381_v45  ;;  %v13451_v45 = vrot.slane %v6581_v11, %v14392_v41 }
 0x567   :  { %7675 = vmatmul.mubr.bf16.vlgmr.msra.gmra.mxu1 %v6451_v21 }
 0x5a7   :  { %v13332_v1 = vpop.f32.mrf.mxu1 }
 0x5a8   :  { %v13334_v20 = vpop.f32.mrf.mxu0 }
 0x5a9   :  { %v13336_v35 = vpop.f32.mrf.mxu1 }
 0x5aa   :  { %v13338_v19 = vpop.f32.mrf.mxu0  ;;  %v7270_v4 = vadd.f32 %v13336_v35, %v13451_v45 }
 0x5ab   :  { %v13340_v10 = vpop.f32.mrf.mxu1 }
 0x5ac   :  { %v13342_v13 = vpop.f32.mrf.mxu0 }
 0x5ad   :  { %v13344_v37 = vpop.f32.mrf.mxu1 }
 0x5ae   :  { %v13346_v47 = vpop.f32.mrf.mxu0  ;;  %v7274_v35 = vadd.f32 %v13344_v37, %v13451_v45 }
 0x5af   :  { %v13348_v62 = vpop.f32.mrf.mxu1 }
 0x5b0   :  { %v13350_v25 = vpop.f32.mrf.mxu0 }
 0x5b1   :  { %v13352_v58 = vpop.f32.mrf.mxu1 }
 0x5b2   :  { %v13354_v30 = vpop.f32.mrf.mxu0 }
 0x5b3   :  { %v13356_v12 = vpop.f32.mrf.mxu1 }
 0x5b4   :  { %v13358_v39 = vpop.f32.mrf.mxu0 }
 0x5b5   :  { %v13360_v16 = vpop.f32.mrf.mxu1 }
 0x5b6   :  { %v13362_v54 = vpop.f32.mrf.mxu0 }
 0x5b7   :  { %v13364_v59 = vpop.f32.mrf.mxu1 }
 0x5b8   :  { %v13366_v26 = vpop.f32.mrf.mxu0 }
 0x5b9   :  { %v13368_v27 = vpop.f32.mrf.mxu1 }
 0x5ba   :  { %v13370_v24 = vpop.f32.mrf.mxu0 }
 0x5bb   :  { %v13372_v53 = vpop.f32.mrf.mxu1 }
 0x5bc   :  { %v13374_v57 = vpop.f32.mrf.mxu0 }
 0x5bd   :  { %v13376_v61 = vpop.f32.mrf.mxu1 }
 0x5be   :  { %v13378_v0 = vpop.f32.mrf.mxu0 }
 0x5bf   :  { %v13380_v3 = vpop.f32.mrf.mxu1 }
 0x5c0   :  { %v13382_v43 = vpop.f32.mrf.mxu0 }
 0x5c1   :  { %v13384_v5 = vpop.f32.mrf.mxu1 }
 0x5c2   :  { %v13386_v63 = vpop.f32.mrf.mxu0 }
 0x5c3   :  { %v13388_v51 = vpop.f32.mrf.mxu1 }
 0x5c4   :  { %v13390_v18 = vpop.f32.mrf.mxu0 }
 0x5c5   :  { %v13392_v8 = vpop.f32.mrf.mxu1 }
 0x5c6   :  { %v13394_v34 = vpop.f32.mrf.mxu0 }
 0x5c7   :  { %v13396_v55 = vpop.f32.mrf.mxu1 }
 0x5c8   :  { %v13398_v7 = vpop.f32.mrf.mxu0 }
 0x5c9   :  { %v13400_v32 = vpop.f32.mrf.mxu1 }
 0x5ca   :  { %v13402_v50 = vpop.f32.mrf.mxu0 }
 0x5cb   :  { %v13404_v17 = vpop.f32.mrf.mxu1 }
 0x5cc   :  { %v13406_v23 = vpop.f32.mrf.mxu0 }
 0x5cd   :  { %v13408_v36 = vpop.f32.mrf.mxu1 }
 0x5ce   :  { %v13410_v29 = vpop.f32.mrf.mxu0 }
 0x5cf   :  { %v13412_v2 = vpop.f32.mrf.mxu1 }
 0x5d0   :  { %v13414_v49 = vpop.f32.mrf.mxu0 }
 0x5d1   :  { %v13416_v31 = vpop.f32.mrf.mxu1 }
 0x5d2   :  { %v13418_v44 = vpop.f32.mrf.mxu0 }
 0x5d3   :  { %v13420_v56 = vpop.f32.mrf.mxu1 }
 0x5d4   :  { %v13422_v52 = vpop.f32.mrf.mxu0 }
 0x5d5   :  { %14382 = vst [vmem:[#allocation36_spill] sm:$0xff] %v13422_v52  ;;  %v13424_v38 = vpop.f32.mrf.mxu1 }
 0x5d6   :  { %v13426_v33 = vpop.f32.mrf.mxu0 }
 0x5d7   :  { %14383 = vst [vmem:[#allocation37_spill] sm:$0xff] %v13426_v33  ;;  %v13428_v6 = vpop.f32.mrf.mxu1 }
 0x5d8   :  { %v13430_v14 = vpop.f32.mrf.mxu0 }
 0x5d9   :  { %14384 = vst [vmem:[#allocation69_spill] sm:$0xff] %v13430_v14  ;;  %v13432_v15 = vpop.f32.mrf.mxu1 }
 0x5da   :  { %14385 = vst [vmem:[#allocation87_spill] sm:$0xff] %v13432_v15  ;;  %v13434_v40 = vpop.f32.mrf.mxu0 }
 0x5db   :  { %14386 = vst [vmem:[#allocation40_spill] sm:$0xff] %v13434_v40  ;;  %v13439_v42 = vpop.f32.mrf.mxu1 }
 0x5dc   :  { %14387 = vst [vmem:[#allocation38_spill] sm:$0xff] %v13439_v42  ;;  %v13441_v48 = vpop.f32.mrf.mxu0  ;;  %v7268_v42 = vadd.f32 %v13332_v1, %v13448_v28  ;;  %v7272_v1 = vadd.f32 %v13340_v10, %v13448_v28 }
 0x5dd   :  { %14388 = vst [vmem:[#allocation52_spill] sm:$0xff] %v13441_v48  ;;  %v13443_v60 = vpop.f32.mrf.mxu1 }
 0x5de   :  { %14389 = vst [vmem:[#allocation70_spill] sm:$0xff] %v13443_v60  ;;  %v13445_v22 = vpop.f32.mrf.mxu0  ;;  %v7381_v52 = vadd.f32 %v13334_v20, %v7268_v42  ;;  %v7278_v20 = vadd.f32 %v13348_v62, %v13448_v28  ;;  %v7385_v10 = vadd.f32 %v13342_v13, %v7272_v1  ;;  %v7282_v62 = vadd.f32 %v13356_v12, %v13448_v28 }
 0x5df   :  { %14390 = vst [vmem:[#allocation41_spill] sm:$0xff] %v13445_v22  ;;  %v7337_v46 = vpop.f32.mrf.mxu1 }
 0x5e0   :  { %v7450_v9 = vpop.f32.mrf.mxu0  ;;  %v7338_v21 = vadd.f32 %v7337_v46, %v13448_v28  ;;  %v7395_v12 = vadd.f32 %v13358_v39, %v7282_v62  ;;  %v7292_v39 = vadd.f32 %v13372_v53, %v13448_v28 }
 0x5e1   :  { %v7339_v40 = vpop.f32.mrf.mxu1 }
 0x5e2   :  { %v7452_v14 = vpop.f32.mrf.mxu0  ;;  %v13456_v48 = vadd.f32 %v7450_v9, %v7338_v21  ;;  %v7340_v60 = vadd.f32 %v7339_v40, %v13451_v45  ;;  %v7405_v53 = vadd.f32 %v13374_v57, %v7292_v39 }
 0x5e3   :  { %v7341_v22 = vpop.f32.mrf.mxu1 }
 0x5e4   :  { %14393 = vst [vmem:[#allocation42_spill] sm:$0xff] %v13456_v48  ;;  %v7454_v33 = vpop.f32.mrf.mxu0  ;;  %v13461_v15 = vadd.f32 %v7452_v14, %v7340_v60  ;;  %v7342_v11 = vadd.f32 %v7341_v22, %v13448_v28  ;;  %v7383_v48 = vadd.f32 %v13338_v19, %v7270_v4  ;;  %v7387_v4 = vadd.f32 %v13346_v47, %v7274_v35 }
 0x5e5   :  { %v7343_v41 = vpop.f32.mrf.mxu1  ;;  %v7284_v47 = vadd.f32 %v13360_v16, %v13451_v45 }
 0x5e6   :  { %v7456_v46 = vpop.f32.mrf.mxu0  ;;  %v13467_v9 = vadd.f32 %v7454_v33, %v7342_v11  ;;  %v7344_v40 = vadd.f32 %v7343_v41, %v13451_v45  ;;  %v7280_v41 = vadd.f32 %v13352_v58, %v13451_v45 }
 0x5e7   :  { %v7493_v21 = vpop.f32.mrf.mxu1  ;;  %v7397_v16 = vadd.f32 %v13362_v54, %v7284_v47  ;;  %v7294_v54 = vadd.f32 %v13376_v61, %v13451_v45  ;;  %v7300_v61 = vadd.f32 %v13384_v5, %v13451_v45 }
 0x5e8   :  { %14394 = vst [vmem:[#allocation18_spill] sm:$0xff] %v13467_v9  ;;  %v13473_v14 = vadd.f32 %v7456_v46, %v7344_v40  ;;  %v7494_v60 = vadd.f32 %v7493_v21, %v7381_v52  ;;  %v7391_v40 = vadd.f32 %v13350_v25, %v7278_v20  ;;  %v7288_v25 = vadd.f32 %v13364_v59, %v13448_v28 }
 0x5e9   :  { %v7606_v22 = vpop.f32.mrf.mxu0  ;;  %v7495_v42 = vpop.f32.mrf.mxu1 }
 0x5ea   :  { %v7607_v33 = vadd.f32 %v7606_v22, %v7494_v60  ;;  %v7496_v11 = vadd.f32 %v7495_v42, %v7383_v48  ;;  %v7393_v60 = vadd.f32 %v13354_v30, %v7280_v41  ;;  %v7290_v30 = vadd.f32 %v13368_v27, %v13451_v45 }
 0x5eb   :  { %v7608_v9 = vpop.f32.mrf.mxu0  ;;  %v7497_v19 = vpop.f32.mrf.mxu1 }
 0x5ec   :  { %8795 = vtanh.f32 %v7607_v33  ;;  %v7609_v37 = vadd.f32 %v7608_v9, %v7496_v11  ;;  %v7498_v46 = vadd.f32 %v7497_v19, %v7385_v10 }
 0x5ed   :  { %v7610_v52 = vpop.f32.mrf.mxu0  ;;  %v7499_v21 = vpop.f32.mrf.mxu1 }
 0x5ee   :  { %8797 = vtanh.f32 %v7609_v37  ;;  %v7611_v13 = vadd.f32 %v7610_v52, %v7498_v46  ;;  %v7500_v48 = vadd.f32 %v7499_v21, %v7387_v4  ;;  %v7401_v37 = vadd.f32 %v13366_v26, %v7288_v25 }
 0x5ef   :  { %v7612_v1 = vpop.f32.mrf.mxu0  ;;  %v7503_v58 = vpop.f32.mrf.mxu1  ;;  %v7403_v21 = vadd.f32 %v13370_v24, %v7290_v30  ;;  %v7298_v26 = vadd.f32 %v13380_v3, %v13448_v28 }
 0x5f0   :  { %8799 = vtanh.f32 %v7611_v13  ;;  %v7613_v9 = vadd.f32 %v7612_v1, %v7500_v48  ;;  %v7504_v35 = vadd.f32 %v7503_v58, %v7391_v40 }
 0x5f1   :  { %v7616_v22 = vpop.f32.mrf.mxu0  ;;  %v7505_v20 = vpop.f32.mrf.mxu1  ;;  %v7411_v57 = vadd.f32 %v13382_v43, %v7298_v26 }
 0x5f2   :  { %8801 = vtanh.f32 %v7613_v9  ;;  %v7617_v42 = vadd.f32 %v7616_v22, %v7504_v35  ;;  %v7506_v10 = vadd.f32 %v7505_v20, %v7393_v60  ;;  %v7407_v22 = vadd.f32 %v13378_v0, %v7294_v54 }
 0x5f3   :  { %v7618_v33 = vpop.f32.mrf.mxu0  ;;  %v7507_v11 = vpop.f32.mrf.mxu1  ;;  %v7413_v0 = vadd.f32 %v13386_v63, %v7300_v61 }
 0x5f4   :  { %8803 = vtanh.f32 %v7617_v42  ;;  %v7619_v41 = vadd.f32 %v7618_v33, %v7506_v10  ;;  %v7508_v19 = vadd.f32 %v7507_v11, %v7395_v12  ;;  %v7302_v10 = vadd.f32 %v13388_v51, %v13448_v28 }
 0x5f5   :  { %v7620_v4 = vpop.f32.mrf.mxu0  ;;  %v7509_v59 = vpop.f32.mrf.mxu1  ;;  %v7308_v51 = vadd.f32 %v13396_v55, %v13448_v28 }
 0x5f6   :  { %8805 = vtanh.f32 %v7619_v41  ;;  %v7621_v46 = vadd.f32 %v7620_v4, %v7508_v19  ;;  %v7510_v52 = vadd.f32 %v7509_v59, %v7397_v16  ;;  %v7304_v41 = vadd.f32 %v13392_v8, %v13451_v45 }
 0x5f7   :  { %v7622_v40 = vpop.f32.mrf.mxu0  ;;  %v7513_v27 = vpop.f32.mrf.mxu1  ;;  %v7415_v39 = vadd.f32 %v13390_v18, %v7302_v10  ;;  %v7310_v8 = vadd.f32 %v13400_v32, %v13451_v45  ;;  %v7421_v18 = vadd.f32 %v13398_v7, %v7308_v51 }
 0x5f8   :  { %8807 = vtanh.f32 %v7621_v46  ;;  %v7623_v62 = vadd.f32 %v7622_v40, %v7510_v52  ;;  %v7514_v13 = vadd.f32 %v7513_v27, %v7401_v37  ;;  %v7417_v27 = vadd.f32 %v13394_v34, %v7304_v41 }
 0x5f9   :  { %v7626_v48 = vpop.f32.mrf.mxu0  ;;  %v8796_v1 = vpop.eup %8795  ;;  %v7423_v34 = vadd.f32 %v13402_v50, %v7310_v8 }
 0x5fa   :  { %v7515_v60 = vpop.f32.mrf.mxu1  ;;  %7717 = vst [vmem:[#allocation7] sm:$0xff] %v8796_v1  ;;  %8809 = vtanh.f32 %v7623_v62  ;;  %v7627_v58 = vadd.f32 %v7626_v48, %v7514_v13  ;;  %v7312_v1 = vadd.f32 %v13404_v17, %v13448_v28  ;;  %v7318_v17 = vadd.f32 %v13412_v2, %v13448_v28 }
 0x5fb   :  { %v7516_v47 = vadd.f32 %v7515_v60, %v7403_v21  ;;  %v7628_v24 = vpop.f32.mrf.mxu0  ;;  %v8798_v9 = vpop.eup %8797 }
 0x5fc   :  { %v7517_v35 = vpop.f32.mrf.mxu1  ;;  %7718 = vst [vmem:[#allocation7 + $0x8] sm:$0xff] %v8798_v9  ;;  %8811 = vtanh.f32 %v7627_v58 }
 0x5fd   :  { %v7629_v25 = vadd.f32 %v7628_v24, %v7516_v47  ;;  %v7518_v20 = vadd.f32 %v7517_v35, %v7405_v53  ;;  %v7630_v3 = vpop.f32.mrf.mxu0  ;;  %v8800_v12 = vpop.eup %8799  ;;  %v7314_v47 = vadd.f32 %v13408_v36, %v13451_v45  ;;  %v7320_v36 = vadd.f32 %v13416_v31, %v13451_v45 }
 0x5fe   :  { %v7519_v42 = vpop.f32.mrf.mxu1  ;;  %7719 = vst [vmem:[#allocation7 + $0x10] sm:$0xff] %v8800_v12 }
 0x5ff   :  { %8813 = vtanh.f32 %v7629_v25  ;;  %v7631_v33 = vadd.f32 %v7630_v3, %v7518_v20  ;;  %v7520_v30 = vadd.f32 %v7519_v42, %v7407_v22  ;;  %v7632_v5 = vpop.f32.mrf.mxu0  ;;  %v8802_v11 = vpop.eup %8801  ;;  %v7425_v22 = vadd.f32 %v13406_v23, %v7312_v1  ;;  %v14399_v1 = vld [vmem:[#allocation38_spill] sm:$0xff] }
 0x600   :  { %v7523_v16 = vpop.f32.mrf.mxu1  ;;  %7720 = vst [vmem:[#allocation7 + $0x18] sm:$0xff] %v8802_v11  ;;  %v7431_v23 = vadd.f32 %v13414_v49, %v7318_v17 }
 0x601   :  { %8815 = vtanh.f32 %v7631_v33  ;;  %v7633_v19 = vadd.f32 %v7632_v5, %v7520_v30  ;;  %v7524_v43 = vadd.f32 %v7523_v16, %v7411_v57  ;;  %v7636_v4 = vpop.f32.mrf.mxu0  ;;  %v8804_v37 = vpop.eup %8803  ;;  %v7427_v57 = vadd.f32 %v13410_v29, %v7314_v47 }
 0x602   :  { %v7525_v59 = vpop.f32.mrf.mxu1  ;;  %7721 = vst [vmem:[#allocation7 + $0x20] sm:$0xff] %v8804_v37  ;;  %v7322_v5 = vadd.f32 %v13420_v56, %v13448_v28  ;;  %v7433_v29 = vadd.f32 %v13418_v44, %v7320_v36  ;;  %v7328_v56 = vadd.f32 %v13428_v6, %v13448_v28 }
 0x603   :  { %8817 = vtanh.f32 %v7633_v19  ;;  %v7637_v46 = vadd.f32 %v7636_v4, %v7524_v43  ;;  %v7526_v63 = vadd.f32 %v7525_v59, %v7413_v0  ;;  %v7638_v52 = vpop.f32.mrf.mxu0  ;;  %v8806_v40 = vpop.eup %8805  ;;  %v7324_v19 = vadd.f32 %v13424_v38, %v13451_v45  ;;  %v14395_v59 = vld [vmem:[#allocation36_spill] sm:$0xff]  ;;  %v14396_v38 = vld [vmem:[#allocation87_spill] sm:$0xff] }
 0x604   :  { %v7527_v21 = vpop.f32.mrf.mxu1  ;;  %7722 = vst [vmem:[#allocation7 + $0x28] sm:$0xff] %v8806_v40  ;;  %v7330_v40 = vadd.f32 %v14396_v38, %v13451_v45  ;;  %v14405_v38 = vld [vmem:[#allocation18_spill] sm:$0xff] }
 0x605   :  { %8819 = vtanh.f32 %v7637_v46  ;;  %v7639_v54 = vadd.f32 %v7638_v52, %v7526_v63  ;;  %v7528_v62 = vadd.f32 %v7527_v21, %v7415_v39  ;;  %v7640_v55 = vpop.f32.mrf.mxu0  ;;  %v8808_v13 = vpop.eup %8807  ;;  %v7435_v39 = vadd.f32 %v14395_v59, %v7322_v5  ;;  %v14397_v21 = vld [vmem:[#allocation37_spill] sm:$0xff] }
 0x606   :  { %v7529_v48 = vpop.f32.mrf.mxu1  ;;  %7723 = vst [vmem:[#allocation7 + $0x30] sm:$0xff] %v8808_v13  ;;  %v14398_v13 = vld [vmem:[#allocation69_spill] sm:$0xff] }
 0x607   :  { %8821 = vtanh.f32 %v7639_v54  ;;  %v7641_v26 = vadd.f32 %v7640_v55, %v7528_v62  ;;  %v7530_v60 = vadd.f32 %v7529_v48, %v7417_v27  ;;  %v7642_v32 = vpop.f32.mrf.mxu0  ;;  %v8810_v53 = vpop.eup %8809  ;;  %v7437_v27 = vadd.f32 %v14397_v21, %v7324_v19 }
 0x608   :  { %v7533_v58 = vpop.f32.mrf.mxu1  ;;  %7724 = vst [vmem:[#allocation7 + $0x38] sm:$0xff] %v8810_v53 }
 0x609   :  { %8823 = vtanh.f32 %v7641_v26  ;;  %v7643_v24 = vadd.f32 %v7642_v32, %v7530_v60  ;;  %v7534_v7 = vadd.f32 %v7533_v58, %v7421_v18  ;;  %v7646_v9 = vpop.f32.mrf.mxu0  ;;  %v8812_v61 = vpop.eup %8811  ;;  %v7441_v18 = vadd.f32 %v14398_v13, %v7328_v56  ;;  %v14400_v58 = vld [vmem:[#allocation40_spill] sm:$0xff]  ;;  %v14404_v56 = vld [vmem:[#allocation42_spill] sm:$0xff] }
 0x60a   :  { %v7535_v35 = vpop.f32.mrf.mxu1  ;;  %7725 = vst [vmem:[#allocation7 + $0x40] sm:$0xff] %v8812_v61  ;;  %v7332_v26 = vadd.f32 %v14399_v1, %v13448_v28  ;;  %v7443_v47 = vadd.f32 %v14400_v58, %v7330_v40  ;;  %v14402_v28 = vld [vmem:[#allocation52_spill] sm:$0xff] }
 0x60b   :  { %8825 = vtanh.f32 %v7643_v24  ;;  %v7647_v25 = vadd.f32 %v7646_v9, %v7534_v7  ;;  %v7536_v50 = vadd.f32 %v7535_v35, %v7423_v34  ;;  %v7648_v20 = vpop.f32.mrf.mxu0  ;;  %v14401_v7 = vld [vmem:[#allocation70_spill] sm:$0xff] }
 0x60c   :  { %v8814_v3 = vpop.eup %8813  ;;  %v7537_v12 = vpop.f32.mrf.mxu1  ;;  %v7334_v9 = vadd.f32 %v14401_v7, %v13451_v45 }
 0x60d   :  { %7726 = vst [vmem:[#allocation7 + $0x48] sm:$0xff] %v8814_v3  ;;  %8827 = vtanh.f32 %v7647_v25  ;;  %v7649_v42 = vadd.f32 %v7648_v20, %v7536_v50  ;;  %v7538_v10 = vadd.f32 %v7537_v12, %v7425_v22  ;;  %v7650_v2 = vpop.f32.mrf.mxu0  ;;  %v7445_v50 = vadd.f32 %v14402_v28, %v7332_v26 }
 0x60e   :  { %v8816_v33 = vpop.eup %8815  ;;  %v7539_v30 = vpop.f32.mrf.mxu1 }
 0x60f   :  { %7727 = vst [vmem:[#allocation7 + $0x50] sm:$0xff] %v8816_v33  ;;  %8829 = vtanh.f32 %v7649_v42  ;;  %v7651_v11 = vadd.f32 %v7650_v2, %v7538_v10  ;;  %v7540_v0 = vadd.f32 %v7539_v30, %v7427_v57  ;;  %v7652_v31 = vpop.f32.mrf.mxu0  ;;  %v14403_v42 = vld [vmem:[#allocation41_spill] sm:$0xff] }
 0x610   :  { %v8818_v16 = vpop.eup %8817  ;;  %v7543_v41 = vpop.f32.mrf.mxu1  ;;  %v7447_v10 = vadd.f32 %v14403_v42, %v7334_v9 }
 0x611   :  { %7728 = vst [vmem:[#allocation7 + $0x58] sm:$0xff] %v8818_v16  ;;  %8831 = vtanh.f32 %v7651_v11  ;;  %v7653_v43 = vadd.f32 %v7652_v31, %v7540_v0  ;;  %v7544_v49 = vadd.f32 %v7543_v41, %v7431_v23  ;;  %v7656_v4 = vpop.f32.mrf.mxu0 }
 0x612   :  { %v8820_v37 = vpop.eup %8819  ;;  %v7545_v51 = vpop.f32.mrf.mxu1 }
 0x613   :  { %7729 = vst [vmem:[#allocation7 + $0x60] sm:$0xff] %v8820_v37  ;;  %8833 = vtanh.f32 %v7653_v43  ;;  %v7657_v46 = vadd.f32 %v7656_v4, %v7544_v49  ;;  %v7546_v44 = vadd.f32 %v7545_v51, %v7433_v29  ;;  %v7658_v63 = vpop.f32.mrf.mxu0 }
 0x614   :  { %v8822_v52 = vpop.eup %8821  ;;  %v7547_v8 = vpop.f32.mrf.mxu1 }
 0x615   :  { %7730 = vst [vmem:[#allocation7 + $0x68] sm:$0xff] %v8822_v52  ;;  %8835 = vtanh.f32 %v7657_v46  ;;  %v7659_v54 = vadd.f32 %v7658_v63, %v7546_v44  ;;  %v7548_v62 = vadd.f32 %v7547_v8, %v7435_v39  ;;  %v7660_v6 = vpop.f32.mrf.mxu0 }
 0x616   :  { %v8824_v55 = vpop.eup %8823  ;;  %v7549_v48 = vpop.f32.mrf.mxu1 }
 0x617   :  { %7731 = vst [vmem:[#allocation7 + $0x70] sm:$0xff] %v8824_v55  ;;  %8837 = vtanh.f32 %v7659_v54  ;;  %v7661_v60 = vadd.f32 %v7660_v6, %v7548_v62  ;;  %v7550_v32 = vadd.f32 %v7549_v48, %v7437_v27  ;;  %v7662_v53 = vpop.f32.mrf.mxu0 }
 0x618   :  { %v8826_v34 = vpop.eup %8825  ;;  %v7553_v24 = vpop.f32.mrf.mxu1 }
 0x619   :  { %7732 = vst [vmem:[#allocation7 + $0x78] sm:$0xff] %v8826_v34  ;;  %8839 = vtanh.f32 %v7661_v60  ;;  %v7663_v61 = vadd.f32 %v7662_v53, %v7550_v32  ;;  %v7554_v17 = vadd.f32 %v7553_v24, %v7441_v18  ;;  %v7666_v35 = vpop.f32.mrf.mxu0 }
 0x61a   :  { %v8828_v22 = vpop.eup %8827  ;;  %v7555_v25 = vpop.f32.mrf.mxu1 }
 0x61b   :  { %7733 = vst [vmem:[#allocation7 + $0x80] sm:$0xff] %v8828_v22  ;;  %8841 = vtanh.f32 %v7663_v61  ;;  %v7667_v20 = vadd.f32 %v7666_v35, %v7554_v17  ;;  %v7556_v3 = vadd.f32 %v7555_v25, %v7443_v47  ;;  %v7668_v36 = vpop.f32.mrf.mxu0 }
 0x61c   :  { %v8830_v12 = vpop.eup %8829  ;;  %v7557_v57 = vpop.f32.mrf.mxu1 }
 0x61d   :  { %7734 = vst [vmem:[#allocation7 + $0x88] sm:$0xff] %v8830_v12  ;;  %8843 = vtanh.f32 %v7667_v20  ;;  %v7669_v45 = vadd.f32 %v7668_v36, %v7556_v3  ;;  %v7558_v2 = vadd.f32 %v7557_v57, %v7445_v50  ;;  %v7670_v33 = vpop.f32.mrf.mxu0 }
 0x61e   :  { %v8832_v23 = vpop.eup %8831  ;;  %v7559_v30 = vpop.f32.mrf.mxu1 }
 0x61f   :  { %7735 = vst [vmem:[#allocation7 + $0x90] sm:$0xff] %v8832_v23  ;;  %8845 = vtanh.f32 %v7669_v45  ;;  %v7671_v5 = vadd.f32 %v7670_v33, %v7558_v2  ;;  %v7560_v11 = vadd.f32 %v7559_v30, %v7447_v10  ;;  %v7672_v31 = vpop.f32.mrf.mxu0 }
 0x620   :  { %v8834_v0 = vpop.eup %8833  ;;  %v7563_v16 = vpop.f32.mrf.mxu1 }
 0x621   :  { %7736 = vst [vmem:[#allocation7 + $0x98] sm:$0xff] %v8834_v0  ;;  %8847 = vtanh.f32 %v7671_v5  ;;  %v7673_v29 = vadd.f32 %v7672_v31, %v7560_v11  ;;  %v7564_v51 = vadd.f32 %v7563_v16, %v14404_v56 }
 0x622   :  { %v8836_v41 = vpop.eup %8835  ;;  %v7565_v19 = vpop.f32.mrf.mxu1 }
 0x623   :  { %7737 = vst [vmem:[#allocation7 + $0xa0] sm:$0xff] %v8836_v41  ;;  %8849 = vtanh.f32 %v7673_v29  ;;  %v7566_v46 = vadd.f32 %v7565_v19, %v13461_v15 }
 0x624   :  { %v8838_v43 = vpop.eup %8837  ;;  %v7567_v49 = vpop.f32.mrf.mxu1 }
 0x625   :  { %7738 = vst [vmem:[#allocation7 + $0xa8] sm:$0xff] %v8838_v43  ;;  %v7568_v40 = vadd.f32 %v7567_v49, %v14405_v38 }
 0x626   :  { %v8840_v4 = vpop.eup %8839  ;;  %v7569_v37 = vpop.f32.mrf.mxu1 }
 0x627   :  { %7739 = vst [vmem:[#allocation7 + $0xb0] sm:$0xff] %v8840_v4  ;;  %v7570_v54 = vadd.f32 %v7569_v37, %v13473_v14 }
 0x628   :  { %v8842_v59 = vpop.eup %8841  ;;  %v7676_v39 = vpop.f32.mrf.mxu1 }
 0x629   :  { %7740 = vst [vmem:[#allocation7 + $0xb8] sm:$0xff] %v8842_v59  ;;  %v7677_v44 = vadd.f32 %v7676_v39, %v7564_v51 }
 0x62a   :  { %v8844_v63 = vpop.eup %8843  ;;  %v7678_v52 = vpop.f32.mrf.mxu1 }
 0x62b   :  { %7741 = vst [vmem:[#allocation7 + $0xc0] sm:$0xff] %v8844_v63  ;;  %8851 = vtanh.f32 %v7677_v44  ;;  %v7679_v8 = vadd.f32 %v7678_v52, %v7566_v46 }
 0x62c   :  { %v8846_v21 = vpop.eup %8845  ;;  %v7680_v27 = vpop.f32.mrf.mxu1 }
 0x62d   :  { %7742 = vst [vmem:[#allocation7 + $0xc8] sm:$0xff] %v8846_v21  ;;  %8853 = vtanh.f32 %v7679_v8  ;;  %v7681_v62 = vadd.f32 %v7680_v27, %v7568_v40 }
 0x62e   :  { %v8848_v6 = vpop.eup %8847  ;;  %v7682_v55 = vpop.f32.mrf.mxu1 }
 0x62f   :  { %7743 = vst [vmem:[#allocation7 + $0xd0] sm:$0xff] %v8848_v6  ;;  %8855 = vtanh.f32 %v7681_v62  ;;  %v7683_v15 = vadd.f32 %v7682_v55, %v7570_v54 }
 0x630   :  { %v8850_v13 = vpop.eup %8849 }
 0x631   :  { %7744 = vst [vmem:[#allocation7 + $0xd8] sm:$0xff] %v8850_v13  ;;  %8857 = vtanh.f32 %v7683_v15 }
 0x638   :  { %v8852_v18 = vpop.eup %8851 }
 0x639   :  { %7745 = vst [vmem:[#allocation7 + $0xe0] sm:$0xff] %v8852_v18 }
 0x63a   :  { %v8854_v48 = vpop.eup %8853 }
 0x63b   :  { %7746 = vst [vmem:[#allocation7 + $0xe8] sm:$0xff] %v8854_v48 }
 0x63c   :  { %v8856_v1 = vpop.eup %8855 }
 0x63d   :  { %7747 = vst [vmem:[#allocation7 + $0xf0] sm:$0xff] %v8856_v1 }
 0x63e   :  { %v8858_v14 = vpop.eup %8857 }
 0x63f   :  { %7748 = vst [vmem:[#allocation7 + $0xf8] sm:$0xff] %v8858_v14 }
 0x640   :  { %8911 = shalt.err (!%p8908_p0)
}
 0x641   :  { %7760 = dma.vmem_to_hbm [thread:$0]  %s7755_s30, 4096, %s13575_s16, [#allocation4], %s8959_s24, %s8959_s24, %s8960_s25  }
 0x642   :  { %8924 = dma.done.wait [#allocation4], 4096  }
 0x643   :  { %8925 = vsyncadd [#allocation4], 4294963200 }
 0x644   :  { %7764 = vsyncpa [#allocation3], 1 }
 0x645   :  { %7765 = vsyncpa [#allocation6], 1 }
 0x646   :  { %7766 = vsyncpa [#allocation4], 1 }

</bundles_post_ra>
